<compile_context>
chip_gen: v7x
topology: tpu7x:2x2x1
jax: 0.10.0
libtpu: 0.0.40
codegen_flags: <defaults>
</compile_context>

<pallas_src>
import functools

import jax
import jax.numpy as jnp
import numpy as np
from jax.experimental import pallas as pl
from jax.experimental.pallas import tpu as pltpu


def _round_up(x, m):
    return (x + m - 1) // m * m


def _pick_tm(m, cap):
    """Largest multiple-of-8 M tile <= cap that avoids (or minimizes) padding."""
    mr = _round_up(m, 8)
    if mr <= cap:
        return mr
    for t in range(cap, 7, -8):
        if mr % t == 0:
            return t
    return cap


def _resident_spec(block_shape, index_map):
    """Grid-invariant operand: ask for a single (non double-buffered) buffer."""
    try:
        return pl.BlockSpec(block_shape, index_map, pipeline_mode=pl.Buffered(1))
    except (TypeError, AttributeError):
        return pl.BlockSpec(block_shape, index_map)


def _space_to_depth(x_nhwc, s):
    """(B, H, W, C) -> (B, H/s, W/s, s*s*C), channel order (row-phase, col-phase, c)."""
    B, H, W, C = x_nhwc.shape
    return (x_nhwc.reshape(B, H // s, s, W // s, s, C)
            .transpose(0, 1, 3, 2, 4, 5)
            .reshape(B, H // s, W // s, s * s * C))


# ----------------------------------------------------------------------------
# Kernel 1: conv1 (8x8 stride 4) on the space-to-depth(4) input.
#   After s2d-by-4 the conv is a 2x2, stride-1 conv with 64 input channels.
# ----------------------------------------------------------------------------
def _conv1_kernel(x_ref, w_ref, b_ref, o_ref, patch_ref):
    # x_ref: (1, 21, 21, 64) f32    w_ref: (256, 32) bf16    b_ref: (1, 32) f32
    # o_ref: (1, 400, 32) f32  (row = oy*20 + ox)
    # patch_ref: (400, 256) f32 VMEM scratch (im2col patches)
    for oy in range(20):
        parts = [x_ref[0, oy + di, pl.ds(dj, 20), :]
                 for di in range(2) for dj in range(2)]
        patch_ref[pl.ds(oy * 20, 20), :] = jnp.concatenate(parts, axis=-1)
    h = jnp.dot(patch_ref[...].astype(jnp.bfloat16), w_ref[...],
                preferred_element_type=jnp.float32)
    o_ref[0] = jnp.maximum(h + b_ref[...], 0.0)


def conv1_call(x_s2d, w, b):
    B = x_s2d.shape[0]
    return pl.pallas_call(
        _conv1_kernel,
        out_shape=jax.ShapeDtypeStruct((B, 400, 32), jnp.float32),
        grid_spec=pltpu.PrefetchScalarGridSpec(
            num_scalar_prefetch=0,
            grid=(B,),
            in_specs=[
                pl.BlockSpec((1, 21, 21, 64), lambda i: (i, 0, 0, 0)),
                pl.BlockSpec((256, 32), lambda i: (0, 0)),
                pl.BlockSpec((1, 32), lambda i: (0, 0)),
            ],
            out_specs=pl.BlockSpec((1, 400, 32), lambda i: (i, 0, 0)),
            scratch_shapes=[pltpu.VMEM((400, 256), jnp.float32)],
        ),
        compiler_params=pltpu.CompilerParams(dimension_semantics=("parallel",)),
    )(x_s2d, w, b)


# ----------------------------------------------------------------------------
# Kernel 2: fused conv2 (4x4 s2, via s2d-by-2 of h1 -> 2x2 s1, C=128) + conv3
# (3x3 s1).  Intermediate 9x9x64 activation stays in registers/VMEM.
# ----------------------------------------------------------------------------
def _conv23_kernel(h1_ref, w2_ref, b2_ref, w3_ref, b3_ref, o_ref, p2_ref, p3_ref):
    # h1_ref: (1, 10, 10, 128) f32   w2_ref: (512, 64) bf16   w3_ref: (576, 64) bf16
    # o_ref: (1, 49, 64) f32  (row = oy*7 + ox, i.e. NHWC flatten of conv3 output)
    # p2_ref: (81, 512) f32 scratch   p3_ref: (49, 576) f32 scratch
    for oy in range(9):
        parts = [h1_ref[0, oy + di, pl.ds(dj, 9), :]
                 for di in range(2) for dj in range(2)]
        p2_ref[pl.ds(oy * 9, 9), :] = jnp.concatenate(parts, axis=-1)
    h2 = jnp.dot(p2_ref[...].astype(jnp.bfloat16), w2_ref[...],
                 preferred_element_type=jnp.float32)
    h2 = jnp.maximum(h2 + b2_ref[...], 0.0)          # (81, 64), row = oy2*9 + ox2

    for oy in range(7):
        parts = [h2[(oy + di) * 9 + dj:(oy + di) * 9 + dj + 7, :]
                 for di in range(3) for dj in range(3)]
        p3_ref[pl.ds(oy * 7, 7), :] = jnp.concatenate(parts, axis=-1)
    h3 = jnp.dot(p3_ref[...].astype(jnp.bfloat16), w3_ref[...],
                 preferred_element_type=jnp.float32)
    o_ref[0] = jnp.maximum(h3 + b3_ref[...], 0.0)


def conv23_call(h1_s2d, w2, b2, w3, b3):
    B = h1_s2d.shape[0]
    return pl.pallas_call(
        _conv23_kernel,
        out_shape=jax.ShapeDtypeStruct((B, 49, 64), jnp.float32),
        grid_spec=pltpu.PrefetchScalarGridSpec(
            num_scalar_prefetch=0,
            grid=(B,),
            in_specs=[
                pl.BlockSpec((1, 10, 10, 128), lambda i: (i, 0, 0, 0)),
                pl.BlockSpec((512, 64), lambda i: (0, 0)),
                pl.BlockSpec((1, 64), lambda i: (0, 0)),
                pl.BlockSpec((576, 64), lambda i: (0, 0)),
                pl.BlockSpec((1, 64), lambda i: (0, 0)),
            ],
            out_specs=pl.BlockSpec((1, 49, 64), lambda i: (i, 0, 0)),
            scratch_shapes=[pltpu.VMEM((81, 512), jnp.float32),
                            pltpu.VMEM((49, 576), jnp.float32)],
        ),
        compiler_params=pltpu.CompilerParams(dimension_semantics=("parallel",)),
    )(h1_s2d, w2, b2, w3, b3)


# ----------------------------------------------------------------------------
# Kernel 3: fused FC head  q = relu(A @ W1 + b1) @ W2 + b2  (weights resident)
# ----------------------------------------------------------------------------
def _mlp_head_kernel(a_ref, w1_ref, b1_ref, w2_ref, b2_ref, o_ref):
    h = jnp.dot(a_ref[...].astype(jnp.bfloat16), w1_ref[...],
                preferred_element_type=jnp.float32)
    h = jnp.maximum(h + b1_ref[...], 0.0)
    q = jnp.dot(h.astype(jnp.bfloat16), w2_ref[...],
                preferred_element_type=jnp.float32)
    o_ref[...] = q + b2_ref[...]


def mlp_head(a, w1, b1, w2, b2, *, tm_cap=128):
    """a: (M, 3136) f32; w1: (3136, 512) bf16; w2: (512, Np) bf16, Np % 128 == 0."""
    M, K = a.shape
    K1, H = w1.shape
    H2, Np = w2.shape
    assert K == K1 and H == H2 and Np % 128 == 0
    tm = _pick_tm(M, tm_cap)
    Mp = _round_up(M, tm)
    if Mp != M:
        a = jnp.pad(a, ((0, Mp - M), (0, 0)))

    out = pl.pallas_call(
        _mlp_head_kernel,
        out_shape=jax.ShapeDtypeStruct((Mp, Np), jnp.float32),
        grid_spec=pltpu.PrefetchScalarGridSpec(
            num_scalar_prefetch=0,
            grid=(Mp // tm,),
            in_specs=[
                pl.BlockSpec((tm, K), lambda i: (i, 0)),
                _resident_spec((K, H), lambda i: (0, 0)),     # fc1 weight, 1 buffer
                _resident_spec((1, H), lambda i: (0, 0)),
                _resident_spec((H, Np), lambda i: (0, 0)),    # fc2 weight, 1 buffer
                _resident_spec((1, Np), lambda i: (0, 0)),
            ],
            out_specs=pl.BlockSpec((tm, Np), lambda i: (i, 0)),
        ),
        compiler_params=pltpu.CompilerParams(dimension_semantics=("parallel",)),
    )(a, w1, b1, w2, b2)
    return out[:M]


# ----------------------------------------------------------------------------
# Params (PyTorch layout) + one-time kernel-layout / bf16 preparation
# ----------------------------------------------------------------------------
def init_params(key, n_actions):
    ks = jax.random.split(key, 10)

    def u(k, shape, fan_in):
        bound = 1.0 / float(np.sqrt(fan_in))
        return jax.random.uniform(k, shape, jnp.float32, -bound, bound)

    return {
        "c1_w": u(ks[0], (32, 4, 8, 8), 4 * 8 * 8),
        "c1_b": u(ks[1], (32,), 4 * 8 * 8),
        "c2_w": u(ks[2], (64, 32, 4, 4), 32 * 4 * 4),
        "c2_b": u(ks[3], (64,), 32 * 4 * 4),
        "c3_w": u(ks[4], (64, 64, 3, 3), 64 * 3 * 3),
        "c3_b": u(ks[5], (64,), 64 * 3 * 3),
        "fc1_w": u(ks[6], (512, 3136), 3136),
        "fc1_b": u(ks[7], (512,), 3136),
        "fc2_w": u(ks[8], (n_actions, 512), 512),
        "fc2_b": u(ks[9], (n_actions,), 512),
    }


def prepare_params(params):
    """One-time conversion of PyTorch-layout f32 params to kernel-ready bf16 layout."""
    bf16, f32 = jnp.bfloat16, jnp.float32

    # conv1 (OIHW 32,4,8,8) -> (256, 32); row = (di*2+dj)*64 + p*16 + q*4 + c
    # matching the space-to-depth(4) input channel order; /255 folded in.
    w = params["c1_w"].transpose(2, 3, 1, 0)                     # (ki, kj, c, oc)
    w = w.reshape(2, 4, 2, 4, 4, 32).transpose(0, 2, 1, 3, 4, 5).reshape(256, 32)
    c1_w = (w / 255.0).astype(bf16)
    c1_b = params["c1_b"].reshape(1, 32).astype(f32)

    # conv2 (64,32,4,4) -> (512, 64); row = (di*2+dj)*128 + p*64 + q*32 + c
    # matching the space-to-depth(2) layout of conv1's output.
    w = params["c2_w"].transpose(2, 3, 1, 0)                     # (ki, kj, c, oc)
    w = w.reshape(2, 2, 2, 2, 32, 64).transpose(0, 2, 1, 3, 4, 5).reshape(512, 64)
    c2_w = w.astype(bf16)
    c2_b = params["c2_b"].reshape(1, 64).astype(f32)

    # conv3 (64,64,3,3) -> (576, 64); row = (di*3+dj)*64 + c.
    c3_w = params["c3_w"].transpose(2, 3, 1, 0).reshape(576, 64).astype(bf16)
    c3_b = params["c3_b"].reshape(1, 64).astype(f32)

    # fc1: PyTorch flattens (c, h, w); our features flatten (h, w, c) -> fold
    # that permutation into the weight columns once.
    hid = params["fc1_w"].shape[0]                               # 512
    fc1_w = (params["fc1_w"].reshape(hid, 64, 7, 7)
             .transpose(2, 3, 1, 0).reshape(3136, hid)).astype(bf16)
    fc1_b = params["fc1_b"].reshape(1, hid).astype(f32)

    n_act = params["fc2_w"].shape[0]
    npad = _round_up(n_act, 128)
    fc2_w = jnp.pad(params["fc2_w"].T, ((0, 0), (0, npad - n_act))).astype(bf16)
    fc2_b = jnp.pad(params["fc2_b"].reshape(1, n_act),
                    ((0, 0), (0, npad - n_act))).astype(f32)

    return {
        "c1_w": c1_w, "c1_b": c1_b,
        "c2_w": c2_w, "c2_b": c2_b,
        "c3_w": c3_w, "c3_b": c3_b,
        "fc1_w": fc1_w, "fc1_b": fc1_b,
        "fc2_w": fc2_w, "fc2_b": fc2_b,
    }


# ----------------------------------------------------------------------------
# Forward pass
# ----------------------------------------------------------------------------
def qnetwork_forward(p, x, *, n_actions):
    # x: (B, 4, 84, 84) f32 raw pixels in [0, 255]; /255 is folded into conv1's weight.
    B = x.shape[0]
    xs = _space_to_depth(x.transpose(0, 2, 3, 1), 4)             # (B, 21, 21, 64)
    h1 = conv1_call(xs, p["c1_w"], p["c1_b"])                    # (B, 400, 32)
    h1 = _space_to_depth(h1.reshape(B, 20, 20, 32), 2)           # (B, 10, 10, 128)
    feat = conv23_call(h1, p["c2_w"], p["c2_b"], p["c3_w"], p["c3_b"])  # (B, 49, 64)
    feat = feat.reshape(B, 49 * 64)                              # (h, w, c) flatten
    q = mlp_head(feat, p["fc1_w"], p["fc1_b"], p["fc2_w"], p["fc2_b"])
    return q[:, :n_actions]


def qnetwork_reference(params, x):
    # Pure-JAX f32 reference reproducing the PyTorch forward exactly (NCHW / OIHW).
    h = x / 255.0

    def conv(h, w, b, s):
        y = jax.lax.conv_general_dilated(
            h, w, (s, s), "VALID", dimension_numbers=("NCHW", "OIHW", "NCHW"))
        return jax.nn.relu(y + b[None, :, None, None])

    h = conv(h, params["c1_w"], params["c1_b"], 4)
    h = conv(h, params["c2_w"], params["c2_b"], 2)
    h = conv(h, params["c3_w"], params["c3_b"], 1)
    h = h.reshape(h.shape[0], -1)
    h = jax.nn.relu(h @ params["fc1_w"].T + params["fc1_b"])
    return h @ params["fc2_w"].T + params["fc2_b"]


if __name__ == "__main__":
    key = jax.random.PRNGKey(0)
    pkey, xkey = jax.random.split(key)
    n_actions = 6  # e.g. Pong's action-space size

    params = init_params(pkey, n_actions)
    prepared = prepare_params(params)   # one-time weight layout + bf16 cast

    # batch=2, channels=4, spatial=84 (Linear(3136, ...) implies an 84x84 input)
    x = jax.random.randint(xkey, (2, 4, 84, 84), 0, 256, jnp.int32).astype(jnp.float32)

    fwd = jax.jit(functools.partial(qnetwork_forward, n_actions=n_actions))
    q = jax.block_until_ready(fwd(prepared, x))
    assert q.shape == (2, n_actions)

    ref = qnetwork_reference(params, x)
    # bf16 weights / bf16 MXU inputs with f32 accumulation -> looser tolerance.
    np.testing.assert_allclose(np.asarray(q), np.asarray(ref), rtol=3e-2, atol=5e-3)

    print("KERNEL_OK")
</pallas_src>

<mosaic_0001>
module attributes {stable_mosaic.version = 11 : i64} {
  func.func @_conv1_kernel(%arg0: i32, %arg1: memref<1x21x21x64xf32, #tpu.memory_space<vmem>>, %arg2: memref<256x32xbf16, #tpu.memory_space<vmem>>, %arg3: memref<1x32xf32, #tpu.memory_space<vmem>>, %arg4: memref<1x400x32xf32, #tpu.memory_space<vmem>>, %arg5: memref<400x256xf32, #tpu.memory_space<vmem>>) attributes {dimension_semantics = [#tpu.dimension_semantics<parallel>], iteration_bounds = array<i64: 2>, scalar_prefetch = 0 : i64, scratch_operands = 1 : i64, tpu.core_type = #tpu.core_type<tc>, window_params = [{transform_indices = @transform_0, window_bounds = array<i64: 1, 21, 21, 64>}, {pipeline_mode = #tpu.pipeline_mode<synchronous>, transform_indices = @transform_1, window_bounds = array<i64: 256, 32>}, {pipeline_mode = #tpu.pipeline_mode<synchronous>, transform_indices = @transform_2, window_bounds = array<i64: 1, 32>}, {transform_indices = @transform_3, window_bounds = array<i64: 1, 400, 32>}]} {
    %c0 = arith.constant 0 : index
    %c0_0 = arith.constant 0 : index
    %c0_1 = arith.constant 0 : index
    %c0_2 = arith.constant 0 : index
    %0 = vector.load %arg1[%c0, %c0_0, %c0_1, %c0_2] : memref<1x21x21x64xf32, #tpu.memory_space<vmem>>, vector<1x1x20x64xf32>
    %1 = vector.shape_cast %0 : vector<1x1x20x64xf32> to vector<20x64xf32>
    %c0_3 = arith.constant 0 : index
    %c0_4 = arith.constant 0 : index
    %c1 = arith.constant 1 : index
    %c0_5 = arith.constant 0 : index
    %2 = vector.load %arg1[%c0_3, %c0_4, %c1, %c0_5] : memref<1x21x21x64xf32, #tpu.memory_space<vmem>>, vector<1x1x20x64xf32>
    %3 = vector.shape_cast %2 : vector<1x1x20x64xf32> to vector<20x64xf32>
    %c0_6 = arith.constant 0 : index
    %c1_7 = arith.constant 1 : index
    %c0_8 = arith.constant 0 : index
    %c0_9 = arith.constant 0 : index
    %4 = vector.load %arg1[%c0_6, %c1_7, %c0_8, %c0_9] : memref<1x21x21x64xf32, #tpu.memory_space<vmem>>, vector<1x1x20x64xf32>
    %5 = vector.shape_cast %4 : vector<1x1x20x64xf32> to vector<20x64xf32>
    %c0_10 = arith.constant 0 : index
    %c1_11 = arith.constant 1 : index
    %c1_12 = arith.constant 1 : index
    %c0_13 = arith.constant 0 : index
    %6 = vector.load %arg1[%c0_10, %c1_11, %c1_12, %c0_13] : memref<1x21x21x64xf32, #tpu.memory_space<vmem>>, vector<1x1x20x64xf32>
    %7 = vector.shape_cast %6 : vector<1x1x20x64xf32> to vector<20x64xf32>
    %8 = tpu.concatenate %1, %3, %5, %7 in 1 : vector<20x64xf32>, vector<20x64xf32>, vector<20x64xf32>, vector<20x64xf32> -> vector<20x256xf32>
    %c0_14 = arith.constant 0 : index
    %c0_15 = arith.constant 0 : index
    %9 = vector.load %arg5[%c0_14, %c0_15] : memref<400x256xf32, #tpu.memory_space<vmem>>, vector<20x256xf32>
    tpu.vector_store %arg5[%c0_14, %c0_15], %8 {strides = array<i32>} : memref<400x256xf32, #tpu.memory_space<vmem>>, vector<20x256xf32>,
    %c0_16 = arith.constant 0 : index
    %c1_17 = arith.constant 1 : index
    %c0_18 = arith.constant 0 : index
    %c0_19 = arith.constant 0 : index
    %10 = vector.load %arg1[%c0_16, %c1_17, %c0_18, %c0_19] : memref<1x21x21x64xf32, #tpu.memory_space<vmem>>, vector<1x1x20x64xf32>
    %11 = vector.shape_cast %10 : vector<1x1x20x64xf32> to vector<20x64xf32>
    %c0_20 = arith.constant 0 : index
    %c1_21 = arith.constant 1 : index
    %c1_22 = arith.constant 1 : index
    %c0_23 = arith.constant 0 : index
    %12 = vector.load %arg1[%c0_20, %c1_21, %c1_22, %c0_23] : memref<1x21x21x64xf32, #tpu.memory_space<vmem>>, vector<1x1x20x64xf32>
    %13 = vector.shape_cast %12 : vector<1x1x20x64xf32> to vector<20x64xf32>
    %c0_24 = arith.constant 0 : index
    %c2 = arith.constant 2 : index
    %c0_25 = arith.constant 0 : index
    %c0_26 = arith.constant 0 : index
    %14 = vector.load %arg1[%c0_24, %c2, %c0_25, %c0_26] : memref<1x21x21x64xf32, #tpu.memory_space<vmem>>, vector<1x1x20x64xf32>
    %15 = vector.shape_cast %14 : vector<1x1x20x64xf32> to vector<20x64xf32>
    %c0_27 = arith.constant 0 : index
    %c2_28 = arith.constant 2 : index
    %c1_29 = arith.constant 1 : index
    %c0_30 = arith.constant 0 : index
    %16 = vector.load %arg1[%c0_27, %c2_28, %c1_29, %c0_30] : memref<1x21x21x64xf32, #tpu.memory_space<vmem>>, vector<1x1x20x64xf32>
    %17 = vector.shape_cast %16 : vector<1x1x20x64xf32> to vector<20x64xf32>
    %18 = tpu.concatenate %11, %13, %15, %17 in 1 : vector<20x64xf32>, vector<20x64xf32>, vector<20x64xf32>, vector<20x64xf32> -> vector<20x256xf32>
    %c20 = arith.constant 20 : index
    %c0_31 = arith.constant 0 : index
    %19 = vector.load %arg5[%c20, %c0_31] : memref<400x256xf32, #tpu.memory_space<vmem>>, vector<20x256xf32>
    tpu.vector_store %arg5[%c20, %c0_31], %18 {strides = array<i32>} : memref<400x256xf32, #tpu.memory_space<vmem>>, vector<20x256xf32>,
    %c0_32 = arith.constant 0 : index
    %c2_33 = arith.constant 2 : index
    %c0_34 = arith.constant 0 : index
    %c0_35 = arith.constant 0 : index
    %20 = vector.load %arg1[%c0_32, %c2_33, %c0_34, %c0_35] : memref<1x21x21x64xf32, #tpu.memory_space<vmem>>, vector<1x1x20x64xf32>
    %21 = vector.shape_cast %20 : vector<1x1x20x64xf32> to vector<20x64xf32>
    %c0_36 = arith.constant 0 : index
    %c2_37 = arith.constant 2 : index
    %c1_38 = arith.constant 1 : index
    %c0_39 = arith.constant 0 : index
    %22 = vector.load %arg1[%c0_36, %c2_37, %c1_38, %c0_39] : memref<1x21x21x64xf32, #tpu.memory_space<vmem>>, vector<1x1x20x64xf32>
    %23 = vector.shape_cast %22 : vector<1x1x20x64xf32> to vector<20x64xf32>
    %c0_40 = arith.constant 0 : index
    %c3 = arith.constant 3 : index
    %c0_41 = arith.constant 0 : index
    %c0_42 = arith.constant 0 : index
    %24 = vector.load %arg1[%c0_40, %c3, %c0_41, %c0_42] : memref<1x21x21x64xf32, #tpu.memory_space<vmem>>, vector<1x1x20x64xf32>
    %25 = vector.shape_cast %24 : vector<1x1x20x64xf32> to vector<20x64xf32>
    %c0_43 = arith.constant 0 : index
    %c3_44 = arith.constant 3 : index
    %c1_45 = arith.constant 1 : index
    %c0_46 = arith.constant 0 : index
    %26 = vector.load %arg1[%c0_43, %c3_44, %c1_45, %c0_46] : memref<1x21x21x64xf32, #tpu.memory_space<vmem>>, vector<1x1x20x64xf32>
    %27 = vector.shape_cast %26 : vector<1x1x20x64xf32> to vector<20x64xf32>
    %28 = tpu.concatenate %21, %23, %25, %27 in 1 : vector<20x64xf32>, vector<20x64xf32>, vector<20x64xf32>, vector<20x64xf32> -> vector<20x256xf32>
    %c40 = arith.constant 40 : index
    %c0_47 = arith.constant 0 : index
    %29 = vector.load %arg5[%c40, %c0_47] : memref<400x256xf32, #tpu.memory_space<vmem>>, vector<20x256xf32>
    tpu.vector_store %arg5[%c40, %c0_47], %28 {strides = array<i32>} : memref<400x256xf32, #tpu.memory_space<vmem>>, vector<20x256xf32>,
    %c0_48 = arith.constant 0 : index
    %c3_49 = arith.constant 3 : index
    %c0_50 = arith.constant 0 : index
    %c0_51 = arith.constant 0 : index
    %30 = vector.load %arg1[%c0_48, %c3_49, %c0_50, %c0_51] : memref<1x21x21x64xf32, #tpu.memory_space<vmem>>, vector<1x1x20x64xf32>
    %31 = vector.shape_cast %30 : vector<1x1x20x64xf32> to vector<20x64xf32>
    %c0_52 = arith.constant 0 : index
    %c3_53 = arith.constant 3 : index
    %c1_54 = arith.constant 1 : index
    %c0_55 = arith.constant 0 : index
    %32 = vector.load %arg1[%c0_52, %c3_53, %c1_54, %c0_55] : memref<1x21x21x64xf32, #tpu.memory_space<vmem>>, vector<1x1x20x64xf32>
    %33 = vector.shape_cast %32 : vector<1x1x20x64xf32> to vector<20x64xf32>
    %c0_56 = arith.constant 0 : index
    %c4 = arith.constant 4 : index
    %c0_57 = arith.constant 0 : index
    %c0_58 = arith.constant 0 : index
    %34 = vector.load %arg1[%c0_56, %c4, %c0_57, %c0_58] : memref<1x21x21x64xf32, #tpu.memory_space<vmem>>, vector<1x1x20x64xf32>
    %35 = vector.shape_cast %34 : vector<1x1x20x64xf32> to vector<20x64xf32>
    %c0_59 = arith.constant 0 : index
    %c4_60 = arith.constant 4 : index
    %c1_61 = arith.constant 1 : index
    %c0_62 = arith.constant 0 : index
    %36 = vector.load %arg1[%c0_59, %c4_60, %c1_61, %c0_62] : memref<1x21x21x64xf32, #tpu.memory_space<vmem>>, vector<1x1x20x64xf32>
    %37 = vector.shape_cast %36 : vector<1x1x20x64xf32> to vector<20x64xf32>
    %38 = tpu.concatenate %31, %33, %35, %37 in 1 : vector<20x64xf32>, vector<20x64xf32>, vector<20x64xf32>, vector<20x64xf32> -> vector<20x256xf32>
    %c60 = arith.constant 60 : index
    %c0_63 = arith.constant 0 : index
    %39 = vector.load %arg5[%c60, %c0_63] : memref<400x256xf32, #tpu.memory_space<vmem>>, vector<20x256xf32>
    tpu.vector_store %arg5[%c60, %c0_63], %38 {strides = array<i32>} : memref<400x256xf32, #tpu.memory_space<vmem>>, vector<20x256xf32>,
    %c0_64 = arith.constant 0 : index
    %c4_65 = arith.constant 4 : index
    %c0_66 = arith.constant 0 : index
    %c0_67 = arith.constant 0 : index
    %40 = vector.load %arg1[%c0_64, %c4_65, %c0_66, %c0_67] : memref<1x21x21x64xf32, #tpu.memory_space<vmem>>, vector<1x1x20x64xf32>
    %41 = vector.shape_cast %40 : vector<1x1x20x64xf32> to vector<20x64xf32>
    %c0_68 = arith.constant 0 : index
    %c4_69 = arith.constant 4 : index
    %c1_70 = arith.constant 1 : index
    %c0_71 = arith.constant 0 : index
    %42 = vector.load %arg1[%c0_68, %c4_69, %c1_70, %c0_71] : memref<1x21x21x64xf32, #tpu.memory_space<vmem>>, vector<1x1x20x64xf32>
    %43 = vector.shape_cast %42 : vector<1x1x20x64xf32> to vector<20x64xf32>
    %c0_72 = arith.constant 0 : index
    %c5 = arith.constant 5 : index
    %c0_73 = arith.constant 0 : index
    %c0_74 = arith.constant 0 : index
    %44 = vector.load %arg1[%c0_72, %c5, %c0_73, %c0_74] : memref<1x21x21x64xf32, #tpu.memory_space<vmem>>, vector<1x1x20x64xf32>
    %45 = vector.shape_cast %44 : vector<1x1x20x64xf32> to vector<20x64xf32>
    %c0_75 = arith.constant 0 : index
    %c5_76 = arith.constant 5 : index
    %c1_77 = arith.constant 1 : index
    %c0_78 = arith.constant 0 : index
    %46 = vector.load %arg1[%c0_75, %c5_76, %c1_77, %c0_78] : memref<1x21x21x64xf32, #tpu.memory_space<vmem>>, vector<1x1x20x64xf32>
    %47 = vector.shape_cast %46 : vector<1x1x20x64xf32> to vector<20x64xf32>
    %48 = tpu.concatenate %41, %43, %45, %47 in 1 : vector<20x64xf32>, vector<20x64xf32>, vector<20x64xf32>, vector<20x64xf32> -> vector<20x256xf32>
    %c80 = arith.constant 80 : index
    %c0_79 = arith.constant 0 : index
    %49 = vector.load %arg5[%c80, %c0_79] : memref<400x256xf32, #tpu.memory_space<vmem>>, vector<20x256xf32>
    tpu.vector_store %arg5[%c80, %c0_79], %48 {strides = array<i32>} : memref<400x256xf32, #tpu.memory_space<vmem>>, vector<20x256xf32>,
    %c0_80 = arith.constant 0 : index
    %c5_81 = arith.constant 5 : index
    %c0_82 = arith.constant 0 : index
    %c0_83 = arith.constant 0 : index
    %50 = vector.load %arg1[%c0_80, %c5_81, %c0_82, %c0_83] : memref<1x21x21x64xf32, #tpu.memory_space<vmem>>, vector<1x1x20x64xf32>
    %51 = vector.shape_cast %50 : vector<1x1x20x64xf32> to vector<20x64xf32>
    %c0_84 = arith.constant 0 : index
    %c5_85 = arith.constant 5 : index
    %c1_86 = arith.constant 1 : index
    %c0_87 = arith.constant 0 : index
    %52 = vector.load %arg1[%c0_84, %c5_85, %c1_86, %c0_87] : memref<1x21x21x64xf32, #tpu.memory_space<vmem>>, vector<1x1x20x64xf32>
    %53 = vector.shape_cast %52 : vector<1x1x20x64xf32> to vector<20x64xf32>
    %c0_88 = arith.constant 0 : index
    %c6 = arith.constant 6 : index
    %c0_89 = arith.constant 0 : index
    %c0_90 = arith.constant 0 : index
    %54 = vector.load %arg1[%c0_88, %c6, %c0_89, %c0_90] : memref<1x21x21x64xf32, #tpu.memory_space<vmem>>, vector<1x1x20x64xf32>
    %55 = vector.shape_cast %54 : vector<1x1x20x64xf32> to vector<20x64xf32>
    %c0_91 = arith.constant 0 : index
    %c6_92 = arith.constant 6 : index
    %c1_93 = arith.constant 1 : index
    %c0_94 = arith.constant 0 : index
    %56 = vector.load %arg1[%c0_91, %c6_92, %c1_93, %c0_94] : memref<1x21x21x64xf32, #tpu.memory_space<vmem>>, vector<1x1x20x64xf32>
    %57 = vector.shape_cast %56 : vector<1x1x20x64xf32> to vector<20x64xf32>
    %58 = tpu.concatenate %51, %53, %55, %57 in 1 : vector<20x64xf32>, vector<20x64xf32>, vector<20x64xf32>, vector<20x64xf32> -> vector<20x256xf32>
    %c100 = arith.constant 100 : index
    %c0_95 = arith.constant 0 : index
    %59 = vector.load %arg5[%c100, %c0_95] : memref<400x256xf32, #tpu.memory_space<vmem>>, vector<20x256xf32>
    tpu.vector_store %arg5[%c100, %c0_95], %58 {strides = array<i32>} : memref<400x256xf32, #tpu.memory_space<vmem>>, vector<20x256xf32>,
    %c0_96 = arith.constant 0 : index
    %c6_97 = arith.constant 6 : index
    %c0_98 = arith.constant 0 : index
    %c0_99 = arith.constant 0 : index
    %60 = vector.load %arg1[%c0_96, %c6_97, %c0_98, %c0_99] : memref<1x21x21x64xf32, #tpu.memory_space<vmem>>, vector<1x1x20x64xf32>
    %61 = vector.shape_cast %60 : vector<1x1x20x64xf32> to vector<20x64xf32>
    %c0_100 = arith.constant 0 : index
    %c6_101 = arith.constant 6 : index
    %c1_102 = arith.constant 1 : index
    %c0_103 = arith.constant 0 : index
    %62 = vector.load %arg1[%c0_100, %c6_101, %c1_102, %c0_103] : memref<1x21x21x64xf32, #tpu.memory_space<vmem>>, vector<1x1x20x64xf32>
    %63 = vector.shape_cast %62 : vector<1x1x20x64xf32> to vector<20x64xf32>
    %c0_104 = arith.constant 0 : index
    %c7 = arith.constant 7 : index
    %c0_105 = arith.constant 0 : index
    %c0_106 = arith.constant 0 : index
    %64 = vector.load %arg1[%c0_104, %c7, %c0_105, %c0_106] : memref<1x21x21x64xf32, #tpu.memory_space<vmem>>, vector<1x1x20x64xf32>
    %65 = vector.shape_cast %64 : vector<1x1x20x64xf32> to vector<20x64xf32>
    %c0_107 = arith.constant 0 : index
    %c7_108 = arith.constant 7 : index
    %c1_109 = arith.constant 1 : index
    %c0_110 = arith.constant 0 : index
    %66 = vector.load %arg1[%c0_107, %c7_108, %c1_109, %c0_110] : memref<1x21x21x64xf32, #tpu.memory_space<vmem>>, vector<1x1x20x64xf32>
    %67 = vector.shape_cast %66 : vector<1x1x20x64xf32> to vector<20x64xf32>
    %68 = tpu.concatenate %61, %63, %65, %67 in 1 : vector<20x64xf32>, vector<20x64xf32>, vector<20x64xf32>, vector<20x64xf32> -> vector<20x256xf32>
    %c120 = arith.constant 120 : index
    %c0_111 = arith.constant 0 : index
    %69 = vector.load %arg5[%c120, %c0_111] : memref<400x256xf32, #tpu.memory_space<vmem>>, vector<20x256xf32>
    tpu.vector_store %arg5[%c120, %c0_111], %68 {strides = array<i32>} : memref<400x256xf32, #tpu.memory_space<vmem>>, vector<20x256xf32>,
    %c0_112 = arith.constant 0 : index
    %c7_113 = arith.constant 7 : index
    %c0_114 = arith.constant 0 : index
    %c0_115 = arith.constant 0 : index
    %70 = vector.load %arg1[%c0_112, %c7_113, %c0_114, %c0_115] : memref<1x21x21x64xf32, #tpu.memory_space<vmem>>, vector<1x1x20x64xf32>
    %71 = vector.shape_cast %70 : vector<1x1x20x64xf32> to vector<20x64xf32>
    %c0_116 = arith.constant 0 : index
    %c7_117 = arith.constant 7 : index
    %c1_118 = arith.constant 1 : index
    %c0_119 = arith.constant 0 : index
    %72 = vector.load %arg1[%c0_116, %c7_117, %c1_118, %c0_119] : memref<1x21x21x64xf32, #tpu.memory_space<vmem>>, vector<1x1x20x64xf32>
    %73 = vector.shape_cast %72 : vector<1x1x20x64xf32> to vector<20x64xf32>
    %c0_120 = arith.constant 0 : index
    %c8 = arith.constant 8 : index
    %c0_121 = arith.constant 0 : index
    %c0_122 = arith.constant 0 : index
    %74 = vector.load %arg1[%c0_120, %c8, %c0_121, %c0_122] : memref<1x21x21x64xf32, #tpu.memory_space<vmem>>, vector<1x1x20x64xf32>
    %75 = vector.shape_cast %74 : vector<1x1x20x64xf32> to vector<20x64xf32>
    %c0_123 = arith.constant 0 : index
    %c8_124 = arith.constant 8 : index
    %c1_125 = arith.constant 1 : index
    %c0_126 = arith.constant 0 : index
    %76 = vector.load %arg1[%c0_123, %c8_124, %c1_125, %c0_126] : memref<1x21x21x64xf32, #tpu.memory_space<vmem>>, vector<1x1x20x64xf32>
    %77 = vector.shape_cast %76 : vector<1x1x20x64xf32> to vector<20x64xf32>
    %78 = tpu.concatenate %71, %73, %75, %77 in 1 : vector<20x64xf32>, vector<20x64xf32>, vector<20x64xf32>, vector<20x64xf32> -> vector<20x256xf32>
    %c140 = arith.constant 140 : index
    %c0_127 = arith.constant 0 : index
    %79 = vector.load %arg5[%c140, %c0_127] : memref<400x256xf32, #tpu.memory_space<vmem>>, vector<20x256xf32>
    tpu.vector_store %arg5[%c140, %c0_127], %78 {strides = array<i32>} : memref<400x256xf32, #tpu.memory_space<vmem>>, vector<20x256xf32>,
    %c0_128 = arith.constant 0 : index
    %c8_129 = arith.constant 8 : index
    %c0_130 = arith.constant 0 : index
    %c0_131 = arith.constant 0 : index
    %80 = vector.load %arg1[%c0_128, %c8_129, %c0_130, %c0_131] : memref<1x21x21x64xf32, #tpu.memory_space<vmem>>, vector<1x1x20x64xf32>
    %81 = vector.shape_cast %80 : vector<1x1x20x64xf32> to vector<20x64xf32>
    %c0_132 = arith.constant 0 : index
    %c8_133 = arith.constant 8 : index
    %c1_134 = arith.constant 1 : index
    %c0_135 = arith.constant 0 : index
    %82 = vector.load %arg1[%c0_132, %c8_133, %c1_134, %c0_135] : memref<1x21x21x64xf32, #tpu.memory_space<vmem>>, vector<1x1x20x64xf32>
    %83 = vector.shape_cast %82 : vector<1x1x20x64xf32> to vector<20x64xf32>
    %c0_136 = arith.constant 0 : index
    %c9 = arith.constant 9 : index
    %c0_137 = arith.constant 0 : index
    %c0_138 = arith.constant 0 : index
    %84 = vector.load %arg1[%c0_136, %c9, %c0_137, %c0_138] : memref<1x21x21x64xf32, #tpu.memory_space<vmem>>, vector<1x1x20x64xf32>
    %85 = vector.shape_cast %84 : vector<1x1x20x64xf32> to vector<20x64xf32>
    %c0_139 = arith.constant 0 : index
    %c9_140 = arith.constant 9 : index
    %c1_141 = arith.constant 1 : index
    %c0_142 = arith.constant 0 : index
    %86 = vector.load %arg1[%c0_139, %c9_140, %c1_141, %c0_142] : memref<1x21x21x64xf32, #tpu.memory_space<vmem>>, vector<1x1x20x64xf32>
    %87 = vector.shape_cast %86 : vector<1x1x20x64xf32> to vector<20x64xf32>
    %88 = tpu.concatenate %81, %83, %85, %87 in 1 : vector<20x64xf32>, vector<20x64xf32>, vector<20x64xf32>, vector<20x64xf32> -> vector<20x256xf32>
    %c160 = arith.constant 160 : index
    %c0_143 = arith.constant 0 : index
    %89 = vector.load %arg5[%c160, %c0_143] : memref<400x256xf32, #tpu.memory_space<vmem>>, vector<20x256xf32>
    tpu.vector_store %arg5[%c160, %c0_143], %88 {strides = array<i32>} : memref<400x256xf32, #tpu.memory_space<vmem>>, vector<20x256xf32>,
    %c0_144 = arith.constant 0 : index
    %c9_145 = arith.constant 9 : index
    %c0_146 = arith.constant 0 : index
    %c0_147 = arith.constant 0 : index
    %90 = vector.load %arg1[%c0_144, %c9_145, %c0_146, %c0_147] : memref<1x21x21x64xf32, #tpu.memory_space<vmem>>, vector<1x1x20x64xf32>
    %91 = vector.shape_cast %90 : vector<1x1x20x64xf32> to vector<20x64xf32>
    %c0_148 = arith.constant 0 : index
    %c9_149 = arith.constant 9 : index
    %c1_150 = arith.constant 1 : index
    %c0_151 = arith.constant 0 : index
    %92 = vector.load %arg1[%c0_148, %c9_149, %c1_150, %c0_151] : memref<1x21x21x64xf32, #tpu.memory_space<vmem>>, vector<1x1x20x64xf32>
    %93 = vector.shape_cast %92 : vector<1x1x20x64xf32> to vector<20x64xf32>
    %c0_152 = arith.constant 0 : index
    %c10 = arith.constant 10 : index
    %c0_153 = arith.constant 0 : index
    %c0_154 = arith.constant 0 : index
    %94 = vector.load %arg1[%c0_152, %c10, %c0_153, %c0_154] : memref<1x21x21x64xf32, #tpu.memory_space<vmem>>, vector<1x1x20x64xf32>
    %95 = vector.shape_cast %94 : vector<1x1x20x64xf32> to vector<20x64xf32>
    %c0_155 = arith.constant 0 : index
    %c10_156 = arith.constant 10 : index
    %c1_157 = arith.constant 1 : index
    %c0_158 = arith.constant 0 : index
    %96 = vector.load %arg1[%c0_155, %c10_156, %c1_157, %c0_158] : memref<1x21x21x64xf32, #tpu.memory_space<vmem>>, vector<1x1x20x64xf32>
    %97 = vector.shape_cast %96 : vector<1x1x20x64xf32> to vector<20x64xf32>
    %98 = tpu.concatenate %91, %93, %95, %97 in 1 : vector<20x64xf32>, vector<20x64xf32>, vector<20x64xf32>, vector<20x64xf32> -> vector<20x256xf32>
    %c180 = arith.constant 180 : index
    %c0_159 = arith.constant 0 : index
    %99 = vector.load %arg5[%c180, %c0_159] : memref<400x256xf32, #tpu.memory_space<vmem>>, vector<20x256xf32>
    tpu.vector_store %arg5[%c180, %c0_159], %98 {strides = array<i32>} : memref<400x256xf32, #tpu.memory_space<vmem>>, vector<20x256xf32>,
    %c0_160 = arith.constant 0 : index
    %c10_161 = arith.constant 10 : index
    %c0_162 = arith.constant 0 : index
    %c0_163 = arith.constant 0 : index
    %100 = vector.load %arg1[%c0_160, %c10_161, %c0_162, %c0_163] : memref<1x21x21x64xf32, #tpu.memory_space<vmem>>, vector<1x1x20x64xf32>
    %101 = vector.shape_cast %100 : vector<1x1x20x64xf32> to vector<20x64xf32>
    %c0_164 = arith.constant 0 : index
    %c10_165 = arith.constant 10 : index
    %c1_166 = arith.constant 1 : index
    %c0_167 = arith.constant 0 : index
    %102 = vector.load %arg1[%c0_164, %c10_165, %c1_166, %c0_167] : memref<1x21x21x64xf32, #tpu.memory_space<vmem>>, vector<1x1x20x64xf32>
    %103 = vector.shape_cast %102 : vector<1x1x20x64xf32> to vector<20x64xf32>
    %c0_168 = arith.constant 0 : index
    %c11 = arith.constant 11 : index
    %c0_169 = arith.constant 0 : index
    %c0_170 = arith.constant 0 : index
    %104 = vector.load %arg1[%c0_168, %c11, %c0_169, %c0_170] : memref<1x21x21x64xf32, #tpu.memory_space<vmem>>, vector<1x1x20x64xf32>
    %105 = vector.shape_cast %104 : vector<1x1x20x64xf32> to vector<20x64xf32>
    %c0_171 = arith.constant 0 : index
    %c11_172 = arith.constant 11 : index
    %c1_173 = arith.constant 1 : index
    %c0_174 = arith.constant 0 : index
    %106 = vector.load %arg1[%c0_171, %c11_172, %c1_173, %c0_174] : memref<1x21x21x64xf32, #tpu.memory_space<vmem>>, vector<1x1x20x64xf32>
    %107 = vector.shape_cast %106 : vector<1x1x20x64xf32> to vector<20x64xf32>
    %108 = tpu.concatenate %101, %103, %105, %107 in 1 : vector<20x64xf32>, vector<20x64xf32>, vector<20x64xf32>, vector<20x64xf32> -> vector<20x256xf32>
    %c200 = arith.constant 200 : index
    %c0_175 = arith.constant 0 : index
    %109 = vector.load %arg5[%c200, %c0_175] : memref<400x256xf32, #tpu.memory_space<vmem>>, vector<20x256xf32>
    tpu.vector_store %arg5[%c200, %c0_175], %108 {strides = array<i32>} : memref<400x256xf32, #tpu.memory_space<vmem>>, vector<20x256xf32>,
    %c0_176 = arith.constant 0 : index
    %c11_177 = arith.constant 11 : index
    %c0_178 = arith.constant 0 : index
    %c0_179 = arith.constant 0 : index
    %110 = vector.load %arg1[%c0_176, %c11_177, %c0_178, %c0_179] : memref<1x21x21x64xf32, #tpu.memory_space<vmem>>, vector<1x1x20x64xf32>
    %111 = vector.shape_cast %110 : vector<1x1x20x64xf32> to vector<20x64xf32>
    %c0_180 = arith.constant 0 : index
    %c11_181 = arith.constant 11 : index
    %c1_182 = arith.constant 1 : index
    %c0_183 = arith.constant 0 : index
    %112 = vector.load %arg1[%c0_180, %c11_181, %c1_182, %c0_183] : memref<1x21x21x64xf32, #tpu.memory_space<vmem>>, vector<1x1x20x64xf32>
    %113 = vector.shape_cast %112 : vector<1x1x20x64xf32> to vector<20x64xf32>
    %c0_184 = arith.constant 0 : index
    %c12 = arith.constant 12 : index
    %c0_185 = arith.constant 0 : index
    %c0_186 = arith.constant 0 : index
    %114 = vector.load %arg1[%c0_184, %c12, %c0_185, %c0_186] : memref<1x21x21x64xf32, #tpu.memory_space<vmem>>, vector<1x1x20x64xf32>
    %115 = vector.shape_cast %114 : vector<1x1x20x64xf32> to vector<20x64xf32>
    %c0_187 = arith.constant 0 : index
    %c12_188 = arith.constant 12 : index
    %c1_189 = arith.constant 1 : index
    %c0_190 = arith.constant 0 : index
    %116 = vector.load %arg1[%c0_187, %c12_188, %c1_189, %c0_190] : memref<1x21x21x64xf32, #tpu.memory_space<vmem>>, vector<1x1x20x64xf32>
    %117 = vector.shape_cast %116 : vector<1x1x20x64xf32> to vector<20x64xf32>
    %118 = tpu.concatenate %111, %113, %115, %117 in 1 : vector<20x64xf32>, vector<20x64xf32>, vector<20x64xf32>, vector<20x64xf32> -> vector<20x256xf32>
    %c220 = arith.constant 220 : index
    %c0_191 = arith.constant 0 : index
    %119 = vector.load %arg5[%c220, %c0_191] : memref<400x256xf32, #tpu.memory_space<vmem>>, vector<20x256xf32>
    tpu.vector_store %arg5[%c220, %c0_191], %118 {strides = array<i32>} : memref<400x256xf32, #tpu.memory_space<vmem>>, vector<20x256xf32>,
    %c0_192 = arith.constant 0 : index
    %c12_193 = arith.constant 12 : index
    %c0_194 = arith.constant 0 : index
    %c0_195 = arith.constant 0 : index
    %120 = vector.load %arg1[%c0_192, %c12_193, %c0_194, %c0_195] : memref<1x21x21x64xf32, #tpu.memory_space<vmem>>, vector<1x1x20x64xf32>
    %121 = vector.shape_cast %120 : vector<1x1x20x64xf32> to vector<20x64xf32>
    %c0_196 = arith.constant 0 : index
    %c12_197 = arith.constant 12 : index
    %c1_198 = arith.constant 1 : index
    %c0_199 = arith.constant 0 : index
    %122 = vector.load %arg1[%c0_196, %c12_197, %c1_198, %c0_199] : memref<1x21x21x64xf32, #tpu.memory_space<vmem>>, vector<1x1x20x64xf32>
    %123 = vector.shape_cast %122 : vector<1x1x20x64xf32> to vector<20x64xf32>
    %c0_200 = arith.constant 0 : index
    %c13 = arith.constant 13 : index
    %c0_201 = arith.constant 0 : index
    %c0_202 = arith.constant 0 : index
    %124 = vector.load %arg1[%c0_200, %c13, %c0_201, %c0_202] : memref<1x21x21x64xf32, #tpu.memory_space<vmem>>, vector<1x1x20x64xf32>
    %125 = vector.shape_cast %124 : vector<1x1x20x64xf32> to vector<20x64xf32>
    %c0_203 = arith.constant 0 : index
    %c13_204 = arith.constant 13 : index
    %c1_205 = arith.constant 1 : index
    %c0_206 = arith.constant 0 : index
    %126 = vector.load %arg1[%c0_203, %c13_204, %c1_205, %c0_206] : memref<1x21x21x64xf32, #tpu.memory_space<vmem>>, vector<1x1x20x64xf32>
    %127 = vector.shape_cast %126 : vector<1x1x20x64xf32> to vector<20x64xf32>
    %128 = tpu.concatenate %121, %123, %125, %127 in 1 : vector<20x64xf32>, vector<20x64xf32>, vector<20x64xf32>, vector<20x64xf32> -> vector<20x256xf32>
    %c240 = arith.constant 240 : index
    %c0_207 = arith.constant 0 : index
    %129 = vector.load %arg5[%c240, %c0_207] : memref<400x256xf32, #tpu.memory_space<vmem>>, vector<20x256xf32>
    tpu.vector_store %arg5[%c240, %c0_207], %128 {strides = array<i32>} : memref<400x256xf32, #tpu.memory_space<vmem>>, vector<20x256xf32>,
    %c0_208 = arith.constant 0 : index
    %c13_209 = arith.constant 13 : index
    %c0_210 = arith.constant 0 : index
    %c0_211 = arith.constant 0 : index
    %130 = vector.load %arg1[%c0_208, %c13_209, %c0_210, %c0_211] : memref<1x21x21x64xf32, #tpu.memory_space<vmem>>, vector<1x1x20x64xf32>
    %131 = vector.shape_cast %130 : vector<1x1x20x64xf32> to vector<20x64xf32>
    %c0_212 = arith.constant 0 : index
    %c13_213 = arith.constant 13 : index
    %c1_214 = arith.constant 1 : index
    %c0_215 = arith.constant 0 : index
    %132 = vector.load %arg1[%c0_212, %c13_213, %c1_214, %c0_215] : memref<1x21x21x64xf32, #tpu.memory_space<vmem>>, vector<1x1x20x64xf32>
    %133 = vector.shape_cast %132 : vector<1x1x20x64xf32> to vector<20x64xf32>
    %c0_216 = arith.constant 0 : index
    %c14 = arith.constant 14 : index
    %c0_217 = arith.constant 0 : index
    %c0_218 = arith.constant 0 : index
    %134 = vector.load %arg1[%c0_216, %c14, %c0_217, %c0_218] : memref<1x21x21x64xf32, #tpu.memory_space<vmem>>, vector<1x1x20x64xf32>
    %135 = vector.shape_cast %134 : vector<1x1x20x64xf32> to vector<20x64xf32>
    %c0_219 = arith.constant 0 : index
    %c14_220 = arith.constant 14 : index
    %c1_221 = arith.constant 1 : index
    %c0_222 = arith.constant 0 : index
    %136 = vector.load %arg1[%c0_219, %c14_220, %c1_221, %c0_222] : memref<1x21x21x64xf32, #tpu.memory_space<vmem>>, vector<1x1x20x64xf32>
    %137 = vector.shape_cast %136 : vector<1x1x20x64xf32> to vector<20x64xf32>
    %138 = tpu.concatenate %131, %133, %135, %137 in 1 : vector<20x64xf32>, vector<20x64xf32>, vector<20x64xf32>, vector<20x64xf32> -> vector<20x256xf32>
    %c260 = arith.constant 260 : index
    %c0_223 = arith.constant 0 : index
    %139 = vector.load %arg5[%c260, %c0_223] : memref<400x256xf32, #tpu.memory_space<vmem>>, vector<20x256xf32>
    tpu.vector_store %arg5[%c260, %c0_223], %138 {strides = array<i32>} : memref<400x256xf32, #tpu.memory_space<vmem>>, vector<20x256xf32>,
    %c0_224 = arith.constant 0 : index
    %c14_225 = arith.constant 14 : index
    %c0_226 = arith.constant 0 : index
    %c0_227 = arith.constant 0 : index
    %140 = vector.load %arg1[%c0_224, %c14_225, %c0_226, %c0_227] : memref<1x21x21x64xf32, #tpu.memory_space<vmem>>, vector<1x1x20x64xf32>
    %141 = vector.shape_cast %140 : vector<1x1x20x64xf32> to vector<20x64xf32>
    %c0_228 = arith.constant 0 : index
    %c14_229 = arith.constant 14 : index
    %c1_230 = arith.constant 1 : index
    %c0_231 = arith.constant 0 : index
    %142 = vector.load %arg1[%c0_228, %c14_229, %c1_230, %c0_231] : memref<1x21x21x64xf32, #tpu.memory_space<vmem>>, vector<1x1x20x64xf32>
    %143 = vector.shape_cast %142 : vector<1x1x20x64xf32> to vector<20x64xf32>
    %c0_232 = arith.constant 0 : index
    %c15 = arith.constant 15 : index
    %c0_233 = arith.constant 0 : index
    %c0_234 = arith.constant 0 : index
    %144 = vector.load %arg1[%c0_232, %c15, %c0_233, %c0_234] : memref<1x21x21x64xf32, #tpu.memory_space<vmem>>, vector<1x1x20x64xf32>
    %145 = vector.shape_cast %144 : vector<1x1x20x64xf32> to vector<20x64xf32>
    %c0_235 = arith.constant 0 : index
    %c15_236 = arith.constant 15 : index
    %c1_237 = arith.constant 1 : index
    %c0_238 = arith.constant 0 : index
    %146 = vector.load %arg1[%c0_235, %c15_236, %c1_237, %c0_238] : memref<1x21x21x64xf32, #tpu.memory_space<vmem>>, vector<1x1x20x64xf32>
    %147 = vector.shape_cast %146 : vector<1x1x20x64xf32> to vector<20x64xf32>
    %148 = tpu.concatenate %141, %143, %145, %147 in 1 : vector<20x64xf32>, vector<20x64xf32>, vector<20x64xf32>, vector<20x64xf32> -> vector<20x256xf32>
    %c280 = arith.constant 280 : index
    %c0_239 = arith.constant 0 : index
    %149 = vector.load %arg5[%c280, %c0_239] : memref<400x256xf32, #tpu.memory_space<vmem>>, vector<20x256xf32>
    tpu.vector_store %arg5[%c280, %c0_239], %148 {strides = array<i32>} : memref<400x256xf32, #tpu.memory_space<vmem>>, vector<20x256xf32>,
    %c0_240 = arith.constant 0 : index
    %c15_241 = arith.constant 15 : index
    %c0_242 = arith.constant 0 : index
    %c0_243 = arith.constant 0 : index
    %150 = vector.load %arg1[%c0_240, %c15_241, %c0_242, %c0_243] : memref<1x21x21x64xf32, #tpu.memory_space<vmem>>, vector<1x1x20x64xf32>
    %151 = vector.shape_cast %150 : vector<1x1x20x64xf32> to vector<20x64xf32>
    %c0_244 = arith.constant 0 : index
    %c15_245 = arith.constant 15 : index
    %c1_246 = arith.constant 1 : index
    %c0_247 = arith.constant 0 : index
    %152 = vector.load %arg1[%c0_244, %c15_245, %c1_246, %c0_247] : memref<1x21x21x64xf32, #tpu.memory_space<vmem>>, vector<1x1x20x64xf32>
    %153 = vector.shape_cast %152 : vector<1x1x20x64xf32> to vector<20x64xf32>
    %c0_248 = arith.constant 0 : index
    %c16 = arith.constant 16 : index
    %c0_249 = arith.constant 0 : index
    %c0_250 = arith.constant 0 : index
    %154 = vector.load %arg1[%c0_248, %c16, %c0_249, %c0_250] : memref<1x21x21x64xf32, #tpu.memory_space<vmem>>, vector<1x1x20x64xf32>
    %155 = vector.shape_cast %154 : vector<1x1x20x64xf32> to vector<20x64xf32>
    %c0_251 = arith.constant 0 : index
    %c16_252 = arith.constant 16 : index
    %c1_253 = arith.constant 1 : index
    %c0_254 = arith.constant 0 : index
    %156 = vector.load %arg1[%c0_251, %c16_252, %c1_253, %c0_254] : memref<1x21x21x64xf32, #tpu.memory_space<vmem>>, vector<1x1x20x64xf32>
    %157 = vector.shape_cast %156 : vector<1x1x20x64xf32> to vector<20x64xf32>
    %158 = tpu.concatenate %151, %153, %155, %157 in 1 : vector<20x64xf32>, vector<20x64xf32>, vector<20x64xf32>, vector<20x64xf32> -> vector<20x256xf32>
    %c300 = arith.constant 300 : index
    %c0_255 = arith.constant 0 : index
    %159 = vector.load %arg5[%c300, %c0_255] : memref<400x256xf32, #tpu.memory_space<vmem>>, vector<20x256xf32>
    tpu.vector_store %arg5[%c300, %c0_255], %158 {strides = array<i32>} : memref<400x256xf32, #tpu.memory_space<vmem>>, vector<20x256xf32>,
    %c0_256 = arith.constant 0 : index
    %c16_257 = arith.constant 16 : index
    %c0_258 = arith.constant 0 : index
    %c0_259 = arith.constant 0 : index
    %160 = vector.load %arg1[%c0_256, %c16_257, %c0_258, %c0_259] : memref<1x21x21x64xf32, #tpu.memory_space<vmem>>, vector<1x1x20x64xf32>
    %161 = vector.shape_cast %160 : vector<1x1x20x64xf32> to vector<20x64xf32>
    %c0_260 = arith.constant 0 : index
    %c16_261 = arith.constant 16 : index
    %c1_262 = arith.constant 1 : index
    %c0_263 = arith.constant 0 : index
    %162 = vector.load %arg1[%c0_260, %c16_261, %c1_262, %c0_263] : memref<1x21x21x64xf32, #tpu.memory_space<vmem>>, vector<1x1x20x64xf32>
    %163 = vector.shape_cast %162 : vector<1x1x20x64xf32> to vector<20x64xf32>
    %c0_264 = arith.constant 0 : index
    %c17 = arith.constant 17 : index
    %c0_265 = arith.constant 0 : index
    %c0_266 = arith.constant 0 : index
    %164 = vector.load %arg1[%c0_264, %c17, %c0_265, %c0_266] : memref<1x21x21x64xf32, #tpu.memory_space<vmem>>, vector<1x1x20x64xf32>
    %165 = vector.shape_cast %164 : vector<1x1x20x64xf32> to vector<20x64xf32>
    %c0_267 = arith.constant 0 : index
    %c17_268 = arith.constant 17 : index
    %c1_269 = arith.constant 1 : index
    %c0_270 = arith.constant 0 : index
    %166 = vector.load %arg1[%c0_267, %c17_268, %c1_269, %c0_270] : memref<1x21x21x64xf32, #tpu.memory_space<vmem>>, vector<1x1x20x64xf32>
    %167 = vector.shape_cast %166 : vector<1x1x20x64xf32> to vector<20x64xf32>
    %168 = tpu.concatenate %161, %163, %165, %167 in 1 : vector<20x64xf32>, vector<20x64xf32>, vector<20x64xf32>, vector<20x64xf32> -> vector<20x256xf32>
    %c320 = arith.constant 320 : index
    %c0_271 = arith.constant 0 : index
    %169 = vector.load %arg5[%c320, %c0_271] : memref<400x256xf32, #tpu.memory_space<vmem>>, vector<20x256xf32>
    tpu.vector_store %arg5[%c320, %c0_271], %168 {strides = array<i32>} : memref<400x256xf32, #tpu.memory_space<vmem>>, vector<20x256xf32>,
    %c0_272 = arith.constant 0 : index
    %c17_273 = arith.constant 17 : index
    %c0_274 = arith.constant 0 : index
    %c0_275 = arith.constant 0 : index
    %170 = vector.load %arg1[%c0_272, %c17_273, %c0_274, %c0_275] : memref<1x21x21x64xf32, #tpu.memory_space<vmem>>, vector<1x1x20x64xf32>
    %171 = vector.shape_cast %170 : vector<1x1x20x64xf32> to vector<20x64xf32>
    %c0_276 = arith.constant 0 : index
    %c17_277 = arith.constant 17 : index
    %c1_278 = arith.constant 1 : index
    %c0_279 = arith.constant 0 : index
    %172 = vector.load %arg1[%c0_276, %c17_277, %c1_278, %c0_279] : memref<1x21x21x64xf32, #tpu.memory_space<vmem>>, vector<1x1x20x64xf32>
    %173 = vector.shape_cast %172 : vector<1x1x20x64xf32> to vector<20x64xf32>
    %c0_280 = arith.constant 0 : index
    %c18 = arith.constant 18 : index
    %c0_281 = arith.constant 0 : index
    %c0_282 = arith.constant 0 : index
    %174 = vector.load %arg1[%c0_280, %c18, %c0_281, %c0_282] : memref<1x21x21x64xf32, #tpu.memory_space<vmem>>, vector<1x1x20x64xf32>
    %175 = vector.shape_cast %174 : vector<1x1x20x64xf32> to vector<20x64xf32>
    %c0_283 = arith.constant 0 : index
    %c18_284 = arith.constant 18 : index
    %c1_285 = arith.constant 1 : index
    %c0_286 = arith.constant 0 : index
    %176 = vector.load %arg1[%c0_283, %c18_284, %c1_285, %c0_286] : memref<1x21x21x64xf32, #tpu.memory_space<vmem>>, vector<1x1x20x64xf32>
    %177 = vector.shape_cast %176 : vector<1x1x20x64xf32> to vector<20x64xf32>
    %178 = tpu.concatenate %171, %173, %175, %177 in 1 : vector<20x64xf32>, vector<20x64xf32>, vector<20x64xf32>, vector<20x64xf32> -> vector<20x256xf32>
    %c340 = arith.constant 340 : index
    %c0_287 = arith.constant 0 : index
    %179 = vector.load %arg5[%c340, %c0_287] : memref<400x256xf32, #tpu.memory_space<vmem>>, vector<20x256xf32>
    tpu.vector_store %arg5[%c340, %c0_287], %178 {strides = array<i32>} : memref<400x256xf32, #tpu.memory_space<vmem>>, vector<20x256xf32>,
    %c0_288 = arith.constant 0 : index
    %c18_289 = arith.constant 18 : index
    %c0_290 = arith.constant 0 : index
    %c0_291 = arith.constant 0 : index
    %180 = vector.load %arg1[%c0_288, %c18_289, %c0_290, %c0_291] : memref<1x21x21x64xf32, #tpu.memory_space<vmem>>, vector<1x1x20x64xf32>
    %181 = vector.shape_cast %180 : vector<1x1x20x64xf32> to vector<20x64xf32>
    %c0_292 = arith.constant 0 : index
    %c18_293 = arith.constant 18 : index
    %c1_294 = arith.constant 1 : index
    %c0_295 = arith.constant 0 : index
    %182 = vector.load %arg1[%c0_292, %c18_293, %c1_294, %c0_295] : memref<1x21x21x64xf32, #tpu.memory_space<vmem>>, vector<1x1x20x64xf32>
    %183 = vector.shape_cast %182 : vector<1x1x20x64xf32> to vector<20x64xf32>
    %c0_296 = arith.constant 0 : index
    %c19 = arith.constant 19 : index
    %c0_297 = arith.constant 0 : index
    %c0_298 = arith.constant 0 : index
    %184 = vector.load %arg1[%c0_296, %c19, %c0_297, %c0_298] : memref<1x21x21x64xf32, #tpu.memory_space<vmem>>, vector<1x1x20x64xf32>
    %185 = vector.shape_cast %184 : vector<1x1x20x64xf32> to vector<20x64xf32>
    %c0_299 = arith.constant 0 : index
    %c19_300 = arith.constant 19 : index
    %c1_301 = arith.constant 1 : index
    %c0_302 = arith.constant 0 : index
    %186 = vector.load %arg1[%c0_299, %c19_300, %c1_301, %c0_302] : memref<1x21x21x64xf32, #tpu.memory_space<vmem>>, vector<1x1x20x64xf32>
    %187 = vector.shape_cast %186 : vector<1x1x20x64xf32> to vector<20x64xf32>
    %188 = tpu.concatenate %181, %183, %185, %187 in 1 : vector<20x64xf32>, vector<20x64xf32>, vector<20x64xf32>, vector<20x64xf32> -> vector<20x256xf32>
    %c360 = arith.constant 360 : index
    %c0_303 = arith.constant 0 : index
    %189 = vector.load %arg5[%c360, %c0_303] : memref<400x256xf32, #tpu.memory_space<vmem>>, vector<20x256xf32>
    tpu.vector_store %arg5[%c360, %c0_303], %188 {strides = array<i32>} : memref<400x256xf32, #tpu.memory_space<vmem>>, vector<20x256xf32>,
    %c0_304 = arith.constant 0 : index
    %c19_305 = arith.constant 19 : index
    %c0_306 = arith.constant 0 : index
    %c0_307 = arith.constant 0 : index
    %190 = vector.load %arg1[%c0_304, %c19_305, %c0_306, %c0_307] : memref<1x21x21x64xf32, #tpu.memory_space<vmem>>, vector<1x1x20x64xf32>
    %191 = vector.shape_cast %190 : vector<1x1x20x64xf32> to vector<20x64xf32>
    %c0_308 = arith.constant 0 : index
    %c19_309 = arith.constant 19 : index
    %c1_310 = arith.constant 1 : index
    %c0_311 = arith.constant 0 : index
    %192 = vector.load %arg1[%c0_308, %c19_309, %c1_310, %c0_311] : memref<1x21x21x64xf32, #tpu.memory_space<vmem>>, vector<1x1x20x64xf32>
    %193 = vector.shape_cast %192 : vector<1x1x20x64xf32> to vector<20x64xf32>
    %c0_312 = arith.constant 0 : index
    %c20_313 = arith.constant 20 : index
    %c0_314 = arith.constant 0 : index
    %c0_315 = arith.constant 0 : index
    %194 = vector.load %arg1[%c0_312, %c20_313, %c0_314, %c0_315] : memref<1x21x21x64xf32, #tpu.memory_space<vmem>>, vector<1x1x20x64xf32>
    %195 = vector.shape_cast %194 : vector<1x1x20x64xf32> to vector<20x64xf32>
    %c0_316 = arith.constant 0 : index
    %c20_317 = arith.constant 20 : index
    %c1_318 = arith.constant 1 : index
    %c0_319 = arith.constant 0 : index
    %196 = vector.load %arg1[%c0_316, %c20_317, %c1_318, %c0_319] : memref<1x21x21x64xf32, #tpu.memory_space<vmem>>, vector<1x1x20x64xf32>
    %197 = vector.shape_cast %196 : vector<1x1x20x64xf32> to vector<20x64xf32>
    %198 = tpu.concatenate %191, %193, %195, %197 in 1 : vector<20x64xf32>, vector<20x64xf32>, vector<20x64xf32>, vector<20x64xf32> -> vector<20x256xf32>
    %c380 = arith.constant 380 : index
    %c0_320 = arith.constant 0 : index
    %199 = vector.load %arg5[%c380, %c0_320] : memref<400x256xf32, #tpu.memory_space<vmem>>, vector<20x256xf32>
    tpu.vector_store %arg5[%c380, %c0_320], %198 {strides = array<i32>} : memref<400x256xf32, #tpu.memory_space<vmem>>, vector<20x256xf32>,
    %c0_321 = arith.constant 0 : index
    %c0_322 = arith.constant 0 : index
    %200 = vector.load %arg5[%c0_321, %c0_322] : memref<400x256xf32, #tpu.memory_space<vmem>>, vector<400x256xf32>
    %201 = arith.truncf %200 : vector<400x256xf32> to vector<400x256xbf16>
    %c0_323 = arith.constant 0 : index
    %c0_324 = arith.constant 0 : index
    %202 = vector.load %arg2[%c0_323, %c0_324] : memref<256x32xbf16, #tpu.memory_space<vmem>>, vector<256x32xbf16>
    %cst = arith.constant dense<0.000000e+00> : vector<400x32xf32>
    %203 = tpu.matmul %201, %202, %cst {dimension_numbers = #tpu.dot_dimension_numbers<[1], [0], [0], [1], [0, 0, 1, 1], [], []>} : vector<400x256xbf16>, vector<256x32xbf16>, vector<400x32xf32> -> vector<400x32xf32>
    %c0_325 = arith.constant 0 : index
    %c0_326 = arith.constant 0 : index
    %204 = vector.load %arg3[%c0_325, %c0_326] : memref<1x32xf32, #tpu.memory_space<vmem>>, vector<1x32xf32>
    %205 = vector.broadcast %204 : vector<1x32xf32> to vector<400x32xf32>
    %206 = arith.addf %203, %205 : vector<400x32xf32>
    %cst_327 = arith.constant 0.000000e+00 : f32
    %207 = vector.broadcast %cst_327 : f32 to vector<400x32xf32>
    %208 = arith.maximumf %206, %207 : vector<400x32xf32>
    %c0_328 = arith.constant 0 : index
    %c0_329 = arith.constant 0 : index
    %c0_330 = arith.constant 0 : index
    %209 = vector.load %arg4[%c0_328, %c0_329, %c0_330] : memref<1x400x32xf32, #tpu.memory_space<vmem>>, vector<1x400x32xf32>
    %210 = vector.shape_cast %209 : vector<1x400x32xf32> to vector<400x32xf32>
    %211 = vector.shape_cast %208 : vector<400x32xf32> to vector<1x400x32xf32>
    tpu.vector_store %arg4[%c0_328, %c0_329, %c0_330], %211 {strides = array<i32>} : memref<1x400x32xf32, #tpu.memory_space<vmem>>, vector<1x400x32xf32>,
    return
  }
  func.func @transform_0(%arg0: i32) -> (i32, i32, i32, i32) {
    %c0_i32 = arith.constant 0 : i32
    %c0_i32_0 = arith.constant 0 : i32
    %c0_i32_1 = arith.constant 0 : i32
    %c0_i32_2 = arith.constant 0 : i32
    return %arg0, %c0_i32, %c0_i32_0, %c0_i32_1 : i32, i32, i32, i32
  }
  func.func @transform_1(%arg0: i32) -> (i32, i32) {
    %c0_i32 = arith.constant 0 : i32
    %c0_i32_0 = arith.constant 0 : i32
    %c0_i32_1 = arith.constant 0 : i32
    return %c0_i32, %c0_i32_0 : i32, i32
  }
  func.func @transform_2(%arg0: i32) -> (i32, i32) {
    %c0_i32 = arith.constant 0 : i32
    %c0_i32_0 = arith.constant 0 : i32
    %c0_i32_1 = arith.constant 0 : i32
    return %c0_i32, %c0_i32_0 : i32, i32
  }
  func.func @transform_3(%arg0: i32) -> (i32, i32, i32) {
    %c0_i32 = arith.constant 0 : i32
    %c0_i32_0 = arith.constant 0 : i32
    %c0_i32_1 = arith.constant 0 : i32
    return %arg0, %c0_i32, %c0_i32_0 : i32, i32, i32
  }
}

module attributes {stable_mosaic.version = 11 : i64} {
  func.func @_conv23_kernel(%arg0: i32, %arg1: memref<1x10x10x128xf32, #tpu.memory_space<vmem>>, %arg2: memref<512x64xbf16, #tpu.memory_space<vmem>>, %arg3: memref<1x64xf32, #tpu.memory_space<vmem>>, %arg4: memref<576x64xbf16, #tpu.memory_space<vmem>>, %arg5: memref<1x64xf32, #tpu.memory_space<vmem>>, %arg6: memref<1x49x64xf32, #tpu.memory_space<vmem>>, %arg7: memref<81x512xf32, #tpu.memory_space<vmem>>, %arg8: memref<49x576xf32, #tpu.memory_space<vmem>>) attributes {dimension_semantics = [#tpu.dimension_semantics<parallel>], iteration_bounds = array<i64: 2>, scalar_prefetch = 0 : i64, scratch_operands = 2 : i64, tpu.core_type = #tpu.core_type<tc>, window_params = [{transform_indices = @transform_0, window_bounds = array<i64: 1, 10, 10, 128>}, {pipeline_mode = #tpu.pipeline_mode<synchronous>, transform_indices = @transform_1, window_bounds = array<i64: 512, 64>}, {pipeline_mode = #tpu.pipeline_mode<synchronous>, transform_indices = @transform_2, window_bounds = array<i64: 1, 64>}, {pipeline_mode = #tpu.pipeline_mode<synchronous>, transform_indices = @transform_3, window_bounds = array<i64: 576, 64>}, {pipeline_mode = #tpu.pipeline_mode<synchronous>, transform_indices = @transform_4, window_bounds = array<i64: 1, 64>}, {transform_indices = @transform_5, window_bounds = array<i64: 1, 49, 64>}]} {
    %c0 = arith.constant 0 : index
    %c0_0 = arith.constant 0 : index
    %c0_1 = arith.constant 0 : index
    %c0_2 = arith.constant 0 : index
    %0 = vector.load %arg1[%c0, %c0_0, %c0_1, %c0_2] : memref<1x10x10x128xf32, #tpu.memory_space<vmem>>, vector<1x1x9x128xf32>
    %1 = vector.shape_cast %0 : vector<1x1x9x128xf32> to vector<9x128xf32>
    %c0_3 = arith.constant 0 : index
    %c0_4 = arith.constant 0 : index
    %c1 = arith.constant 1 : index
    %c0_5 = arith.constant 0 : index
    %2 = vector.load %arg1[%c0_3, %c0_4, %c1, %c0_5] : memref<1x10x10x128xf32, #tpu.memory_space<vmem>>, vector<1x1x9x128xf32>
    %3 = vector.shape_cast %2 : vector<1x1x9x128xf32> to vector<9x128xf32>
    %c0_6 = arith.constant 0 : index
    %c1_7 = arith.constant 1 : index
    %c0_8 = arith.constant 0 : index
    %c0_9 = arith.constant 0 : index
    %4 = vector.load %arg1[%c0_6, %c1_7, %c0_8, %c0_9] : memref<1x10x10x128xf32, #tpu.memory_space<vmem>>, vector<1x1x9x128xf32>
    %5 = vector.shape_cast %4 : vector<1x1x9x128xf32> to vector<9x128xf32>
    %c0_10 = arith.constant 0 : index
    %c1_11 = arith.constant 1 : index
    %c1_12 = arith.constant 1 : index
    %c0_13 = arith.constant 0 : index
    %6 = vector.load %arg1[%c0_10, %c1_11, %c1_12, %c0_13] : memref<1x10x10x128xf32, #tpu.memory_space<vmem>>, vector<1x1x9x128xf32>
    %7 = vector.shape_cast %6 : vector<1x1x9x128xf32> to vector<9x128xf32>
    %8 = tpu.concatenate %1, %3, %5, %7 in 1 : vector<9x128xf32>, vector<9x128xf32>, vector<9x128xf32>, vector<9x128xf32> -> vector<9x512xf32>
    %c0_14 = arith.constant 0 : index
    %c0_15 = arith.constant 0 : index
    %9 = vector.load %arg7[%c0_14, %c0_15] : memref<81x512xf32, #tpu.memory_space<vmem>>, vector<9x512xf32>
    tpu.vector_store %arg7[%c0_14, %c0_15], %8 {strides = array<i32>} : memref<81x512xf32, #tpu.memory_space<vmem>>, vector<9x512xf32>,
    %c0_16 = arith.constant 0 : index
    %c1_17 = arith.constant 1 : index
    %c0_18 = arith.constant 0 : index
    %c0_19 = arith.constant 0 : index
    %10 = vector.load %arg1[%c0_16, %c1_17, %c0_18, %c0_19] : memref<1x10x10x128xf32, #tpu.memory_space<vmem>>, vector<1x1x9x128xf32>
    %11 = vector.shape_cast %10 : vector<1x1x9x128xf32> to vector<9x128xf32>
    %c0_20 = arith.constant 0 : index
    %c1_21 = arith.constant 1 : index
    %c1_22 = arith.constant 1 : index
    %c0_23 = arith.constant 0 : index
    %12 = vector.load %arg1[%c0_20, %c1_21, %c1_22, %c0_23] : memref<1x10x10x128xf32, #tpu.memory_space<vmem>>, vector<1x1x9x128xf32>
    %13 = vector.shape_cast %12 : vector<1x1x9x128xf32> to vector<9x128xf32>
    %c0_24 = arith.constant 0 : index
    %c2 = arith.constant 2 : index
    %c0_25 = arith.constant 0 : index
    %c0_26 = arith.constant 0 : index
    %14 = vector.load %arg1[%c0_24, %c2, %c0_25, %c0_26] : memref<1x10x10x128xf32, #tpu.memory_space<vmem>>, vector<1x1x9x128xf32>
    %15 = vector.shape_cast %14 : vector<1x1x9x128xf32> to vector<9x128xf32>
    %c0_27 = arith.constant 0 : index
    %c2_28 = arith.constant 2 : index
    %c1_29 = arith.constant 1 : index
    %c0_30 = arith.constant 0 : index
    %16 = vector.load %arg1[%c0_27, %c2_28, %c1_29, %c0_30] : memref<1x10x10x128xf32, #tpu.memory_space<vmem>>, vector<1x1x9x128xf32>
    %17 = vector.shape_cast %16 : vector<1x1x9x128xf32> to vector<9x128xf32>
    %18 = tpu.concatenate %11, %13, %15, %17 in 1 : vector<9x128xf32>, vector<9x128xf32>, vector<9x128xf32>, vector<9x128xf32> -> vector<9x512xf32>
    %c9 = arith.constant 9 : index
    %c0_31 = arith.constant 0 : index
    %19 = vector.load %arg7[%c9, %c0_31] : memref<81x512xf32, #tpu.memory_space<vmem>>, vector<9x512xf32>
    tpu.vector_store %arg7[%c9, %c0_31], %18 {strides = array<i32>} : memref<81x512xf32, #tpu.memory_space<vmem>>, vector<9x512xf32>,
    %c0_32 = arith.constant 0 : index
    %c2_33 = arith.constant 2 : index
    %c0_34 = arith.constant 0 : index
    %c0_35 = arith.constant 0 : index
    %20 = vector.load %arg1[%c0_32, %c2_33, %c0_34, %c0_35] : memref<1x10x10x128xf32, #tpu.memory_space<vmem>>, vector<1x1x9x128xf32>
    %21 = vector.shape_cast %20 : vector<1x1x9x128xf32> to vector<9x128xf32>
    %c0_36 = arith.constant 0 : index
    %c2_37 = arith.constant 2 : index
    %c1_38 = arith.constant 1 : index
    %c0_39 = arith.constant 0 : index
    %22 = vector.load %arg1[%c0_36, %c2_37, %c1_38, %c0_39] : memref<1x10x10x128xf32, #tpu.memory_space<vmem>>, vector<1x1x9x128xf32>
    %23 = vector.shape_cast %22 : vector<1x1x9x128xf32> to vector<9x128xf32>
    %c0_40 = arith.constant 0 : index
    %c3 = arith.constant 3 : index
    %c0_41 = arith.constant 0 : index
    %c0_42 = arith.constant 0 : index
    %24 = vector.load %arg1[%c0_40, %c3, %c0_41, %c0_42] : memref<1x10x10x128xf32, #tpu.memory_space<vmem>>, vector<1x1x9x128xf32>
    %25 = vector.shape_cast %24 : vector<1x1x9x128xf32> to vector<9x128xf32>
    %c0_43 = arith.constant 0 : index
    %c3_44 = arith.constant 3 : index
    %c1_45 = arith.constant 1 : index
    %c0_46 = arith.constant 0 : index
    %26 = vector.load %arg1[%c0_43, %c3_44, %c1_45, %c0_46] : memref<1x10x10x128xf32, #tpu.memory_space<vmem>>, vector<1x1x9x128xf32>
    %27 = vector.shape_cast %26 : vector<1x1x9x128xf32> to vector<9x128xf32>
    %28 = tpu.concatenate %21, %23, %25, %27 in 1 : vector<9x128xf32>, vector<9x128xf32>, vector<9x128xf32>, vector<9x128xf32> -> vector<9x512xf32>
    %c18 = arith.constant 18 : index
    %c0_47 = arith.constant 0 : index
    %29 = vector.load %arg7[%c18, %c0_47] : memref<81x512xf32, #tpu.memory_space<vmem>>, vector<9x512xf32>
    tpu.vector_store %arg7[%c18, %c0_47], %28 {strides = array<i32>} : memref<81x512xf32, #tpu.memory_space<vmem>>, vector<9x512xf32>,
    %c0_48 = arith.constant 0 : index
    %c3_49 = arith.constant 3 : index
    %c0_50 = arith.constant 0 : index
    %c0_51 = arith.constant 0 : index
    %30 = vector.load %arg1[%c0_48, %c3_49, %c0_50, %c0_51] : memref<1x10x10x128xf32, #tpu.memory_space<vmem>>, vector<1x1x9x128xf32>
    %31 = vector.shape_cast %30 : vector<1x1x9x128xf32> to vector<9x128xf32>
    %c0_52 = arith.constant 0 : index
    %c3_53 = arith.constant 3 : index
    %c1_54 = arith.constant 1 : index
    %c0_55 = arith.constant 0 : index
    %32 = vector.load %arg1[%c0_52, %c3_53, %c1_54, %c0_55] : memref<1x10x10x128xf32, #tpu.memory_space<vmem>>, vector<1x1x9x128xf32>
    %33 = vector.shape_cast %32 : vector<1x1x9x128xf32> to vector<9x128xf32>
    %c0_56 = arith.constant 0 : index
    %c4 = arith.constant 4 : index
    %c0_57 = arith.constant 0 : index
    %c0_58 = arith.constant 0 : index
    %34 = vector.load %arg1[%c0_56, %c4, %c0_57, %c0_58] : memref<1x10x10x128xf32, #tpu.memory_space<vmem>>, vector<1x1x9x128xf32>
    %35 = vector.shape_cast %34 : vector<1x1x9x128xf32> to vector<9x128xf32>
    %c0_59 = arith.constant 0 : index
    %c4_60 = arith.constant 4 : index
    %c1_61 = arith.constant 1 : index
    %c0_62 = arith.constant 0 : index
    %36 = vector.load %arg1[%c0_59, %c4_60, %c1_61, %c0_62] : memref<1x10x10x128xf32, #tpu.memory_space<vmem>>, vector<1x1x9x128xf32>
    %37 = vector.shape_cast %36 : vector<1x1x9x128xf32> to vector<9x128xf32>
    %38 = tpu.concatenate %31, %33, %35, %37 in 1 : vector<9x128xf32>, vector<9x128xf32>, vector<9x128xf32>, vector<9x128xf32> -> vector<9x512xf32>
    %c27 = arith.constant 27 : index
    %c0_63 = arith.constant 0 : index
    %39 = vector.load %arg7[%c27, %c0_63] : memref<81x512xf32, #tpu.memory_space<vmem>>, vector<9x512xf32>
    tpu.vector_store %arg7[%c27, %c0_63], %38 {strides = array<i32>} : memref<81x512xf32, #tpu.memory_space<vmem>>, vector<9x512xf32>,
    %c0_64 = arith.constant 0 : index
    %c4_65 = arith.constant 4 : index
    %c0_66 = arith.constant 0 : index
    %c0_67 = arith.constant 0 : index
    %40 = vector.load %arg1[%c0_64, %c4_65, %c0_66, %c0_67] : memref<1x10x10x128xf32, #tpu.memory_space<vmem>>, vector<1x1x9x128xf32>
    %41 = vector.shape_cast %40 : vector<1x1x9x128xf32> to vector<9x128xf32>
    %c0_68 = arith.constant 0 : index
    %c4_69 = arith.constant 4 : index
    %c1_70 = arith.constant 1 : index
    %c0_71 = arith.constant 0 : index
    %42 = vector.load %arg1[%c0_68, %c4_69, %c1_70, %c0_71] : memref<1x10x10x128xf32, #tpu.memory_space<vmem>>, vector<1x1x9x128xf32>
    %43 = vector.shape_cast %42 : vector<1x1x9x128xf32> to vector<9x128xf32>
    %c0_72 = arith.constant 0 : index
    %c5 = arith.constant 5 : index
    %c0_73 = arith.constant 0 : index
    %c0_74 = arith.constant 0 : index
    %44 = vector.load %arg1[%c0_72, %c5, %c0_73, %c0_74] : memref<1x10x10x128xf32, #tpu.memory_space<vmem>>, vector<1x1x9x128xf32>
    %45 = vector.shape_cast %44 : vector<1x1x9x128xf32> to vector<9x128xf32>
    %c0_75 = arith.constant 0 : index
    %c5_76 = arith.constant 5 : index
    %c1_77 = arith.constant 1 : index
    %c0_78 = arith.constant 0 : index
    %46 = vector.load %arg1[%c0_75, %c5_76, %c1_77, %c0_78] : memref<1x10x10x128xf32, #tpu.memory_space<vmem>>, vector<1x1x9x128xf32>
    %47 = vector.shape_cast %46 : vector<1x1x9x128xf32> to vector<9x128xf32>
    %48 = tpu.concatenate %41, %43, %45, %47 in 1 : vector<9x128xf32>, vector<9x128xf32>, vector<9x128xf32>, vector<9x128xf32> -> vector<9x512xf32>
    %c36 = arith.constant 36 : index
    %c0_79 = arith.constant 0 : index
    %49 = vector.load %arg7[%c36, %c0_79] : memref<81x512xf32, #tpu.memory_space<vmem>>, vector<9x512xf32>
    tpu.vector_store %arg7[%c36, %c0_79], %48 {strides = array<i32>} : memref<81x512xf32, #tpu.memory_space<vmem>>, vector<9x512xf32>,
    %c0_80 = arith.constant 0 : index
    %c5_81 = arith.constant 5 : index
    %c0_82 = arith.constant 0 : index
    %c0_83 = arith.constant 0 : index
    %50 = vector.load %arg1[%c0_80, %c5_81, %c0_82, %c0_83] : memref<1x10x10x128xf32, #tpu.memory_space<vmem>>, vector<1x1x9x128xf32>
    %51 = vector.shape_cast %50 : vector<1x1x9x128xf32> to vector<9x128xf32>
    %c0_84 = arith.constant 0 : index
    %c5_85 = arith.constant 5 : index
    %c1_86 = arith.constant 1 : index
    %c0_87 = arith.constant 0 : index
    %52 = vector.load %arg1[%c0_84, %c5_85, %c1_86, %c0_87] : memref<1x10x10x128xf32, #tpu.memory_space<vmem>>, vector<1x1x9x128xf32>
    %53 = vector.shape_cast %52 : vector<1x1x9x128xf32> to vector<9x128xf32>
    %c0_88 = arith.constant 0 : index
    %c6 = arith.constant 6 : index
    %c0_89 = arith.constant 0 : index
    %c0_90 = arith.constant 0 : index
    %54 = vector.load %arg1[%c0_88, %c6, %c0_89, %c0_90] : memref<1x10x10x128xf32, #tpu.memory_space<vmem>>, vector<1x1x9x128xf32>
    %55 = vector.shape_cast %54 : vector<1x1x9x128xf32> to vector<9x128xf32>
    %c0_91 = arith.constant 0 : index
    %c6_92 = arith.constant 6 : index
    %c1_93 = arith.constant 1 : index
    %c0_94 = arith.constant 0 : index
    %56 = vector.load %arg1[%c0_91, %c6_92, %c1_93, %c0_94] : memref<1x10x10x128xf32, #tpu.memory_space<vmem>>, vector<1x1x9x128xf32>
    %57 = vector.shape_cast %56 : vector<1x1x9x128xf32> to vector<9x128xf32>
    %58 = tpu.concatenate %51, %53, %55, %57 in 1 : vector<9x128xf32>, vector<9x128xf32>, vector<9x128xf32>, vector<9x128xf32> -> vector<9x512xf32>
    %c45 = arith.constant 45 : index
    %c0_95 = arith.constant 0 : index
    %59 = vector.load %arg7[%c45, %c0_95] : memref<81x512xf32, #tpu.memory_space<vmem>>, vector<9x512xf32>
    tpu.vector_store %arg7[%c45, %c0_95], %58 {strides = array<i32>} : memref<81x512xf32, #tpu.memory_space<vmem>>, vector<9x512xf32>,
    %c0_96 = arith.constant 0 : index
    %c6_97 = arith.constant 6 : index
    %c0_98 = arith.constant 0 : index
    %c0_99 = arith.constant 0 : index
    %60 = vector.load %arg1[%c0_96, %c6_97, %c0_98, %c0_99] : memref<1x10x10x128xf32, #tpu.memory_space<vmem>>, vector<1x1x9x128xf32>
    %61 = vector.shape_cast %60 : vector<1x1x9x128xf32> to vector<9x128xf32>
    %c0_100 = arith.constant 0 : index
    %c6_101 = arith.constant 6 : index
    %c1_102 = arith.constant 1 : index
    %c0_103 = arith.constant 0 : index
    %62 = vector.load %arg1[%c0_100, %c6_101, %c1_102, %c0_103] : memref<1x10x10x128xf32, #tpu.memory_space<vmem>>, vector<1x1x9x128xf32>
    %63 = vector.shape_cast %62 : vector<1x1x9x128xf32> to vector<9x128xf32>
    %c0_104 = arith.constant 0 : index
    %c7 = arith.constant 7 : index
    %c0_105 = arith.constant 0 : index
    %c0_106 = arith.constant 0 : index
    %64 = vector.load %arg1[%c0_104, %c7, %c0_105, %c0_106] : memref<1x10x10x128xf32, #tpu.memory_space<vmem>>, vector<1x1x9x128xf32>
    %65 = vector.shape_cast %64 : vector<1x1x9x128xf32> to vector<9x128xf32>
    %c0_107 = arith.constant 0 : index
    %c7_108 = arith.constant 7 : index
    %c1_109 = arith.constant 1 : index
    %c0_110 = arith.constant 0 : index
    %66 = vector.load %arg1[%c0_107, %c7_108, %c1_109, %c0_110] : memref<1x10x10x128xf32, #tpu.memory_space<vmem>>, vector<1x1x9x128xf32>
    %67 = vector.shape_cast %66 : vector<1x1x9x128xf32> to vector<9x128xf32>
    %68 = tpu.concatenate %61, %63, %65, %67 in 1 : vector<9x128xf32>, vector<9x128xf32>, vector<9x128xf32>, vector<9x128xf32> -> vector<9x512xf32>
    %c54 = arith.constant 54 : index
    %c0_111 = arith.constant 0 : index
    %69 = vector.load %arg7[%c54, %c0_111] : memref<81x512xf32, #tpu.memory_space<vmem>>, vector<9x512xf32>
    tpu.vector_store %arg7[%c54, %c0_111], %68 {strides = array<i32>} : memref<81x512xf32, #tpu.memory_space<vmem>>, vector<9x512xf32>,
    %c0_112 = arith.constant 0 : index
    %c7_113 = arith.constant 7 : index
    %c0_114 = arith.constant 0 : index
    %c0_115 = arith.constant 0 : index
    %70 = vector.load %arg1[%c0_112, %c7_113, %c0_114, %c0_115] : memref<1x10x10x128xf32, #tpu.memory_space<vmem>>, vector<1x1x9x128xf32>
    %71 = vector.shape_cast %70 : vector<1x1x9x128xf32> to vector<9x128xf32>
    %c0_116 = arith.constant 0 : index
    %c7_117 = arith.constant 7 : index
    %c1_118 = arith.constant 1 : index
    %c0_119 = arith.constant 0 : index
    %72 = vector.load %arg1[%c0_116, %c7_117, %c1_118, %c0_119] : memref<1x10x10x128xf32, #tpu.memory_space<vmem>>, vector<1x1x9x128xf32>
    %73 = vector.shape_cast %72 : vector<1x1x9x128xf32> to vector<9x128xf32>
    %c0_120 = arith.constant 0 : index
    %c8 = arith.constant 8 : index
    %c0_121 = arith.constant 0 : index
    %c0_122 = arith.constant 0 : index
    %74 = vector.load %arg1[%c0_120, %c8, %c0_121, %c0_122] : memref<1x10x10x128xf32, #tpu.memory_space<vmem>>, vector<1x1x9x128xf32>
    %75 = vector.shape_cast %74 : vector<1x1x9x128xf32> to vector<9x128xf32>
    %c0_123 = arith.constant 0 : index
    %c8_124 = arith.constant 8 : index
    %c1_125 = arith.constant 1 : index
    %c0_126 = arith.constant 0 : index
    %76 = vector.load %arg1[%c0_123, %c8_124, %c1_125, %c0_126] : memref<1x10x10x128xf32, #tpu.memory_space<vmem>>, vector<1x1x9x128xf32>
    %77 = vector.shape_cast %76 : vector<1x1x9x128xf32> to vector<9x128xf32>
    %78 = tpu.concatenate %71, %73, %75, %77 in 1 : vector<9x128xf32>, vector<9x128xf32>, vector<9x128xf32>, vector<9x128xf32> -> vector<9x512xf32>
    %c63 = arith.constant 63 : index
    %c0_127 = arith.constant 0 : index
    %79 = vector.load %arg7[%c63, %c0_127] : memref<81x512xf32, #tpu.memory_space<vmem>>, vector<9x512xf32>
    tpu.vector_store %arg7[%c63, %c0_127], %78 {strides = array<i32>} : memref<81x512xf32, #tpu.memory_space<vmem>>, vector<9x512xf32>,
    %c0_128 = arith.constant 0 : index
    %c8_129 = arith.constant 8 : index
    %c0_130 = arith.constant 0 : index
    %c0_131 = arith.constant 0 : index
    %80 = vector.load %arg1[%c0_128, %c8_129, %c0_130, %c0_131] : memref<1x10x10x128xf32, #tpu.memory_space<vmem>>, vector<1x1x9x128xf32>
    %81 = vector.shape_cast %80 : vector<1x1x9x128xf32> to vector<9x128xf32>
    %c0_132 = arith.constant 0 : index
    %c8_133 = arith.constant 8 : index
    %c1_134 = arith.constant 1 : index
    %c0_135 = arith.constant 0 : index
    %82 = vector.load %arg1[%c0_132, %c8_133, %c1_134, %c0_135] : memref<1x10x10x128xf32, #tpu.memory_space<vmem>>, vector<1x1x9x128xf32>
    %83 = vector.shape_cast %82 : vector<1x1x9x128xf32> to vector<9x128xf32>
    %c0_136 = arith.constant 0 : index
    %c9_137 = arith.constant 9 : index
    %c0_138 = arith.constant 0 : index
    %c0_139 = arith.constant 0 : index
    %84 = vector.load %arg1[%c0_136, %c9_137, %c0_138, %c0_139] : memref<1x10x10x128xf32, #tpu.memory_space<vmem>>, vector<1x1x9x128xf32>
    %85 = vector.shape_cast %84 : vector<1x1x9x128xf32> to vector<9x128xf32>
    %c0_140 = arith.constant 0 : index
    %c9_141 = arith.constant 9 : index
    %c1_142 = arith.constant 1 : index
    %c0_143 = arith.constant 0 : index
    %86 = vector.load %arg1[%c0_140, %c9_141, %c1_142, %c0_143] : memref<1x10x10x128xf32, #tpu.memory_space<vmem>>, vector<1x1x9x128xf32>
    %87 = vector.shape_cast %86 : vector<1x1x9x128xf32> to vector<9x128xf32>
    %88 = tpu.concatenate %81, %83, %85, %87 in 1 : vector<9x128xf32>, vector<9x128xf32>, vector<9x128xf32>, vector<9x128xf32> -> vector<9x512xf32>
    %c72 = arith.constant 72 : index
    %c0_144 = arith.constant 0 : index
    %89 = vector.load %arg7[%c72, %c0_144] : memref<81x512xf32, #tpu.memory_space<vmem>>, vector<9x512xf32>
    tpu.vector_store %arg7[%c72, %c0_144], %88 {strides = array<i32>} : memref<81x512xf32, #tpu.memory_space<vmem>>, vector<9x512xf32>,
    %c0_145 = arith.constant 0 : index
    %c0_146 = arith.constant 0 : index
    %90 = vector.load %arg7[%c0_145, %c0_146] : memref<81x512xf32, #tpu.memory_space<vmem>>, vector<81x512xf32>
    %91 = arith.truncf %90 : vector<81x512xf32> to vector<81x512xbf16>
    %c0_147 = arith.constant 0 : index
    %c0_148 = arith.constant 0 : index
    %92 = vector.load %arg2[%c0_147, %c0_148] : memref<512x64xbf16, #tpu.memory_space<vmem>>, vector<512x64xbf16>
    %cst = arith.constant dense<0.000000e+00> : vector<81x64xf32>
    %93 = tpu.matmul %91, %92, %cst {dimension_numbers = #tpu.dot_dimension_numbers<[1], [0], [0], [1], [0, 0, 1, 1], [], []>} : vector<81x512xbf16>, vector<512x64xbf16>, vector<81x64xf32> -> vector<81x64xf32>
    %c0_149 = arith.constant 0 : index
    %c0_150 = arith.constant 0 : index
    %94 = vector.load %arg3[%c0_149, %c0_150] : memref<1x64xf32, #tpu.memory_space<vmem>>, vector<1x64xf32>
    %95 = vector.broadcast %94 : vector<1x64xf32> to vector<81x64xf32>
    %96 = arith.addf %93, %95 : vector<81x64xf32>
    %cst_151 = arith.constant 0.000000e+00 : f32
    %97 = vector.broadcast %cst_151 : f32 to vector<81x64xf32>
    %98 = arith.maximumf %96, %97 : vector<81x64xf32>
    %99 = vector.extract_strided_slice %98 {offsets = [0, 0], sizes = [7, 64], strides = [1, 1]} : vector<81x64xf32> to vector<7x64xf32>
    %100 = vector.extract_strided_slice %98 {offsets = [1, 0], sizes = [7, 64], strides = [1, 1]} : vector<81x64xf32> to vector<7x64xf32>
    %101 = vector.extract_strided_slice %98 {offsets = [2, 0], sizes = [7, 64], strides = [1, 1]} : vector<81x64xf32> to vector<7x64xf32>
    %102 = vector.extract_strided_slice %98 {offsets = [9, 0], sizes = [7, 64], strides = [1, 1]} : vector<81x64xf32> to vector<7x64xf32>
    %103 = vector.extract_strided_slice %98 {offsets = [10, 0], sizes = [7, 64], strides = [1, 1]} : vector<81x64xf32> to vector<7x64xf32>
    %104 = vector.extract_strided_slice %98 {offsets = [11, 0], sizes = [7, 64], strides = [1, 1]} : vector<81x64xf32> to vector<7x64xf32>
    %105 = vector.extract_strided_slice %98 {offsets = [18, 0], sizes = [7, 64], strides = [1, 1]} : vector<81x64xf32> to vector<7x64xf32>
    %106 = vector.extract_strided_slice %98 {offsets = [19, 0], sizes = [7, 64], strides = [1, 1]} : vector<81x64xf32> to vector<7x64xf32>
    %107 = vector.extract_strided_slice %98 {offsets = [20, 0], sizes = [7, 64], strides = [1, 1]} : vector<81x64xf32> to vector<7x64xf32>
    %108 = tpu.concatenate %99, %100, %101, %102, %103, %104, %105, %106, %107 in 1 : vector<7x64xf32>, vector<7x64xf32>, vector<7x64xf32>, vector<7x64xf32>, vector<7x64xf32>, vector<7x64xf32>, vector<7x64xf32>, vector<7x64xf32>, vector<7x64xf32> -> vector<7x576xf32>
    %c0_152 = arith.constant 0 : index
    %c0_153 = arith.constant 0 : index
    %109 = vector.load %arg8[%c0_152, %c0_153] : memref<49x576xf32, #tpu.memory_space<vmem>>, vector<7x576xf32>
    tpu.vector_store %arg8[%c0_152, %c0_153], %108 {strides = array<i32>} : memref<49x576xf32, #tpu.memory_space<vmem>>, vector<7x576xf32>,
    %110 = vector.extract_strided_slice %98 {offsets = [9, 0], sizes = [7, 64], strides = [1, 1]} : vector<81x64xf32> to vector<7x64xf32>
    %111 = vector.extract_strided_slice %98 {offsets = [10, 0], sizes = [7, 64], strides = [1, 1]} : vector<81x64xf32> to vector<7x64xf32>
    %112 = vector.extract_strided_slice %98 {offsets = [11, 0], sizes = [7, 64], strides = [1, 1]} : vector<81x64xf32> to vector<7x64xf32>
    %113 = vector.extract_strided_slice %98 {offsets = [18, 0], sizes = [7, 64], strides = [1, 1]} : vector<81x64xf32> to vector<7x64xf32>
    %114 = vector.extract_strided_slice %98 {offsets = [19, 0], sizes = [7, 64], strides = [1, 1]} : vector<81x64xf32> to vector<7x64xf32>
    %115 = vector.extract_strided_slice %98 {offsets = [20, 0], sizes = [7, 64], strides = [1, 1]} : vector<81x64xf32> to vector<7x64xf32>
    %116 = vector.extract_strided_slice %98 {offsets = [27, 0], sizes = [7, 64], strides = [1, 1]} : vector<81x64xf32> to vector<7x64xf32>
    %117 = vector.extract_strided_slice %98 {offsets = [28, 0], sizes = [7, 64], strides = [1, 1]} : vector<81x64xf32> to vector<7x64xf32>
    %118 = vector.extract_strided_slice %98 {offsets = [29, 0], sizes = [7, 64], strides = [1, 1]} : vector<81x64xf32> to vector<7x64xf32>
    %119 = tpu.concatenate %110, %111, %112, %113, %114, %115, %116, %117, %118 in 1 : vector<7x64xf32>, vector<7x64xf32>, vector<7x64xf32>, vector<7x64xf32>, vector<7x64xf32>, vector<7x64xf32>, vector<7x64xf32>, vector<7x64xf32>, vector<7x64xf32> -> vector<7x576xf32>
    %c7_154 = arith.constant 7 : index
    %c0_155 = arith.constant 0 : index
    %120 = vector.load %arg8[%c7_154, %c0_155] : memref<49x576xf32, #tpu.memory_space<vmem>>, vector<7x576xf32>
    tpu.vector_store %arg8[%c7_154, %c0_155], %119 {strides = array<i32>} : memref<49x576xf32, #tpu.memory_space<vmem>>, vector<7x576xf32>,
    %121 = vector.extract_strided_slice %98 {offsets = [18, 0], sizes = [7, 64], strides = [1, 1]} : vector<81x64xf32> to vector<7x64xf32>
    %122 = vector.extract_strided_slice %98 {offsets = [19, 0], sizes = [7, 64], strides = [1, 1]} : vector<81x64xf32> to vector<7x64xf32>
    %123 = vector.extract_strided_slice %98 {offsets = [20, 0], sizes = [7, 64], strides = [1, 1]} : vector<81x64xf32> to vector<7x64xf32>
    %124 = vector.extract_strided_slice %98 {offsets = [27, 0], sizes = [7, 64], strides = [1, 1]} : vector<81x64xf32> to vector<7x64xf32>
    %125 = vector.extract_strided_slice %98 {offsets = [28, 0], sizes = [7, 64], strides = [1, 1]} : vector<81x64xf32> to vector<7x64xf32>
    %126 = vector.extract_strided_slice %98 {offsets = [29, 0], sizes = [7, 64], strides = [1, 1]} : vector<81x64xf32> to vector<7x64xf32>
    %127 = vector.extract_strided_slice %98 {offsets = [36, 0], sizes = [7, 64], strides = [1, 1]} : vector<81x64xf32> to vector<7x64xf32>
    %128 = vector.extract_strided_slice %98 {offsets = [37, 0], sizes = [7, 64], strides = [1, 1]} : vector<81x64xf32> to vector<7x64xf32>
    %129 = vector.extract_strided_slice %98 {offsets = [38, 0], sizes = [7, 64], strides = [1, 1]} : vector<81x64xf32> to vector<7x64xf32>
    %130 = tpu.concatenate %121, %122, %123, %124, %125, %126, %127, %128, %129 in 1 : vector<7x64xf32>, vector<7x64xf32>, vector<7x64xf32>, vector<7x64xf32>, vector<7x64xf32>, vector<7x64xf32>, vector<7x64xf32>, vector<7x64xf32>, vector<7x64xf32> -> vector<7x576xf32>
    %c14 = arith.constant 14 : index
    %c0_156 = arith.constant 0 : index
    %131 = vector.load %arg8[%c14, %c0_156] : memref<49x576xf32, #tpu.memory_space<vmem>>, vector<7x576xf32>
    tpu.vector_store %arg8[%c14, %c0_156], %130 {strides = array<i32>} : memref<49x576xf32, #tpu.memory_space<vmem>>, vector<7x576xf32>,
    %132 = vector.extract_strided_slice %98 {offsets = [27, 0], sizes = [7, 64], strides = [1, 1]} : vector<81x64xf32> to vector<7x64xf32>
    %133 = vector.extract_strided_slice %98 {offsets = [28, 0], sizes = [7, 64], strides = [1, 1]} : vector<81x64xf32> to vector<7x64xf32>
    %134 = vector.extract_strided_slice %98 {offsets = [29, 0], sizes = [7, 64], strides = [1, 1]} : vector<81x64xf32> to vector<7x64xf32>
    %135 = vector.extract_strided_slice %98 {offsets = [36, 0], sizes = [7, 64], strides = [1, 1]} : vector<81x64xf32> to vector<7x64xf32>
    %136 = vector.extract_strided_slice %98 {offsets = [37, 0], sizes = [7, 64], strides = [1, 1]} : vector<81x64xf32> to vector<7x64xf32>
    %137 = vector.extract_strided_slice %98 {offsets = [38, 0], sizes = [7, 64], strides = [1, 1]} : vector<81x64xf32> to vector<7x64xf32>
    %138 = vector.extract_strided_slice %98 {offsets = [45, 0], sizes = [7, 64], strides = [1, 1]} : vector<81x64xf32> to vector<7x64xf32>
    %139 = vector.extract_strided_slice %98 {offsets = [46, 0], sizes = [7, 64], strides = [1, 1]} : vector<81x64xf32> to vector<7x64xf32>
    %140 = vector.extract_strided_slice %98 {offsets = [47, 0], sizes = [7, 64], strides = [1, 1]} : vector<81x64xf32> to vector<7x64xf32>
    %141 = tpu.concatenate %132, %133, %134, %135, %136, %137, %138, %139, %140 in 1 : vector<7x64xf32>, vector<7x64xf32>, vector<7x64xf32>, vector<7x64xf32>, vector<7x64xf32>, vector<7x64xf32>, vector<7x64xf32>, vector<7x64xf32>, vector<7x64xf32> -> vector<7x576xf32>
    %c21 = arith.constant 21 : index
    %c0_157 = arith.constant 0 : index
    %142 = vector.load %arg8[%c21, %c0_157] : memref<49x576xf32, #tpu.memory_space<vmem>>, vector<7x576xf32>
    tpu.vector_store %arg8[%c21, %c0_157], %141 {strides = array<i32>} : memref<49x576xf32, #tpu.memory_space<vmem>>, vector<7x576xf32>,
    %143 = vector.extract_strided_slice %98 {offsets = [36, 0], sizes = [7, 64], strides = [1, 1]} : vector<81x64xf32> to vector<7x64xf32>
    %144 = vector.extract_strided_slice %98 {offsets = [37, 0], sizes = [7, 64], strides = [1, 1]} : vector<81x64xf32> to vector<7x64xf32>
    %145 = vector.extract_strided_slice %98 {offsets = [38, 0], sizes = [7, 64], strides = [1, 1]} : vector<81x64xf32> to vector<7x64xf32>
    %146 = vector.extract_strided_slice %98 {offsets = [45, 0], sizes = [7, 64], strides = [1, 1]} : vector<81x64xf32> to vector<7x64xf32>
    %147 = vector.extract_strided_slice %98 {offsets = [46, 0], sizes = [7, 64], strides = [1, 1]} : vector<81x64xf32> to vector<7x64xf32>
    %148 = vector.extract_strided_slice %98 {offsets = [47, 0], sizes = [7, 64], strides = [1, 1]} : vector<81x64xf32> to vector<7x64xf32>
    %149 = vector.extract_strided_slice %98 {offsets = [54, 0], sizes = [7, 64], strides = [1, 1]} : vector<81x64xf32> to vector<7x64xf32>
    %150 = vector.extract_strided_slice %98 {offsets = [55, 0], sizes = [7, 64], strides = [1, 1]} : vector<81x64xf32> to vector<7x64xf32>
    %151 = vector.extract_strided_slice %98 {offsets = [56, 0], sizes = [7, 64], strides = [1, 1]} : vector<81x64xf32> to vector<7x64xf32>
    %152 = tpu.concatenate %143, %144, %145, %146, %147, %148, %149, %150, %151 in 1 : vector<7x64xf32>, vector<7x64xf32>, vector<7x64xf32>, vector<7x64xf32>, vector<7x64xf32>, vector<7x64xf32>, vector<7x64xf32>, vector<7x64xf32>, vector<7x64xf32> -> vector<7x576xf32>
    %c28 = arith.constant 28 : index
    %c0_158 = arith.constant 0 : index
    %153 = vector.load %arg8[%c28, %c0_158] : memref<49x576xf32, #tpu.memory_space<vmem>>, vector<7x576xf32>
    tpu.vector_store %arg8[%c28, %c0_158], %152 {strides = array<i32>} : memref<49x576xf32, #tpu.memory_space<vmem>>, vector<7x576xf32>,
    %154 = vector.extract_strided_slice %98 {offsets = [45, 0], sizes = [7, 64], strides = [1, 1]} : vector<81x64xf32> to vector<7x64xf32>
    %155 = vector.extract_strided_slice %98 {offsets = [46, 0], sizes = [7, 64], strides = [1, 1]} : vector<81x64xf32> to vector<7x64xf32>
    %156 = vector.extract_strided_slice %98 {offsets = [47, 0], sizes = [7, 64], strides = [1, 1]} : vector<81x64xf32> to vector<7x64xf32>
    %157 = vector.extract_strided_slice %98 {offsets = [54, 0], sizes = [7, 64], strides = [1, 1]} : vector<81x64xf32> to vector<7x64xf32>
    %158 = vector.extract_strided_slice %98 {offsets = [55, 0], sizes = [7, 64], strides = [1, 1]} : vector<81x64xf32> to vector<7x64xf32>
    %159 = vector.extract_strided_slice %98 {offsets = [56, 0], sizes = [7, 64], strides = [1, 1]} : vector<81x64xf32> to vector<7x64xf32>
    %160 = vector.extract_strided_slice %98 {offsets = [63, 0], sizes = [7, 64], strides = [1, 1]} : vector<81x64xf32> to vector<7x64xf32>
    %161 = vector.extract_strided_slice %98 {offsets = [64, 0], sizes = [7, 64], strides = [1, 1]} : vector<81x64xf32> to vector<7x64xf32>
    %162 = vector.extract_strided_slice %98 {offsets = [65, 0], sizes = [7, 64], strides = [1, 1]} : vector<81x64xf32> to vector<7x64xf32>
    %163 = tpu.concatenate %154, %155, %156, %157, %158, %159, %160, %161, %162 in 1 : vector<7x64xf32>, vector<7x64xf32>, vector<7x64xf32>, vector<7x64xf32>, vector<7x64xf32>, vector<7x64xf32>, vector<7x64xf32>, vector<7x64xf32>, vector<7x64xf32> -> vector<7x576xf32>
    %c35 = arith.constant 35 : index
    %c0_159 = arith.constant 0 : index
    %164 = vector.load %arg8[%c35, %c0_159] : memref<49x576xf32, #tpu.memory_space<vmem>>, vector<7x576xf32>
    tpu.vector_store %arg8[%c35, %c0_159], %163 {strides = array<i32>} : memref<49x576xf32, #tpu.memory_space<vmem>>, vector<7x576xf32>,
    %165 = vector.extract_strided_slice %98 {offsets = [54, 0], sizes = [7, 64], strides = [1, 1]} : vector<81x64xf32> to vector<7x64xf32>
    %166 = vector.extract_strided_slice %98 {offsets = [55, 0], sizes = [7, 64], strides = [1, 1]} : vector<81x64xf32> to vector<7x64xf32>
    %167 = vector.extract_strided_slice %98 {offsets = [56, 0], sizes = [7, 64], strides = [1, 1]} : vector<81x64xf32> to vector<7x64xf32>
    %168 = vector.extract_strided_slice %98 {offsets = [63, 0], sizes = [7, 64], strides = [1, 1]} : vector<81x64xf32> to vector<7x64xf32>
    %169 = vector.extract_strided_slice %98 {offsets = [64, 0], sizes = [7, 64], strides = [1, 1]} : vector<81x64xf32> to vector<7x64xf32>
    %170 = vector.extract_strided_slice %98 {offsets = [65, 0], sizes = [7, 64], strides = [1, 1]} : vector<81x64xf32> to vector<7x64xf32>
    %171 = vector.extract_strided_slice %98 {offsets = [72, 0], sizes = [7, 64], strides = [1, 1]} : vector<81x64xf32> to vector<7x64xf32>
    %172 = vector.extract_strided_slice %98 {offsets = [73, 0], sizes = [7, 64], strides = [1, 1]} : vector<81x64xf32> to vector<7x64xf32>
    %173 = vector.extract_strided_slice %98 {offsets = [74, 0], sizes = [7, 64], strides = [1, 1]} : vector<81x64xf32> to vector<7x64xf32>
    %174 = tpu.concatenate %165, %166, %167, %168, %169, %170, %171, %172, %173 in 1 : vector<7x64xf32>, vector<7x64xf32>, vector<7x64xf32>, vector<7x64xf32>, vector<7x64xf32>, vector<7x64xf32>, vector<7x64xf32>, vector<7x64xf32>, vector<7x64xf32> -> vector<7x576xf32>
    %c42 = arith.constant 42 : index
    %c0_160 = arith.constant 0 : index
    %175 = vector.load %arg8[%c42, %c0_160] : memref<49x576xf32, #tpu.memory_space<vmem>>, vector<7x576xf32>
    tpu.vector_store %arg8[%c42, %c0_160], %174 {strides = array<i32>} : memref<49x576xf32, #tpu.memory_space<vmem>>, vector<7x576xf32>,
    %c0_161 = arith.constant 0 : index
    %c0_162 = arith.constant 0 : index
    %176 = vector.load %arg8[%c0_161, %c0_162] : memref<49x576xf32, #tpu.memory_space<vmem>>, vector<49x576xf32>
    %177 = arith.truncf %176 : vector<49x576xf32> to vector<49x576xbf16>
    %c0_163 = arith.constant 0 : index
    %c0_164 = arith.constant 0 : index
    %178 = vector.load %arg4[%c0_163, %c0_164] : memref<576x64xbf16, #tpu.memory_space<vmem>>, vector<576x64xbf16>
    %cst_165 = arith.constant dense<0.000000e+00> : vector<49x64xf32>
    %179 = tpu.matmul %177, %178, %cst_165 {dimension_numbers = #tpu.dot_dimension_numbers<[1], [0], [0], [1], [0, 0, 1, 1], [], []>} : vector<49x576xbf16>, vector<576x64xbf16>, vector<49x64xf32> -> vector<49x64xf32>
    %c0_166 = arith.constant 0 : index
    %c0_167 = arith.constant 0 : index
    %180 = vector.load %arg5[%c0_166, %c0_167] : memref<1x64xf32, #tpu.memory_space<vmem>>, vector<1x64xf32>
    %181 = vector.broadcast %180 : vector<1x64xf32> to vector<49x64xf32>
    %182 = arith.addf %179, %181 : vector<49x64xf32>
    %cst_168 = arith.constant 0.000000e+00 : f32
    %183 = vector.broadcast %cst_168 : f32 to vector<49x64xf32>
    %184 = arith.maximumf %182, %183 : vector<49x64xf32>
    %c0_169 = arith.constant 0 : index
    %c0_170 = arith.constant 0 : index
    %c0_171 = arith.constant 0 : index
    %185 = vector.load %arg6[%c0_169, %c0_170, %c0_171] : memref<1x49x64xf32, #tpu.memory_space<vmem>>, vector<1x49x64xf32>
    %186 = vector.shape_cast %185 : vector<1x49x64xf32> to vector<49x64xf32>
    %187 = vector.shape_cast %184 : vector<49x64xf32> to vector<1x49x64xf32>
    tpu.vector_store %arg6[%c0_169, %c0_170, %c0_171], %187 {strides = array<i32>} : memref<1x49x64xf32, #tpu.memory_space<vmem>>, vector<1x49x64xf32>,
    return
  }
  func.func @transform_0(%arg0: i32) -> (i32, i32, i32, i32) {
    %c0_i32 = arith.constant 0 : i32
    %c0_i32_0 = arith.constant 0 : i32
    %c0_i32_1 = arith.constant 0 : i32
    %c0_i32_2 = arith.constant 0 : i32
    return %arg0, %c0_i32, %c0_i32_0, %c0_i32_1 : i32, i32, i32, i32
  }
  func.func @transform_1(%arg0: i32) -> (i32, i32) {
    %c0_i32 = arith.constant 0 : i32
    %c0_i32_0 = arith.constant 0 : i32
    %c0_i32_1 = arith.constant 0 : i32
    return %c0_i32, %c0_i32_0 : i32, i32
  }
  func.func @transform_2(%arg0: i32) -> (i32, i32) {
    %c0_i32 = arith.constant 0 : i32
    %c0_i32_0 = arith.constant 0 : i32
    %c0_i32_1 = arith.constant 0 : i32
    return %c0_i32, %c0_i32_0 : i32, i32
  }
  func.func @transform_3(%arg0: i32) -> (i32, i32) {
    %c0_i32 = arith.constant 0 : i32
    %c0_i32_0 = arith.constant 0 : i32
    %c0_i32_1 = arith.constant 0 : i32
    return %c0_i32, %c0_i32_0 : i32, i32
  }
  func.func @transform_4(%arg0: i32) -> (i32, i32) {
    %c0_i32 = arith.constant 0 : i32
    %c0_i32_0 = arith.constant 0 : i32
    %c0_i32_1 = arith.constant 0 : i32
    return %c0_i32, %c0_i32_0 : i32, i32
  }
  func.func @transform_5(%arg0: i32) -> (i32, i32, i32) {
    %c0_i32 = arith.constant 0 : i32
    %c0_i32_0 = arith.constant 0 : i32
    %c0_i32_1 = arith.constant 0 : i32
    return %arg0, %c0_i32, %c0_i32_0 : i32, i32, i32
  }
}

module attributes {stable_mosaic.version = 11 : i64} {
  func.func @_mlp_head_kernel(%arg0: i32, %arg1: memref<8x3136xf32, #tpu.memory_space<vmem>>, %arg2: memref<3136x512xbf16, #tpu.memory_space<vmem>>, %arg3: memref<1x512xf32, #tpu.memory_space<vmem>>, %arg4: memref<512x128xbf16, #tpu.memory_space<vmem>>, %arg5: memref<1x128xf32, #tpu.memory_space<vmem>>, %arg6: memref<8x128xf32, #tpu.memory_space<vmem>>) attributes {dimension_semantics = [#tpu.dimension_semantics<parallel>], iteration_bounds = array<i64: 1>, scalar_prefetch = 0 : i64, scratch_operands = 0 : i64, tpu.core_type = #tpu.core_type<tc>, window_params = [{transform_indices = @transform_0, window_bounds = array<i64: 8, 3136>}, {pipeline_mode = #tpu.pipeline_mode<synchronous>, transform_indices = @transform_1, window_bounds = array<i64: 3136, 512>}, {pipeline_mode = #tpu.pipeline_mode<synchronous>, transform_indices = @transform_2, window_bounds = array<i64: 1, 512>}, {pipeline_mode = #tpu.pipeline_mode<synchronous>, transform_indices = @transform_3, window_bounds = array<i64: 512, 128>}, {pipeline_mode = #tpu.pipeline_mode<synchronous>, transform_indices = @transform_4, window_bounds = array<i64: 1, 128>}, {transform_indices = @transform_5, window_bounds = array<i64: 8, 128>}]} {
    %c0 = arith.constant 0 : index
    %c0_0 = arith.constant 0 : index
    %0 = vector.load %arg1[%c0, %c0_0] : memref<8x3136xf32, #tpu.memory_space<vmem>>, vector<8x3136xf32>
    %1 = arith.truncf %0 : vector<8x3136xf32> to vector<8x3136xbf16>
    %c0_1 = arith.constant 0 : index
    %c0_2 = arith.constant 0 : index
    %2 = vector.load %arg2[%c0_1, %c0_2] : memref<3136x512xbf16, #tpu.memory_space<vmem>>, vector<3136x512xbf16>
    %cst = arith.constant dense<0.000000e+00> : vector<8x512xf32>
    %3 = tpu.matmul %1, %2, %cst {dimension_numbers = #tpu.dot_dimension_numbers<[1], [0], [0], [1], [0, 0, 1, 1], [], []>} : vector<8x3136xbf16>, vector<3136x512xbf16>, vector<8x512xf32> -> vector<8x512xf32>
    %c0_3 = arith.constant 0 : index
    %c0_4 = arith.constant 0 : index
    %4 = vector.load %arg3[%c0_3, %c0_4] : memref<1x512xf32, #tpu.memory_space<vmem>>, vector<1x512xf32>
    %5 = vector.broadcast %4 : vector<1x512xf32> to vector<8x512xf32>
    %6 = arith.addf %3, %5 : vector<8x512xf32>
    %cst_5 = arith.constant 0.000000e+00 : f32
    %7 = vector.broadcast %cst_5 : f32 to vector<8x512xf32>
    %8 = arith.maximumf %6, %7 : vector<8x512xf32>
    %9 = arith.truncf %8 : vector<8x512xf32> to vector<8x512xbf16>
    %c0_6 = arith.constant 0 : index
    %c0_7 = arith.constant 0 : index
    %10 = vector.load %arg4[%c0_6, %c0_7] : memref<512x128xbf16, #tpu.memory_space<vmem>>, vector<512x128xbf16>
    %cst_8 = arith.constant dense<0.000000e+00> : vector<8x128xf32>
    %11 = tpu.matmul %9, %10, %cst_8 {dimension_numbers = #tpu.dot_dimension_numbers<[1], [0], [0], [1], [0, 0, 1, 1], [], []>} : vector<8x512xbf16>, vector<512x128xbf16>, vector<8x128xf32> -> vector<8x128xf32>
    %c0_9 = arith.constant 0 : index
    %c0_10 = arith.constant 0 : index
    %12 = vector.load %arg5[%c0_9, %c0_10] : memref<1x128xf32, #tpu.memory_space<vmem>>, vector<1x128xf32>
    %13 = vector.broadcast %12 : vector<1x128xf32> to vector<8x128xf32>
    %14 = arith.addf %11, %13 : vector<8x128xf32>
    %c0_11 = arith.constant 0 : index
    %c0_12 = arith.constant 0 : index
    %15 = vector.load %arg6[%c0_11, %c0_12] : memref<8x128xf32, #tpu.memory_space<vmem>>, vector<8x128xf32>
    tpu.vector_store %arg6[%c0_11, %c0_12], %14 {strides = array<i32>} : memref<8x128xf32, #tpu.memory_space<vmem>>, vector<8x128xf32>,
    return
  }
  func.func @transform_0(%arg0: i32) -> (i32, i32) {
    %c0_i32 = arith.constant 0 : i32
    %c0_i32_0 = arith.constant 0 : i32
    return %arg0, %c0_i32 : i32, i32
  }
  func.func @transform_1(%arg0: i32) -> (i32, i32) {
    %c0_i32 = arith.constant 0 : i32
    %c0_i32_0 = arith.constant 0 : i32
    %c0_i32_1 = arith.constant 0 : i32
    return %c0_i32, %c0_i32_0 : i32, i32
  }
  func.func @transform_2(%arg0: i32) -> (i32, i32) {
    %c0_i32 = arith.constant 0 : i32
    %c0_i32_0 = arith.constant 0 : i32
    %c0_i32_1 = arith.constant 0 : i32
    return %c0_i32, %c0_i32_0 : i32, i32
  }
  func.func @transform_3(%arg0: i32) -> (i32, i32) {
    %c0_i32 = arith.constant 0 : i32
    %c0_i32_0 = arith.constant 0 : i32
    %c0_i32_1 = arith.constant 0 : i32
    return %c0_i32, %c0_i32_0 : i32, i32
  }
  func.func @transform_4(%arg0: i32) -> (i32, i32) {
    %c0_i32 = arith.constant 0 : i32
    %c0_i32_0 = arith.constant 0 : i32
    %c0_i32_1 = arith.constant 0 : i32
    return %c0_i32, %c0_i32_0 : i32, i32
  }
  func.func @transform_5(%arg0: i32) -> (i32, i32) {
    %c0_i32 = arith.constant 0 : i32
    %c0_i32_0 = arith.constant 0 : i32
    return %arg0, %c0_i32 : i32, i32
  }
}

</mosaic_0001>

<bundles_post_ra>
// kernel: qnetwork_forward.3
= control target key start
LH: loop header
LB: loop body
LE: loop exit
PB: predicated region body
PF: predicated region fallthrough
CT: control target
= control target key end

     0   :  { %s2398_s12 = smov 0   ;;  %s3369_s0 = inlined_call_operand.vmem [shape: f32[2,21,21,64], index: 0, kind: input, shape index: {}]   ;;  %s3370_s1 = inlined_call_operand.vmem [shape: bf16[256,32], index: 1, kind: input, shape index: {}]   ;;  %s3371_s2 = inlined_call_operand.vmem [shape: f32[1,32], index: 2, kind: input, shape index: {}]   ;;  %s3372_s3 = inlined_call_operand.vmem [shape: f32[2,400,32], index: 3, kind: output, shape index: {}]  }
   0x1 LB: > { %s2048_s13 = sadd.s32 4294967295, %s2374_s12   ;;  %p2052_p0 = scmp.ge.s32.totalorder %s2374_s12, 1  ;;  %s2374_s12 = sphi %s2398_s12, %s13_s12  }
   0x2   : > { %p137_p1 = scmp.lt.s32.totalorder %s2374_s12, 3 }
   0x4   : > { %p138_p2 = pnand %p2052_p0, %p137_p1 }
   0x5   : > { %p161_p3 = scmp.lt.s32.totalorder (!%p138_p2), %s2048_s13, 1  ;;  %v2352_v0 = vld [vmem:[%s3370_s1] sm:$0xff] (!%p138_p2)   ;;  %v2376_v1 = vmov (!%p138_p2), 0   ;;  %v2353_v2 = vld [vmem:[%s3370_s1 + $0x8] sm:$0xff] (!%p138_p2)   ;;  %v2354_v3 = vld [vmem:[%s3370_s1 + $0x10] sm:$0xff] (!%p138_p2)   ;;  %s2377_s24 = smov (!%p138_p2), 64  }
   0x6   : > { %141 = sbr.rel (%p138_p2) target bundleno = 592 (0x250), region = 32  ;;  %1659 = vmatprep.subr.bf16.mxu0 (!%p138_p2), %v2376_v1  ;;  %2308 = vmatprep.subr.bf16.mxu1 (!%p138_p2), %v2376_v1  ;;  %v2355_v8 = vld [vmem:[%s3370_s1 + $0x18] sm:$0xff] (!%p138_p2)   ;;  %v2356_v11 = vld [vmem:[%s3370_s1 + $0x20] sm:$0xff] (!%p138_p2)   ;;  %v2357_v12 = vld [vmem:[%s3370_s1 + $0x28] sm:$0xff] (!%p138_p2)   ;;  %vm209_vm0 = vcmask (!%p138_p2), 523264   ;;  %vm271_vm1 = vcmask (!%p138_p2), 1043456  }
   0x7   : > { %1660 = vmatpush1.bf16.msra.mxu0 (!%p138_p2), %v2352_v0  ;;  %2324 = vmatpush1.bf16.msra.mxu1 (!%p138_p2), %v2352_v0  ;;  %v2358_v15 = vld [vmem:[%s3370_s1 + $0x30] sm:$0xff] (!%p138_p2)   ;;  %v2359_v18 = vld [vmem:[%s3370_s1 + $0x38] sm:$0xff] (!%p138_p2)   ;;  %v2360_v21 = vld [vmem:[%s3370_s1 + $0x40] sm:$0xff] (!%p138_p2)   ;;  %vm1942_vm2 = vcmask (!%p138_p2), 261120  }
   0x8   : > { %1661 = vmatprep.subr.bf16.mxu0 (!%p138_p2), %v2376_v1  ;;  %2309 = vmatprep.subr.bf16.mxu1 (!%p138_p2), %v2376_v1  ;;  %v2361_v24 = vld [vmem:[%s3370_s1 + $0x48] sm:$0xff] (!%p138_p2)   ;;  %v2362_v27 = vld [vmem:[%s3370_s1 + $0x50] sm:$0xff] (!%p138_p2)   ;;  %v2363_v30 = vld [vmem:[%s3370_s1 + $0x58] sm:$0xff] (!%p138_p2)  }
   0x9   : > { %v2364_v32 = vld [vmem:[%s3370_s1 + $0x60] sm:$0xff] (!%p138_p2)   ;;  %v2365_v34 = vld [vmem:[%s3370_s1 + $0x68] sm:$0xff] (!%p138_p2)   ;;  %v2366_v36 = vld [vmem:[%s3370_s1 + $0x70] sm:$0xff] (!%p138_p2)  }
   0xa   : > { %v2367_v39 = vld [vmem:[%s3370_s1 + $0x78] sm:$0xff] (!%p138_p2)  }
   0xb   : > { %1662 = vmatpush1.bf16.msra.mxu0 (!%p138_p2), %v2353_v2  ;;  %2325 = vmatpush1.bf16.msra.mxu1 (!%p138_p2), %v2353_v2 }
   0xc   : > { %1663 = vmatprep.subr.bf16.mxu0 (!%p138_p2), %v2376_v1  ;;  %2310 = vmatprep.subr.bf16.mxu1 (!%p138_p2), %v2376_v1 }
   0xd   : > { %s3374_s13 = smov (!%p161_p3, %s2048_s13), 1 }
   0xe   : > { %s2340_s18 = smul.u32 504, %s3374_s13 }
   0xf   : > { %1664 = vmatpush1.bf16.msra.mxu0 %v2354_v3  ;;  %2326 = vmatpush1.bf16.msra.mxu1 %v2354_v3 }
  0x10   : > { %s2422_s21 = scalar_lea.vmem %s3369_s0, %s2340_s18  ;;  %1665 = vmatprep.subr.bf16.mxu0 %v2376_v1  ;;  %2311 = vmatprep.subr.bf16.mxu1 %v2376_v1 }
  0x11   : > { %v2058_v4 = vld [vmem:[%s2422_s21 + $0x19] sm:$0xff]  ;;  %v175_v5 = vld [vmem:[%s2422_s21 + $0x1] sm:$0xff]  ;;  %v176_v7 = vld [vmem:[%s2422_s21 + $0x9] sm:$0xff] }
  0x12   : > { %200 = vrot.lane.b32.xlu0 %v2058_v4, %s2377_s24  ;;  %188 = vrot.lane.b32.xlu1 %v175_v5, %s2377_s24  ;;  %v2059_v6 = vld [vmem:[%s2422_s21 + $0x21] sm:$0xff]  ;;  %v2443_v9 = vld [vmem:[%s2422_s21 + $0x31] sm:$0xff] }
  0x13   : > { %v2446_v10 = vld [vmem:[%s2422_s21 + $0x39] sm:$0xff]  ;;  %1666 = vmatpush1.bf16.msra.mxu0 %v2355_v8  ;;  %2327 = vmatpush1.bf16.msra.mxu1 %v2355_v8  ;;  %v2465_v13 = vld [vmem:[%s2422_s21 + $0x121] sm:$0xff]  ;;  %v2184_v14 = vld [vmem:[%s2422_s21 + $0x109] sm:$0xff] }
  0x14   : > { %1667 = vmatprep.subr.bf16.mxu0 %v2376_v1  ;;  %2312 = vmatprep.subr.bf16.mxu1 %v2376_v1  ;;  %v2060_v16 = vld [vmem:[%s2422_s21 + $0x29] sm:$0xf]  ;;  %v2179_v17 = vld [vmem:[%s2422_s21 + $0x111] sm:$0xff]  ;;  %v2180_v19 = vld [vmem:[%s2422_s21 + $0x119] sm:$0xf] }
  0x15   : > { %v177_v20 = vld [vmem:[%s2422_s21 + $0x11] sm:$0xf]  ;;  %v2173_v22 = vld [vmem:[%s2422_s21 + $0xf9] sm:$0xff]  ;;  %v2174_v23 = vld [vmem:[%s2422_s21 + $0x101] sm:$0xf] }
  0x16   : > { %202 = vrot.lane.b32.xlu0 %v2059_v6, %s2377_s24  ;;  %190 = vrot.lane.b32.xlu1 %v176_v7, %s2377_s24  ;;  %v2072_v25 = vld [vmem:[%s2422_s21 + $0x41] sm:$0xf]  ;;  %v2191_v26 = vld [vmem:[%s2422_s21 + $0x129] sm:$0xff] }
  0x17   : > { %1668 = vmatpush1.bf16.msra.mxu0 %v2356_v11  ;;  %2328 = vmatpush1.bf16.msra.mxu1 %v2356_v11  ;;  %v2192_v28 = vld [vmem:[%s2422_s21 + $0x131] sm:$0xf]  ;;  %v2066_v29 = vld [vmem:[%s2422_s21 + $0x29] sm:$0xf]  ;;  %v2186_v31 = vld [vmem:[%s2422_s21 + $0x119] sm:$0xf] }
  0x18   : > { %1669 = vmatprep.subr.bf16.mxu0 %v2376_v1  ;;  %2313 = vmatprep.subr.bf16.mxu1 %v2376_v1  ;;  %v2082_v33 = vld [vmem:[%s2422_s21 + $0x49] sm:$0xff]  ;;  %v2094_v35 = vld [vmem:[%s2422_s21 + $0x61] sm:$0xff]  ;;  %v2083_v37 = vld [vmem:[%s2422_s21 + $0x51] sm:$0xff] }
  0x19   : > { %v2084_v38 = vld [vmem:[%s2422_s21 + $0x59] sm:$0xf]  ;;  %v2203_v41 = vld [vmem:[%s2422_s21 + $0x141] sm:$0xff]  ;;  %v2095_v43 = vld [vmem:[%s2422_s21 + $0x69] sm:$0xff] }
  0x1a   : > { %250 = vrot.lane.b32.xlu0 %v2443_v9, %s2377_s24  ;;  %252 = vrot.lane.b32.xlu1 %v2446_v10, %s2377_s24  ;;  %v2202_v40 = vld [vmem:[%s2422_s21 + $0x139] sm:$0xff]  ;;  %v2078_v42 = vld [vmem:[%s2422_s21 + $0x41] sm:$0xf] }
  0x1b   : > { %1670 = vmatpush1.bf16.msra.mxu0 %v2357_v12  ;;  %2329 = vmatpush1.bf16.msra.mxu1 %v2357_v12  ;;  %v2096_v44 = vld [vmem:[%s2422_s21 + $0x71] sm:$0xf]  ;;  %v2572_v46 = vld [vmem:[%s2422_s21 + $0x159] sm:$0xff]  ;;  %v2204_v48 = vld [vmem:[%s2422_s21 + $0x149] sm:$0xf] }
  0x1c   : > { %1671 = vmatprep.subr.bf16.mxu0 %v2376_v1  ;;  %2314 = vmatprep.subr.bf16.mxu1 %v2376_v1  ;;  %v2214_v45 = vld [vmem:[%s2422_s21 + $0x151] sm:$0xff]  ;;  %v2090_v47 = vld [vmem:[%s2422_s21 + $0x59] sm:$0xf]  ;;  %v2216_v50 = vld [vmem:[%s2422_s21 + $0x161] sm:$0xf] }
  0x1d   : > { %v2198_v49 = vld [vmem:[%s2422_s21 + $0x131] sm:$0xf]  ;;  %v2210_v51 = vld [vmem:[%s2422_s21 + $0x149] sm:$0xf]  ;;  %v2106_v52 = vld [vmem:[%s2422_s21 + $0x79] sm:$0xff] }
  0x1e   : > { %238 = vrot.lane.b32.xlu0 %v2058_v4, %s2377_s24  ;;  %240 = vrot.lane.b32.xlu1 %v2059_v6, %s2377_s24  ;;  %v2107_v53 = vld [vmem:[%s2422_s21 + $0x81] sm:$0xff]  ;;  %v2226_v54 = vld [vmem:[%s2422_s21 + $0x169] sm:$0xff] }
  0x1f   : > { %1672 = vmatpush1.bf16.msra.mxu0 %v2358_v15  ;;  %2330 = vmatpush1.bf16.msra.mxu1 %v2358_v15  ;;  %v2600_v55 = vld [vmem:[%s2422_s21 + $0x91] sm:$0xff]  ;;  %v2603_v56 = vld [vmem:[%s2422_s21 + $0x99] sm:$0xff]  ;;  %v2612_v57 = vld [vmem:[%s2422_s21 + $0x181] sm:$0xff] }
  0x20   : > { %1673 = vmatprep.subr.bf16.mxu0 %v2376_v1  ;;  %2315 = vmatprep.subr.bf16.mxu1 %v2376_v1  ;;  %v2055_v58 = vld [vmem:[%s2422_s21 + $0x18] sm:$0xff]  ;;  %v172_v59 = vld [vmem:[%s2422_s21] sm:$0xff]  ;;  %v2108_v60 = vld [vmem:[%s2422_s21 + $0x89] sm:$0xf] }
  0x21   : > { %v2621_v61 = vld [vmem:[%s2422_s21 + $0x171] sm:$0xff]  ;;  %v2056_v2 = vld [vmem:[%s2422_s21 + $0x20] sm:$0xff]  ;;  %v173_v3 = vld [vmem:[%s2422_s21 + $0x8] sm:$0xff] }
  0x22   : > { %851 = vrot.lane.b32.xlu0 %v2465_v13, %s2377_s24  ;;  %839 = vrot.lane.b32.xlu1 %v2184_v14, %s2377_s24  ;;  %v2228_v4 = vld [vmem:[%s2422_s21 + $0x179] sm:$0xf]  ;;  %v2102_v5 = vld [vmem:[%s2422_s21 + $0x71] sm:$0xf] }
  0x23   : > { %1674 = vmatpush1.bf16.msra.mxu0 %v2359_v18  ;;  %2331 = vmatpush1.bf16.msra.mxu1 %v2359_v18  ;;  %v2640_v11 = vld [vmem:[%s2422_s21 + $0x38] sm:$0xff]  ;;  %v2222_v14 = vld [vmem:[%s2422_s21 + $0x161] sm:$0xf] }
  0x24   : > { %1675 = vmatprep.subr.bf16.mxu0 %v2376_v1  ;;  %2316 = vmatprep.subr.bf16.mxu1 %v2376_v1 }
  0x26   : > { %204 = vrot.lane.b32.xlu0 %v2060_v16, %s2377_s24  ;;  %804 = vrot.lane.b32.xlu1 %v2179_v17, %s2377_s24 }
  0x27   : > { %1676 = vmatpush1.bf16.msra.mxu0 %v2360_v21  ;;  %2332 = vmatpush1.bf16.msra.mxu1 %v2360_v21  ;;  %v2120_v21 = vld [vmem:[%s2422_s21 + $0xa1] sm:$0xf] }
  0x28   : > { %1677 = vmatprep.subr.bf16.mxu0 %v2376_v1  ;;  %2317 = vmatprep.subr.bf16.mxu1 %v2376_v1 }
  0x2a   : > { %806 = vrot.lane.b32.xlu0 %v2180_v19, %s2377_s24  ;;  %192 = vrot.lane.b32.xlu1 %v177_v20, %s2377_s24 }
  0x2b   : > { %1678 = vmatpush1.bf16.msra.mxu0 %v2361_v24  ;;  %2333 = vmatpush1.bf16.msra.mxu1 %v2361_v24 }
  0x2c   : > { %1679 = vmatprep.subr.bf16.mxu0 %v2376_v1  ;;  %2318 = vmatprep.subr.bf16.mxu1 %v2376_v1 }
  0x2e   : > { %792 = vrot.lane.b32.xlu0 %v2173_v22, %s2377_s24  ;;  %794 = vrot.lane.b32.xlu1 %v2174_v23, %s2377_s24  ;;  %v2655_v22 = vld [vmem:[%s2422_s21 + $0x189] sm:$0xff] }
  0x2f   : > { %1680 = vmatpush1.bf16.msra.mxu0 %v2362_v27  ;;  %2334 = vmatpush1.bf16.msra.mxu1 %v2362_v27 }
  0x30   : > { %1681 = vmatprep.subr.bf16.mxu0 %v2376_v1  ;;  %2319 = vmatprep.subr.bf16.mxu1 %v2376_v1 }
  0x32   : > { %254 = vrot.lane.b32.xlu0 %v2072_v25, %s2377_s24  ;;  %853 = vrot.lane.b32.xlu1 %v2191_v26, %s2377_s24 }
  0x33   : > { %1682 = vmatpush1.bf16.msra.mxu0 %v2363_v30  ;;  %2335 = vmatpush1.bf16.msra.mxu1 %v2363_v30  ;;  %v2671_v30 = vld [vmem:[%s2422_s21 + $0x120] sm:$0xff] }
  0x34   : > { %1683 = vmatprep.subr.bf16.mxu0 %v2376_v1  ;;  %2320 = vmatprep.subr.bf16.mxu1 %v2376_v1 }
  0x36   : > { %855 = vrot.lane.b32.xlu0 %v2192_v28, %s2377_s24  ;;  %242 = vrot.lane.b32.xlu1 %v2066_v29, %s2377_s24 }
  0x37   : > { %1684 = vmatpush1.bf16.msra.mxu0 %v2364_v32  ;;  %2336 = vmatpush1.bf16.msra.mxu1 %v2364_v32  ;;  %v2240_v32 = vld [vmem:[%s2422_s21 + $0x191] sm:$0xf] }
  0x38   : > { %1685 = vmatprep.subr.bf16.mxu0 %v2376_v1  ;;  %2321 = vmatprep.subr.bf16.mxu1 %v2376_v1 }
  0x3a   : > { %841 = vrot.lane.b32.xlu0 %v2179_v17, %s2377_s24  ;;  %843 = vrot.lane.b32.xlu1 %v2186_v31, %s2377_s24  ;;  %v2181_v31 = vld [vmem:[%s2422_s21 + $0x108] sm:$0xff] }
  0x3b   : > { %1686 = vmatpush1.bf16.msra.mxu0 %v2365_v34  ;;  %2337 = vmatpush1.bf16.msra.mxu1 %v2365_v34 }
  0x3c   : > { %1687 = vmatprep.subr.bf16.mxu0 %v2376_v1  ;;  %2322 = vmatprep.subr.bf16.mxu1 %v2376_v1 }
  0x3e   : > { %322 = vrot.lane.b32.xlu0 %v2082_v33, %s2377_s24  ;;  %310 = vrot.lane.b32.xlu1 %v2443_v9, %s2377_s24 }
  0x3f   : > { %1688 = vmatpush1.bf16.msra.mxu0 %v2366_v36  ;;  %2338 = vmatpush1.bf16.msra.mxu1 %v2366_v36 }
  0x40   : > { %1689 = vmatprep.subr.bf16.mxu0 %v2376_v1  ;;  %2323 = vmatprep.subr.bf16.mxu1 %v2376_v1 }
  0x42   : > { %371 = vrot.lane.b32.xlu0 %v2094_v35, %s2377_s24  ;;  %359 = vrot.lane.b32.xlu1 %v2082_v33, %s2377_s24  ;;  %v2114_v33 = vld [vmem:[%s2422_s21 + $0x89] sm:$0xf] }
  0x43   : > { %1690 = vmatpush1.bf16.msra.mxu0 %v2367_v39  ;;  %2339 = vmatpush1.bf16.msra.mxu1 %v2367_v39 }
  0x46   : > { %324 = vrot.lane.b32.xlu0 %v2083_v37, %s2377_s24  ;;  %326 = vrot.lane.b32.xlu1 %v2084_v38, %s2377_s24 }
  0x4a   : > { %922 = vrot.lane.b32.xlu0 %v2202_v40, %s2377_s24  ;;  %924 = vrot.lane.b32.xlu1 %v2203_v41, %s2377_s24 }
  0x4e   : > { %312 = vrot.lane.b32.xlu0 %v2446_v10, %s2377_s24  ;;  %314 = vrot.lane.b32.xlu1 %v2078_v42, %s2377_s24  ;;  %v2637_v10 = vld [vmem:[%s2422_s21 + $0x30] sm:$0xff] }
  0x4f   : > { %v2694_v42 = vld [vmem:[%s2422_s21 + $0x110] sm:$0xff] }
  0x52   : > { %910 = vrot.lane.b32.xlu0 %v2465_v13, %s2377_s24  ;;  %912 = vrot.lane.b32.xlu1 %v2191_v26, %s2377_s24 }
  0x56   : > { %373 = vrot.lane.b32.xlu0 %v2095_v43, %s2377_s24  ;;  %375 = vrot.lane.b32.xlu1 %v2096_v44, %s2377_s24 }
  0x5a   : > { %971 = vrot.lane.b32.xlu0 %v2214_v45, %s2377_s24  ;;  %973 = vrot.lane.b32.xlu1 %v2572_v46, %s2377_s24 }
  0x5e   : > { %361 = vrot.lane.b32.xlu0 %v2083_v37, %s2377_s24  ;;  %363 = vrot.lane.b32.xlu1 %v2090_v47, %s2377_s24 }
  0x62   : > { %959 = vrot.lane.b32.xlu0 %v2202_v40, %s2377_s24  ;;  %961 = vrot.lane.b32.xlu1 %v2203_v41, %s2377_s24  ;;  %v2057_v41 = vld [vmem:[%s2422_s21 + $0x28] sm:$0xf] }
  0x66   : > { %926 = vrot.lane.b32.xlu0 %v2204_v48, %s2377_s24  ;;  %914 = vrot.lane.b32.xlu1 %v2198_v49, %s2377_s24  ;;  %v2177_v48 = vld [vmem:[%s2422_s21 + $0x118] sm:$0xf]  ;;  %v174_v49 = vld [vmem:[%s2422_s21 + $0x10] sm:$0xf] }
  0x6a   : > { %975 = vrot.lane.b32.xlu0 %v2216_v50, %s2377_s24  ;;  %963 = vrot.lane.b32.xlu1 %v2210_v51, %s2377_s24  ;;  %v2130_v50 = vld [vmem:[%s2422_s21 + $0xa9] sm:$0xff] }
  0x6e   : > { %442 = vrot.lane.b32.xlu0 %v2106_v52, %s2377_s24  ;;  %444 = vrot.lane.b32.xlu1 %v2107_v53, %s2377_s24 }
  0x72   : > { %1042 = vrot.lane.b32.xlu0 %v2226_v54, %s2377_s24  ;;  %430 = vrot.lane.b32.xlu1 %v2094_v35, %s2377_s24 }
  0x76   : > { %432 = vrot.lane.b32.xlu0 %v2095_v43, %s2377_s24  ;;  %1030 = vrot.lane.b32.xlu1 %v2214_v45, %s2377_s24  ;;  %v2234_v43 = vld [vmem:[%s2422_s21 + $0x179] sm:$0xf] }
  0x7a   : > { %491 = vrot.lane.b32.xlu0 %v2600_v55, %s2377_s24  ;;  %493 = vrot.lane.b32.xlu1 %v2603_v56, %s2377_s24 }
  0x7e   : > { %479 = vrot.lane.b32.xlu0 %v2106_v52, %s2377_s24  ;;  %481 = vrot.lane.b32.xlu1 %v2107_v53, %s2377_s24 }
  0x82   : > { %1091 = vrot.lane.b32.xlu0 %v2612_v57, %s2377_s24  ;;  %1079 = vrot.lane.b32.xlu1 %v2226_v54, %s2377_s24 }
  0x84   : > { %v201_v62 = vpop.permute.xlu0 %200  ;;  %v189_v63 = vpop.permute.xlu1 %188 }
  0x85   : > { %v213_v0 = vsel %vm209_vm0, %v2055_v58, %v201_v62  ;;  %v210_v1 = vsel %vm209_vm0, %v172_v59, %v189_v63  ;;  %v2171_v59 = vld [vmem:[%s2422_s21 + $0x100] sm:$0xf] }
  0x86   : > { %446 = vrot.lane.b32.xlu0 %v2108_v60, %s2377_s24  ;;  %1044 = vrot.lane.b32.xlu1 %v2621_v61, %s2377_s24  ;;  %v2716_v60 = vld [vmem:[%s2422_s21 + $0xc1] sm:$0xff] }
  0x88   : > { %v203_v6 = vpop.permute.xlu0 %202  ;;  %v191_v7 = vpop.permute.xlu1 %190 }
  0x89   : > { %v214_v8 = vsel %vm209_vm0, %v2056_v2, %v203_v6  ;;  %v211_v9 = vsel %vm209_vm0, %v173_v3, %v191_v7 }
  0x8a   : > { %1046 = vrot.lane.b32.xlu0 %v2228_v4, %s2377_s24  ;;  %434 = vrot.lane.b32.xlu1 %v2102_v5, %s2377_s24  ;;  %v1475_v12 = vpack.c.bf16 %v214_v8, %v213_v0  ;;  %v1474_v13 = vpack.c.bf16 %v211_v9, %v210_v1  ;;  %v2729_v4 = vld [vmem:[%s2422_s21 + $0xb1] sm:$0xff]  ;;  %v2132_v5 = vld [vmem:[%s2422_s21 + $0xb9] sm:$0xf] }
  0x8c   : > { %v251_v15 = vpop.permute.xlu0 %250  ;;  %v253_v16 = vpop.permute.xlu1 %252  ;;  %1691 = vmatprep.mubr.bf16.mxu0 %v1475_v12 }
  0x8d   : > { %v262_v17 = vsel %vm209_vm0, %v2637_v10, %v251_v15  ;;  %v2647_v18 = vsel %vm209_vm0, %v2640_v11, %v253_v16  ;;  %1692 = vmatmul.mubr.bf16.vlgmr.msra.gmra.mrb[0].mxu0 %v1474_v13  ;;  %v2189_v16 = vld [vmem:[%s2422_s21 + $0x130] sm:$0xf] }
  0x8e   : > { %v273_v19 = vrot.slane %v262_v17, 4  ;;  %v276_v20 = vrot.slane %v2647_v18, 4  ;;  %1032 = vrot.lane.b32.xlu0 %v2572_v46, %s2377_s24  ;;  %1034 = vrot.lane.b32.xlu1 %v2222_v14, %s2377_s24 }
  0x90   : > { %289 = vst [vmem:[#allocation2 + $0x28] sm:$0xf0] %v273_v19  ;;  %v2660_v23 = vsel %vm271_vm1, %v273_v19, %v276_v20  ;;  %v239_v24 = vpop.permute.xlu0 %238  ;;  %v241_v25 = vpop.permute.xlu1 %240  ;;  %v2063_v19 = vld [vmem:[%s2422_s21 + $0x28] sm:$0xf] }
  0x91   : > { %v259_v26 = vsel %vm209_vm0, %v2055_v58, %v239_v24  ;;  %v2664_v27 = vsel %vm209_vm0, %v2056_v2, %v241_v25  ;;  %v2170_v58 = vld [vmem:[%s2422_s21 + $0xf8] sm:$0xff]  ;;  %v2069_v2 = vld [vmem:[%s2422_s21 + $0x40] sm:$0xf] }
  0x92   : > { %v272_v28 = vrot.slane %v259_v26, 4  ;;  %v274_v29 = vrot.slane %v2664_v27, 4  ;;  %495 = vrot.lane.b32.xlu0 %v2120_v21, %s2377_s24  ;;  %1093 = vrot.lane.b32.xlu1 %v2655_v22, %s2377_s24  ;;  %v2745_v24 = vld [vmem:[%s2422_s21 + $0x1a1] sm:$0xff] }
  0x93   : > { %v2079_v27 = vld [vmem:[%s2422_s21 + $0x48] sm:$0xff] }
  0x94   : > { %288 = vst [vmem:[#allocation2 + $0x20] sm:$0xf0] %v272_v28  ;;  %v2679_v34 = vsel %vm271_vm1, %v272_v28, %v274_v29  ;;  %v852_v35 = vpop.permute.xlu0 %851  ;;  %v840_v36 = vpop.permute.xlu1 %839 }
  0x95   : > { %v2683_v37 = vsel %vm209_vm0, %v2671_v30, %v852_v35  ;;  %v2686_v38 = vsel %vm209_vm0, %v2181_v31, %v840_v36 }
  0x96   : > { %v873_v39 = vrot.slane %v2683_v37, 4  ;;  %v872_v40 = vrot.slane %v2686_v38, 4  ;;  %1095 = vrot.lane.b32.xlu0 %v2240_v32, %s2377_s24  ;;  %483 = vrot.lane.b32.xlu1 %v2114_v33, %s2377_s24  ;;  %v2126_v37 = vld [vmem:[%s2422_s21 + $0xa1] sm:$0xf] }
  0x98   : > { %889 = vst [vmem:[#allocation2 + $0x1b8] sm:$0xf0] %v873_v39  ;;  %888 = vst [vmem:[#allocation2 + $0x1b0] sm:$0xf0] %v872_v40  ;;  %v205_v44 = vpop.permute.xlu0 %204  ;;  %v805_v45 = vpop.permute.xlu1 %804 }
  0x99   : > { %v215_v46 = vsel %vm209_vm0, %v2057_v41, %v205_v44  ;;  %v815_v47 = vsel %vm209_vm0, %v2694_v42, %v805_v45 }
  0x9a   : > { %221 = vst [vmem:[#allocation2 + $0x28] sm:$0xf] %v215_v46  ;;  %1081 = vrot.lane.b32.xlu0 %v2621_v61, %s2377_s24  ;;  %1083 = vrot.lane.b32.xlu1 %v2234_v43, %s2377_s24 }
  0x9c   : > { %v807_v51 = vpop.permute.xlu0 %806  ;;  %v193_v52 = vpop.permute.xlu1 %192 }
  0x9d   : > { %v816_v53 = vsel %vm209_vm0, %v2177_v48, %v807_v51  ;;  %v212_v54 = vsel %vm209_vm0, %v174_v49, %v193_v52 }
  0x9e   : > { %822 = vst [vmem:[#allocation2 + $0x1b8] sm:$0xf] %v816_v53  ;;  %220 = vst [vmem:[#allocation2 + $0x20] sm:$0xf] %v212_v54  ;;  %562 = vrot.lane.b32.xlu0 %v2130_v50, %s2377_s24  ;;  %550 = vrot.lane.b32.xlu1 %v2600_v55, %s2377_s24  ;;  %v2725_v55 = vld [vmem:[%s2422_s21 + $0x128] sm:$0xff]  ;;  %v2782_v54 = vld [vmem:[%s2422_s21 + $0x60] sm:$0xff] }
  0xa0   : > { %v793_v61 = vpop.permute.xlu0 %792  ;;  %v795_v62 = vpop.permute.xlu1 %794 }
  0xa1   : > { %v812_v63 = vsel %vm209_vm0, %v2170_v58, %v793_v61  ;;  %v813_v0 = vsel %vm209_vm0, %v2171_v59, %v795_v62  ;;  %v1379_v1 = vld [vmem:[#allocation2 + $0x28] sm:$0xff]  ;;  %v2144_v59 = vld [vmem:[%s2422_s21 + $0xd1] sm:$0xf] }
  0xa2   : > { %821 = vst [vmem:[#allocation2 + $0x1b0] sm:$0xf] %v813_v0  ;;  %611 = vrot.lane.b32.xlu0 %v2716_v60, %s2377_s24  ;;  %599 = vrot.lane.b32.xlu1 %v2130_v50, %s2377_s24  ;;  %v1477_v3 = vpack.c.bf16 %v2660_v23, %v1379_v1  ;;  %v2742_v23 = vld [vmem:[%s2422_s21 + $0x199] sm:$0xff]  ;;  %v2785_v58 = vld [vmem:[%s2422_s21 + $0xc9] sm:$0xff] }
  0xa3   : > { %v2801_v0 = vld [vmem:[%s2422_s21 + $0x50] sm:$0xff]  ;;  %v2081_v1 = vld [vmem:[%s2422_s21 + $0x58] sm:$0xf] }
  0xa4   : > { %v255_v6 = vpop.permute.xlu0 %254  ;;  %v854_v7 = vpop.permute.xlu1 %853  ;;  %1699 = vmatprep.mubr.bf16.mxu0 %v1477_v3  ;;  %v2808_v3 = vld [vmem:[%s2422_s21 + $0x1b9] sm:$0xff] }
  0xa5   : > { %v264_v8 = vsel %vm209_vm0, %v2069_v2, %v255_v6  ;;  %v864_v9 = vsel %vm209_vm0, %v2725_v55, %v854_v7  ;;  %v1429_v12 = vld [vmem:[#allocation2 + $0x1b8] sm:$0xff]  ;;  %v1378_v13 = vld [vmem:[#allocation2 + $0x20] sm:$0xff] }
  0xa6   : > { %v280_v14 = vrot.slane %v264_v8, 4  ;;  %v876_v15 = vrot.slane %v864_v9, 4  ;;  %564 = vrot.lane.b32.xlu0 %v2729_v4, %s2377_s24  ;;  %566 = vrot.lane.b32.xlu1 %v2132_v5, %s2377_s24  ;;  %v1501_v17 = vpack.c.bf16 %v1429_v12, %v815_v47  ;;  %v1476_v21 = vpack.c.bf16 %v2679_v34, %v1378_v13  ;;  %v2805_v2 = vld [vmem:[%s2422_s21 + $0x1b1] sm:$0xff]  ;;  %v2825_v12 = vld [vmem:[%s2422_s21 + $0x140] sm:$0xff] }
  0xa7   : > { %v2822_v9 = vld [vmem:[%s2422_s21 + $0x138] sm:$0xff] }
  0xa8   : > { %v281_v25 = vsel %vm271_vm1, %v276_v20, %v280_v14  ;;  %v877_v26 = vsel %vm271_vm1, %v873_v39, %v876_v15  ;;  %v856_v28 = vpop.permute.xlu0 %855  ;;  %1795 = vmatprep.mubr.bf16.mxu1 %v1501_v17  ;;  %v243_v31 = vpop.permute.xlu1 %242  ;;  %1700 = vmatmul.mubr.bf16.gmra.mrb[4].mxu0 %v1476_v21  ;;  %v2183_v20 = vld [vmem:[%s2422_s21 + $0x118] sm:$0xf] }
  0xa9   : > { %v865_v32 = vsel %vm209_vm0, %v2189_v16, %v856_v28  ;;  %v261_v33 = vsel %vm209_vm0, %v2063_v19, %v243_v31  ;;  %v1428_v34 = vld [vmem:[#allocation2 + $0x1b0] sm:$0xff]  ;;  %v2138_v13 = vld [vmem:[%s2422_s21 + $0xb9] sm:$0xf]  ;;  %v2075_v19 = vld [vmem:[%s2422_s21 + $0x40] sm:$0xf] }
  0xaa   : > { %v880_v35 = vrot.slane %v865_v32, 4  ;;  %v278_v36 = vrot.slane %v261_v33, 4  ;;  %1162 = vrot.lane.b32.xlu0 %v2742_v23, %s2377_s24  ;;  %1164 = vrot.lane.b32.xlu1 %v2745_v24, %s2377_s24  ;;  %v1500_v18 = vpack.c.bf16 %v1428_v34, %v812_v63  ;;  %v2252_v33 = vld [vmem:[%s2422_s21 + $0x1a9] sm:$0xf]  ;;  %v2246_v34 = vld [vmem:[%s2422_s21 + $0x191] sm:$0xf] }
  0xac   : > { %v881_v39 = vsel %vm271_vm1, %v876_v15, %v880_v35  ;;  %v279_v41 = vsel %vm271_vm1, %v274_v29, %v278_v36  ;;  %v842_v43 = vpop.permute.xlu0 %841  ;;  %1796 = vmatmul.mubr.bf16.vlgmr.msra.gmra.mrb[0].mxu1 %v1500_v18  ;;  %v844_v44 = vpop.permute.xlu1 %843 }
  0xad   : > { %v861_v45 = vsel %vm209_vm0, %v2694_v42, %v842_v43  ;;  %v862_v46 = vsel %vm209_vm0, %v2183_v20, %v844_v44  ;;  %v1503_v47 = vpack.c.bf16 %v881_v39, %v877_v26  ;;  %v2258_v39 = vld [vmem:[%s2422_s21 + $0x1a9] sm:$0xf] }
  0xae   : > { %v874_v48 = vrot.slane %v861_v45, 4  ;;  %v878_v49 = vrot.slane %v862_v46, 4  ;;  %552 = vrot.lane.b32.xlu0 %v2603_v56, %s2377_s24  ;;  %554 = vrot.lane.b32.xlu1 %v2126_v37, %s2377_s24  ;;  %v2264_v37 = vld [vmem:[%s2422_s21 + $0x1c1] sm:$0xf] }
  0xaf   : > { %1803 = vmatprep.mubr.bf16.mxu1 %v1503_v47  ;;  %v2863_v47 = vld [vmem:[%s2422_s21 + $0x150] sm:$0xff] }
  0xb0   : > { %v875_v29 = vsel %vm271_vm1, %v872_v40, %v874_v48  ;;  %v879_v42 = vsel %vm271_vm1, %v874_v48, %v878_v49  ;;  %v323_v50 = vpop.permute.xlu0 %322  ;;  %v311_v51 = vpop.permute.xlu1 %310  ;;  %v2866_v48 = vld [vmem:[%s2422_s21 + $0x158] sm:$0xff] }
  0xb1   : > { %v334_v52 = vsel %vm209_vm0, %v2079_v27, %v323_v50  ;;  %v331_v53 = vsel %vm209_vm0, %v2637_v10, %v311_v51  ;;  %v1502_v56 = vpack.c.bf16 %v879_v42, %v875_v29  ;;  %v2155_v29 = vld [vmem:[%s2422_s21 + $0xe1] sm:$0xff] }
  0xb2   : > { %1150 = vrot.lane.b32.xlu0 %v2612_v57, %s2377_s24  ;;  %1152 = vrot.lane.b32.xlu1 %v2655_v22, %s2377_s24  ;;  %v1479_v38 = vpack.c.bf16 %v334_v52, %v281_v25  ;;  %v1478_v40 = vpack.c.bf16 %v331_v53, %v279_v41 }
  0xb4   : > { %v372_v61 = vpop.permute.xlu0 %371  ;;  %v360_v10 = vpop.permute.xlu1 %359  ;;  %1804 = vmatmul.mubr.bf16.gmra.mrb[4].mxu1 %v1502_v56  ;;  %1707 = vmatprep.mubr.bf16.mxu0 %v1479_v38 }
  0xb5   : > { %v2790_v57 = vsel %vm209_vm0, %v2782_v54, %v372_v61  ;;  %v2793_v22 = vsel %vm209_vm0, %v2079_v27, %v360_v10  ;;  %1708 = vmatmul.mubr.bf16.gmra.mrb[8].mxu0 %v1478_v40  ;;  %v2154_v27 = vld [vmem:[%s2422_s21 + $0xd9] sm:$0xff]  ;;  %v2274_v10 = vld [vmem:[%s2422_s21 + $0x1c9] sm:$0xff] }
  0xb6   : > { %v393_v62 = vrot.slane %v2790_v57, 4  ;;  %v392_v63 = vrot.slane %v2793_v22, 4  ;;  %613 = vrot.lane.b32.xlu0 %v2785_v58, %s2377_s24  ;;  %615 = vrot.lane.b32.xlu1 %v2144_v59, %s2377_s24  ;;  %v2087_v61 = vld [vmem:[%s2422_s21 + $0x58] sm:$0xf]  ;;  %v2195_v22 = vld [vmem:[%s2422_s21 + $0x130] sm:$0xf] }
  0xb8   : > { %409 = vst [vmem:[#allocation2 + $0x78] sm:$0xf0] %v393_v62  ;;  %408 = vst [vmem:[#allocation2 + $0x70] sm:$0xf0] %v392_v63  ;;  %v325_v5 = vpop.permute.xlu0 %324  ;;  %v327_v6 = vpop.permute.xlu1 %326 }
  0xb9   : > { %v335_v7 = vsel %vm209_vm0, %v2801_v0, %v325_v5  ;;  %v336_v8 = vsel %vm209_vm0, %v2081_v1, %v327_v6 }
  0xba   : > { %342 = vst [vmem:[#allocation2 + $0x78] sm:$0xf] %v336_v8  ;;  %1211 = vrot.lane.b32.xlu0 %v2805_v2, %s2377_s24  ;;  %1213 = vrot.lane.b32.xlu1 %v2808_v3, %s2377_s24 }
  0xbc   : > { %v923_v14 = vpop.permute.xlu0 %922  ;;  %v925_v15 = vpop.permute.xlu1 %924 }
  0xbd   : > { %v934_v16 = vsel %vm209_vm0, %v2822_v9, %v923_v14  ;;  %v935_v17 = vsel %vm209_vm0, %v2825_v12, %v925_v15 }
  0xbe   : > { %601 = vrot.lane.b32.xlu0 %v2729_v4, %s2377_s24  ;;  %603 = vrot.lane.b32.xlu1 %v2138_v13, %s2377_s24  ;;  %v1505_v21 = vpack.c.bf16 %v935_v17, %v934_v16 }
  0xc0   : > { %v313_v25 = vpop.permute.xlu0 %312  ;;  %v315_v26 = vpop.permute.xlu1 %314  ;;  %1811 = vmatprep.mubr.bf16.mxu1 %v1505_v21 }
  0xc1   : > { %v332_v28 = vsel %vm209_vm0, %v2640_v11, %v313_v25  ;;  %v333_v31 = vsel %vm209_vm0, %v2075_v19, %v315_v26  ;;  %v1389_v32 = vld [vmem:[#allocation2 + $0x78] sm:$0xff] }
  0xc2   : > { %341 = vst [vmem:[#allocation2 + $0x70] sm:$0xf] %v333_v31  ;;  %1199 = vrot.lane.b32.xlu0 %v2742_v23, %s2377_s24  ;;  %1201 = vrot.lane.b32.xlu1 %v2745_v24, %s2377_s24  ;;  %v1481_v4 = vpack.c.bf16 %v1389_v32, %v335_v7  ;;  %v2852_v23 = vld [vmem:[%s2422_s21 + $0x68] sm:$0xff]  ;;  %v2093_v24 = vld [vmem:[%s2422_s21 + $0x70] sm:$0xf] }
  0xc3   : > { %v2167_v26 = vld [vmem:[%s2422_s21 + $0xf9] sm:$0xff]  ;;  %v2207_v32 = vld [vmem:[%s2422_s21 + $0x148] sm:$0xf] }
  0xc4   : > { %v911_v35 = vpop.permute.xlu0 %910  ;;  %v913_v36 = vpop.permute.xlu1 %912  ;;  %1715 = vmatprep.mubr.bf16.mxu0 %v1481_v4 }
  0xc5   : > { %v931_v11 = vsel %vm209_vm0, %v2671_v30, %v911_v35  ;;  %v932_v18 = vsel %vm209_vm0, %v2725_v55, %v913_v36 }
  0xc6   : > { %1166 = vrot.lane.b32.xlu0 %v2252_v33, %s2377_s24  ;;  %1154 = vrot.lane.b32.xlu1 %v2246_v34, %s2377_s24  ;;  %v1504_v20 = vpack.c.bf16 %v932_v18, %v931_v11  ;;  %v2103_v18 = vld [vmem:[%s2422_s21 + $0x78] sm:$0xff] }
  0xc8   : > { %v374_v41 = vpop.permute.xlu0 %373  ;;  %v376_v43 = vpop.permute.xlu1 %375  ;;  %1812 = vmatmul.mubr.bf16.gmra.mrb[8].mxu1 %v1504_v20  ;;  %v2286_v20 = vld [vmem:[%s2422_s21 + $0x1e1] sm:$0xff] }
  0xc9   : > { %v384_v30 = vsel %vm209_vm0, %v2852_v23, %v374_v41  ;;  %v385_v55 = vsel %vm209_vm0, %v2093_v24, %v376_v43  ;;  %v1388_v44 = vld [vmem:[#allocation2 + $0x70] sm:$0xff]  ;;  %v2104_v24 = vld [vmem:[%s2422_s21 + $0x80] sm:$0xff] }
  0xca   : > { %v396_v45 = vrot.slane %v384_v30, 4  ;;  %v400_v46 = vrot.slane %v385_v55, 4  ;;  %1215 = vrot.lane.b32.xlu0 %v2264_v37, %s2377_s24  ;;  %1203 = vrot.lane.b32.xlu1 %v2258_v39, %s2377_s24  ;;  %v1480_v49 = vpack.c.bf16 %v1388_v44, %v332_v28 }
  0xcc   : > { %v397_v42 = vsel %vm271_vm1, %v393_v62, %v396_v45  ;;  %v401_v50 = vsel %vm271_vm1, %v396_v45, %v400_v46  ;;  %v972_v51 = vpop.permute.xlu0 %971  ;;  %v974_v52 = vpop.permute.xlu1 %973  ;;  %1716 = vmatmul.mubr.bf16.gmra.mrb[12].mxu0 %v1480_v49  ;;  %v2223_v46 = vld [vmem:[%s2422_s21 + $0x168] sm:$0xff] }
  0xcd   : > { %v983_v53 = vsel %vm209_vm0, %v2863_v47, %v972_v51  ;;  %v984_v56 = vsel %vm209_vm0, %v2866_v48, %v974_v52  ;;  %v1483_v38 = vpack.c.bf16 %v401_v50, %v397_v42  ;;  %v2156_v42 = vld [vmem:[%s2422_s21 + $0xe9] sm:$0xf]  ;;  %v2934_v50 = vld [vmem:[%s2422_s21 + $0x1d1] sm:$0xff] }
  0xce   : > { %v993_v40 = vrot.slane %v983_v53, 4  ;;  %v996_v59 = vrot.slane %v984_v56, 4  ;;  %682 = vrot.lane.b32.xlu0 %v2154_v27, %s2377_s24  ;;  %684 = vrot.lane.b32.xlu1 %v2155_v29, %s2377_s24 }
  0xcf   : > { %1723 = vmatprep.mubr.bf16.mxu0 %v1483_v38 }
  0xd0   : > { %1009 = vst [vmem:[#allocation2 + $0x208] sm:$0xf0] %v993_v40  ;;  %v2883_v57 = vsel %vm271_vm1, %v993_v40, %v996_v59  ;;  %v362_v62 = vpop.permute.xlu0 %361  ;;  %v364_v1 = vpop.permute.xlu1 %363  ;;  %v2276_v40 = vld [vmem:[%s2422_s21 + $0x1d9] sm:$0xf] }
  0xd1   : > { %v381_v5 = vsel %vm209_vm0, %v2801_v0, %v362_v62  ;;  %v382_v6 = vsel %vm209_vm0, %v2087_v61, %v364_v1  ;;  %v2954_v1 = vld [vmem:[%s2422_s21 + $0x98] sm:$0xff] }
  0xd2   : > { %v394_v7 = vrot.slane %v381_v5, 4  ;;  %v398_v8 = vrot.slane %v382_v6, 4  ;;  %1282 = vrot.lane.b32.xlu0 %v2274_v10, %s2377_s24  ;;  %670 = vrot.lane.b32.xlu1 %v2716_v60, %s2377_s24  ;;  %v2201_v60 = vld [vmem:[%s2422_s21 + $0x148] sm:$0xf] }
  0xd4   : > { %v395_v13 = vsel %vm271_vm1, %v392_v63, %v394_v7  ;;  %v399_v14 = vsel %vm271_vm1, %v394_v7, %v398_v8  ;;  %v960_v0 = vpop.permute.xlu0 %959  ;;  %v962_v15 = vpop.permute.xlu1 %961  ;;  %v2906_v63 = vld [vmem:[%s2422_s21 + $0xf1] sm:$0xff]  ;;  %v2270_v7 = vld [vmem:[%s2422_s21 + $0x1c1] sm:$0xf] }
  0xd5   : > { %v980_v16 = vsel %vm209_vm0, %v2822_v9, %v960_v0  ;;  %v981_v17 = vsel %vm209_vm0, %v2825_v12, %v962_v15  ;;  %v1482_v19 = vpack.c.bf16 %v399_v14, %v395_v13  ;;  %v2168_v15 = vld [vmem:[%s2422_s21 + $0x101] sm:$0xf] }
  0xd6   : > { %v992_v21 = vrot.slane %v980_v16, 4  ;;  %v994_v25 = vrot.slane %v981_v17, 4  ;;  %672 = vrot.lane.b32.xlu0 %v2785_v58, %s2377_s24  ;;  %1270 = vrot.lane.b32.xlu1 %v2805_v2, %s2377_s24  ;;  %v2213_v2 = vld [vmem:[%s2422_s21 + $0x160] sm:$0xf]  ;;  %v2287_v16 = vld [vmem:[%s2422_s21 + $0x1e9] sm:$0xff] }
  0xd7   : > { %1724 = vmatmul.mubr.bf16.gmra.mrb[16].mxu0 %v1482_v19 }
  0xd8   : > { %1008 = vst [vmem:[#allocation2 + $0x200] sm:$0xf0] %v992_v21  ;;  %v995_v9 = vsel %vm271_vm1, %v992_v21, %v994_v25  ;;  %v927_v12 = vpop.permute.xlu0 %926  ;;  %v915_v28 = vpop.permute.xlu1 %914 }
  0xd9   : > { %v936_v31 = vsel %vm209_vm0, %v2201_v60, %v927_v12  ;;  %v933_v58 = vsel %vm209_vm0, %v2195_v22, %v915_v28  ;;  %v2162_v12 = vld [vmem:[%s2422_s21 + $0xe9] sm:$0xf] }
  0xda   : > { %942 = vst [vmem:[#allocation2 + $0x208] sm:$0xf] %v936_v31  ;;  %941 = vst [vmem:[#allocation2 + $0x200] sm:$0xf] %v933_v58  ;;  %731 = vrot.lane.b32.xlu0 %v2906_v63, %s2377_s24  ;;  %733 = vrot.lane.b32.xlu1 %v2167_v26, %s2377_s24  ;;  %v2980_v26 = vld [vmem:[%s2422_s21 + $0x180] sm:$0xff] }
  0xdc   : > { %v976_v4 = vpop.permute.xlu0 %975  ;;  %v964_v33 = vpop.permute.xlu1 %963 }
  0xdd   : > { %v985_v34 = vsel %vm209_vm0, %v2213_v2, %v976_v4  ;;  %v982_v35 = vsel %vm209_vm0, %v2207_v32, %v964_v33 }
  0xde   : > { %v1000_v36 = vrot.slane %v985_v34, 4  ;;  %v998_v11 = vrot.slane %v982_v35, 4  ;;  %719 = vrot.lane.b32.xlu0 %v2154_v27, %s2377_s24  ;;  %721 = vrot.lane.b32.xlu1 %v2155_v29, %s2377_s24  ;;  %v2105_v34 = vld [vmem:[%s2422_s21 + $0x88] sm:$0xf]  ;;  %v2997_v35 = vld [vmem:[%s2422_s21 + $0x170] sm:$0xff] }
  0xe0   : > { %v1001_v37 = vsel %vm271_vm1, %v996_v59, %v1000_v36  ;;  %v999_v39 = vsel %vm271_vm1, %v994_v25, %v998_v11  ;;  %v443_v41 = vpop.permute.xlu0 %442  ;;  %v445_v43 = vpop.permute.xlu1 %444  ;;  %v2150_v59 = vld [vmem:[%s2422_s21 + $0xd1] sm:$0xf]  ;;  %v2282_v36 = vld [vmem:[%s2422_s21 + $0x1d9] sm:$0xf] }
  0xe1   : > { %v454_v30 = vsel %vm209_vm0, %v2103_v18, %v443_v41  ;;  %v455_v55 = vsel %vm209_vm0, %v2104_v24, %v445_v43  ;;  %v1439_v44 = vld [vmem:[#allocation2 + $0x208] sm:$0xff]  ;;  %v1438_v45 = vld [vmem:[#allocation2 + $0x200] sm:$0xff] }
  0xe2   : > { %1331 = vrot.lane.b32.xlu0 %v2286_v20, %s2377_s24  ;;  %1319 = vrot.lane.b32.xlu1 %v2274_v10, %s2377_s24  ;;  %v1507_v49 = vpack.c.bf16 %v2883_v57, %v1439_v44  ;;  %v1506_v27 = vpack.c.bf16 %v995_v9, %v1438_v45  ;;  %v1485_v29 = vpack.c.bf16 %v455_v55, %v454_v30  ;;  %v2288_v9 = vld [vmem:[%s2422_s21 + $0x1f1] sm:$0xf]  ;;  %v2178_v41 = vld [vmem:[%s2422_s21 + $0x109] sm:$0xff] }
  0xe3   : > { %v2219_v45 = vld [vmem:[%s2422_s21 + $0x160] sm:$0xf] }
  0xe4   : > { %v1043_v51 = vpop.permute.xlu0 %1042  ;;  %1819 = vmatprep.mubr.bf16.mxu1 %v1507_v49  ;;  %v431_v52 = vpop.permute.xlu1 %430  ;;  %1731 = vmatprep.mubr.bf16.mxu0 %v1485_v29 }
  0xe5   : > { %v1054_v53 = vsel %vm209_vm0, %v2223_v46, %v1043_v51  ;;  %v451_v56 = vsel %vm209_vm0, %v2782_v54, %v431_v52  ;;  %1820 = vmatmul.mubr.bf16.gmra.mrb[12].mxu1 %v1506_v27  ;;  %v2951_v54 = vld [vmem:[%s2422_s21 + $0x90] sm:$0xff]  ;;  %v3022_v51 = vld [vmem:[%s2422_s21 + $0x188] sm:$0xff] }
  0xe6   : > { %686 = vrot.lane.b32.xlu0 %v2156_v42, %s2377_s24  ;;  %1284 = vrot.lane.b32.xlu1 %v2934_v50, %s2377_s24  ;;  %v1509_v38 = vpack.c.bf16 %v1054_v53, %v1001_v37  ;;  %v2225_v37 = vld [vmem:[%s2422_s21 + $0x178] sm:$0xf] }
  0xe8   : > { %v433_v61 = vpop.permute.xlu0 %432  ;;  %v1031_v10 = vpop.permute.xlu1 %1030  ;;  %1827 = vmatprep.mubr.bf16.mxu1 %v1509_v38 }
  0xe9   : > { %v452_v57 = vsel %vm209_vm0, %v2852_v23, %v433_v61  ;;  %v1051_v62 = vsel %vm209_vm0, %v2863_v47, %v1031_v10  ;;  %v2237_v10 = vld [vmem:[%s2422_s21 + $0x190] sm:$0xf] }
  0xea   : > { %1286 = vrot.lane.b32.xlu0 %v2276_v40, %s2377_s24  ;;  %674 = vrot.lane.b32.xlu1 %v2150_v59, %s2377_s24  ;;  %v1508_v5 = vpack.c.bf16 %v1051_v62, %v999_v39  ;;  %v1484_v6 = vpack.c.bf16 %v452_v57, %v451_v56  ;;  %v2099_v39 = vld [vmem:[%s2422_s21 + $0x70] sm:$0xf]  ;;  %v2111_v62 = vld [vmem:[%s2422_s21 + $0x88] sm:$0xf] }
  0xec   : > { %v492_v8 = vpop.permute.xlu0 %491  ;;  %v494_v13 = vpop.permute.xlu1 %493  ;;  %1732 = vmatmul.mubr.bf16.gmra.mrb[20].mxu0 %v1484_v6 }
  0xed   : > { %v503_v23 = vsel %vm209_vm0, %v2951_v54, %v492_v8  ;;  %v2961_v47 = vsel %vm209_vm0, %v2954_v1, %v494_v13  ;;  %1828 = vmatmul.mubr.bf16.gmra.mrb[16].mxu1 %v1508_v5 }
  0xee   : > { %v513_v14 = vrot.slane %v503_v23, 4  ;;  %v516_v0 = vrot.slane %v2961_v47, 4  ;;  %1272 = vrot.lane.b32.xlu0 %v2808_v3, %s2377_s24  ;;  %1274 = vrot.lane.b32.xlu1 %v2270_v7, %s2377_s24 }
  0xf0   : > { %529 = vst [vmem:[#allocation2 + $0xc8] sm:$0xf0] %v513_v14  ;;  %v517_v17 = vsel %vm271_vm1, %v513_v14, %v516_v0  ;;  %v480_v19 = vpop.permute.xlu0 %479  ;;  %v482_v21 = vpop.permute.xlu1 %481 }
  0xf1   : > { %v500_v25 = vsel %vm209_vm0, %v2103_v18, %v480_v19  ;;  %v2974_v60 = vsel %vm209_vm0, %v2104_v24, %v482_v21  ;;  %v2231_v21 = vld [vmem:[%s2422_s21 + $0x178] sm:$0xf] }
  0xf2   : > { %v512_v22 = vrot.slane %v500_v25, 4  ;;  %v514_v3 = vrot.slane %v2974_v60, 4  ;;  %735 = vrot.lane.b32.xlu0 %v2168_v15, %s2377_s24  ;;  %1333 = vrot.lane.b32.xlu1 %v2287_v16, %s2377_s24 }
  0xf4   : > { %528 = vst [vmem:[#allocation2 + $0xc0] sm:$0xf0] %v512_v22  ;;  %v515_v28 = vsel %vm271_vm1, %v512_v22, %v514_v3  ;;  %v1092_v31 = vpop.permute.xlu0 %1091  ;;  %v1080_v58 = vpop.permute.xlu1 %1079 }
  0xf5   : > { %v1103_v2 = vsel %vm209_vm0, %v2980_v26, %v1092_v31  ;;  %v2990_v32 = vsel %vm209_vm0, %v2223_v46, %v1080_v58 }
  0xf6   : > { %v1113_v4 = vrot.slane %v1103_v2, 4  ;;  %v1112_v33 = vrot.slane %v2990_v32, 4  ;;  %1335 = vrot.lane.b32.xlu0 %v2288_v9, %s2377_s24  ;;  %723 = vrot.lane.b32.xlu1 %v2162_v12, %s2377_s24  ;;  %v2127_v2 = vld [vmem:[%s2422_s21 + $0xa8] sm:$0xff] }
  0xf8   : > { %1129 = vst [vmem:[#allocation2 + $0x258] sm:$0xf0] %v1113_v4  ;;  %1128 = vst [vmem:[#allocation2 + $0x250] sm:$0xf0] %v1112_v33  ;;  %v447_v11 = vpop.permute.xlu0 %446  ;;  %v1045_v18 = vpop.permute.xlu1 %1044 }
  0xf9   : > { %v456_v24 = vsel %vm209_vm0, %v2105_v34, %v447_v11  ;;  %v1055_v20 = vsel %vm209_vm0, %v2997_v35, %v1045_v18  ;;  %v3052_v18 = vld [vmem:[%s2422_s21 + $0xc0] sm:$0xff] }
  0xfa   : > { %462 = vst [vmem:[#allocation2 + $0xc8] sm:$0xf] %v456_v24  ;;  %1321 = vrot.lane.b32.xlu0 %v2934_v50, %s2377_s24  ;;  %1323 = vrot.lane.b32.xlu1 %v2282_v36, %s2377_s24  ;;  %v2117_v50 = vld [vmem:[%s2422_s21 + $0xa0] sm:$0xf] }
  0xfc   : > { %v1047_v43 = vpop.permute.xlu0 %1046  ;;  %v435_v30 = vpop.permute.xlu1 %434 }
  0xfd   : > { %v1056_v55 = vsel %vm209_vm0, %v2225_v37, %v1047_v43  ;;  %v453_v44 = vsel %vm209_vm0, %v2099_v39, %v435_v30  ;;  %v2128_v43 = vld [vmem:[%s2422_s21 + $0xb0] sm:$0xff]  ;;  %v2129_v30 = vld [vmem:[%s2422_s21 + $0xb8] sm:$0xf] }
  0xfe   : > { %1062 = vst [vmem:[#allocation2 + $0x258] sm:$0xf] %v1056_v55  ;;  %461 = vst [vmem:[#allocation2 + $0xc0] sm:$0xf] %v453_v44  ;;  %802 = vrot.lane.b32.xlu0 %v2178_v41, %s2377_s24  ;;  %790 = vrot.lane.b32.xlu1 %v2906_v63, %s2377_s24  ;;  %s2341_s24 = smul.u32 400, %s3374_s13 }
 0x100   : > { %v1033_v46 = vpop.permute.xlu0 %1032  ;;  %v1035_v49 = vpop.permute.xlu1 %1034  ;;  %s3188_s4 = scalar_lea.vmem %s3372_s3, %s2341_s24 }
 0x101   : > { %v1052_v27 = vsel %vm209_vm0, %v2866_v48, %v1033_v46  ;;  %v1053_v29 = vsel %vm209_vm0, %v2219_v45, %v1035_v49  ;;  %v1399_v42 = vld [vmem:[#allocation2 + $0xc8] sm:$0xff]  ;;  %v2247_v49 = vld [vmem:[%s2422_s21 + $0x198] sm:$0xff] }
 0x102   : > { %1061 = vst [vmem:[#allocation2 + $0x250] sm:$0xf] %v1053_v29  ;;  %v1487_v52 = vpack.c.bf16 %v517_v17, %v1399_v42 }
 0x104   : > { %v496_v53 = vpop.permute.xlu0 %495  ;;  %v1094_v56 = vpop.permute.xlu1 %1093  ;;  %1739 = vmatprep.mubr.bf16.mxu0 %v1487_v52 }
 0x105   : > { %v505_v63 = vsel %vm209_vm0, %v2117_v50, %v496_v53  ;;  %v1104_v38 = vsel %vm209_vm0, %v3022_v51, %v1094_v56  ;;  %v1449_v40 = vld [vmem:[#allocation2 + $0x258] sm:$0xff]  ;;  %v1398_v48 = vld [vmem:[#allocation2 + $0xc0] sm:$0xff] }
 0x106   : > { %v520_v59 = vrot.slane %v505_v63, 4  ;;  %v1116_v61 = vrot.slane %v1104_v38, 4  ;;  %v1511_v57 = vpack.c.bf16 %v1449_v40, %v1055_v20  ;;  %v1486_v5 = vpack.c.bf16 %v515_v28, %v1398_v48  ;;  %v2123_v53 = vld [vmem:[%s2422_s21 + $0xa0] sm:$0xf] }
 0x108   : > { %v521_v6 = vsel %vm271_vm1, %v516_v0, %v520_v59  ;;  %v1117_v7 = vsel %vm271_vm1, %v1113_v4, %v1116_v61  ;;  %v1096_v8 = vpop.permute.xlu0 %1095  ;;  %1835 = vmatprep.mubr.bf16.mxu1 %v1511_v57  ;;  %v484_v13 = vpop.permute.xlu1 %483  ;;  %1740 = vmatmul.mubr.bf16.gmra.mrb[24].mxu0 %v1486_v5 }
 0x109   : > { %v1105_v23 = vsel %vm209_vm0, %v2237_v10, %v1096_v8  ;;  %v502_v14 = vsel %vm209_vm0, %v2111_v62, %v484_v13  ;;  %v1448_v15 = vld [vmem:[#allocation2 + $0x250] sm:$0xff] }
 0x10a   : > { %v1120_v16 = vrot.slane %v1105_v23, 4  ;;  %v518_v17 = vrot.slane %v502_v14, 4  ;;  %v1510_v19 = vpack.c.bf16 %v1448_v15, %v1052_v27  ;;  %v2248_v27 = vld [vmem:[%s2422_s21 + $0x1a0] sm:$0xff] }
 0x10c   : > { %v1121_v47 = vsel %vm271_vm1, %v1116_v61, %v1120_v16  ;;  %v519_v0 = vsel %vm271_vm1, %v514_v3, %v518_v17  ;;  %v1082_v25 = vpop.permute.xlu0 %1081  ;;  %1836 = vmatmul.mubr.bf16.gmra.mrb[20].mxu1 %v1510_v19  ;;  %v1084_v22 = vpop.permute.xlu1 %1083  ;;  %v3089_v19 = vld [vmem:[%s2422_s21 + $0x1b8] sm:$0xff] }
 0x10d   : > { %v1101_v9 = vsel %vm209_vm0, %v2997_v35, %v1082_v25  ;;  %v1102_v12 = vsel %vm209_vm0, %v2231_v21, %v1084_v22  ;;  %v1513_v28 = vpack.c.bf16 %v1121_v47, %v1117_v7  ;;  %v2141_v7 = vld [vmem:[%s2422_s21 + $0xd0] sm:$0xf] }
 0x10e   : > { %v1114_v31 = vrot.slane %v1101_v9, 4  ;;  %v1118_v58 = vrot.slane %v1102_v12, 4 }
 0x10f   : > { %1843 = vmatprep.mubr.bf16.mxu1 %v1513_v28 }
 0x110   : > { %v1115_v60 = vsel %vm271_vm1, %v1112_v33, %v1114_v31  ;;  %v1119_v3 = vsel %vm271_vm1, %v1114_v31, %v1118_v58  ;;  %v563_v4 = vpop.permute.xlu0 %562  ;;  %v551_v34 = vpop.permute.xlu1 %550  ;;  %v2135_v58 = vld [vmem:[%s2422_s21 + $0xb8] sm:$0xf] }
 0x111   : > { %v574_v36 = vsel %vm209_vm0, %v2127_v2, %v563_v4  ;;  %v571_v35 = vsel %vm209_vm0, %v2951_v54, %v551_v34  ;;  %v1512_v11 = vpack.c.bf16 %v1119_v3, %v1115_v60 }
 0x112   : > { %v1489_v24 = vpack.c.bf16 %v574_v36, %v521_v6  ;;  %v1488_v20 = vpack.c.bf16 %v571_v35, %v519_v0  ;;  %v3079_v6 = vld [vmem:[%s2422_s21 + $0xc8] sm:$0xff] }
 0x114   : > { %v612_v37 = vpop.permute.xlu0 %611  ;;  %v600_v32 = vpop.permute.xlu1 %599  ;;  %1844 = vmatmul.mubr.bf16.gmra.mrb[24].mxu1 %v1512_v11  ;;  %1747 = vmatprep.mubr.bf16.mxu0 %v1489_v24 }
 0x115   : > { %v623_v33 = vsel %vm209_vm0, %v3052_v18, %v612_v37  ;;  %v3057_v39 = vsel %vm209_vm0, %v2127_v2, %v600_v32  ;;  %1748 = vmatmul.mubr.bf16.gmra.mrb[28].mxu0 %v1488_v20 }
 0x116   : > { %v633_v41 = vrot.slane %v623_v33, 4  ;;  %v632_v54 = vrot.slane %v3057_v39, 4 }
 0x118   : > { %649 = vst [vmem:[#allocation2 + $0x118] sm:$0xf0] %v633_v41  ;;  %648 = vst [vmem:[#allocation2 + $0x110] sm:$0xf0] %v632_v54  ;;  %v565_v55 = vpop.permute.xlu0 %564  ;;  %v567_v44 = vpop.permute.xlu1 %566 }
 0x119   : > { %v575_v45 = vsel %vm209_vm0, %v2128_v43, %v565_v55  ;;  %v576_v46 = vsel %vm209_vm0, %v2129_v30, %v567_v44  ;;  %v2249_v55 = vld [vmem:[%s2422_s21 + $0x1a8] sm:$0xf]  ;;  %v2243_v44 = vld [vmem:[%s2422_s21 + $0x190] sm:$0xf] }
 0x11a   : > { %582 = vst [vmem:[#allocation2 + $0x118] sm:$0xf] %v576_v46 }
 0x11c   : > { %v1163_v29 = vpop.permute.xlu0 %1162  ;;  %v1165_v42 = vpop.permute.xlu1 %1164 }
 0x11d   : > { %v1174_v50 = vsel %vm209_vm0, %v2247_v49, %v1163_v29  ;;  %v1175_v52 = vsel %vm209_vm0, %v2248_v27, %v1165_v42  ;;  %v2255_v29 = vld [vmem:[%s2422_s21 + $0x1a8] sm:$0xf] }
 0x11e   : > { %v1515_v56 = vpack.c.bf16 %v1175_v52, %v1174_v50 }
 0x120   : > { %v553_v63 = vpop.permute.xlu0 %552  ;;  %v555_v38 = vpop.permute.xlu1 %554  ;;  %1851 = vmatprep.mubr.bf16.mxu1 %v1515_v56 }
 0x121   : > { %v572_v40 = vsel %vm209_vm0, %v2954_v1, %v553_v63  ;;  %v573_v48 = vsel %vm209_vm0, %v2123_v53, %v555_v38  ;;  %v1409_v59 = vld [vmem:[#allocation2 + $0x118] sm:$0xff] }
 0x122   : > { %581 = vst [vmem:[#allocation2 + $0x110] sm:$0xf] %v573_v48  ;;  %v1491_v61 = vpack.c.bf16 %v1409_v59, %v575_v45  ;;  %v2151_v38 = vld [vmem:[%s2422_s21 + $0xd8] sm:$0xff] }
 0x124   : > { %v1151_v10 = vpop.permute.xlu0 %1150  ;;  %v1153_v57 = vpop.permute.xlu1 %1152  ;;  %1755 = vmatprep.mubr.bf16.mxu0 %v1491_v61 }
 0x125   : > { %v1171_v62 = vsel %vm209_vm0, %v2980_v26, %v1151_v10  ;;  %v1172_v5 = vsel %vm209_vm0, %v3022_v51, %v1153_v57  ;;  %v3086_v26 = vld [vmem:[%s2422_s21 + $0x1b0] sm:$0xff] }
 0x126   : > { %v1514_v1 = vpack.c.bf16 %v1172_v5, %v1171_v62 }
 0x128   : > { %v614_v8 = vpop.permute.xlu0 %613  ;;  %v616_v13 = vpop.permute.xlu1 %615  ;;  %1852 = vmatmul.mubr.bf16.gmra.mrb[28].mxu1 %v1514_v1  ;;  %v2271_v1 = vld [vmem:[%s2422_s21 + $0x1c8] sm:$0xff] }
 0x129   : > { %v624_v23 = vsel %vm209_vm0, %v3079_v6, %v614_v8  ;;  %v625_v14 = vsel %vm209_vm0, %v2141_v7, %v616_v13  ;;  %v1408_v15 = vld [vmem:[#allocation2 + $0x110] sm:$0xff] }
 0x12a   : > { %v636_v16 = vrot.slane %v624_v23, 4  ;;  %v640_v17 = vrot.slane %v625_v14, 4  ;;  %v1490_v51 = vpack.c.bf16 %v1408_v15, %v572_v40  ;;  %v2152_v40 = vld [vmem:[%s2422_s21 + $0xe0] sm:$0xff] }
 0x12c   : > { %v637_v21 = vsel %vm271_vm1, %v633_v41, %v636_v16  ;;  %v641_v47 = vsel %vm271_vm1, %v636_v16, %v640_v17  ;;  %v1212_v0 = vpop.permute.xlu0 %1211  ;;  %v1214_v25 = vpop.permute.xlu1 %1213  ;;  %1756 = vmatmul.mubr.bf16.gmra.mrb[32].mxu0 %v1490_v51 }
 0x12d   : > { %v1223_v22 = vsel %vm209_vm0, %v3086_v26, %v1212_v0  ;;  %v1224_v9 = vsel %vm209_vm0, %v3089_v19, %v1214_v25  ;;  %v1493_v12 = vpack.c.bf16 %v641_v47, %v637_v21 }
 0x12e   : > { %v1233_v28 = vrot.slane %v1223_v22, 4  ;;  %v1236_v31 = vrot.slane %v1224_v9, 4  ;;  %v3131_v22 = vld [vmem:[%s2422_s21 + $0xf0] sm:$0xff]  ;;  %v2164_v9 = vld [vmem:[%s2422_s21 + $0xf8] sm:$0xff] }
 0x12f   : > { %1763 = vmatprep.mubr.bf16.mxu0 %v1493_v12 }
 0x130   : > { %1249 = vst [vmem:[#allocation2 + $0x2a8] sm:$0xf0] %v1233_v28  ;;  %v1237_v2 = vsel %vm271_vm1, %v1233_v28, %v1236_v31  ;;  %v602_v60 = vpop.permute.xlu0 %601  ;;  %v604_v3 = vpop.permute.xlu1 %603 }
 0x131   : > { %v621_v4 = vsel %vm209_vm0, %v2128_v43, %v602_v60  ;;  %v622_v34 = vsel %vm209_vm0, %v2135_v58, %v604_v3 }
 0x132   : > { %v634_v36 = vrot.slane %v621_v4, 4  ;;  %v638_v35 = vrot.slane %v622_v34, 4 }
 0x134   : > { %v635_v11 = vsel %vm271_vm1, %v632_v54, %v634_v36  ;;  %v639_v24 = vsel %vm271_vm1, %v634_v36, %v638_v35  ;;  %v1200_v20 = vpop.permute.xlu0 %1199  ;;  %v1202_v37 = vpop.permute.xlu1 %1201 }
 0x135   : > { %v1220_v32 = vsel %vm209_vm0, %v2247_v49, %v1200_v20  ;;  %v1221_v33 = vsel %vm209_vm0, %v2248_v27, %v1202_v37  ;;  %v1492_v41 = vpack.c.bf16 %v639_v24, %v635_v11  ;;  %v2261_v27 = vld [vmem:[%s2422_s21 + $0x1c0] sm:$0xf] }
 0x136   : > { %v1232_v43 = vrot.slane %v1220_v32, 4  ;;  %v1234_v30 = vrot.slane %v1221_v33, 4  ;;  %v2283_v24 = vld [vmem:[%s2422_s21 + $0x1e0] sm:$0xff] }
 0x137   : > { %1764 = vmatmul.mubr.bf16.gmra.mrb[36].mxu0 %v1492_v41 }
 0x138   : > { %1248 = vst [vmem:[#allocation2 + $0x2a0] sm:$0xf0] %v1232_v43  ;;  %v1235_v39 = vsel %vm271_vm1, %v1232_v43, %v1234_v30  ;;  %v1167_v54 = vpop.permute.xlu0 %1166  ;;  %v1155_v45 = vpop.permute.xlu1 %1154 }
 0x139   : > { %v1176_v46 = vsel %vm209_vm0, %v2249_v55, %v1167_v54  ;;  %v1173_v49 = vsel %vm209_vm0, %v2243_v44, %v1155_v45  ;;  %v2153_v55 = vld [vmem:[%s2422_s21 + $0xe8] sm:$0xf]  ;;  %v3161_v44 = vld [vmem:[%s2422_s21 + $0x1d0] sm:$0xff] }
 0x13a   : > { %1182 = vst [vmem:[#allocation2 + $0x2a8] sm:$0xf] %v1176_v46  ;;  %1181 = vst [vmem:[#allocation2 + $0x2a0] sm:$0xf] %v1173_v49  ;;  %v2273_v49 = vld [vmem:[%s2422_s21 + $0x1d8] sm:$0xf] }
 0x13c   : > { %v1216_v42 = vpop.permute.xlu0 %1215  ;;  %v1204_v50 = vpop.permute.xlu1 %1203 }
 0x13d   : > { %v1225_v52 = vsel %vm209_vm0, %v2261_v27, %v1216_v42  ;;  %v1222_v53 = vsel %vm209_vm0, %v2255_v29, %v1204_v50  ;;  %v2147_v27 = vld [vmem:[%s2422_s21 + $0xd0] sm:$0xf] }
 0x13e   : > { %v1240_v56 = vrot.slane %v1225_v52, 4  ;;  %v1238_v63 = vrot.slane %v1222_v53, 4  ;;  %v2267_v53 = vld [vmem:[%s2422_s21 + $0x1c0] sm:$0xf] }
 0x140   : > { %v1241_v48 = vsel %vm271_vm1, %v1236_v31, %v1240_v56  ;;  %v1239_v59 = vsel %vm271_vm1, %v1234_v30, %v1238_v63  ;;  %v683_v61 = vpop.permute.xlu0 %682  ;;  %v685_v10 = vpop.permute.xlu1 %684  ;;  %v3177_v56 = vld [vmem:[%s3371_s2] ss:$0 sm:$0xff] }
 0x141   : > { %v694_v57 = vsel %vm209_vm0, %v2151_v38, %v683_v61  ;;  %v695_v62 = vsel %vm209_vm0, %v2152_v40, %v685_v10  ;;  %v1459_v5 = vld [vmem:[#allocation2 + $0x2a8] sm:$0xff]  ;;  %v1458_v7 = vld [vmem:[#allocation2 + $0x2a0] sm:$0xff] }
 0x142   : > { %v1517_v8 = vpack.c.bf16 %v1237_v2, %v1459_v5  ;;  %v1516_v13 = vpack.c.bf16 %v1235_v39, %v1458_v7  ;;  %v1495_v23 = vpack.c.bf16 %v695_v62, %v694_v57  ;;  %v2165_v10 = vld [vmem:[%s2422_s21 + $0x100] sm:$0xf]  ;;  %v2284_v57 = vld [vmem:[%s2422_s21 + $0x1e8] sm:$0xff] }
 0x144   : > { %v1283_v14 = vpop.permute.xlu0 %1282  ;;  %1859 = vmatprep.mubr.bf16.mxu1 %v1517_v8  ;;  %v671_v15 = vpop.permute.xlu1 %670  ;;  %1771 = vmatprep.mubr.bf16.mxu0 %v1495_v23 }
 0x145   : > { %v1294_v16 = vsel %vm209_vm0, %v2271_v1, %v1283_v14  ;;  %v691_v17 = vsel %vm209_vm0, %v3052_v18, %v671_v15  ;;  %1860 = vmatmul.mubr.bf16.gmra.mrb[32].mxu1 %v1516_v13 }
 0x146   : > { %v1519_v51 = vpack.c.bf16 %v1294_v16, %v1241_v48 }
 0x148   : > { %v673_v21 = vpop.permute.xlu0 %672  ;;  %v1271_v47 = vpop.permute.xlu1 %1270  ;;  %1867 = vmatprep.mubr.bf16.mxu1 %v1519_v51 }
 0x149   : > { %v692_v0 = vsel %vm209_vm0, %v3079_v6, %v673_v21  ;;  %v1291_v25 = vsel %vm209_vm0, %v3086_v26, %v1271_v47 }
 0x14a   : > { %v1518_v12 = vpack.c.bf16 %v1291_v25, %v1239_v59  ;;  %v1494_v28 = vpack.c.bf16 %v692_v0, %v691_v17  ;;  %v2285_v0 = vld [vmem:[%s2422_s21 + $0x1f0] sm:$0xf] }
 0x14c   : > { %v732_v31 = vpop.permute.xlu0 %731  ;;  %v734_v58 = vpop.permute.xlu1 %733  ;;  %1772 = vmatmul.mubr.bf16.gmra.mrb[40].mxu0 %v1494_v28 }
 0x14d   : > { %v743_v18 = vsel %vm209_vm0, %v3131_v22, %v732_v31  ;;  %v3137_v2 = vsel %vm209_vm0, %v2164_v9, %v734_v58  ;;  %1868 = vmatmul.mubr.bf16.gmra.mrb[36].mxu1 %v1518_v12  ;;  %v2159_v9 = vld [vmem:[%s2422_s21 + $0xe8] sm:$0xf] }
 0x14e   : > { %v753_v6 = vrot.slane %v743_v18, 4  ;;  %v756_v60 = vrot.slane %v3137_v2, 4  ;;  %v2279_v2 = vld [vmem:[%s2422_s21 + $0x1d8] sm:$0xf] }
 0x150   : > { %769 = vst [vmem:[#allocation2 + $0x168] sm:$0xf0] %v753_v6  ;;  %v757_v26 = vsel %vm271_vm1, %v753_v6, %v756_v60  ;;  %v720_v3 = vpop.permute.xlu0 %719  ;;  %v722_v4 = vpop.permute.xlu1 %721 }
 0x151   : > { %v740_v34 = vsel %vm209_vm0, %v2151_v38, %v720_v3  ;;  %v3145_v36 = vsel %vm209_vm0, %v2152_v40, %v722_v4 }
 0x152   : > { %v752_v35 = vrot.slane %v740_v34, 4  ;;  %v754_v11 = vrot.slane %v3145_v36, 4 }
 0x154   : > { %768 = vst [vmem:[#allocation2 + $0x160] sm:$0xf0] %v752_v35  ;;  %v3152_v20 = vsel %vm271_vm1, %v752_v35, %v754_v11  ;;  %v1332_v37 = vpop.permute.xlu0 %1331  ;;  %v1320_v32 = vpop.permute.xlu1 %1319 }
 0x155   : > { %v1343_v33 = vsel %vm209_vm0, %v2283_v24, %v1332_v37  ;;  %v3156_v41 = vsel %vm209_vm0, %v2271_v1, %v1320_v32 }
 0x156   : > { %v1353_v43 = vrot.slane %v1343_v33, 4  ;;  %v1352_v30 = vrot.slane %v3156_v41, 4 }
 0x158   : > { %1369 = vst [vmem:[#allocation2 + $0x2f8] sm:$0xf0] %v1353_v43  ;;  %1368 = vst [vmem:[#allocation2 + $0x2f0] sm:$0xf0] %v1352_v30  ;;  %v687_v39 = vpop.permute.xlu0 %686  ;;  %v1285_v54 = vpop.permute.xlu1 %1284 }
 0x159   : > { %v696_v45 = vsel %vm209_vm0, %v2153_v55, %v687_v39  ;;  %v1295_v46 = vsel %vm209_vm0, %v3161_v44, %v1285_v54 }
 0x15a   : > { %702 = vst [vmem:[#allocation2 + $0x168] sm:$0xf] %v696_v45  ;;  %v2175_v45 = vld [vmem:[%s2422_s21 + $0x108] sm:$0xff] }
 0x15c   : > { %v1287_v29 = vpop.permute.xlu0 %1286  ;;  %v675_v42 = vpop.permute.xlu1 %674 }
 0x15d   : > { %v1296_v50 = vsel %vm209_vm0, %v2273_v49, %v1287_v29  ;;  %v693_v52 = vsel %vm209_vm0, %v2147_v27, %v675_v42 }
 0x15e   : > { %1302 = vst [vmem:[#allocation2 + $0x2f8] sm:$0xf] %v1296_v50  ;;  %701 = vst [vmem:[#allocation2 + $0x160] sm:$0xf] %v693_v52 }
 0x160   : > { %v1273_v63 = vpop.permute.xlu0 %1272  ;;  %v1275_v38 = vpop.permute.xlu1 %1274 }
 0x161   : > { %v1292_v40 = vsel %vm209_vm0, %v3089_v19, %v1273_v63  ;;  %v1293_v48 = vsel %vm209_vm0, %v2267_v53, %v1275_v38  ;;  %v1419_v59 = vld [vmem:[#allocation2 + $0x168] sm:$0xff]  ;;  %v1693_v61 = vpop.f32.mrb[0].mxu0 }
 0x162   : > { %1301 = vst [vmem:[#allocation2 + $0x2f0] sm:$0xf] %v1293_v48  ;;  %v1497_v62 = vpack.c.bf16 %v757_v26, %v1419_v59  ;;  %v1694_v5 = vadd.f32 %v3177_v56, %v1693_v61  ;;  %v1695_v7 = vpop.f32.mrb[1].mxu0 }
 0x163   : > { %v1696_v19 = vpop.f32.mrb[2].mxu0 }
 0x164   : > { %v736_v1 = vpop.permute.xlu0 %735  ;;  %v1334_v8 = vpop.permute.xlu1 %1333  ;;  %1779 = vmatprep.mubr.bf16.mxu0 %v1497_v62  ;;  %v1892_v13 = vmax.f32 %v1694_v5, 0.0  ;;  %v1697_v23 = vadd.f32 %v3177_v56, %v1696_v19 }
 0x165   : > { %v745_v14 = vsel %vm209_vm0, %v2165_v10, %v736_v1  ;;  %v1344_v15 = vsel %vm209_vm0, %v2284_v57, %v1334_v8  ;;  %v1469_v16 = vld [vmem:[#allocation2 + $0x2f8] sm:$0xff]  ;;  %v1418_v17 = vld [vmem:[#allocation2 + $0x160] sm:$0xff]  ;;  %v1698_v51 = vpop.f32.mrb[3].mxu0 }
 0x166   : > { %v760_v21 = vrot.slane %v745_v14, 4  ;;  %v1356_v47 = vrot.slane %v1344_v15, 4  ;;  %v1521_v25 = vpack.c.bf16 %v1469_v16, %v1295_v46  ;;  %1943 = vst.msk [vmem:[%s3188_s4] sm:$0xff] %vm1942_vm2, %v1892_v13  ;;  %v1496_v12 = vpack.c.bf16 %v3152_v20, %v1418_v17 }
 0x167   : > { %v1893_v28 = vmax.f32 %v1697_v23, 0.0 }
 0x168   : > { %v761_v31 = vsel %vm271_vm1, %v756_v60, %v760_v21  ;;  %v1357_v58 = vsel %vm271_vm1, %v1353_v43, %v1356_v47  ;;  %v1336_v18 = vpop.permute.xlu0 %1335  ;;  %1875 = vmatprep.mubr.bf16.mxu1 %v1521_v25  ;;  %v724_v6 = vpop.permute.xlu1 %723  ;;  %1780 = vmatmul.mubr.bf16.gmra.mrb[44].mxu0 %v1496_v12 }
 0x169   : > { %v1345_v26 = vsel %vm209_vm0, %v2285_v0, %v1336_v18  ;;  %v742_v3 = vsel %vm209_vm0, %v2159_v9, %v724_v6  ;;  %1944 = vst.msk [vmem:[%s3188_s4 + $0x8] sm:$0xff] %vm1942_vm2, %v1893_v28  ;;  %v1468_v4 = vld [vmem:[#allocation2 + $0x2f0] sm:$0xff] }
 0x16a   : > { %v1360_v34 = vrot.slane %v1345_v26, 4  ;;  %v758_v35 = vrot.slane %v742_v3, 4  ;;  %v1520_v24 = vpack.c.bf16 %v1468_v4, %v1292_v40 }
 0x16c   : > { %v1361_v60 = vsel %vm271_vm1, %v1356_v47, %v1360_v34  ;;  %v759_v20 = vsel %vm271_vm1, %v754_v11, %v758_v35  ;;  %v1322_v37 = vpop.permute.xlu0 %1321  ;;  %1876 = vmatmul.mubr.bf16.gmra.mrb[40].mxu1 %v1520_v24  ;;  %v1324_v32 = vpop.permute.xlu1 %1323 }
 0x16d   : > { %v1341_v33 = vsel %vm209_vm0, %v3161_v44, %v1322_v37  ;;  %v1342_v43 = vsel %vm209_vm0, %v2279_v2, %v1324_v32  ;;  %v1523_v55 = vpack.c.bf16 %v1361_v60, %v1357_v58 }
 0x16e   : > { %v1354_v39 = vrot.slane %v1341_v33, 4  ;;  %v1358_v54 = vrot.slane %v1342_v43, 4 }
 0x16f   : > { %1883 = vmatprep.mubr.bf16.mxu1 %v1523_v55 }
 0x170   : > { %v1355_v46 = vsel %vm271_vm1, %v1352_v30, %v1354_v39  ;;  %v1359_v36 = vsel %vm271_vm1, %v1354_v39, %v1358_v54  ;;  %v803_v11 = vpop.permute.xlu0 %802  ;;  %v791_v49 = vpop.permute.xlu1 %790 }
 0x171   : > { %v814_v27 = vsel %vm209_vm0, %v2175_v45, %v803_v11  ;;  %v811_v44 = vsel %vm209_vm0, %v3131_v22, %v791_v49  ;;  %v1522_v29 = vpack.c.bf16 %v1359_v36, %v1355_v46 }
 0x172   : > { %v1499_v42 = vpack.c.bf16 %v814_v27, %v761_v31  ;;  %v1498_v50 = vpack.c.bf16 %v811_v44, %v759_v20 }
 0x174   : > { %1884 = vmatmul.mubr.bf16.gmra.mrb[44].mxu1 %v1522_v29  ;;  %1787 = vmatprep.mubr.bf16.mxu0 %v1499_v42 }
 0x175   : > { %1788 = vmatmul.mubr.bf16.gmra.mrb[48].mxu0 %v1498_v50 }
 0x17b   : > { %v1701_v41 = vpop.f32.mrb[4].mxu0 }
 0x17c   : > { %v1702_v30 = vadd.f32 %v3177_v56, %v1701_v41  ;;  %v1703_v52 = vpop.f32.mrb[5].mxu0 }
 0x17d   : > { %v1704_v53 = vpop.f32.mrb[6].mxu0 }
 0x17e   : > { %v1894_v63 = vmax.f32 %v1702_v30, 0.0  ;;  %v1705_v38 = vadd.f32 %v3177_v56, %v1704_v53  ;;  %v1706_v40 = vpop.f32.mrb[7].mxu0 }
 0x17f   : > { %v1797_v48 = vpop.f32.mrb[0].mxu1 }
 0x180   : > { %1945 = vst.msk [vmem:[%s3188_s4 + $0x10] sm:$0xff] %vm1942_vm2, %v1894_v63  ;;  %v1895_v22 = vmax.f32 %v1705_v38, 0.0  ;;  %v1798_v59 = vadd.f32 %v3177_v56, %v1797_v48  ;;  %v1799_v61 = vpop.f32.mrb[1].mxu1 }
 0x181   : > { %v1800_v10 = vpop.f32.mrb[2].mxu1 }
 0x182   : > { %1946 = vst.msk [vmem:[%s3188_s4 + $0x18] sm:$0xff] %vm1942_vm2, %v1895_v22  ;;  %v1918_v57 = vmax.f32 %v1798_v59, 0.0  ;;  %v1801_v62 = vadd.f32 %v3177_v56, %v1800_v10  ;;  %v1802_v5 = vpop.f32.mrb[3].mxu1 }
 0x184   : > { %1969 = vst.msk [vmem:[%s3188_s4 + $0xd0] sm:$0xff] %vm1942_vm2, %v1918_v57  ;;  %v1919_v7 = vmax.f32 %v1801_v62, 0.0 }
 0x186   : > { %1970 = vst.msk [vmem:[%s3188_s4 + $0xd8] sm:$0xff] %vm1942_vm2, %v1919_v7 }
 0x187   : > { %v1805_v19 = vpop.f32.mrb[4].mxu1 }
 0x188   : > { %v1806_v1 = vadd.f32 %v3177_v56, %v1805_v19  ;;  %v1807_v8 = vpop.f32.mrb[5].mxu1  ;;  %v1709_v13 = vpop.f32.mrb[8].mxu0 }
 0x189   : > { %v1710_v23 = vadd.f32 %v3177_v56, %v1709_v13  ;;  %v1808_v14 = vpop.f32.mrb[6].mxu1  ;;  %v1711_v15 = vpop.f32.mrb[9].mxu0 }
 0x18a   : > { %v1920_v16 = vmax.f32 %v1806_v1, 0.0  ;;  %v1809_v17 = vadd.f32 %v3177_v56, %v1808_v14  ;;  %v1810_v51 = vpop.f32.mrb[7].mxu1  ;;  %v1712_v21 = vpop.f32.mrb[10].mxu0 }
 0x18b   : > { %v1896_v47 = vmax.f32 %v1710_v23, 0.0  ;;  %v1713_v0 = vadd.f32 %v3177_v56, %v1712_v21  ;;  %v1714_v25 = vpop.f32.mrb[11].mxu0 }
 0x18c   : > { %1971 = vst.msk [vmem:[%s3188_s4 + $0xe0] sm:$0xff] %vm1942_vm2, %v1920_v16  ;;  %v1921_v9 = vmax.f32 %v1809_v17, 0.0 }
 0x18d   : > { %1947 = vst.msk [vmem:[%s3188_s4 + $0x20] sm:$0xff] %vm1942_vm2, %v1896_v47  ;;  %v1897_v12 = vmax.f32 %v1713_v0, 0.0 }
 0x18e   : > { %1972 = vst.msk [vmem:[%s3188_s4 + $0xe8] sm:$0xff] %vm1942_vm2, %v1921_v9 }
 0x18f   : > { %1948 = vst.msk [vmem:[%s3188_s4 + $0x28] sm:$0xff] %vm1942_vm2, %v1897_v12 }
 0x19b   : > { %v1813_v28 = vpop.f32.mrb[8].mxu1 }
 0x19c   : > { %v1814_v31 = vadd.f32 %v3177_v56, %v1813_v28  ;;  %v1815_v58 = vpop.f32.mrb[9].mxu1 }
 0x19d   : > { %v1816_v18 = vpop.f32.mrb[10].mxu1 }
 0x19e   : > { %v1922_v6 = vmax.f32 %v1814_v31, 0.0  ;;  %v1817_v26 = vadd.f32 %v3177_v56, %v1816_v18  ;;  %v1818_v3 = vpop.f32.mrb[11].mxu1 }
 0x19f   : > { %v1717_v4 = vpop.f32.mrb[12].mxu0 }
 0x1a0   : > { %v1718_v34 = vadd.f32 %v3177_v56, %v1717_v4  ;;  %v1719_v35 = vpop.f32.mrb[13].mxu0  ;;  %1973 = vst.msk [vmem:[%s3188_s4 + $0xf0] sm:$0xff] %vm1942_vm2, %v1922_v6  ;;  %v1923_v24 = vmax.f32 %v1817_v26, 0.0 }
 0x1a1   : > { %v1720_v2 = vpop.f32.mrb[14].mxu0 }
 0x1a2   : > { %v1898_v60 = vmax.f32 %v1718_v34, 0.0  ;;  %v1721_v20 = vadd.f32 %v3177_v56, %v1720_v2  ;;  %v1722_v37 = vpop.f32.mrb[15].mxu0  ;;  %1974 = vst.msk [vmem:[%s3188_s4 + $0xf8] sm:$0xff] %vm1942_vm2, %v1923_v24 }
 0x1a4   : > { %1949 = vst.msk [vmem:[%s3188_s4 + $0x30] sm:$0xff] %vm1942_vm2, %v1898_v60  ;;  %v1899_v32 = vmax.f32 %v1721_v20, 0.0 }
 0x1a6   : > { %1950 = vst.msk [vmem:[%s3188_s4 + $0x38] sm:$0xff] %vm1942_vm2, %v1899_v32 }
 0x1aa   : > { %v1725_v33 = vpop.f32.mrb[16].mxu0 }
 0x1ab   : > { %v1726_v43 = vadd.f32 %v3177_v56, %v1725_v33  ;;  %v1727_v55 = vpop.f32.mrb[17].mxu0 }
 0x1ac   : > { %v1728_v39 = vpop.f32.mrb[18].mxu0 }
 0x1ad   : > { %v1900_v54 = vmax.f32 %v1726_v43, 0.0  ;;  %v1729_v45 = vadd.f32 %v3177_v56, %v1728_v39  ;;  %v1730_v46 = vpop.f32.mrb[19].mxu0 }
 0x1af   : > { %1951 = vst.msk [vmem:[%s3188_s4 + $0x40] sm:$0xff] %vm1942_vm2, %v1900_v54  ;;  %v1901_v36 = vmax.f32 %v1729_v45, 0.0 }
 0x1b1   : > { %1952 = vst.msk [vmem:[%s3188_s4 + $0x48] sm:$0xff] %vm1942_vm2, %v1901_v36 }
 0x1b8   : > { %v1821_v11 = vpop.f32.mrb[12].mxu1 }
 0x1b9   : > { %v1822_v49 = vadd.f32 %v3177_v56, %v1821_v11  ;;  %v1823_v27 = vpop.f32.mrb[13].mxu1 }
 0x1ba   : > { %v1824_v44 = vpop.f32.mrb[14].mxu1 }
 0x1bb   : > { %v1924_v29 = vmax.f32 %v1822_v49, 0.0  ;;  %v1825_v42 = vadd.f32 %v3177_v56, %v1824_v44  ;;  %v1826_v50 = vpop.f32.mrb[15].mxu1 }
 0x1bd   : > { %1975 = vst.msk [vmem:[%s3188_s4 + $0x100] sm:$0xff] %vm1942_vm2, %v1924_v29  ;;  %v1925_v41 = vmax.f32 %v1825_v42, 0.0 }
 0x1bf   : > { %1976 = vst.msk [vmem:[%s3188_s4 + $0x108] sm:$0xff] %vm1942_vm2, %v1925_v41  ;;  %v1733_v30 = vpop.f32.mrb[20].mxu0 }
 0x1c0   : > { %v1734_v52 = vadd.f32 %v3177_v56, %v1733_v30  ;;  %v1829_v53 = vpop.f32.mrb[16].mxu1  ;;  %v1735_v63 = vpop.f32.mrb[21].mxu0 }
 0x1c1   : > { %v1830_v38 = vadd.f32 %v3177_v56, %v1829_v53  ;;  %v1831_v40 = vpop.f32.mrb[17].mxu1  ;;  %v1736_v48 = vpop.f32.mrb[22].mxu0 }
 0x1c2   : > { %v1902_v22 = vmax.f32 %v1734_v52, 0.0  ;;  %v1737_v59 = vadd.f32 %v3177_v56, %v1736_v48  ;;  %v1832_v61 = vpop.f32.mrb[18].mxu1  ;;  %v1738_v10 = vpop.f32.mrb[23].mxu0 }
 0x1c3   : > { %v1926_v57 = vmax.f32 %v1830_v38, 0.0  ;;  %v1833_v62 = vadd.f32 %v3177_v56, %v1832_v61  ;;  %v1834_v5 = vpop.f32.mrb[19].mxu1 }
 0x1c4   : > { %1953 = vst.msk [vmem:[%s3188_s4 + $0x50] sm:$0xff] %vm1942_vm2, %v1902_v22  ;;  %v1903_v7 = vmax.f32 %v1737_v59, 0.0 }
 0x1c5   : > { %1977 = vst.msk [vmem:[%s3188_s4 + $0x110] sm:$0xff] %vm1942_vm2, %v1926_v57  ;;  %v1927_v19 = vmax.f32 %v1833_v62, 0.0 }
 0x1c6   : > { %1954 = vst.msk [vmem:[%s3188_s4 + $0x58] sm:$0xff] %vm1942_vm2, %v1903_v7 }
 0x1c7   : > { %1978 = vst.msk [vmem:[%s3188_s4 + $0x118] sm:$0xff] %vm1942_vm2, %v1927_v19 }
 0x1db   : > { %v1741_v1 = vpop.f32.mrb[24].mxu0 }
 0x1dc   : > { %v1742_v8 = vadd.f32 %v3177_v56, %v1741_v1  ;;  %v1743_v13 = vpop.f32.mrb[25].mxu0 }
 0x1dd   : > { %v1744_v23 = vpop.f32.mrb[26].mxu0 }
 0x1de   : > { %v1904_v14 = vmax.f32 %v1742_v8, 0.0  ;;  %v1745_v15 = vadd.f32 %v3177_v56, %v1744_v23  ;;  %v1746_v16 = vpop.f32.mrb[27].mxu0 }
 0x1df   : > { %v1837_v17 = vpop.f32.mrb[20].mxu1 }
 0x1e0   : > { %1955 = vst.msk [vmem:[%s3188_s4 + $0x60] sm:$0xff] %vm1942_vm2, %v1904_v14  ;;  %v1905_v51 = vmax.f32 %v1745_v15, 0.0  ;;  %v1838_v21 = vadd.f32 %v3177_v56, %v1837_v17  ;;  %v1839_v47 = vpop.f32.mrb[21].mxu1 }
 0x1e1   : > { %v1840_v0 = vpop.f32.mrb[22].mxu1 }
 0x1e2   : > { %1956 = vst.msk [vmem:[%s3188_s4 + $0x68] sm:$0xff] %vm1942_vm2, %v1905_v51  ;;  %v1928_v25 = vmax.f32 %v1838_v21, 0.0  ;;  %v1841_v9 = vadd.f32 %v3177_v56, %v1840_v0  ;;  %v1842_v12 = vpop.f32.mrb[23].mxu1 }
 0x1e4   : > { %1979 = vst.msk [vmem:[%s3188_s4 + $0x120] sm:$0xff] %vm1942_vm2, %v1928_v25  ;;  %v1929_v28 = vmax.f32 %v1841_v9, 0.0 }
 0x1e6   : > { %1980 = vst.msk [vmem:[%s3188_s4 + $0x128] sm:$0xff] %vm1942_vm2, %v1929_v28 }
 0x1e7   : > { %v1845_v31 = vpop.f32.mrb[24].mxu1 }
 0x1e8   : > { %v1846_v58 = vadd.f32 %v3177_v56, %v1845_v31  ;;  %v1847_v18 = vpop.f32.mrb[25].mxu1  ;;  %v1749_v6 = vpop.f32.mrb[28].mxu0 }
 0x1e9   : > { %v1750_v26 = vadd.f32 %v3177_v56, %v1749_v6  ;;  %v1848_v3 = vpop.f32.mrb[26].mxu1  ;;  %v1751_v4 = vpop.f32.mrb[29].mxu0 }
 0x1ea   : > { %v1930_v34 = vmax.f32 %v1846_v58, 0.0  ;;  %v1849_v35 = vadd.f32 %v3177_v56, %v1848_v3  ;;  %v1850_v24 = vpop.f32.mrb[27].mxu1  ;;  %v1752_v2 = vpop.f32.mrb[30].mxu0 }
 0x1eb   : > { %v1906_v60 = vmax.f32 %v1750_v26, 0.0  ;;  %v1753_v20 = vadd.f32 %v3177_v56, %v1752_v2  ;;  %v1754_v37 = vpop.f32.mrb[31].mxu0 }
 0x1ec   : > { %1981 = vst.msk [vmem:[%s3188_s4 + $0x130] sm:$0xff] %vm1942_vm2, %v1930_v34  ;;  %v1931_v32 = vmax.f32 %v1849_v35, 0.0 }
 0x1ed   : > { %1957 = vst.msk [vmem:[%s3188_s4 + $0x70] sm:$0xff] %vm1942_vm2, %v1906_v60  ;;  %v1907_v33 = vmax.f32 %v1753_v20, 0.0 }
 0x1ee   : > { %1982 = vst.msk [vmem:[%s3188_s4 + $0x138] sm:$0xff] %vm1942_vm2, %v1931_v32 }
 0x1ef   : > { %1958 = vst.msk [vmem:[%s3188_s4 + $0x78] sm:$0xff] %vm1942_vm2, %v1907_v33 }
 0x1fb   : > { %v1853_v43 = vpop.f32.mrb[28].mxu1 }
 0x1fc   : > { %v1854_v55 = vadd.f32 %v3177_v56, %v1853_v43  ;;  %v1855_v39 = vpop.f32.mrb[29].mxu1 }
 0x1fd   : > { %v1856_v54 = vpop.f32.mrb[30].mxu1 }
 0x1fe   : > { %v1932_v45 = vmax.f32 %v1854_v55, 0.0  ;;  %v1857_v46 = vadd.f32 %v3177_v56, %v1856_v54  ;;  %v1858_v36 = vpop.f32.mrb[31].mxu1 }
 0x1ff   : > { %v1757_v11 = vpop.f32.mrb[32].mxu0 }
 0x200   : > { %v1758_v49 = vadd.f32 %v3177_v56, %v1757_v11  ;;  %v1759_v27 = vpop.f32.mrb[33].mxu0  ;;  %1983 = vst.msk [vmem:[%s3188_s4 + $0x140] sm:$0xff] %vm1942_vm2, %v1932_v45  ;;  %v1933_v44 = vmax.f32 %v1857_v46, 0.0 }
 0x201   : > { %v1760_v29 = vpop.f32.mrb[34].mxu0 }
 0x202   : > { %v1908_v42 = vmax.f32 %v1758_v49, 0.0  ;;  %v1761_v50 = vadd.f32 %v3177_v56, %v1760_v29  ;;  %v1762_v41 = vpop.f32.mrb[35].mxu0  ;;  %1984 = vst.msk [vmem:[%s3188_s4 + $0x148] sm:$0xff] %vm1942_vm2, %v1933_v44 }
 0x204   : > { %1959 = vst.msk [vmem:[%s3188_s4 + $0x80] sm:$0xff] %vm1942_vm2, %v1908_v42  ;;  %v1909_v30 = vmax.f32 %v1761_v50, 0.0 }
 0x206   : > { %1960 = vst.msk [vmem:[%s3188_s4 + $0x88] sm:$0xff] %vm1942_vm2, %v1909_v30 }
 0x20a   : > { %v1765_v52 = vpop.f32.mrb[36].mxu0 }
 0x20b   : > { %v1766_v53 = vadd.f32 %v3177_v56, %v1765_v52  ;;  %v1767_v63 = vpop.f32.mrb[37].mxu0 }
 0x20c   : > { %v1768_v38 = vpop.f32.mrb[38].mxu0 }
 0x20d   : > { %v1910_v40 = vmax.f32 %v1766_v53, 0.0  ;;  %v1769_v48 = vadd.f32 %v3177_v56, %v1768_v38  ;;  %v1770_v22 = vpop.f32.mrb[39].mxu0 }
 0x20f   : > { %1961 = vst.msk [vmem:[%s3188_s4 + $0x90] sm:$0xff] %vm1942_vm2, %v1910_v40  ;;  %v1911_v59 = vmax.f32 %v1769_v48, 0.0 }
 0x211   : > { %1962 = vst.msk [vmem:[%s3188_s4 + $0x98] sm:$0xff] %vm1942_vm2, %v1911_v59 }
 0x218   : > { %v1861_v61 = vpop.f32.mrb[32].mxu1 }
 0x219   : > { %v1862_v10 = vadd.f32 %v3177_v56, %v1861_v61  ;;  %v1863_v57 = vpop.f32.mrb[33].mxu1 }
 0x21a   : > { %v1864_v62 = vpop.f32.mrb[34].mxu1 }
 0x21b   : > { %v1934_v5 = vmax.f32 %v1862_v10, 0.0  ;;  %v1865_v7 = vadd.f32 %v3177_v56, %v1864_v62  ;;  %v1866_v19 = vpop.f32.mrb[35].mxu1 }
 0x21d   : > { %1985 = vst.msk [vmem:[%s3188_s4 + $0x150] sm:$0xff] %vm1942_vm2, %v1934_v5  ;;  %v1935_v1 = vmax.f32 %v1865_v7, 0.0 }
 0x21f   : > { %1986 = vst.msk [vmem:[%s3188_s4 + $0x158] sm:$0xff] %vm1942_vm2, %v1935_v1  ;;  %v1773_v8 = vpop.f32.mrb[40].mxu0 }
 0x220   : > { %v1774_v13 = vadd.f32 %v3177_v56, %v1773_v8  ;;  %v1869_v23 = vpop.f32.mrb[36].mxu1  ;;  %v1775_v14 = vpop.f32.mrb[41].mxu0 }
 0x221   : > { %v1870_v15 = vadd.f32 %v3177_v56, %v1869_v23  ;;  %v1871_v16 = vpop.f32.mrb[37].mxu1  ;;  %v1776_v17 = vpop.f32.mrb[42].mxu0 }
 0x222   : > { %v1912_v51 = vmax.f32 %v1774_v13, 0.0  ;;  %v1777_v21 = vadd.f32 %v3177_v56, %v1776_v17  ;;  %v1872_v47 = vpop.f32.mrb[38].mxu1  ;;  %v1778_v0 = vpop.f32.mrb[43].mxu0 }
 0x223   : > { %v1936_v25 = vmax.f32 %v1870_v15, 0.0  ;;  %v1873_v9 = vadd.f32 %v3177_v56, %v1872_v47  ;;  %v1874_v12 = vpop.f32.mrb[39].mxu1 }
 0x224   : > { %1963 = vst.msk [vmem:[%s3188_s4 + $0xa0] sm:$0xff] %vm1942_vm2, %v1912_v51  ;;  %v1913_v28 = vmax.f32 %v1777_v21, 0.0 }
 0x225   : > { %1987 = vst.msk [vmem:[%s3188_s4 + $0x160] sm:$0xff] %vm1942_vm2, %v1936_v25  ;;  %v1937_v31 = vmax.f32 %v1873_v9, 0.0 }
 0x226   : > { %1964 = vst.msk [vmem:[%s3188_s4 + $0xa8] sm:$0xff] %vm1942_vm2, %v1913_v28 }
 0x227   : > { %1988 = vst.msk [vmem:[%s3188_s4 + $0x168] sm:$0xff] %vm1942_vm2, %v1937_v31 }
 0x23b   : > { %v1781_v58 = vpop.f32.mrb[44].mxu0 }
 0x23c   : > { %v1782_v18 = vadd.f32 %v3177_v56, %v1781_v58  ;;  %v1783_v6 = vpop.f32.mrb[45].mxu0 }
 0x23d   : > { %v1784_v26 = vpop.f32.mrb[46].mxu0 }
 0x23e   : > { %v1914_v3 = vmax.f32 %v1782_v18, 0.0  ;;  %v1785_v4 = vadd.f32 %v3177_v56, %v1784_v26  ;;  %v1786_v34 = vpop.f32.mrb[47].mxu0 }
 0x23f   : > { %v1877_v35 = vpop.f32.mrb[40].mxu1 }
 0x240   : > { %1965 = vst.msk [vmem:[%s3188_s4 + $0xb0] sm:$0xff] %vm1942_vm2, %v1914_v3  ;;  %v1915_v24 = vmax.f32 %v1785_v4, 0.0  ;;  %v1878_v2 = vadd.f32 %v3177_v56, %v1877_v35  ;;  %v1879_v60 = vpop.f32.mrb[41].mxu1 }
 0x241   : > { %v1880_v20 = vpop.f32.mrb[42].mxu1 }
 0x242   : > { %1966 = vst.msk [vmem:[%s3188_s4 + $0xb8] sm:$0xff] %vm1942_vm2, %v1915_v24  ;;  %v1938_v37 = vmax.f32 %v1878_v2, 0.0  ;;  %v1881_v32 = vadd.f32 %v3177_v56, %v1880_v20  ;;  %v1882_v33 = vpop.f32.mrb[43].mxu1 }
 0x244   : > { %1989 = vst.msk [vmem:[%s3188_s4 + $0x170] sm:$0xff] %vm1942_vm2, %v1938_v37  ;;  %v1939_v43 = vmax.f32 %v1881_v32, 0.0 }
 0x246   : > { %1990 = vst.msk [vmem:[%s3188_s4 + $0x178] sm:$0xff] %vm1942_vm2, %v1939_v43 }
 0x247   : > { %v1885_v55 = vpop.f32.mrb[44].mxu1 }
 0x248   : > { %v1886_v39 = vadd.f32 %v3177_v56, %v1885_v55  ;;  %v1887_v54 = vpop.f32.mrb[45].mxu1  ;;  %v1789_v45 = vpop.f32.mrb[48].mxu0 }
 0x249   : > { %v1790_v46 = vadd.f32 %v3177_v56, %v1789_v45  ;;  %v1888_v36 = vpop.f32.mrb[46].mxu1  ;;  %v1791_v11 = vpop.f32.mrb[49].mxu0 }
 0x24a   : > { %v1940_v49 = vmax.f32 %v1886_v39, 0.0  ;;  %v1889_v27 = vadd.f32 %v3177_v56, %v1888_v36  ;;  %v1890_v44 = vpop.f32.mrb[47].mxu1  ;;  %v1792_v29 = vpop.f32.mrb[50].mxu0 }
 0x24b   : > { %v1916_v42 = vmax.f32 %v1790_v46, 0.0  ;;  %v1793_v50 = vadd.f32 %v3177_v56, %v1792_v29  ;;  %v1794_v41 = vpop.f32.mrb[51].mxu0 }
 0x24c   : > { %1991 = vst.msk [vmem:[%s3188_s4 + $0x180] sm:$0xff] %vm1942_vm2, %v1940_v49  ;;  %v1941_v30 = vmax.f32 %v1889_v27, 0.0 }
 0x24d   : > { %1967 = vst.msk [vmem:[%s3188_s4 + $0xc0] sm:$0xff] %vm1942_vm2, %v1916_v42  ;;  %v1917_v52 = vmax.f32 %v1793_v50, 0.0 }
 0x24e   : > { %1992 = vst.msk [vmem:[%s3188_s4 + $0x188] sm:$0xff] %vm1942_vm2, %v1941_v30 }
 0x24f   : > { %1968 = vst.msk [vmem:[%s3188_s4 + $0xc8] sm:$0xff] %vm1942_vm2, %v1917_v52 }
 0x250 PF: > { %s13_s12 = sadd.s32 1, %s2374_s12  }
 0x251   : > { %p10_p4 = scmp.ge.s32.totalorder %s13_s12, 4  }
 0x253   :  { %12 = sbr.rel (!%p10_p4) target bundleno = 1 (0x1), region = 82 }

// kernel: qnetwork_forward.4
= control target key start
LH: loop header
LB: loop body
LE: loop exit
PB: predicated region body
PF: predicated region fallthrough
CT: control target
= control target key end

     0   :  { %s2618_s18 = smov 0   ;;  %s3300_s0 = inlined_call_operand.vmem [shape: f32[2,10,10,128], index: 0, kind: input, shape index: {}]   ;;  %s3301_s1 = inlined_call_operand.vmem [shape: bf16[512,64], index: 1, kind: input, shape index: {}]   ;;  %s3302_s2 = inlined_call_operand.vmem [shape: f32[1,64], index: 2, kind: input, shape index: {}]   ;;  %s3303_s3 = inlined_call_operand.vmem [shape: bf16[576,64], index: 3, kind: input, shape index: {}]   ;;  %s3304_s4 = inlined_call_operand.vmem [shape: f32[1,64], index: 4, kind: input, shape index: {}]   ;;  %s3305_s5 = inlined_call_operand.vmem [shape: f32[2,49,64], index: 5, kind: output, shape index: {}]  }
   0x1 LB: > { %s2133_s19 = sadd.s32 4294967295, %s2585_s18   ;;  %p2137_p0 = scmp.ge.s32.totalorder %s2585_s18, 1  ;;  %s2585_s18 = sphi %s2618_s18, %s15_s18  }
   0x2   : > { %p187_p1 = scmp.lt.s32.totalorder %s2585_s18, 3 }
   0x4   : > { %p188_p2 = pnand %p2137_p0, %p187_p1 }
   0x5   : > { %v2511_v0 = vld [vmem:[%s3301_s1 + $0x40] sm:$0xff] (!%p188_p2)   ;;  %v2515_v4 = vld [vmem:[%s3301_s1 + $0x48] sm:$0xff] (!%p188_p2)   ;;  %v2519_v8 = vld [vmem:[%s3301_s1 + $0x50] sm:$0xff] (!%p188_p2)   ;;  %p215_p3 = scmp.lt.s32.totalorder (!%p188_p2), %s2133_s19, 1  ;;  %vm260_vm0 = vcmask (!%p188_p2), 1040384   ;;  %vm306_vm1 = vcmask (!%p188_p2), 1041408  }
   0x6   : > { %191 = sbr.rel (%p188_p2) target bundleno = 688 (0x2b0), region = 40  ;;  %v2512_v1 = vld [vmem:[%s3301_s1 + $0xc0] sm:$0xff] (!%p188_p2)   ;;  %2284 = vmatprep.subr.bf16.mxu0 (!%p188_p2), %v2511_v0  ;;  %v2516_v5 = vld [vmem:[%s3301_s1 + $0xc8] sm:$0xff] (!%p188_p2)   ;;  %v2520_v9 = vld [vmem:[%s3301_s1 + $0xd0] sm:$0xff] (!%p188_p2)   ;;  %vm352_vm2 = vcmask (!%p188_p2), 1042432   ;;  %vm398_vm3 = vcmask (!%p188_p2), 1043456  }
   0x7   : > { %v2513_v2 = vld [vmem:[%s3301_s1] sm:$0xff] (!%p188_p2)   ;;  %2336 = vmatprep.subr.bf16.mxu1 (!%p188_p2), %v2512_v1  ;;  %v2517_v6 = vld [vmem:[%s3301_s1 + $0x8] sm:$0xff] (!%p188_p2)   ;;  %v2521_v10 = vld [vmem:[%s3301_s1 + $0x10] sm:$0xff] (!%p188_p2)   ;;  %vm444_vm4 = vcmask (!%p188_p2), 1044480   ;;  %vm490_vm5 = vcmask (!%p188_p2), 1045504   ;;  %vm536_vm6 = vcmask (!%p188_p2), 1046528  }
   0x8   : > { %v2514_v3 = vld [vmem:[%s3301_s1 + $0x80] sm:$0xff] (!%p188_p2)   ;;  %2285 = vmatpush3.bf16.msra.mxu0 (!%p188_p2), %v2513_v2  ;;  %v2518_v7 = vld [vmem:[%s3301_s1 + $0x88] sm:$0xff] (!%p188_p2)   ;;  %v2522_v11 = vld [vmem:[%s3301_s1 + $0x90] sm:$0xff] (!%p188_p2)   ;;  %s2587_s16 = smov (!%p188_p2), 64   ;;  %vm1130_vm7 = vcmask (!%p188_p2), 522240   ;;  %vm1174_vm8 = vcmask (!%p188_p2), 523271  }
   0x9   : > { %2337 = vmatpush3.bf16.msra.mxu1 (!%p188_p2), %v2514_v3  ;;  %2286 = vmatprep.subr.bf16.mxu0 (!%p188_p2), %v2515_v4  ;;  %v2523_v12 = vld [vmem:[%s3301_s1 + $0x58] sm:$0xff] (!%p188_p2)   ;;  %v2527_v16 = vld [vmem:[%s3301_s1 + $0x60] sm:$0xff] (!%p188_p2)   ;;  %v2531_v20 = vld [vmem:[%s3301_s1 + $0x68] sm:$0xff] (!%p188_p2)   ;;  %vm1180_vm9 = vcmask (!%p188_p2), 521216   ;;  %vm1256_vm10 = vcmask (!%p188_p2), 523270   ;;  %vm1262_vm11 = vcmask (!%p188_p2), 520192  }
   0xa   : > { %2338 = vmatprep.subr.bf16.mxu1 (!%p188_p2), %v2516_v5  ;;  %v2524_v13 = vld [vmem:[%s3301_s1 + $0xd8] sm:$0xff] (!%p188_p2)   ;;  %v2528_v17 = vld [vmem:[%s3301_s1 + $0xe0] sm:$0xff] (!%p188_p2)   ;;  %v2532_v21 = vld [vmem:[%s3301_s1 + $0xe8] sm:$0xff] (!%p188_p2)   ;;  %vm1328_vm12 = vcmask (!%p188_p2), 523269   ;;  %vm1334_vm13 = vcmask (!%p188_p2), 519168   ;;  %vm1369_vm14 = vcmask (!%p188_p2), 523268  }
   0xb   : > { %v2525_v14 = vld [vmem:[%s3301_s1 + $0x18] sm:$0xff] (!%p188_p2)   ;;  %v2529_v18 = vld [vmem:[%s3301_s1 + $0x20] sm:$0xff] (!%p188_p2)   ;;  %v2533_v22 = vld [vmem:[%s3301_s1 + $0x28] sm:$0xff] (!%p188_p2)   ;;  %vm1375_vm15 = vcmask (!%p188_p2), 518144  }
   0xc   : > { %2287 = vmatpush3.bf16.msra.mxu0 (!%p188_p2), %v2517_v6  ;;  %v2526_v15 = vld [vmem:[%s3301_s1 + $0x98] sm:$0xff] (!%p188_p2)   ;;  %v2530_v19 = vld [vmem:[%s3301_s1 + $0xa0] sm:$0xff] (!%p188_p2)   ;;  %v2534_v23 = vld [vmem:[%s3301_s1 + $0xa8] sm:$0xff] (!%p188_p2)  }
   0xd   : > { %2339 = vmatpush3.bf16.msra.mxu1 %v2518_v7  ;;  %2288 = vmatprep.subr.bf16.mxu0 %v2519_v8  ;;  %s3307_s19 = smov (!%p215_p3, %s2133_s19), 1  ;;  %v2535_v24 = vld [vmem:[%s3301_s1 + $0x70] sm:$0xff]   ;;  %v2539_v28 = vld [vmem:[%s3301_s1 + $0x78] sm:$0xff]  }
   0xe   : > { %2340 = vmatprep.subr.bf16.mxu1 %v2520_v9  ;;  %v2536_v25 = vld [vmem:[%s3301_s1 + $0xf0] sm:$0xff]   ;;  %s2500_s26 = smul.u32 160, %s3307_s19  ;;  %v2540_v29 = vld [vmem:[%s3301_s1 + $0xf8] sm:$0xff]  }
   0xf   : > { %v2537_v26 = vld [vmem:[%s3301_s1 + $0x30] sm:$0xff]   ;;  %v2541_v30 = vld [vmem:[%s3301_s1 + $0x38] sm:$0xff]   ;;  %s2501_s28 = smul.u32 56, %s3307_s19 }
  0x10   : > { %2289 = vmatpush3.bf16.msra.mxu0 %v2521_v10  ;;  %v2538_v27 = vld [vmem:[%s3301_s1 + $0xb0] sm:$0xff]   ;;  %s2726_s12 = scalar_lea.vmem %s3300_s0, %s2500_s26  ;;  %v2542_v31 = vld [vmem:[%s3301_s1 + $0xb8] sm:$0xff]  }
  0x11   : > { %2341 = vmatpush3.bf16.msra.mxu1 %v2522_v11  ;;  %2290 = vmatprep.subr.bf16.mxu0 %v2523_v12  ;;  %v2735_v32 = vld [vmem:[%s2726_s12 + $0x1] sm:$0xff]  ;;  %v229_v33 = vld [vmem:[%s2726_s12 + $0x9] sm:$0x1]  ;;  %v2739_v34 = vld [vmem:[%s2726_s12 + $0x11] sm:$0xff]  ;;  %s224_s6 = scalar_lea.vmem %s3305_s5, %s2501_s28 }
  0x12   : > { %2342 = vmatprep.subr.bf16.mxu1 %v2524_v13  ;;  %240 = vst [vmem:[#allocation2 + $0x28] sm:$0x1] %v229_v33  ;;  %v262_v35 = vrot.slane %v2739_v34, 7  ;;  %v2143_v36 = vld [vmem:[%s2726_s12 + $0x19] sm:$0x1]  ;;  %v2150_v37 = vld [vmem:[%s2726_s12 + $0x21] sm:$0xff] }
  0x13   : > { %v2745_v38 = vld [vmem:[%s2726_s12] sm:$0xff]  ;;  %242 = vst [vmem:[#allocation2 + $0x38] sm:$0x1] %v2143_v36  ;;  %v264_v39 = vrot.slane %v2150_v37, 7  ;;  %v227_v40 = vld [vmem:[%s2726_s12 + $0x8] sm:$0x1] }
  0x14   : > { %2291 = vmatpush3.bf16.msra.mxu0 %v2525_v14  ;;  %v2749_v41 = vld [vmem:[%s2726_s12 + $0x10] sm:$0xff]  ;;  %v2141_v42 = vld [vmem:[%s2726_s12 + $0x18] sm:$0x1]  ;;  %282 = vst [vmem:[#allocation2 + $0x28] sm:$0xfe] %v262_v35  ;;  %v2754_v44 = vld [vmem:[%s2726_s12 + $0x20] sm:$0xff] }
  0x15   : > { %2343 = vmatpush3.bf16.msra.mxu1 %v2526_v15  ;;  %2292 = vmatprep.subr.bf16.mxu0 %v2527_v16  ;;  %239 = vst [vmem:[#allocation2 + $0x20] sm:$0x1] %v227_v40  ;;  %v261_v43 = vrot.slane %v2749_v41, 7  ;;  %241 = vst [vmem:[#allocation2 + $0x30] sm:$0x1] %v2141_v42  ;;  %v263_v47 = vrot.slane %v2754_v44, 7 }
  0x16   : > { %2344 = vmatprep.subr.bf16.mxu1 %v2528_v17  ;;  %v2147_v45 = vld [vmem:[%s2726_s12 + $0x19] sm:$0x1]  ;;  %v2155_v46 = vld [vmem:[%s2726_s12 + $0x29] sm:$0x1]  ;;  %284 = vst [vmem:[#allocation2 + $0x38] sm:$0xfe] %v264_v39 }
  0x17   : > { %v267_v48 = vrot.slane %v2147_v45, 7  ;;  %v308_v49 = vrot.slane %v2150_v37, 6  ;;  %v313_v50 = vrot.slane %v2155_v46, 6  ;;  %v2760_v51 = vld [vmem:[%s2726_s12 + $0x31] sm:$0xff]  ;;  %v2763_v52 = vld [vmem:[%s2726_s12 + $0x41] sm:$0xff]  ;;  %v307_v1 = vrot.slane %v2754_v44, 6 }
  0x18   : > { %2293 = vmatpush3.bf16.msra.mxu0 %v2529_v18  ;;  %281 = vst [vmem:[#allocation2 + $0x20] sm:$0xfe] %v261_v43  ;;  %v354_v53 = vrot.slane %v2760_v51, 5  ;;  %v2151_v54 = vld [vmem:[%s2726_s12 + $0x29] sm:$0x1]  ;;  %v310_v56 = vrot.slane %v2760_v51, 6 }
  0x19   : > { %2345 = vmatpush3.bf16.msra.mxu1 %v2530_v19  ;;  %2294 = vmatprep.subr.bf16.mxu0 %v2531_v20  ;;  %v2159_v55 = vld [vmem:[%s2726_s12 + $0x39] sm:$0x1]  ;;  %283 = vst [vmem:[#allocation2 + $0x30] sm:$0xfe] %v263_v47  ;;  %v268_v57 = vsel %vm260_vm0, %v262_v35, %v267_v48  ;;  %v314_v58 = vsel %vm306_vm1, %v308_v49, %v313_v50  ;;  %328 = vst [vmem:[#allocation2 + $0x48] sm:$0xfc] %v308_v49 }
  0x1a   : > { %2346 = vmatprep.subr.bf16.mxu1 %v2532_v21  ;;  %v271_v59 = vrot.slane %v2151_v54, 7  ;;  %v317_v60 = vrot.slane %v2159_v55, 6  ;;  %v2145_v61 = vld [vmem:[%s2726_s12 + $0x18] sm:$0x1]  ;;  %v2153_v62 = vld [vmem:[%s2726_s12 + $0x28] sm:$0x1] }
  0x1b   : > { %286 = vst [vmem:[#allocation2 + $0x48] sm:$0x3] %v268_v57  ;;  %332 = vst [vmem:[#allocation2 + $0x68] sm:$0x7] %v314_v58  ;;  %v356_v63 = vrot.slane %v2763_v52, 5  ;;  %v265_v0 = vrot.slane %v2145_v61, 7 }
  0x1c   : > { %2295 = vmatpush3.bf16.msra.mxu0 %v2533_v22  ;;  %374 = vst [vmem:[#allocation2 + $0x68] sm:$0xf8] %v354_v53  ;;  %330 = vst [vmem:[#allocation2 + $0x58] sm:$0xfc] %v310_v56  ;;  %v311_v2 = vrot.slane %v2153_v62, 6  ;;  %v2778_v3 = vld [vmem:[%s2726_s12 + $0x30] sm:$0xff]  ;;  %v272_v5 = vsel %vm260_vm0, %v264_v39, %v271_v59  ;;  %v318_v6 = vsel %vm306_vm1, %v310_v56, %v317_v60 }
  0x1d   : > { %2347 = vmatpush3.bf16.msra.mxu1 %v2534_v23  ;;  %2296 = vmatprep.subr.bf16.mxu0 %v2535_v24  ;;  %v2781_v4 = vld [vmem:[%s2726_s12 + $0x40] sm:$0xff]  ;;  %v353_v7 = vrot.slane %v2778_v3, 5  ;;  %v2149_v8 = vld [vmem:[%s2726_s12 + $0x28] sm:$0x1]  ;;  %v2157_v9 = vld [vmem:[%s2726_s12 + $0x38] sm:$0x1]  ;;  %v266_v11 = vsel %vm260_vm0, %v261_v43, %v265_v0 }
  0x1e   : > { %2348 = vmatprep.subr.bf16.mxu1 %v2536_v25  ;;  %v309_v10 = vrot.slane %v2778_v3, 6  ;;  %288 = vst [vmem:[#allocation2 + $0x58] sm:$0x3] %v272_v5  ;;  %334 = vst [vmem:[#allocation2 + $0x78] sm:$0x7] %v318_v6  ;;  %v312_v12 = vsel %vm306_vm1, %v307_v1, %v311_v2  ;;  %v269_v13 = vrot.slane %v2149_v8, 7 }
  0x1f   : > { %376 = vst [vmem:[#allocation2 + $0x78] sm:$0xf8] %v356_v63  ;;  %327 = vst [vmem:[#allocation2 + $0x40] sm:$0xfc] %v307_v1  ;;  %v315_v14 = vrot.slane %v2157_v9, 6  ;;  %v587_v17 = vld [vmem:[#allocation2 + $0x28] sm:$0xff] }
  0x20   : > { %2297 = vmatpush3.bf16.msra.mxu0 %v2537_v26  ;;  %v2163_v15 = vld [vmem:[%s2726_s12 + $0x39] sm:$0x1]  ;;  %v2171_v16 = vld [vmem:[%s2726_s12 + $0x49] sm:$0x1]  ;;  %285 = vst [vmem:[#allocation2 + $0x40] sm:$0x3] %v266_v11  ;;  %v627_v23 = vpack.c.bf16 %v587_v17, %v2735_v32  ;;  %v270_v25 = vsel %vm260_vm0, %v263_v47, %v269_v13 }
  0x21   : > { %2349 = vmatpush3.bf16.msra.mxu1 %v2538_v27  ;;  %2298 = vmatprep.subr.bf16.mxu0 %v2539_v28  ;;  %331 = vst [vmem:[#allocation2 + $0x60] sm:$0x7] %v312_v12  ;;  %373 = vst [vmem:[#allocation2 + $0x60] sm:$0xf8] %v353_v7  ;;  %v355_v18 = vrot.slane %v2781_v4, 5  ;;  %v359_v19 = vrot.slane %v2163_v15, 5  ;;  %v316_v26 = vsel %vm306_vm1, %v309_v10, %v315_v14 }
  0x22   : > { %2350 = vmatprep.subr.bf16.mxu1 %v2540_v29  ;;  %329 = vst [vmem:[#allocation2 + $0x50] sm:$0xfc] %v309_v10  ;;  %v400_v20 = vrot.slane %v2763_v52, 4  ;;  %v405_v21 = vrot.slane %v2171_v16, 4  ;;  %v2798_v22 = vld [vmem:[%s2726_s12 + $0x51] sm:$0xff]  ;;  %945 = vmatprep.mubr.bf16.mxu0 %v627_v23  ;;  %v399_v40 = vrot.slane %v2781_v4, 4 }
  0x23   : > { %v589_v24 = vld [vmem:[#allocation2 + $0x38] sm:$0xff]  ;;  %v446_v27 = vrot.slane %v2798_v22, 3  ;;  %v2169_v29 = vld [vmem:[%s2726_s12 + $0x48] sm:$0x1]  ;;  %287 = vst [vmem:[#allocation2 + $0x50] sm:$0x3] %v270_v25  ;;  %v360_v32 = vsel %vm352_vm2, %v354_v53, %v359_v19 }
  0x24   : > { %2299 = vmatpush3.bf16.msra.mxu0 %v2541_v30  ;;  %v2161_v28 = vld [vmem:[%s2726_s12 + $0x38] sm:$0x1]  ;;  %v629_v30 = vpack.c.bf16 %v589_v24, %v2739_v34  ;;  %333 = vst [vmem:[#allocation2 + $0x70] sm:$0x7] %v316_v26  ;;  %375 = vst [vmem:[#allocation2 + $0x70] sm:$0xf8] %v355_v18  ;;  %v406_v33 = vsel %vm398_vm3, %v400_v20, %v405_v21 }
  0x25   : > { %2351 = vmatpush3.bf16.msra.mxu1 %v2542_v31  ;;  %v586_v31 = vld [vmem:[#allocation2 + $0x20] sm:$0xff]  ;;  %420 = vst [vmem:[#allocation2 + $0x88] sm:$0xf0] %v400_v20  ;;  %v357_v35 = vrot.slane %v2161_v28, 5  ;;  %v2814_v36 = vld [vmem:[%s2726_s12 + $0x50] sm:$0xff]  ;;  %v403_v42 = vrot.slane %v2169_v29, 4 }
  0x26   : > { %v2167_v37 = vld [vmem:[%s2726_s12 + $0x49] sm:$0x1]  ;;  %v626_v34 = vpack.c.bf16 %v586_v31, %v2745_v38  ;;  %v588_v39 = vld [vmem:[#allocation2 + $0x30] sm:$0xff]  ;;  %378 = vst [vmem:[#allocation2 + $0x88] sm:$0xf] %v360_v32  ;;  %v445_v43 = vrot.slane %v2814_v36, 3  ;;  %1025 = vmatprep.mubr.bf16.mxu1 %v629_v30 }
  0x27   : > { %424 = vst [vmem:[#allocation2 + $0xa8] sm:$0x1f] %v406_v33  ;;  %466 = vst [vmem:[#allocation2 + $0xa8] sm:$0xe0] %v446_v27  ;;  %v2175_v44 = vld [vmem:[%s2726_s12 + $0x59] sm:$0x1]  ;;  %v628_v45 = vpack.c.bf16 %v588_v39, %v2749_v41  ;;  %v358_v47 = vsel %vm352_vm2, %v353_v7, %v357_v35  ;;  %v404_v53 = vsel %vm398_vm3, %v399_v40, %v403_v42 }
  0x28   : > { %v591_v46 = vld [vmem:[#allocation2 + $0x48] sm:$0xff]  ;;  %v363_v48 = vrot.slane %v2167_v37, 5  ;;  %v402_v49 = vrot.slane %v2798_v22, 4  ;;  %946 = vmatmul.mubr.bf16.vlgmr.msra.gmra.mrb[0].mxu0 %v626_v34  ;;  %377 = vst [vmem:[#allocation2 + $0x80] sm:$0xf] %v358_v47  ;;  %v409_v41 = vrot.slane %v2175_v44, 4 }
  0x29   : > { %v595_v38 = vld [vmem:[#allocation2 + $0x68] sm:$0xff]  ;;  %419 = vst [vmem:[#allocation2 + $0x80] sm:$0xf0] %v399_v40  ;;  %465 = vst [vmem:[#allocation2 + $0xa0] sm:$0xe0] %v445_v43  ;;  %1026 = vmatmul.mubr.bf16.vlgmr.msra.gmra.mrb[0].mxu1 %v628_v45  ;;  %v593_v57 = vld [vmem:[#allocation2 + $0x58] sm:$0xff] }
  0x2a   : > { %v2827_v50 = vld [vmem:[%s2726_s12 + $0x61] sm:$0xff]  ;;  %v631_v51 = vpack.c.bf16 %v595_v38, %v591_v46  ;;  %v2173_v56 = vld [vmem:[%s2726_s12 + $0x58] sm:$0x1]  ;;  %423 = vst [vmem:[#allocation2 + $0xa0] sm:$0x1f] %v404_v53  ;;  %v364_v59 = vsel %vm352_vm2, %v356_v63, %v363_v48  ;;  %v401_v61 = vrot.slane %v2814_v36, 4  ;;  %v410_v5 = vsel %vm398_vm3, %v402_v49, %v409_v41 }
  0x2b   : > { %v448_v54 = vrot.slane %v2827_v50, 3  ;;  %v2165_v55 = vld [vmem:[%s2726_s12 + $0x48] sm:$0x1]  ;;  %v597_v58 = vld [vmem:[#allocation2 + $0x78] sm:$0xff]  ;;  %422 = vst [vmem:[#allocation2 + $0x98] sm:$0xf0] %v402_v49 }
  0x2c   : > { %v361_v60 = vrot.slane %v2165_v55, 5  ;;  %v407_v62 = vrot.slane %v2173_v56, 4  ;;  %v2840_v0 = vld [vmem:[%s2726_s12 + $0x60] sm:$0xff]  ;;  %953 = vmatprep.mubr.bf16.mxu0 %v631_v51  ;;  %v633_v1 = vpack.c.bf16 %v597_v58, %v593_v57  ;;  %380 = vst [vmem:[#allocation2 + $0x98] sm:$0xf] %v364_v59  ;;  %v492_v6 = vrot.slane %v2827_v50, 2 }
  0x2d   : > { %v590_v2 = vld [vmem:[#allocation2 + $0x40] sm:$0xff]  ;;  %468 = vst [vmem:[#allocation2 + $0xb8] sm:$0xe0] %v448_v54  ;;  %v447_v52 = vrot.slane %v2840_v0, 3  ;;  %v2179_v63 = vld [vmem:[%s2726_s12 + $0x59] sm:$0x1] }
  0x2e   : > { %v594_v3 = vld [vmem:[#allocation2 + $0x60] sm:$0xff]  ;;  %426 = vst [vmem:[#allocation2 + $0xb8] sm:$0x1f] %v410_v5  ;;  %v362_v8 = vsel %vm352_vm2, %v355_v18, %v361_v60  ;;  %v408_v9 = vsel %vm398_vm3, %v401_v61, %v407_v62  ;;  %421 = vst [vmem:[#allocation2 + $0x90] sm:$0xf0] %v401_v61  ;;  %v451_v10 = vrot.slane %v2179_v63, 3  ;;  %1033 = vmatprep.mubr.bf16.mxu1 %v633_v1 }
  0x2f   : > { %v630_v7 = vpack.c.bf16 %v594_v3, %v590_v2  ;;  %v2187_v11 = vld [vmem:[%s2726_s12 + $0x69] sm:$0x1]  ;;  %v2854_v12 = vld [vmem:[%s2726_s12 + $0x71] sm:$0xff]  ;;  %379 = vst [vmem:[#allocation2 + $0x90] sm:$0xf] %v362_v8  ;;  %v491_v18 = vrot.slane %v2840_v0, 2 }
  0x30   : > { %v2177_v13 = vld [vmem:[%s2726_s12 + $0x58] sm:$0x1]  ;;  %v592_v14 = vld [vmem:[#allocation2 + $0x50] sm:$0xff]  ;;  %425 = vst [vmem:[#allocation2 + $0xb0] sm:$0x1f] %v408_v9  ;;  %v497_v4 = vrot.slane %v2187_v11, 2  ;;  %v452_v23 = vsel %vm444_vm4, %v446_v27, %v451_v10 }
  0x31   : > { %v596_v15 = vld [vmem:[#allocation2 + $0x70] sm:$0xff]  ;;  %467 = vst [vmem:[#allocation2 + $0xb0] sm:$0xe0] %v447_v52  ;;  %512 = vst [vmem:[#allocation2 + $0xc8] sm:$0xc0] %v492_v6  ;;  %v538_v16 = vrot.slane %v2854_v12, 1  ;;  %954 = vmatmul.mubr.bf16.gmra.mrb[4].mxu0 %v630_v7 }
  0x32   : > { %v449_v17 = vrot.slane %v2177_v13, 3  ;;  %v632_v19 = vpack.c.bf16 %v596_v15, %v592_v14  ;;  %v599_v20 = vld [vmem:[#allocation2 + $0x88] sm:$0xff]  ;;  %v494_v25 = vrot.slane %v2854_v12, 2  ;;  %470 = vst [vmem:[#allocation2 + $0xc8] sm:$0x3f] %v452_v23  ;;  %v498_v28 = vsel %vm490_vm5, %v492_v6, %v497_v4  ;;  %v2192_v22 = vld [vmem:[%s2726_s12 + $0x70] sm:$0xff] }
  0x33   : > { %v603_v21 = vld [vmem:[#allocation2 + $0xa8] sm:$0xff]  ;;  %558 = vst [vmem:[#allocation2 + $0xe8] sm:$0x80] %v538_v16  ;;  %511 = vst [vmem:[#allocation2 + $0xc0] sm:$0xc0] %v491_v18  ;;  %v2875_v32 = vld [vmem:[#allocation2 + $0x80] sm:$0xff] }
  0x34   : > { %v2185_v24 = vld [vmem:[%s2726_s12 + $0x68] sm:$0x1]  ;;  %v635_v26 = vpack.c.bf16 %v603_v21, %v599_v20  ;;  %v450_v29 = vsel %vm444_vm4, %v445_v43, %v449_v17  ;;  %v2183_v27 = vld [vmem:[%s2726_s12 + $0x69] sm:$0x1]  ;;  %v2191_v31 = vld [vmem:[%s2726_s12 + $0x79] sm:$0x1]  ;;  %1034 = vmatmul.mubr.bf16.gmra.mrb[4].mxu1 %v632_v19 }
  0x35   : > { %v495_v30 = vrot.slane %v2185_v24, 2  ;;  %516 = vst [vmem:[#allocation2 + $0xe8] sm:$0x7f] %v498_v28  ;;  %469 = vst [vmem:[#allocation2 + $0xc0] sm:$0x3f] %v450_v29  ;;  %v537_v33 = vrot.slane %v2192_v22, 1 }
  0x36   : > { %v455_v35 = vrot.slane %v2183_v27, 3  ;;  %v501_v37 = vrot.slane %v2191_v31, 2  ;;  %514 = vst [vmem:[#allocation2 + $0xd8] sm:$0xc0] %v494_v25  ;;  %v2878_v34 = vld [vmem:[%s2726_s12 + $0x81] sm:$0xff]  ;;  %v493_v36 = vrot.slane %v2192_v22, 2  ;;  %961 = vmatprep.mubr.bf16.mxu0 %v635_v26 }
  0x37   : > { %v602_v39 = vld [vmem:[#allocation2 + $0xa0] sm:$0xff]  ;;  %v496_v40 = vsel %vm490_vm5, %v491_v18, %v495_v30  ;;  %v540_v42 = vrot.slane %v2878_v34, 1  ;;  %v2181_v43 = vld [vmem:[%s2726_s12 + $0x68] sm:$0x1]  ;;  %v2189_v44 = vld [vmem:[%s2726_s12 + $0x78] sm:$0x1] }
  0x38   : > { %v601_v45 = vld [vmem:[#allocation2 + $0x98] sm:$0xff]  ;;  %515 = vst [vmem:[#allocation2 + $0xe0] sm:$0x7f] %v496_v40  ;;  %557 = vst [vmem:[#allocation2 + $0xe0] sm:$0x80] %v537_v33  ;;  %v456_v46 = vsel %vm444_vm4, %v448_v54, %v455_v35  ;;  %v502_v38 = vsel %vm490_vm5, %v494_v25, %v501_v37  ;;  %v453_v47 = vrot.slane %v2181_v43, 3  ;;  %v634_v61 = vpack.c.bf16 %v602_v39, %v2875_v32 }
  0x39   : > { %513 = vst [vmem:[#allocation2 + $0xd0] sm:$0xc0] %v493_v36  ;;  %v2889_v48 = vld [vmem:[%s2726_s12 + $0x80] sm:$0xff]  ;;  %v2195_v49 = vld [vmem:[%s2726_s12 + $0x79] sm:$0x1]  ;;  %v499_v53 = vrot.slane %v2189_v44, 2 }
  0x3a   : > { %v605_v51 = vld [vmem:[#allocation2 + $0xb8] sm:$0xff]  ;;  %472 = vst [vmem:[#allocation2 + $0xd8] sm:$0x3f] %v456_v46  ;;  %518 = vst [vmem:[#allocation2 + $0xf8] sm:$0x7f] %v502_v38  ;;  %v539_v41 = vrot.slane %v2889_v48, 1  ;;  %v454_v58 = vsel %vm444_vm4, %v447_v52, %v453_v47  ;;  %962 = vmatmul.mubr.bf16.gmra.mrb[8].mxu0 %v634_v61 }
  0x3b   : > { %560 = vst [vmem:[#allocation2 + $0xf8] sm:$0x80] %v540_v42  ;;  %v543_v50 = vrot.slane %v2195_v49, 1  ;;  %v2193_v54 = vld [vmem:[%s2726_s12 + $0x78] sm:$0x1]  ;;  %v637_v55 = vpack.c.bf16 %v605_v51, %v601_v45  ;;  %v600_v56 = vld [vmem:[#allocation2 + $0x90] sm:$0xff]  ;;  %v500_v62 = vsel %vm490_vm5, %v493_v36, %v499_v53 }
  0x3c   : > { %v604_v57 = vld [vmem:[#allocation2 + $0xb0] sm:$0xff]  ;;  %v541_v59 = vrot.slane %v2193_v54, 1  ;;  %v2199_v60 = vld [vmem:[%s2726_s12 + $0x89] sm:$0x1]  ;;  %471 = vst [vmem:[#allocation2 + $0xd0] sm:$0x3f] %v454_v58 }
  0x3d   : > { %559 = vst [vmem:[#allocation2 + $0xf0] sm:$0x80] %v539_v41  ;;  %v544_v1 = vsel %vm536_vm6, %v538_v16, %v543_v50  ;;  %v547_v2 = vrot.slane %v2199_v60, 1  ;;  %v2206_v3 = vld [vmem:[%s2726_s12 + $0x91] sm:$0xff]  ;;  %v2197_v0 = vld [vmem:[%s2726_s12 + $0x88] sm:$0x1]  ;;  %1041 = vmatprep.mubr.bf16.mxu1 %v637_v55  ;;  %v636_v52 = vpack.c.bf16 %v604_v57, %v600_v56 }
  0x3e   : > { %v2204_v5 = vld [vmem:[%s2726_s12 + $0x90] sm:$0xff]  ;;  %v607_v63 = vld [vmem:[#allocation2 + $0xc8] sm:$0xff]  ;;  %517 = vst [vmem:[#allocation2 + $0xf0] sm:$0x7f] %v500_v62  ;;  %v542_v6 = vsel %vm536_vm6, %v537_v33, %v541_v59  ;;  %v545_v7 = vrot.slane %v2197_v0, 1  ;;  %v606_v14 = vld [vmem:[#allocation2 + $0xc0] sm:$0xff]  ;;  %v643_v25 = vpack.c.bf16 %v2878_v34, %v544_v1 }
  0x3f   : > { %v2203_v8 = vld [vmem:[%s2726_s12 + $0x89] sm:$0x1]  ;;  %v2201_v9 = vld [vmem:[%s2726_s12 + $0x88] sm:$0x1]  ;;  %v548_v11 = vsel %vm536_vm6, %v540_v42, %v547_v2  ;;  %v2207_v12 = vld [vmem:[%s2726_s12 + $0x99] sm:$0x1]  ;;  %1042 = vmatmul.mubr.bf16.gmra.mrb[8].mxu1 %v636_v52  ;;  %v642_v30 = vpack.c.bf16 %v2889_v48, %v542_v6 }
  0x40   : > { %v611_v10 = vld [vmem:[#allocation2 + $0xe8] sm:$0xff]  ;;  %579 = vst [vmem:[#allocation2 + $0x148] sm:$0x1] %v2203_v8  ;;  %578 = vst [vmem:[#allocation2 + $0x140] sm:$0x1] %v2201_v9  ;;  %v546_v15 = vsel %vm536_vm6, %v539_v41, %v545_v7  ;;  %v610_v16 = vld [vmem:[#allocation2 + $0xe0] sm:$0xff]  ;;  %v645_v26 = vpack.c.bf16 %v2206_v3, %v548_v11 }
  0x41   : > { %v639_v13 = vpack.c.bf16 %v611_v10, %v607_v63  ;;  %581 = vst [vmem:[#allocation2 + $0x158] sm:$0x1] %v2207_v12  ;;  %v2205_v4 = vld [vmem:[%s2726_s12 + $0x98] sm:$0x1]  ;;  %v638_v21 = vpack.c.bf16 %v610_v16, %v606_v14  ;;  %v644_v22 = vpack.c.bf16 %v2204_v5, %v546_v15  ;;  %v2918_v39 = vld [vmem:[%s3302_s2] ss:$0 sm:$0xff] }
  0x42   : > { %580 = vst [vmem:[#allocation2 + $0x150] sm:$0x1] %v2205_v4  ;;  %v609_v17 = vld [vmem:[#allocation2 + $0xd8] sm:$0xff]  ;;  %v2543_v45 = vld [vmem:[%s3303_s3 + $0x40] sm:$0xff]   ;;  %v2546_v51 = vld [vmem:[%s3303_s3 + $0x48] sm:$0xff]   ;;  %vm1438_vm0 = vcmask 523267  }
  0x43   : > { %969 = vmatprep.mubr.bf16.mxu0 %v639_v13  ;;  %v613_v18 = vld [vmem:[#allocation2 + $0xf8] sm:$0xff]  ;;  %v608_v20 = vld [vmem:[#allocation2 + $0xd0] sm:$0xff]  ;;  %v2544_v46 = vld [vmem:[%s3303_s3] sm:$0xff]   ;;  %2388 = vmatprep.subr.bf16.mxu0 %v2543_v45  ;;  %vm1444_vm2 = vcmask 517120  }
  0x44   : > { %v641_v19 = vpack.c.bf16 %v613_v18, %v609_v17  ;;  %970 = vmatmul.mubr.bf16.gmra.mrb[12].mxu0 %v638_v21  ;;  %v2545_v38 = vld [vmem:[%s3303_s3 + $0xc0] sm:$0xff]   ;;  %v2548_v56 = vld [vmem:[%s3303_s3 + $0x8] sm:$0xff]   ;;  %v2549_v63 = vld [vmem:[%s3303_s3 + $0x50] sm:$0xff]  }
  0x45   : > { %v612_v23 = vld [vmem:[#allocation2 + $0xf0] sm:$0xff]  ;;  %977 = vmatprep.mubr.bf16.mxu0 %v643_v25  ;;  %v2547_v53 = vld [vmem:[%s3303_s3 + $0x80] sm:$0xff]   ;;  %2428 = vmatprep.subr.bf16.mxu1 %v2545_v38  ;;  %v2550_v9 = vld [vmem:[%s3303_s3 + $0xc8] sm:$0xff]  }
  0x46   : > { %1049 = vmatprep.mubr.bf16.mxu1 %v641_v19  ;;  %v640_v24 = vpack.c.bf16 %v612_v23, %v608_v20  ;;  %2389 = vmatpush3.bf16.msra.mxu0 %v2544_v46  ;;  %v2551_v10 = vld [vmem:[%s3303_s3 + $0x10] sm:$0xff]   ;;  %v2552_v11 = vld [vmem:[%s3303_s3 + $0x88] sm:$0xff]   ;;  %v2553_v18 = vld [vmem:[%s3303_s3 + $0x58] sm:$0xff]  }
  0x47   : > { %v623_v28 = vld [vmem:[#allocation2 + $0x148] sm:$0x1]  ;;  %v622_v32 = vld [vmem:[#allocation2 + $0x140] sm:$0x1]  ;;  %2429 = vmatpush3.bf16.msra.mxu1 %v2547_v53  ;;  %2390 = vmatprep.subr.bf16.mxu0 %v2546_v51  ;;  %v2554_v19 = vld [vmem:[%s3303_s3 + $0xd0] sm:$0xff]  }
  0x48   : > { %1050 = vmatmul.mubr.bf16.gmra.mrb[12].mxu1 %v640_v24  ;;  %v625_v29 = vld [vmem:[#allocation2 + $0x158] sm:$0x1]  ;;  %v647_v27 = vpack.c.bf16 %v623_v28, %v623_v28  ;;  %v646_v35 = vpack.c.bf16 %v622_v32, %v622_v32  ;;  %2430 = vmatprep.subr.bf16.mxu1 %v2550_v9  ;;  %v2556_v21 = vld [vmem:[%s3303_s3 + $0x90] sm:$0xff]  }
  0x49   : > { %1057 = vmatprep.mubr.bf16.mxu1 %v645_v26  ;;  %v649_v31 = vpack.c.bf16 %v625_v29, %v625_v29  ;;  %v624_v33 = vld [vmem:[#allocation2 + $0x150] sm:$0x1]  ;;  %v2555_v20 = vld [vmem:[%s3303_s3 + $0x18] sm:$0xff]  }
  0x4a   : > { %v648_v37 = vpack.c.bf16 %v624_v33, %v624_v33  ;;  %2391 = vmatpush3.bf16.msra.mxu0 %v2548_v56  ;;  %v2561_v56 = vld [vmem:[%s3303_s3 + $0x68] sm:$0xff]  }
  0x4b   : > { %2392 = vmatprep.subr.bf16.mxu0 %v2549_v63  ;;  %2431 = vmatpush3.bf16.msra.mxu1 %v2552_v11 }
  0x4c   : > { %978 = vmatmul.mubr.bf16.gmra.mrb[16].mxu0 %v642_v30  ;;  %2432 = vmatprep.subr.bf16.mxu1 %v2554_v19 }
  0x4d   : > { %985 = vmatprep.mubr.bf16.mxu0 %v647_v27 }
  0x4e   : > { %2393 = vmatpush3.bf16.msra.mxu0 %v2551_v10 }
  0x4f   : > { %2394 = vmatprep.subr.bf16.mxu0 %v2553_v18  ;;  %2433 = vmatpush3.bf16.msra.mxu1 %v2556_v21  ;;  %v2568_v21 = vld [vmem:[%s3303_s3 + $0xa8] sm:$0xff]  }
  0x50   : > { %1058 = vmatmul.mubr.bf16.gmra.mrb[16].mxu1 %v644_v22 }
  0x51   : > { %1065 = vmatprep.mubr.bf16.mxu1 %v649_v31 }
  0x52   : > { %2395 = vmatpush3.bf16.msra.mxu0 %v2555_v20  ;;  %v2567_v20 = vld [vmem:[%s3303_s3 + $0x30] sm:$0xff]  }
  0x54   : > { %986 = vmatmul.mubr.bf16.gmra.mrb[20].mxu0 %v646_v35 }
  0x58   : > { %1066 = vmatmul.mubr.bf16.gmra.mrb[20].mxu1 %v648_v37 }
  0xfb   : > { %v2300_v34 = vpop.f32.mrb[0].mxu0 }
  0xfc   : > { %v2352_v36 = vpop.f32.mrb[0].mxu1  ;;  %v2301_v40 = vpop.f32.mrb[1].mxu0 }
  0xfd   : > { %v2302_v42 = vadd.f32 %v2301_v40, %v2300_v34  ;;  %v2353_v43 = vpop.f32.mrb[1].mxu1  ;;  %v2303_v44 = vpop.f32.mrb[2].mxu0  ;;  %v2557_v40 = vld [vmem:[%s3303_s3 + $0x60] sm:$0xff]  }
  0xfe   : > { %v2354_v47 = vadd.f32 %v2353_v43, %v2352_v36  ;;  %v2355_v48 = vpop.f32.mrb[2].mxu1  ;;  %v2304_v49 = vpop.f32.mrb[3].mxu0  ;;  %2396 = vmatprep.subr.bf16.mxu0 %v2557_v40  ;;  %v2571_v40 = vld [vmem:[%s3303_s3 + $0x38] sm:$0xff]  }
  0xff   : > { %v948_v41 = vadd.f32 %v2302_v42, %v2918_v39  ;;  %v2305_v50 = vadd.f32 %v2304_v49, %v2303_v44  ;;  %v2356_v54 = vpop.f32.mrb[3].mxu1  ;;  %v2558_v42 = vld [vmem:[%s3303_s3 + $0xd8] sm:$0xff]  }
 0x100   : > { %v2357_v55 = vadd.f32 %v2356_v54, %v2355_v48  ;;  %v2560_v48 = vld [vmem:[%s3303_s3 + $0x98] sm:$0xff]   ;;  %2434 = vmatprep.subr.bf16.mxu1 %v2558_v42  ;;  %v2572_v42 = vld [vmem:[%s3303_s3 + $0xb0] sm:$0xff]  }
 0x101   : > { %v1028_v57 = vadd.f32 %v2354_v47, %v948_v41  ;;  %v951_v58 = vadd.f32 %v2305_v50, %v2918_v39  ;;  %v2559_v47 = vld [vmem:[%s3303_s3 + $0x20] sm:$0xff]   ;;  %2435 = vmatpush3.bf16.msra.mxu1 %v2560_v48 }
 0x102   : > { %2397 = vmatpush3.bf16.msra.mxu0 %v2559_v47 }
 0x103   : > { %v2940_v59 = vmax.f32 %v1028_v57, 0.0  ;;  %v1031_v60 = vadd.f32 %v2357_v55, %v951_v58  ;;  %v2562_v57 = vld [vmem:[%s3303_s3 + $0xe0] sm:$0xff]   ;;  %2398 = vmatprep.subr.bf16.mxu0 %v2561_v56 }
 0x104   : > { %v2306_v61 = vpop.f32.mrb[4].mxu0  ;;  %2436 = vmatprep.subr.bf16.mxu1 %v2562_v57  ;;  %v2573_v57 = vld [vmem:[%s3303_s3 + $0xf8] sm:$0xff]  }
 0x105   : > { %v2307_v1 = vpop.f32.mrb[5].mxu0  ;;  %v2942_v2 = vmax.f32 %v1031_v60, 0.0  ;;  %v1085_v52 = vrot.slane %v2940_v59, 1 }
 0x106   : > { %v2308_v3 = vadd.f32 %v2307_v1, %v2306_v61  ;;  %v2309_v5 = vpop.f32.mrb[6].mxu0  ;;  %v2563_v1 = vld [vmem:[%s3303_s3 + $0x28] sm:$0xff]  }
 0x107   : > { %v2358_v62 = vpop.f32.mrb[4].mxu1  ;;  %v2310_v8 = vpop.f32.mrb[7].mxu0  ;;  %1086 = vrot.lane.b32.xlu1 %v1085_v52, %s2587_s16  ;;  %v1094_v15 = vrot.slane %v2942_v2, 1  ;;  %v1102_v31 = vrot.slane %v2942_v2, 3  ;;  %2399 = vmatpush3.bf16.msra.mxu0 %v2563_v1 }
 0x108   : > { %v2359_v0 = vpop.f32.mrb[5].mxu1  ;;  %v956_v12 = vadd.f32 %v2308_v3, %v2918_v39  ;;  %v2311_v13 = vadd.f32 %v2310_v8, %v2309_v5  ;;  %v2564_v3 = vld [vmem:[%s3303_s3 + $0xa0] sm:$0xff]  }
 0x109   : > { %v2360_v6 = vadd.f32 %v2359_v0, %v2358_v62  ;;  %v2361_v7 = vpop.f32.mrb[6].mxu1  ;;  %1095 = vrot.lane.b32.xlu0 %v1094_v15, %s2587_s16  ;;  %2437 = vmatpush3.bf16.msra.mxu1 %v2564_v3 }
 0x10a   : > { %v2362_v14 = vpop.f32.mrb[7].mxu1  ;;  %v959_v17 = vadd.f32 %v2311_v13, %v2918_v39 }
 0x10b   : > { %v2363_v4 = vadd.f32 %v2362_v14, %v2361_v7  ;;  %v1036_v16 = vadd.f32 %v2360_v6, %v956_v12  ;;  %v2565_v14 = vld [vmem:[%s3303_s3 + $0x70] sm:$0xff]  }
 0x10c   : > { %2400 = vmatprep.subr.bf16.mxu0 %v2565_v14 }
 0x10d   : > { %v2974_v23 = vmax.f32 %v1036_v16, 0.0  ;;  %v1039_v24 = vadd.f32 %v2363_v4, %v959_v17  ;;  %v2312_v25 = vpop.f32.mrb[8].mxu0  ;;  %2401 = vmatpush3.bf16.msra.mxu0 %v2567_v20 }
 0x10e   : > { %v2313_v26 = vpop.f32.mrb[9].mxu0 }
 0x10f   : > { %v2976_v29 = vmax.f32 %v1039_v24, 0.0  ;;  %v2314_v30 = vadd.f32 %v2313_v26, %v2312_v25  ;;  %v2315_v22 = vpop.f32.mrb[10].mxu0  ;;  %v1103_v32 = vrot.slane %v2974_v23, 3  ;;  %v1117_v33 = vrot.slane %v2974_v23, 4 }
 0x110   : > { %v2316_v35 = vpop.f32.mrb[11].mxu0  ;;  %v1132_v36 = vrot.slane %v2974_v23, 1 }
 0x111   : > { %v1118_v43 = vrot.slane %v2976_v29, 4  ;;  %v964_v44 = vadd.f32 %v2314_v30, %v2918_v39  ;;  %v2317_v45 = vadd.f32 %v2316_v35, %v2315_v22  ;;  %v1104_v38 = vsel %vm444_vm4, %v1102_v31, %v1103_v32 }
 0x112   : > { %v2364_v28 = vpop.f32.mrb[8].mxu1  ;;  %1105 = vrot.lane.b32.xlu0 %v1104_v38, %s2587_s16  ;;  %v1133_v51 = vsel %vm536_vm6, %v1094_v15, %v1132_v36  ;;  %v3000_v53 = vrot.slane %v2976_v29, 1  ;;  %v1112_v55 = vrot.slane %v2976_v29, 3  ;;  %v2566_v15 = vld [vmem:[%s3303_s3 + $0xe8] sm:$0xff]  }
 0x113   : > { %v2365_v27 = vpop.f32.mrb[9].mxu1  ;;  %v1119_v41 = vsel %vm398_vm3, %v1117_v33, %v1118_v43  ;;  %v967_v50 = vadd.f32 %v2317_v45, %v2918_v39  ;;  %1134 = vrot.lane.b32.xlu1 %v1133_v51, %s2587_s16  ;;  %2438 = vmatprep.subr.bf16.mxu1 %v2566_v15  ;;  %v2570_v33 = vld [vmem:[%s3303_s3 + $0xf0] sm:$0xff]  }
 0x114   : > { %v2366_v37 = vadd.f32 %v2365_v27, %v2364_v28  ;;  %v2367_v34 = vpop.f32.mrb[10].mxu1  ;;  %1131 = vst.msk [vmem:[#allocation3 + $0x20] sm:$0x7f] %vm1130_vm7, %v1119_v41  ;;  %v1138_v62 = vsel %vm536_vm6, %v1132_v36, %v3000_v53  ;;  %v1113_v12 = vsel %vm444_vm4, %v1103_v32, %v1112_v55  ;;  %v2569_v32 = vld [vmem:[%s3303_s3 + $0x78] sm:$0xff]   ;;  %2439 = vmatpush3.bf16.msra.mxu1 %v2568_v21  ;;  %vm1508_vm7 = vcmask 516096  }
 0x115   : > { %v2368_v46 = vpop.f32.mrb[11].mxu1  ;;  %2402 = vmatprep.subr.bf16.mxu0 %v2569_v32  ;;  %2440 = vmatprep.subr.bf16.mxu1 %v2570_v33 }
 0x116   : > { %v2369_v49 = vadd.f32 %v2368_v46, %v2367_v34  ;;  %v1044_v54 = vadd.f32 %v2366_v37, %v964_v44  ;;  %1139 = vrot.lane.b32.xlu0 %v1138_v62, %s2587_s16  ;;  %2403 = vmatpush3.bf16.msra.mxu0 %v2571_v40 }
 0x117   : > { %v2318_v61 = vpop.f32.mrb[12].mxu0  ;;  %1182 = vrot.lane.b32.xlu1 %v3000_v53, %s2587_s16 }
 0x118   : > { %v3013_v58 = vmax.f32 %v1044_v54, 0.0  ;;  %v1047_v60 = vadd.f32 %v2369_v49, %v967_v50  ;;  %v2319_v0 = vpop.f32.mrb[13].mxu0  ;;  %2441 = vmatpush3.bf16.msra.mxu1 %v2572_v42 }
 0x119   : > { %v2320_v6 = vadd.f32 %v2319_v0, %v2318_v61  ;;  %v2321_v8 = vpop.f32.mrb[14].mxu0  ;;  %2442 = vmatprep.subr.bf16.mxu1 %v2573_v57 }
 0x11a   : > { %v1151_v52 = vrot.slane %v3013_v58, 4  ;;  %v3025_v63 = vmax.f32 %v1047_v60, 0.0  ;;  %v3030_v9 = vrot.slane %v3013_v58, 1  ;;  %v2322_v11 = vpop.f32.mrb[15].mxu0  ;;  %1114 = vrot.lane.b32.xlu0 %v1113_v12, %s2587_s16  ;;  %v1146_v31 = vrot.slane %v3013_v58, 3 }
 0x11b   : > { %v2370_v5 = vpop.f32.mrb[12].mxu1  ;;  %v972_v17 = vadd.f32 %v2320_v6, %v2918_v39  ;;  %v2323_v18 = vadd.f32 %v2322_v11, %v2321_v8 }
 0x11c   : > { %v2371_v7 = vpop.f32.mrb[13].mxu1  ;;  %v1152_v4 = vsel %vm398_vm3, %v1118_v43, %v1151_v52  ;;  %v1211_v16 = vrot.slane %v3025_v63, 4  ;;  %1190 = vrot.lane.b32.xlu1 %v3030_v9, %s2587_s16  ;;  %v3067_v36 = vrot.slane %v3025_v63, 3  ;;  %v1187_v44 = vsel %vm536_vm6, %v3000_v53, %v3030_v9 }
 0x11d   : > { %v2372_v10 = vadd.f32 %v2371_v7, %v2370_v5  ;;  %v2373_v13 = vpop.f32.mrb[14].mxu1  ;;  %v1164_v24 = vrot.slane %v1152_v4, 2  ;;  %v975_v22 = vadd.f32 %v2323_v18, %v2918_v39  ;;  %v1147_v53 = vsel %vm444_vm4, %v1112_v55, %v1146_v31  ;;  %v2574_v55 = vld [vmem:[%s3303_s3 + $0xb8] sm:$0xff]  }
 0x11e   : > { %v2374_v19 = vpop.f32.mrb[15].mxu1  ;;  %v1212_v26 = vsel %vm398_vm3, %v1151_v52, %v1211_v16  ;;  %v1240_v28 = vrot.slane %v1211_v16, 4  ;;  %1195 = vrot.lane.b32.xlu0 %v1146_v31, %s2587_s16  ;;  %v1264_v56 = vrot.slane %v3025_v63, 1  ;;  %v1204_v1 = vsel %vm444_vm4, %v1146_v31, %v3067_v36  ;;  %2443 = vmatpush3.bf16.msra.mxu1 %v2574_v55 }
 0x11f   : > { %v2375_v25 = vadd.f32 %v2374_v19, %v2373_v13  ;;  %v1052_v30 = vadd.f32 %v2372_v10, %v972_v17  ;;  %1175 = vst.msk [vmem:[#allocation3 + $0x20] sm:$0x80] %vm1174_vm8, %v1164_v24  ;;  %v1231_v27 = vrot.slane %v1212_v26, 4  ;;  %v2324_v34 = vpop.f32.mrb[16].mxu0  ;;  %vm1502_vm8 = vcmask 523266  }
 0x120   : > { %1181 = vst.msk [vmem:[#allocation3 + $0x48] sm:$0x3f] %vm1180_vm9, %v1164_v24  ;;  %v2325_v45 = vpop.f32.mrb[17].mxu0  ;;  %1188 = vrot.lane.b32.xlu1 %v1187_v44, %s2587_s16  ;;  %v1265_v15 = vsel %vm536_vm6, %v3030_v9, %v1264_v56  ;;  %vm1121_vm9 = vcmask 523264  }
 0x121   : > { %v3064_v35 = vmax.f32 %v1052_v30, 0.0  ;;  %v1055_v37 = vadd.f32 %v2375_v25, %v975_v22  ;;  %v1241_v43 = vsel %vm398_vm3, %v1231_v27, %v1240_v28  ;;  %1257 = vst.msk [vmem:[#allocation3 + $0x48] sm:$0xc0] %vm1256_vm10, %v1231_v27  ;;  %v2326_v48 = vadd.f32 %v2325_v45, %v2324_v34  ;;  %v2327_v51 = vpop.f32.mrb[18].mxu0 }
 0x122   : > { %1263 = vst.msk [vmem:[#allocation3 + $0x70] sm:$0x1f] %vm1262_vm11, %v1241_v43  ;;  %v2328_v50 = vpop.f32.mrb[19].mxu0  ;;  %1148 = vrot.lane.b32.xlu0 %v1147_v53, %s2587_s16  ;;  %v1091_v53 = vrot.slane %v2942_v2, 2 }
 0x123   : > { %v2376_v46 = vpop.f32.mrb[16].mxu1  ;;  %v1285_v38 = vrot.slane %v3064_v35, 4  ;;  %v3083_v47 = vmax.f32 %v1055_v37, 0.0  ;;  %v980_v5 = vadd.f32 %v2326_v48, %v2918_v39  ;;  %v2329_v52 = vadd.f32 %v2328_v50, %v2327_v51 }
 0x124   : > { %v2377_v49 = vpop.f32.mrb[17].mxu1  ;;  %1205 = vrot.lane.b32.xlu1 %v1204_v1, %s2587_s16  ;;  %v1336_v27 = vrot.slane %v3064_v35, 1  ;;  %v1090_v50 = vrot.slane %v2940_v59, 2 }
 0x125   : > { %v2378_v41 = vadd.f32 %v2377_v49, %v2376_v46  ;;  %v2379_v54 = vpop.f32.mrb[18].mxu1  ;;  %v1286_v60 = vsel %vm398_vm3, %v1211_v16, %v1285_v38  ;;  %v1312_v61 = vrot.slane %v1285_v38, 6  ;;  %v1357_v62 = vrot.slane %v3083_v47, 4  ;;  %v3143_v38 = vld [vmem:[%s3303_s3 + $0x100] sm:$0xff]  }
 0x126   : > { %v2380_v3 = vpop.f32.mrb[19].mxu1  ;;  %v1303_v0 = vrot.slane %v1286_v60, 6  ;;  %v983_v10 = vadd.f32 %v2329_v52, %v2918_v39  ;;  %1207 = vrot.lane.b32.xlu0 %v3067_v36, %s2587_s16  ;;  %v1277_v16 = vrot.slane %v3064_v35, 3  ;;  %v1377_v37 = vrot.slane %v3083_v47, 1  ;;  %2476 = vmatprep.subr.bf16.mxu0 %v3143_v38 }
 0x127   : > { %v2381_v6 = vadd.f32 %v2380_v3, %v2379_v54  ;;  %1370 = vst.msk [vmem:[#allocation3 + $0x98] sm:$0xf0] %vm1369_vm14, %v1357_v62  ;;  %v1060_v8 = vadd.f32 %v2378_v41, %v980_v5  ;;  %v2330_v11 = vpop.f32.mrb[20].mxu0  ;;  %v1349_v46 = vrot.slane %v3083_v47, 3  ;;  %2492 = vmatprep.subr.bf16.mxu1 %v3143_v38  ;;  %v1092_v60 = vsel %vm490_vm5, %v1090_v50, %v1091_v53 }
 0x128   : > { %1376 = vst.msk [vmem:[#allocation3 + $0xc0] sm:$0x7] %vm1375_vm15, %v1357_v62  ;;  %v1313_v7 = vsel %vm306_vm1, %v1303_v0, %v1312_v61  ;;  %v2331_v13 = vpop.f32.mrb[21].mxu0  ;;  %1266 = vrot.lane.b32.xlu1 %v1265_v15, %s2587_s16  ;;  %v1278_v22 = vsel %vm444_vm4, %v3067_v36, %v1277_v16  ;;  %v1378_v43 = vsel %vm536_vm6, %v1336_v27, %v1377_v37  ;;  %v1099_v62 = vrot.slane %v2974_v23, 2 }
 0x129   : > { %1329 = vst.msk [vmem:[#allocation3 + $0x70] sm:$0xe0] %vm1328_vm12, %v1303_v0  ;;  %v3109_v12 = vmax.f32 %v1060_v8, 0.0  ;;  %v1063_v14 = vadd.f32 %v2381_v6, %v983_v10  ;;  %v2332_v17 = vadd.f32 %v2331_v13, %v2330_v11  ;;  %v2333_v19 = vpop.f32.mrb[22].mxu0  ;;  %v1350_v48 = vsel %vm444_vm4, %v1277_v16, %v1349_v46 }
 0x12a   : > { %1335 = vst.msk [vmem:[#allocation3 + $0x98] sm:$0xf] %vm1334_vm13, %v1313_v7  ;;  %v2334_v25 = vpop.f32.mrb[23].mxu0  ;;  %1268 = vrot.lane.b32.xlu0 %v1264_v56, %s2587_s16  ;;  %v1100_v3 = vsel %vm490_vm5, %v1091_v53, %v1099_v62  ;;  %v1109_v6 = vrot.slane %v2976_v29, 2 }
 0x12b   : > { %v2382_v4 = vpop.f32.mrb[20].mxu1  ;;  %v1394_v20 = vrot.slane %v3109_v12, 4  ;;  %v3118_v21 = vmax.f32 %v1063_v14, 0.0  ;;  %v988_v28 = vadd.f32 %v2332_v17, %v2918_v39  ;;  %v1337_v39 = vsel %vm536_vm6, %v1264_v56, %v1336_v27 }
 0x12c   : > { %v2383_v18 = vpop.f32.mrb[21].mxu1  ;;  %1279 = vrot.lane.b32.xlu1 %v1278_v22, %s2587_s16  ;;  %v1390_v44 = vrot.slane %v3109_v12, 3  ;;  %v1446_v49 = vrot.slane %v3109_v12, 1 }
 0x12d   : > { %v2384_v24 = vadd.f32 %v2383_v18, %v2382_v4  ;;  %v2385_v26 = vpop.f32.mrb[22].mxu1  ;;  %v1422_v30 = vrot.slane %v1394_v20, 2  ;;  %v1462_v32 = vrot.slane %v3118_v21, 4  ;;  %v1457_v41 = vrot.slane %v3118_v21, 3 }
 0x12e   : > { %v2386_v9 = vpop.f32.mrb[23].mxu1  ;;  %1281 = vrot.lane.b32.xlu0 %v1277_v16, %s2587_s16  ;;  %v1447_v51 = vsel %vm536_vm6, %v1377_v37, %v1446_v49 }
 0x12f   : > { %v1068_v31 = vadd.f32 %v2384_v24, %v988_v28  ;;  %1439 = vst.msk [vmem:[#allocation3 + $0xc0] sm:$0xf8] %vm1438_vm0, %v1422_v30  ;;  %v1485_v36 = vrot.slane %v1462_v32, 4  ;;  %v1143_v24 = vrot.slane %v3013_v58, 2  ;;  %v3182_v28 = vrot.slane %v3025_v63, 2 }
 0x130   : > { %1445 = vst.msk [vmem:[#allocation3 + $0xe8] sm:$0x3] %vm1444_vm2, %v1422_v30  ;;  %1338 = vrot.lane.b32.xlu1 %v1337_v39, %s2587_s16 }
 0x131   : > { %v1083_v33 = vmax.f32 %v1068_v31, 0.0  ;;  %v1144_v39 = vsel %vm490_vm5, %v1109_v6, %v1143_v24 }
 0x132   : > { %1340 = vrot.lane.b32.xlu0 %v1336_v27, %s2587_s16 }
 0x133   : > { %v1463_v34 = vrot.slane %v1083_v33, 4 }
 0x134   : > { %1379 = vrot.lane.b32.xlu1 %v1378_v43, %s2587_s16 }
 0x135   : > { %v1464_v40 = vsel %vm398_vm3, %v1462_v32, %v1463_v34 }
 0x136   : > { %v1486_v42 = vrot.slane %v1464_v40, 4  ;;  %1381 = vrot.lane.b32.xlu0 %v1377_v37, %s2587_s16 }
 0x138   : > { %v1487_v45 = vsel %vm398_vm3, %v1485_v36, %v1486_v42  ;;  %1509 = vst.msk [vmem:[#allocation3 + $0x110] sm:$0x1] %vm1508_vm7, %v1486_v42  ;;  %1391 = vrot.lane.b32.xlu1 %v1390_v44, %s2587_s16  ;;  %v3194_v42 = vsel %vm490_vm5, %v1143_v24, %v3182_v28 }
 0x139   : > { %1503 = vst.msk [vmem:[#allocation3 + $0xe8] sm:$0xfc] %vm1502_vm8, %v1487_v45 }
 0x13a   : > { %1351 = vrot.lane.b32.xlu0 %v1350_v48, %s2587_s16 }
 0x13c   : > { %1450 = vrot.lane.b32.xlu1 %v1446_v49, %s2587_s16 }
 0x13e   : > { %1448 = vrot.lane.b32.xlu0 %v1447_v51, %s2587_s16 }
 0x140   : > { %1353 = vrot.lane.b32.xlu1 %v1349_v46, %s2587_s16 }
 0x142   : > { %1458 = vrot.lane.b32.xlu0 %v1457_v41, %s2587_s16 }
 0x179   : > { %v1087_v54 = vpop.permute.xlu1 %1086 }
 0x17a   : > { %v1122_v56 = vsel %vm1121_vm9, %v2940_v59, %v1087_v54  ;;  %v3202_v54 = vrot.slane %v3064_v35, 2 }
 0x17b   : > { %1126 = vst [vmem:[#allocation3] sm:$0x7f] %v1122_v56  ;;  %v1096_v57 = vpop.permute.xlu0 %1095 }
 0x17c   : > { %v1123_v61 = vsel %vm1121_vm9, %v1092_v60, %v1096_v57 }
 0x17d   : > { %1127 = vst [vmem:[#allocation3 + $0x8] sm:$0x7f] %v1123_v61 }
 0x184   : > { %v1106_v1 = vpop.permute.xlu0 %1105 }
 0x185   : > { %v1124_v55 = vsel %vm1121_vm9, %v1100_v3, %v1106_v1  ;;  %v1135_v0 = vpop.permute.xlu1 %1134 }
 0x186   : > { %1128 = vst [vmem:[#allocation3 + $0x10] sm:$0x7f] %v1124_v55  ;;  %v1153_v5 = vsel %vm1121_vm9, %v2942_v2, %v1135_v0  ;;  %v1110_v2 = vsel %vm490_vm5, %v1099_v62, %v1109_v6 }
 0x187   : > { %v1160_v59 = vrot.slane %v1153_v5, 2 }
 0x188   : > { %v1140_v52 = vpop.permute.xlu0 %1139 }
 0x189   : > { %1170 = vst [vmem:[#allocation3] sm:$0x80] %v1160_v59  ;;  %1176 = vst [vmem:[#allocation3 + $0x28] sm:$0x3f] %v1160_v59  ;;  %v1154_v7 = vsel %vm1121_vm9, %v1100_v3, %v1140_v52  ;;  %v1213_v8 = vsel %vm1121_vm9, %v2974_v23, %v1140_v52  ;;  %v1183_v10 = vpop.permute.xlu1 %1182 }
 0x18a   : > { %v1161_v11 = vrot.slane %v1154_v7, 2  ;;  %v1227_v13 = vrot.slane %v1213_v8, 4  ;;  %v1214_v14 = vsel %vm1121_vm9, %v2976_v29, %v1183_v10 }
 0x18b   : > { %v1232_v15 = vrot.slane %v1214_v14, 4 }
 0x18c   : > { %1171 = vst [vmem:[#allocation3 + $0x8] sm:$0x80] %v1161_v11  ;;  %1177 = vst [vmem:[#allocation3 + $0x30] sm:$0x3f] %v1161_v11  ;;  %v1115_v4 = vpop.permute.xlu0 %1114 }
 0x18d   : > { %1252 = vst [vmem:[#allocation3 + $0x28] sm:$0xc0] %v1227_v13  ;;  %v1233_v16 = vsel %vm398_vm3, %v1227_v13, %v1232_v15  ;;  %v1125_v17 = vsel %vm1121_vm9, %v1110_v2, %v1115_v4  ;;  %v2576_v15 = vld [vmem:[%s3303_s3 + $0x108] sm:$0xff]  }
 0x18e   : > { %v1191_v18 = vpop.permute.xlu1 %1190  ;;  %1258 = vst [vmem:[#allocation3 + $0x50] sm:$0x1f] %v1233_v16  ;;  %1129 = vst [vmem:[#allocation3 + $0x18] sm:$0x7f] %v1125_v17  ;;  %v1162_v23 = vrot.slane %v1125_v17, 2 }
 0x18f   : > { %v1216_v19 = vsel %vm1121_vm9, %v1109_v6, %v1191_v18  ;;  %v1288_v20 = vsel %vm1121_vm9, %v3013_v58, %v1191_v18 }
 0x190   : > { %1172 = vst [vmem:[#allocation3 + $0x10] sm:$0x80] %v1162_v23  ;;  %1178 = vst [vmem:[#allocation3 + $0x38] sm:$0x3f] %v1162_v23  ;;  %v1196_v25 = vpop.permute.xlu0 %1195  ;;  %v1234_v9 = vrot.slane %v1216_v19, 4  ;;  %v1304_v27 = vrot.slane %v1288_v20, 6 }
 0x191   : > { %v1217_v31 = vsel %vm1121_vm9, %v1143_v24, %v1196_v25  ;;  %v1510_v10 = vld [vmem:[#allocation3] sm:$0xff] }
 0x192   : > { %v1189_v26 = vpop.permute.xlu1 %1188  ;;  %v1236_v43 = vrot.slane %v1217_v31, 4  ;;  %v3233_v31 = vrot.slane %v3083_v47, 2 }
 0x193   : > { %v1215_v30 = vsel %vm1121_vm9, %v1110_v2, %v1189_v26  ;;  %v1287_v22 = vsel %vm1121_vm9, %v2976_v29, %v1189_v26  ;;  %v1511_v5 = vld [vmem:[#allocation3 + $0x8] sm:$0xff] }
 0x194   : > { %v1228_v32 = vrot.slane %v1215_v30, 4  ;;  %v1299_v33 = vrot.slane %v1287_v22, 6  ;;  %v1149_v37 = vpop.permute.xlu0 %1148  ;;  %v1515_v1 = vld [vmem:[#allocation3 + $0x28] sm:$0xff]  ;;  %v3228_v22 = vld [vmem:[%s3303_s3 + $0x110] sm:$0xff]  }
 0x195   : > { %v1155_v40 = vsel %vm1121_vm9, %v1144_v39, %v1149_v37  ;;  %v1545_v14 = vpack.c.bf16 %v1515_v1, %v1510_v10 }
 0x196   : > { %v1235_v34 = vsel %vm398_vm3, %v1228_v32, %v1234_v9  ;;  %1253 = vst [vmem:[#allocation3 + $0x30] sm:$0xc0] %v1228_v32  ;;  %v1305_v36 = vsel %vm306_vm1, %v1299_v33, %v1304_v27  ;;  %1324 = vst [vmem:[#allocation3 + $0x50] sm:$0xe0] %v1299_v33  ;;  %v1206_v29 = vpop.permute.xlu1 %1205  ;;  %v1163_v44 = vrot.slane %v1155_v40, 2  ;;  %v1229_v45 = vrot.slane %v1155_v40, 4 }
 0x197   : > { %1259 = vst [vmem:[#allocation3 + $0x58] sm:$0x1f] %v1235_v34  ;;  %1330 = vst [vmem:[#allocation3 + $0x78] sm:$0xf] %v1305_v36  ;;  %v1218_v46 = vsel %vm1121_vm9, %v3194_v42, %v1206_v29  ;;  %v1512_v16 = vld [vmem:[#allocation3 + $0x10] sm:$0xff] }
 0x198   : > { %v1230_v48 = vrot.slane %v1218_v46, 4  ;;  %v1301_v49 = vrot.slane %v1218_v46, 6  ;;  %1173 = vst [vmem:[#allocation3 + $0x18] sm:$0x80] %v1163_v44  ;;  %1179 = vst [vmem:[#allocation3 + $0x40] sm:$0x3f] %v1163_v44  ;;  %v1237_v51 = vsel %vm398_vm3, %v1229_v45, %v1236_v43  ;;  %v1208_v41 = vpop.permute.xlu0 %1207 }
 0x199   : > { %1254 = vst [vmem:[#allocation3 + $0x38] sm:$0xc0] %v1229_v45  ;;  %1260 = vst [vmem:[#allocation3 + $0x60] sm:$0x1f] %v1237_v51  ;;  %v1219_v53 = vsel %vm1121_vm9, %v3182_v28, %v1208_v41 }
 0x19a   : > { %1255 = vst [vmem:[#allocation3 + $0x40] sm:$0xc0] %v1230_v48  ;;  %1326 = vst [vmem:[#allocation3 + $0x60] sm:$0xe0] %v1301_v49  ;;  %v1267_v50 = vpop.permute.xlu1 %1266  ;;  %v1238_v56 = vrot.slane %v1219_v53, 4  ;;  %v1308_v57 = vrot.slane %v1219_v53, 6 }
 0x19b   : > { %v1289_v60 = vsel %vm1121_vm9, %v1144_v39, %v1267_v50  ;;  %v1359_v61 = vsel %vm1121_vm9, %v3013_v58, %v1267_v50  ;;  %v1274_v58 = vsel %vm490_vm5, %v3182_v28, %v3202_v54  ;;  %v1386_v39 = vrot.slane %v3109_v12, 2  ;;  %v2578_v12 = vld [vmem:[%s3303_s3 + $0x118] sm:$0xff]  }
 0x19c   : > { %v1300_v62 = vrot.slane %v1289_v60, 6  ;;  %1365 = vst [vmem:[#allocation3 + $0x78] sm:$0xf0] %v1359_v61  ;;  %v1239_v3 = vsel %vm398_vm3, %v1230_v48, %v1238_v56  ;;  %v1309_v55 = vsel %vm306_vm1, %v1301_v49, %v1308_v57  ;;  %v1269_v0 = vpop.permute.xlu0 %1268 }
 0x19d   : > { %v1516_v59 = vld [vmem:[#allocation3 + $0x30] sm:$0xff]  ;;  %1261 = vst [vmem:[#allocation3 + $0x68] sm:$0x1f] %v1239_v3  ;;  %1332 = vst [vmem:[#allocation3 + $0x88] sm:$0xf] %v1309_v55  ;;  %v1290_v52 = vsel %vm1121_vm9, %v1143_v24, %v1269_v0  ;;  %v1360_v6 = vsel %vm1121_vm9, %v3025_v63, %v1269_v0  ;;  %v1387_v43 = vsel %vm490_vm5, %v3233_v31, %v1386_v39 }
 0x19e   : > { %1325 = vst [vmem:[#allocation3 + $0x58] sm:$0xe0] %v1300_v62  ;;  %v1280_v7 = vpop.permute.xlu1 %1279  ;;  %v1546_v8 = vpack.c.bf16 %v1516_v59, %v1511_v5  ;;  %v1306_v11 = vrot.slane %v1290_v52, 6  ;;  %1371 = vst [vmem:[#allocation3 + $0xa0] sm:$0x7] %v1360_v6  ;;  %v1520_v1 = vld [vmem:[#allocation3 + $0x50] sm:$0xff]  ;;  %v1346_v0 = vsel %vm490_vm5, %v3202_v54, %v3233_v31 }
 0x19f   : > { %v1291_v13 = vsel %vm1121_vm9, %v1274_v58, %v1280_v7  ;;  %v1513_v4 = vld [vmem:[#allocation3 + $0x18] sm:$0xff] }
 0x1a0   : > { %v1302_v2 = vrot.slane %v1291_v13, 6  ;;  %1367 = vst [vmem:[#allocation3 + $0x88] sm:$0xf0] %v1291_v13  ;;  %1904 = vmatprep.mubr.bf16.mxu0 %v1546_v8  ;;  %v1517_v17 = vld [vmem:[#allocation3 + $0x38] sm:$0xff]  ;;  %v1307_v18 = vsel %vm306_vm1, %v1300_v62, %v1306_v11  ;;  %v1282_v23 = vpop.permute.xlu0 %1281 }
 0x1a1   : > { %1905 = vmatmul.mubr.bf16.vlgmr.msra.gmra.mrb[24].mxu0 %v1545_v14  ;;  %v1518_v19 = vld [vmem:[#allocation3 + $0x40] sm:$0xff]  ;;  %v1547_v20 = vpack.c.bf16 %v1517_v17, %v1512_v16  ;;  %1331 = vst [vmem:[#allocation3 + $0x80] sm:$0xf] %v1307_v18  ;;  %v1292_v24 = vsel %vm1121_vm9, %v3202_v54, %v1282_v23  ;;  %v1455_v16 = vrot.slane %v3118_v21, 2 }
 0x1a2   : > { %1327 = vst [vmem:[#allocation3 + $0x68] sm:$0xe0] %v1302_v2  ;;  %v1339_v25 = vpop.permute.xlu1 %1338  ;;  %v1548_v26 = vpack.c.bf16 %v1518_v19, %v1513_v4  ;;  %2477 = vmatpush3.bf16.msra.mxu0 %v3143_v38  ;;  %v1310_v9 = vrot.slane %v1292_v24, 6  ;;  %1373 = vst [vmem:[#allocation3 + $0xb0] sm:$0x7] %v1292_v24 }
 0x1a3   : > { %v1361_v30 = vsel %vm1121_vm9, %v3194_v42, %v1339_v25  ;;  %2478 = vmatprep.subr.bf16.mxu0 %v2576_v15  ;;  %v1395_v27 = vsel %vm1121_vm9, %v3025_v63, %v1339_v25  ;;  %v1525_v49 = vld [vmem:[#allocation3 + $0x78] sm:$0xff] }
 0x1a4   : > { %1366 = vst [vmem:[#allocation3 + $0x80] sm:$0xf0] %v1361_v30  ;;  %1968 = vmatprep.mubr.bf16.mxu1 %v1548_v26  ;;  %v1311_v32 = vsel %vm306_vm1, %v1302_v2, %v1310_v9  ;;  %v1341_v33 = vpop.permute.xlu0 %1340  ;;  %v1410_v63 = vrot.slane %v1395_v27, 2  ;;  %v1550_v59 = vpack.c.bf16 %v1525_v49, %v1520_v1  ;;  %v1522_v30 = vld [vmem:[#allocation3 + $0x60] sm:$0xff]  ;;  %v1539_v49 = vld [vmem:[#allocation3 + $0xe8] sm:$0xff] }
 0x1a5   : > { %1969 = vmatmul.mubr.bf16.vlgmr.msra.gmra.mrb[24].mxu1 %v1547_v20  ;;  %1333 = vst [vmem:[#allocation3 + $0x90] sm:$0xf] %v1311_v32  ;;  %v1362_v37 = vsel %vm1121_vm9, %v3182_v28, %v1341_v33  ;;  %v1396_v34 = vsel %vm1121_vm9, %v3064_v35, %v1341_v33  ;;  %v1521_v56 = vld [vmem:[#allocation3 + $0x58] sm:$0xff] }
 0x1a6   : > { %v1380_v36 = vpop.permute.xlu1 %1379  ;;  %2496 = vmatpush3.bf16.msra.mxu1 %v3143_v38  ;;  %2479 = vmatpush3.bf16.msra.mxu0 %v2576_v15  ;;  %1372 = vst [vmem:[#allocation3 + $0xa8] sm:$0x7] %v1362_v37  ;;  %v1411_v40 = vrot.slane %v1396_v34, 2 }
 0x1a7   : > { %v1397_v42 = vsel %vm1121_vm9, %v1274_v58, %v1380_v36  ;;  %v1465_v29 = vsel %vm1121_vm9, %v3064_v35, %v1380_v36  ;;  %2493 = vmatprep.subr.bf16.mxu1 %v2576_v15  ;;  %2480 = vmatprep.subr.bf16.mxu0 %v3228_v22  ;;  %v1527_v23 = vld [vmem:[#allocation3 + $0x88] sm:$0xff] }
 0x1a8   : > { %v1412_v28 = vsel %vm490_vm5, %v1410_v63, %v1411_v40  ;;  %1440 = vst [vmem:[#allocation3 + $0xc8] sm:$0x3] %v1411_v40  ;;  %v1382_v38 = vpop.permute.xlu0 %1381  ;;  %v1413_v44 = vrot.slane %v1397_v42, 2  ;;  %v1475_v45 = vrot.slane %v1465_v29, 4 }
 0x1a9   : > { %1434 = vst [vmem:[#allocation3 + $0xa0] sm:$0xf8] %v1412_v28  ;;  %v1398_v35 = vsel %vm1121_vm9, %v3202_v54, %v1382_v38  ;;  %v1466_v46 = vsel %vm1121_vm9, %v3083_v47, %v1382_v38  ;;  %v1523_v24 = vld [vmem:[#allocation3 + $0x68] sm:$0xff] }
 0x1aa   : > { %v1392_v48 = vpop.permute.xlu1 %1391  ;;  %2497 = vmatpush3.bf16.msra.mxu1 %v2576_v15  ;;  %2481 = vmatpush3.bf16.msra.mxu0 %v3228_v22  ;;  %v1414_v51 = vrot.slane %v1398_v35, 2  ;;  %v1476_v41 = vrot.slane %v1466_v46, 4  ;;  %v1514_v35 = vld [vmem:[#allocation3 + $0x20] sm:$0xff] }
 0x1ab   : > { %v1400_v53 = vsel %vm1121_vm9, %v1387_v43, %v1392_v48  ;;  %v1401_v50 = vsel %vm1121_vm9, %v1386_v39, %v1392_v48  ;;  %v1526_v57 = vld [vmem:[#allocation3 + $0x80] sm:$0xff]  ;;  %2494 = vmatprep.subr.bf16.mxu1 %v3228_v22  ;;  %2482 = vmatprep.subr.bf16.mxu0 %v2578_v12 }
 0x1ac   : > { %v1419_v60 = vrot.slane %v1400_v53, 2  ;;  %v1420_v61 = vrot.slane %v1401_v50, 2  ;;  %v1481_v62 = vrot.slane %v1401_v50, 4  ;;  %v1551_v47 = vpack.c.bf16 %v1526_v57, %v1521_v56  ;;  %1441 = vst [vmem:[#allocation3 + $0xd0] sm:$0x3] %v1414_v51  ;;  %v1352_v5 = vpop.permute.xlu0 %1351  ;;  %v1524_v50 = vld [vmem:[#allocation3 + $0x70] sm:$0xff] }
 0x1ad   : > { %v1415_v3 = vsel %vm490_vm5, %v1413_v44, %v1414_v51  ;;  %v1477_v55 = vsel %vm398_vm3, %v1475_v45, %v1476_v41  ;;  %1504 = vst [vmem:[#allocation3 + $0xf0] sm:$0x1] %v1476_v41  ;;  %v1363_v6 = vsel %vm1121_vm9, %v1346_v0, %v1352_v5  ;;  %v1519_v44 = vld [vmem:[#allocation3 + $0x48] sm:$0xff]  ;;  %v1534_v41 = vld [vmem:[#allocation3 + $0xc0] sm:$0xff]  ;;  %v1529_v56 = vld [vmem:[#allocation3 + $0x98] sm:$0xff] }
 0x1ae   : > { %1435 = vst [vmem:[#allocation3 + $0xa8] sm:$0xf8] %v1415_v3  ;;  %1498 = vst [vmem:[#allocation3 + $0xc8] sm:$0xfc] %v1477_v55  ;;  %v1421_v52 = vsel %vm490_vm5, %v1419_v60, %v1420_v61  ;;  %1912 = vmatprep.mubr.bf16.mxu0 %v1551_v47  ;;  %v1451_v58 = vpop.permute.xlu1 %1450  ;;  %2498 = vmatpush3.bf16.msra.mxu1 %v3228_v22  ;;  %v1552_v22 = vpack.c.bf16 %v1527_v23, %v1522_v30  ;;  %v1544_v60 = vld [vmem:[#allocation3 + $0x110] sm:$0x1] }
 0x1af   : > { %1443 = vst [vmem:[#allocation3 + $0xe0] sm:$0x3] %v1420_v61  ;;  %1500 = vst [vmem:[#allocation3 + $0xd8] sm:$0xfc] %v1481_v62  ;;  %v1468_v54 = vsel %vm1121_vm9, %v3233_v31, %v1451_v58  ;;  %1913 = vmatmul.mubr.bf16.gmra.mrb[28].mxu0 %v1550_v59  ;;  %2495 = vmatprep.subr.bf16.mxu1 %v2578_v12  ;;  %v1549_v48 = vpack.c.bf16 %v1519_v44, %v1514_v35  ;;  %v2241_v55 = vld [vmem:[%s3304_s4] ss:$0 sm:$0xff] }
 0x1b0   : > { %1506 = vst [vmem:[#allocation3 + $0x100] sm:$0x1] %v1481_v62  ;;  %1437 = vst [vmem:[#allocation3 + $0xb8] sm:$0xf8] %v1421_v52  ;;  %v1479_v7 = vrot.slane %v1468_v54, 4  ;;  %2483 = vmatpush3.bf16.msra.mxu0 %v2578_v12  ;;  %v1449_v8 = vpop.permute.xlu0 %1448  ;;  %v1530_v39 = vld [vmem:[#allocation3 + $0xa0] sm:$0xff]  ;;  %v1559_v53 = vpack.c.bf16 %v1539_v49, %v1534_v41  ;;  %v1554_v57 = vpack.c.bf16 %v1529_v56, %v1524_v50 }
 0x1b1   : > { %1368 = vst [vmem:[#allocation3 + $0x90] sm:$0xf0] %v1363_v6  ;;  %v1467_v10 = vsel %vm1121_vm9, %v3233_v31, %v1449_v8  ;;  %v1564_v61 = vpack.c.bf16 %v1544_v60, %v1544_v60 }
 0x1b2   : > { %1505 = vst [vmem:[#allocation3 + $0xf8] sm:$0x1] %v1479_v7  ;;  %v1354_v11 = vpop.permute.xlu1 %1353  ;;  %2499 = vmatpush3.bf16.msra.mxu1 %v2578_v12  ;;  %v1478_v13 = vrot.slane %v1467_v10, 4 }
 0x1b3   : > { %v1364_v14 = vsel %vm1121_vm9, %v3233_v31, %v1354_v11  ;;  %v1399_v15 = vsel %vm1121_vm9, %v1346_v0, %v1354_v11 }
 0x1b4   : > { %1374 = vst [vmem:[#allocation3 + $0xb8] sm:$0x7] %v1364_v14  ;;  %v1416_v2 = vrot.slane %v1399_v15, 2  ;;  %v1417_v4 = vrot.slane %v1364_v14, 2  ;;  %v1480_v17 = vsel %vm398_vm3, %v1478_v13, %v1479_v7  ;;  %v1459_v18 = vpop.permute.xlu0 %1458  ;;  %v1540_v43 = vld [vmem:[#allocation3 + $0xf0] sm:$0x1] }
 0x1b5   : > { %1499 = vst [vmem:[#allocation3 + $0xd0] sm:$0xfc] %v1480_v17  ;;  %v1469_v20 = vsel %vm1121_vm9, %v1455_v16, %v1459_v18  ;;  %v1535_v21 = vld [vmem:[#allocation3 + $0xc8] sm:$0xff]  ;;  %v1560_v45 = vpack.c.bf16 %v1540_v43, %v1540_v43 }
 0x1b6   : > { %v1418_v19 = vsel %vm490_vm5, %v1416_v2, %v1417_v4  ;;  %1442 = vst [vmem:[#allocation3 + $0xd8] sm:$0x3] %v1417_v4  ;;  %v1483_v26 = vrot.slane %v1469_v20, 4  ;;  %v1531_v27 = vld [vmem:[#allocation3 + $0xa8] sm:$0xff]  ;;  %v1555_v37 = vpack.c.bf16 %v1535_v21, %v1530_v39 }
 0x1b7   : > { %1436 = vst [vmem:[#allocation3 + $0xb0] sm:$0xf8] %v1418_v19  ;;  %v1542_v46 = vld [vmem:[#allocation3 + $0x100] sm:$0x1] }
 0x1b8   : > { %v1528_v25 = vld [vmem:[#allocation3 + $0x90] sm:$0xff]  ;;  %1501 = vst [vmem:[#allocation3 + $0xe0] sm:$0xfc] %v1483_v26  ;;  %1507 = vst [vmem:[#allocation3 + $0x108] sm:$0x1] %v1483_v26  ;;  %v1562_v51 = vpack.c.bf16 %v1542_v46, %v1542_v46 }
 0x1b9   : > { %v1553_v9 = vpack.c.bf16 %v1528_v25, %v1523_v24  ;;  %v1541_v32 = vld [vmem:[#allocation3 + $0xf8] sm:$0x1] }
 0x1ba   : > { %v1561_v63 = vpack.c.bf16 %v1541_v32, %v1541_v32 }
 0x1bb   : > { %1976 = vmatprep.mubr.bf16.mxu1 %v1553_v9  ;;  %v1533_v40 = vld [vmem:[#allocation3 + $0xb8] sm:$0xff] }
 0x1bc   : > { %1977 = vmatmul.mubr.bf16.gmra.mrb[28].mxu1 %v1552_v22  ;;  %v1536_v31 = vld [vmem:[#allocation3 + $0xd0] sm:$0xff] }
 0x1bd   : > { %v1556_v33 = vpack.c.bf16 %v1536_v31, %v1531_v27  ;;  %v1537_v36 = vld [vmem:[#allocation3 + $0xd8] sm:$0xff] }
 0x1be   : > { %v1532_v34 = vld [vmem:[#allocation3 + $0xb0] sm:$0xff] }
 0x1bf   : > { %1920 = vmatprep.mubr.bf16.mxu0 %v1556_v33  ;;  %v1538_v42 = vld [vmem:[#allocation3 + $0xe0] sm:$0xff]  ;;  %v1543_v29 = vld [vmem:[#allocation3 + $0x108] sm:$0x1]  ;;  %v1557_v28 = vpack.c.bf16 %v1537_v36, %v1532_v34 }
 0x1c0   : > { %1921 = vmatmul.mubr.bf16.gmra.mrb[32].mxu0 %v1555_v37  ;;  %v1558_v12 = vpack.c.bf16 %v1538_v42, %v1533_v40  ;;  %v1563_v38 = vpack.c.bf16 %v1543_v29, %v1543_v29 }
 0x1c1   : > { %1928 = vmatprep.mubr.bf16.mxu0 %v1561_v63 }
 0x1c2   : > { %1984 = vmatprep.mubr.bf16.mxu1 %v1558_v12 }
 0x1c4   : > { %1985 = vmatmul.mubr.bf16.gmra.mrb[32].mxu1 %v1557_v28 }
 0x1c5   : > { %1992 = vmatprep.mubr.bf16.mxu1 %v1563_v38 }
 0x1c8   : > { %1929 = vmatmul.mubr.bf16.gmra.mrb[36].mxu0 %v1560_v45 }
 0x1c9   : > { %2484 = vmatprep.mubr.msk.bf16.mxu0 %vm1121_vm9, %v1549_v48 }
 0x1cc   : > { %1993 = vmatmul.mubr.bf16.gmra.mrb[36].mxu1 %v1562_v51 }
 0x1cd   : > { %2488 = vmatprep.mubr.msk.bf16.mxu1 %vm1121_vm9, %v1559_v53 }
 0x1d0   : > { %2485 = vmatmul.mubr.msk.bf16.vlgmr.msra.gmra.mrb[40].mxu0 %vm1121_vm9, %v1554_v57 }
 0x1d4   : > { %2489 = vmatmul.mubr.msk.bf16.vlgmr.msra.gmra.mrb[40].mxu1 %vm1121_vm9, %v1564_v61 }
 0x274   : > { %v2404_v62 = vpop.f32.mrb[24].mxu0 }
 0x275   : > { %v2405_v47 = vpop.f32.mrb[25].mxu0 }
 0x276   : > { %v2406_v1 = vadd.f32 %v2405_v47, %v2404_v62  ;;  %v2407_v3 = vpop.f32.mrb[26].mxu0 }
 0x277   : > { %v2408_v0 = vpop.f32.mrb[27].mxu0 }
 0x278   : > { %v2409_v5 = vadd.f32 %v2408_v0, %v2407_v3  ;;  %v2444_v59 = vpop.f32.mrb[24].mxu1  ;;  %v1907_v6 = vadd.f32 %v2406_v1, %v2241_v55 }
 0x279   : > { %v2445_v52 = vpop.f32.mrb[25].mxu1 }
 0x27a   : > { %v2446_v58 = vadd.f32 %v2445_v52, %v2444_v59  ;;  %v2447_v54 = vpop.f32.mrb[26].mxu1  ;;  %v1910_v8 = vadd.f32 %v2409_v5, %v2241_v55 }
 0x27b   : > { %v2448_v7 = vpop.f32.mrb[27].mxu1 }
 0x27c   : > { %v2449_v10 = vadd.f32 %v2448_v7, %v2447_v54  ;;  %v1971_v11 = vadd.f32 %v2446_v58, %v1907_v6 }
 0x27e   : > { %v1974_v13 = vadd.f32 %v2449_v10, %v1910_v8 }
 0x282   : > { %v2410_v14 = vpop.f32.mrb[28].mxu0 }
 0x283   : > { %v2411_v15 = vpop.f32.mrb[29].mxu0 }
 0x284   : > { %v2412_v2 = vadd.f32 %v2411_v15, %v2410_v14  ;;  %v2413_v4 = vpop.f32.mrb[30].mxu0 }
 0x285   : > { %v2414_v16 = vpop.f32.mrb[31].mxu0 }
 0x286   : > { %v2415_v17 = vadd.f32 %v2414_v16, %v2413_v4  ;;  %v1915_v19 = vadd.f32 %v2412_v2, %v2241_v55 }
 0x288   : > { %v1918_v26 = vadd.f32 %v2415_v17, %v2241_v55 }
 0x28f   : > { %v2450_v18 = vpop.f32.mrb[28].mxu1 }
 0x290   : > { %v2451_v23 = vpop.f32.mrb[29].mxu1 }
 0x291   : > { %v2452_v20 = vadd.f32 %v2451_v23, %v2450_v18  ;;  %v2453_v24 = vpop.f32.mrb[30].mxu1 }
 0x292   : > { %v2454_v25 = vpop.f32.mrb[31].mxu1 }
 0x293   : > { %v2455_v9 = vadd.f32 %v2454_v25, %v2453_v24  ;;  %v1979_v30 = vadd.f32 %v2452_v20, %v1915_v19  ;;  %v2416_v21 = vpop.f32.mrb[32].mxu0 }
 0x294   : > { %v2417_v27 = vpop.f32.mrb[33].mxu0 }
 0x295   : > { %v1982_v22 = vadd.f32 %v2455_v9, %v1918_v26  ;;  %v2418_v31 = vadd.f32 %v2417_v27, %v2416_v21  ;;  %v2419_v32 = vpop.f32.mrb[34].mxu0 }
 0x296   : > { %v2420_v33 = vpop.f32.mrb[35].mxu0 }
 0x297   : > { %v2456_v39 = vpop.f32.mrb[32].mxu1  ;;  %v1923_v37 = vadd.f32 %v2418_v31, %v2241_v55  ;;  %v2421_v34 = vadd.f32 %v2420_v33, %v2419_v32 }
 0x298   : > { %v2457_v36 = vpop.f32.mrb[33].mxu1 }
 0x299   : > { %v2458_v63 = vadd.f32 %v2457_v36, %v2456_v39  ;;  %v2459_v40 = vpop.f32.mrb[34].mxu1  ;;  %v1926_v42 = vadd.f32 %v2421_v34, %v2241_v55 }
 0x29a   : > { %v2460_v29 = vpop.f32.mrb[35].mxu1 }
 0x29b   : > { %v2461_v12 = vadd.f32 %v2460_v29, %v2459_v40  ;;  %v1987_v28 = vadd.f32 %v2458_v63, %v1923_v37  ;;  %v2422_v38 = vpop.f32.mrb[36].mxu0 }
 0x29c   : > { %v2423_v43 = vpop.f32.mrb[37].mxu0 }
 0x29d   : > { %v1990_v44 = vadd.f32 %v2461_v12, %v1926_v42  ;;  %v2424_v45 = vadd.f32 %v2423_v43, %v2422_v38  ;;  %v2425_v35 = vpop.f32.mrb[38].mxu0 }
 0x29e   : > { %v2426_v46 = vpop.f32.mrb[39].mxu0 }
 0x29f   : > { %v2462_v48 = vpop.f32.mrb[36].mxu1  ;;  %v1931_v49 = vadd.f32 %v2424_v45, %v2241_v55 }
 0x2a0   : > { %v2463_v51 = vpop.f32.mrb[37].mxu1 }
 0x2a1   : > { %v2464_v41 = vadd.f32 %v2463_v51, %v2462_v48  ;;  %v2465_v53 = vpop.f32.mrb[38].mxu1 }
 0x2a2   : > { %v2466_v50 = vpop.f32.mrb[39].mxu1 }
 0x2a3   : > { %v1995_v56 = vadd.f32 %v2464_v41, %v1931_v49  ;;  %v2486_v57 = vpop.f32.mrb[40].mxu0 }
 0x2a4   : > { %v2043_v60 = vadd.f32 %v2486_v57, %v1979_v30  ;;  %v2034_v61 = vpop.f32.mrb[41].mxu0 }
 0x2a5   : > { %v2035_v62 = vadd.f32 %v2034_v61, %v1971_v11  ;;  %v2487_v47 = vpop.f32.mrb[42].mxu0 }
 0x2a6   : > { %v2066_v1 = vmax.f32 %v2043_v60, 0.0  ;;  %v2046_v3 = vadd.f32 %v2487_v47, %v1982_v22  ;;  %v2037_v0 = vpop.f32.mrb[43].mxu0 }
 0x2a7   : > { %v2490_v5 = vpop.f32.mrb[40].mxu1  ;;  %v2064_v55 = vmax.f32 %v2035_v62, 0.0  ;;  %v2038_v59 = vadd.f32 %v2037_v0, %v1974_v13 }
 0x2a8   : > { %v2059_v52 = vadd.f32 %v2490_v5, %v1995_v56  ;;  %v2050_v6 = vpop.f32.mrb[41].mxu1  ;;  %2073 = vst.msk [vmem:[%s224_s6 + $0x10] sm:$0xff] %vm1121_vm9, %v2066_v1  ;;  %v2067_v58 = vmax.f32 %v2046_v3, 0.0 }
 0x2a9   : > { %v2051_v54 = vadd.f32 %v2050_v6, %v1987_v28  ;;  %v2491_v7 = vpop.f32.mrb[42].mxu1  ;;  %2071 = vst.msk [vmem:[%s224_s6] sm:$0xff] %vm1121_vm9, %v2064_v55  ;;  %v2065_v8 = vmax.f32 %v2038_v59, 0.0 }
 0x2aa   : > { %v2070_v10 = vmax.f32 %v2059_v52, 0.0  ;;  %v2053_v14 = vpop.f32.mrb[43].mxu1  ;;  %2074 = vst.msk [vmem:[%s224_s6 + $0x18] sm:$0xff] %vm1121_vm9, %v2067_v58 }
 0x2ab   : > { %v2068_v11 = vmax.f32 %v2051_v54, 0.0  ;;  %v2054_v15 = vadd.f32 %v2053_v14, %v1990_v44  ;;  %2072 = vst.msk [vmem:[%s224_s6 + $0x8] sm:$0xff] %vm1121_vm9, %v2065_v8 }
 0x2ac   : > { %2077 = vst.msk [vmem:[%s224_s6 + $0x30] sm:$0x1] %vm1508_vm7, %v2070_v10 }
 0x2ad   : > { %2075 = vst.msk [vmem:[%s224_s6 + $0x20] sm:$0xff] %vm1121_vm9, %v2068_v11  ;;  %v2069_v13 = vmax.f32 %v2054_v15, 0.0 }
 0x2af   : > { %2076 = vst.msk [vmem:[%s224_s6 + $0x28] sm:$0xff] %vm1121_vm9, %v2069_v13 }
 0x2b0 PF: > { %s15_s18 = sadd.s32 1, %s2585_s18  }
 0x2b1   : > { %p12_p4 = scmp.ge.s32.totalorder %s15_s18, 4  }
 0x2b3   :  { %14 = sbr.rel (!%p12_p4) target bundleno = 1 (0x1), region = 79 }

// kernel: qnetwork_forward.5
= control target key start
LH: loop header
LB: loop body
LE: loop exit
PB: predicated region body
PF: predicated region fallthrough
CT: control target
= control target key end

     0   :  { %vm4797_vm0 = vcmask 523264   ;;  %s10958_s1 = inlined_call_operand.vmem [shape: bf16[3136,512], index: 1, kind: input, shape index: {}]   ;;  %s10959_s0 = inlined_call_operand.vmem [shape: f32[8,3136], index: 0, kind: input, shape index: {}]   ;;  %s10960_s3 = inlined_call_operand.vmem [shape: bf16[512,128], index: 3, kind: input, shape index: {}]   ;;  %s10961_s2 = inlined_call_operand.vmem [shape: f32[1,512], index: 2, kind: input, shape index: {}]   ;;  %s10962_s4 = inlined_call_operand.vmem [shape: f32[1,128], index: 4, kind: input, shape index: {}]   ;;  %s10963_s5 = inlined_call_operand.vmem [shape: f32[8,128], index: 5, kind: output, shape index: {}]  }
   0x1   :  { %v7187_v0 = vld [vmem:[%s10958_s1 + $0x4] ss:$16 sps:$4 sm:$0xff]   ;;  %v7189_v1 = vld [vmem:[%s10958_s1 + $0xc] ss:$16 sps:$4 sm:$0xff]   ;;  %v7191_v2 = vld [vmem:[%s10958_s1] ss:$16 sps:$4 sm:$0xff]  }
   0x2   :  { %4801 = vmatprep.subr.bf16.mxu0 %v7187_v0  ;;  %v7192_v3 = vld [vmem:[%s10958_s1 + $0x8] ss:$16 sps:$4 sm:$0xff]   ;;  %5334 = vmatprep.subr.bf16.mxu1 %v7189_v1  ;;  %v7193_v4 = vld [vmem:[%s10958_s1 + $0x24] ss:$16 sps:$4 sm:$0xff]   ;;  %v7195_v5 = vld [vmem:[%s10958_s1 + $0x2c] ss:$16 sps:$4 sm:$0xff]  }
   0x3   :  { %4802 = vmatpush1.bf16.msra.mxu0 %v7191_v2  ;;  %5335 = vmatpush1.bf16.msra.mxu1 %v7192_v3  ;;  %v7197_v6 = vld [vmem:[%s10958_s1 + $0x20] ss:$16 sps:$4 sm:$0xff]   ;;  %v7198_v7 = vld [vmem:[%s10958_s1 + $0x28] ss:$16 sps:$4 sm:$0xff]   ;;  %v7199_v8 = vld [vmem:[%s10958_s1 + $0x44] ss:$16 sps:$4 sm:$0xff]  }
   0x4   :  { %4803 = vmatprep.subr.bf16.mxu0 %v7193_v4  ;;  %5336 = vmatprep.subr.bf16.mxu1 %v7195_v5  ;;  %v7201_v9 = vld [vmem:[%s10958_s1 + $0x4c] ss:$16 sps:$4 sm:$0xff]   ;;  %v7203_v10 = vld [vmem:[%s10958_s1 + $0x40] ss:$16 sps:$4 sm:$0xff]   ;;  %v7204_v11 = vld [vmem:[%s10958_s1 + $0x48] ss:$16 sps:$4 sm:$0xff]  }
   0x5   :  { %v7205_v12 = vld [vmem:[%s10958_s1 + $0x64] ss:$16 sps:$4 sm:$0xff]   ;;  %v7207_v13 = vld [vmem:[%s10958_s1 + $0x6c] ss:$16 sps:$4 sm:$0xff]   ;;  %v7209_v14 = vld [vmem:[%s10958_s1 + $0x60] ss:$16 sps:$4 sm:$0xff]  }
   0x6   :  { %v7210_v15 = vld [vmem:[%s10958_s1 + $0x68] ss:$16 sps:$4 sm:$0xff]   ;;  %v7211_v16 = vld [vmem:[%s10958_s1 + $0x84] ss:$16 sps:$4 sm:$0xff]   ;;  %v7213_v17 = vld [vmem:[%s10958_s1 + $0x8c] ss:$16 sps:$4 sm:$0xff]  }
   0x7   :  { %4804 = vmatpush1.bf16.msra.mxu0 %v7197_v6  ;;  %5337 = vmatpush1.bf16.msra.mxu1 %v7198_v7  ;;  %v7215_v18 = vld [vmem:[%s10958_s1 + $0x80] ss:$16 sps:$4 sm:$0xff]   ;;  %v7216_v19 = vld [vmem:[%s10958_s1 + $0x88] ss:$16 sps:$4 sm:$0xff]   ;;  %v7217_v20 = vld [vmem:[%s10958_s1 + $0xa4] ss:$16 sps:$4 sm:$0xff]  }
   0x8   :  { %4805 = vmatprep.subr.bf16.mxu0 %v7199_v8  ;;  %5338 = vmatprep.subr.bf16.mxu1 %v7201_v9  ;;  %v7219_v21 = vld [vmem:[%s10958_s1 + $0xac] ss:$16 sps:$4 sm:$0xff]   ;;  %v7221_v22 = vld [vmem:[%s10958_s1 + $0xa0] ss:$16 sps:$4 sm:$0xff]   ;;  %v7222_v23 = vld [vmem:[%s10958_s1 + $0xa8] ss:$16 sps:$4 sm:$0xff]  }
   0x9   :  { %v7223_v24 = vld [vmem:[%s10958_s1 + $0xc4] ss:$16 sps:$4 sm:$0xff]   ;;  %v7225_v25 = vld [vmem:[%s10958_s1 + $0xcc] ss:$16 sps:$4 sm:$0xff]   ;;  %v7227_v26 = vld [vmem:[%s10958_s1 + $0xc0] ss:$16 sps:$4 sm:$0xff]  }
   0xa   :  { %v7228_v27 = vld [vmem:[%s10958_s1 + $0xc8] ss:$16 sps:$4 sm:$0xff]   ;;  %v7229_v28 = vld [vmem:[%s10958_s1 + $0xe4] ss:$16 sps:$4 sm:$0xff]   ;;  %v7231_v29 = vld [vmem:[%s10958_s1 + $0xec] ss:$16 sps:$4 sm:$0xff]  }
   0xb   :  { %4806 = vmatpush1.bf16.msra.mxu0 %v7203_v10  ;;  %5339 = vmatpush1.bf16.msra.mxu1 %v7204_v11  ;;  %v7233_v30 = vld [vmem:[%s10958_s1 + $0xe0] ss:$16 sps:$4 sm:$0xff]   ;;  %v7234_v31 = vld [vmem:[%s10958_s1 + $0xe8] ss:$16 sps:$4 sm:$0xff]   ;;  %v7235_v32 = vld [vmem:[%s10958_s1 + $0x104] ss:$16 sps:$4 sm:$0xff]  }
   0xc   :  { %4807 = vmatprep.subr.bf16.mxu0 %v7205_v12  ;;  %5340 = vmatprep.subr.bf16.mxu1 %v7207_v13  ;;  %v7237_v33 = vld [vmem:[%s10958_s1 + $0x10c] ss:$16 sps:$4 sm:$0xff]   ;;  %v7239_v34 = vld [vmem:[%s10958_s1 + $0x100] ss:$16 sps:$4 sm:$0xff]   ;;  %v7240_v35 = vld [vmem:[%s10958_s1 + $0x108] ss:$16 sps:$4 sm:$0xff]  }
   0xd   :  { %v7241_v36 = vld [vmem:[%s10958_s1 + $0x124] ss:$16 sps:$4 sm:$0xff]   ;;  %v7243_v37 = vld [vmem:[%s10958_s1 + $0x12c] ss:$16 sps:$4 sm:$0xff]   ;;  %v7245_v38 = vld [vmem:[%s10958_s1 + $0x120] ss:$16 sps:$4 sm:$0xff]  }
   0xe   :  { %v7246_v39 = vld [vmem:[%s10958_s1 + $0x128] ss:$16 sps:$4 sm:$0xff]   ;;  %v7247_v40 = vld [vmem:[%s10958_s1 + $0x144] ss:$16 sps:$4 sm:$0xff]   ;;  %v7249_v41 = vld [vmem:[%s10958_s1 + $0x14c] ss:$16 sps:$4 sm:$0xff]  }
   0xf   :  { %4808 = vmatpush1.bf16.msra.mxu0 %v7209_v14  ;;  %5341 = vmatpush1.bf16.msra.mxu1 %v7210_v15  ;;  %v7251_v42 = vld [vmem:[%s10958_s1 + $0x140] ss:$16 sps:$4 sm:$0xff]   ;;  %v7252_v43 = vld [vmem:[%s10958_s1 + $0x148] ss:$16 sps:$4 sm:$0xff]   ;;  %v7253_v44 = vld [vmem:[%s10958_s1 + $0x164] ss:$16 sps:$4 sm:$0xff]  }
  0x10   :  { %4809 = vmatprep.subr.bf16.mxu0 %v7211_v16  ;;  %5342 = vmatprep.subr.bf16.mxu1 %v7213_v17  ;;  %v7255_v45 = vld [vmem:[%s10958_s1 + $0x16c] ss:$16 sps:$4 sm:$0xff]   ;;  %v7257_v47 = vld [vmem:[%s10958_s1 + $0x160] ss:$16 sps:$4 sm:$0xff]   ;;  %v7258_v49 = vld [vmem:[%s10958_s1 + $0x168] ss:$16 sps:$4 sm:$0xff]  }
  0x11   :  { %v22_v46 = vld [vmem:[%s10959_s0 + $0x8] sm:$0xff]  ;;  %v7259_v50 = vld [vmem:[%s10958_s1 + $0x184] ss:$16 sps:$4 sm:$0xff]   ;;  %v7263_v52 = vld [vmem:[%s10958_s1 + $0x180] ss:$16 sps:$4 sm:$0xff]  }
  0x12   :  { %v47_v48 = vpack.c.bf16 %v22_v46, %v22_v46  ;;  %v7261_v51 = vld [vmem:[%s10958_s1 + $0x18c] ss:$16 sps:$4 sm:$0xff]   ;;  %v7264_v53 = vld [vmem:[%s10958_s1 + $0x188] ss:$16 sps:$4 sm:$0xff]   ;;  %v7265_v54 = vld [vmem:[%s10958_s1 + $0x1a4] ss:$16 sps:$4 sm:$0xff]  }
  0x13   :  { %4810 = vmatpush1.bf16.msra.mxu0 %v7215_v18  ;;  %5343 = vmatpush1.bf16.msra.mxu1 %v7216_v19  ;;  %v7267_v55 = vld [vmem:[%s10958_s1 + $0x1ac] ss:$16 sps:$4 sm:$0xff]   ;;  %v7269_v56 = vld [vmem:[%s10958_s1 + $0x1a0] ss:$16 sps:$4 sm:$0xff]   ;;  %v7270_v57 = vld [vmem:[%s10958_s1 + $0x1a8] ss:$16 sps:$4 sm:$0xff]  }
  0x14   :  { %4811 = vmatprep.subr.bf16.mxu0 %v7217_v20  ;;  %5344 = vmatprep.subr.bf16.mxu1 %v7219_v21  ;;  %v7271_v58 = vld [vmem:[%s10958_s1 + $0x1c4] ss:$16 sps:$4 sm:$0xff]   ;;  %v7273_v59 = vld [vmem:[%s10958_s1 + $0x1cc] ss:$16 sps:$4 sm:$0xff]   ;;  %v7275_v60 = vld [vmem:[%s10958_s1 + $0x1c0] ss:$16 sps:$4 sm:$0xff]  }
  0x15   :  { %4833 = vmatprep.mubr.bf16.mxu0 %v47_v48  ;;  %5366 = vmatprep.mubr.bf16.mxu1 %v47_v48  ;;  %v7276_v61 = vld [vmem:[%s10958_s1 + $0x1c8] ss:$16 sps:$4 sm:$0xff]   ;;  %v7277_v62 = vld [vmem:[%s10958_s1 + $0x1e4] ss:$16 sps:$4 sm:$0xff]   ;;  %v7279_v63 = vld [vmem:[%s10958_s1 + $0x1ec] ss:$16 sps:$4 sm:$0xff]  }
  0x16   :  { %v7281_v0 = vld [vmem:[%s10958_s1 + $0x1e0] ss:$16 sps:$4 sm:$0xff]   ;;  %v7282_v1 = vld [vmem:[%s10958_s1 + $0x1e8] ss:$16 sps:$4 sm:$0xff]   ;;  %v7285_v3 = vld [vmem:[%s10958_s1 + $0x204] ss:$16 sps:$4 sm:$0xff]  }
  0x17   :  { %4812 = vmatpush1.bf16.msra.mxu0 %v7221_v22  ;;  %5345 = vmatpush1.bf16.msra.mxu1 %v7222_v23  ;;  %v21_v2 = vld [vmem:[%s10959_s0] sm:$0xff]  ;;  %v7288_v4 = vld [vmem:[%s10958_s1 + $0x20c] ss:$16 sps:$4 sm:$0xff]   ;;  %v7286_v7 = vld [vmem:[%s10958_s1 + $0x208] ss:$16 sps:$4 sm:$0xff]  }
  0x18   :  { %4813 = vmatprep.subr.bf16.mxu0 %v7223_v24  ;;  %5346 = vmatprep.subr.bf16.mxu1 %v7225_v25  ;;  %v46_v5 = vpack.c.bf16 %v21_v2, %v21_v2  ;;  %v7283_v6 = vld [vmem:[%s10958_s1 + $0x200] ss:$16 sps:$4 sm:$0xff]   ;;  %v7291_v8 = vld [vmem:[%s10958_s1 + $0x224] ss:$16 sps:$4 sm:$0xff]   ;;  %v7294_v9 = vld [vmem:[%s10958_s1 + $0x22c] ss:$16 sps:$4 sm:$0xff]  }
  0x19   :  { %v7289_v10 = vld [vmem:[%s10958_s1 + $0x220] ss:$16 sps:$4 sm:$0xff]   ;;  %v7292_v11 = vld [vmem:[%s10958_s1 + $0x228] ss:$16 sps:$4 sm:$0xff]   ;;  %v7297_v12 = vld [vmem:[%s10958_s1 + $0x244] ss:$16 sps:$4 sm:$0xff]  }
  0x1a   :  { %v7300_v13 = vld [vmem:[%s10958_s1 + $0x24c] ss:$16 sps:$4 sm:$0xff]   ;;  %v7295_v14 = vld [vmem:[%s10958_s1 + $0x240] ss:$16 sps:$4 sm:$0xff]   ;;  %v7298_v15 = vld [vmem:[%s10958_s1 + $0x248] ss:$16 sps:$4 sm:$0xff]  }
  0x1b   :  { %4814 = vmatpush1.bf16.msra.mxu0 %v7227_v26  ;;  %5347 = vmatpush1.bf16.msra.mxu1 %v7228_v27  ;;  %v7303_v16 = vld [vmem:[%s10958_s1 + $0x264] ss:$16 sps:$4 sm:$0xff]   ;;  %v7306_v17 = vld [vmem:[%s10958_s1 + $0x26c] ss:$16 sps:$4 sm:$0xff]   ;;  %v7301_v18 = vld [vmem:[%s10958_s1 + $0x260] ss:$16 sps:$4 sm:$0xff]  }
  0x1c   :  { %4815 = vmatprep.subr.bf16.mxu0 %v7229_v28  ;;  %5348 = vmatprep.subr.bf16.mxu1 %v7231_v29  ;;  %v7304_v19 = vld [vmem:[%s10958_s1 + $0x268] ss:$16 sps:$4 sm:$0xff]   ;;  %v7309_v20 = vld [vmem:[%s10958_s1 + $0x284] ss:$16 sps:$4 sm:$0xff]   ;;  %v7312_v21 = vld [vmem:[%s10958_s1 + $0x28c] ss:$16 sps:$4 sm:$0xff]  }
  0x1d   :  { %v7307_v22 = vld [vmem:[%s10958_s1 + $0x280] ss:$16 sps:$4 sm:$0xff]   ;;  %v7310_v23 = vld [vmem:[%s10958_s1 + $0x288] ss:$16 sps:$4 sm:$0xff]   ;;  %v7315_v24 = vld [vmem:[%s10958_s1 + $0x2a4] ss:$16 sps:$4 sm:$0xff]  }
  0x1e   :  { %v7318_v25 = vld [vmem:[%s10958_s1 + $0x2ac] ss:$16 sps:$4 sm:$0xff]   ;;  %v7313_v26 = vld [vmem:[%s10958_s1 + $0x2a0] ss:$16 sps:$4 sm:$0xff]   ;;  %v7316_v27 = vld [vmem:[%s10958_s1 + $0x2a8] ss:$16 sps:$4 sm:$0xff]  }
  0x1f   :  { %4816 = vmatpush1.bf16.msra.mxu0 %v7233_v30  ;;  %5349 = vmatpush1.bf16.msra.mxu1 %v7234_v31  ;;  %v7321_v28 = vld [vmem:[%s10958_s1 + $0x2c4] ss:$16 sps:$4 sm:$0xff]   ;;  %v7324_v29 = vld [vmem:[%s10958_s1 + $0x2cc] ss:$16 sps:$4 sm:$0xff]   ;;  %v7319_v31 = vld [vmem:[%s10958_s1 + $0x2c0] ss:$16 sps:$4 sm:$0xff]  }
  0x20   :  { %4817 = vmatprep.subr.bf16.mxu0 %v7235_v32  ;;  %5350 = vmatprep.subr.bf16.mxu1 %v7237_v33  ;;  %v24_v30 = vld [vmem:[%s10959_s0 + $0x18] sm:$0xff]  ;;  %v7345_v46 = vld [vmem:[%s10958_s1 + $0x344] ss:$16 sps:$4 sm:$0xff]   ;;  %v7343_v48 = vld [vmem:[%s10958_s1 + $0x340] ss:$16 sps:$4 sm:$0xff]  }
  0x21   :  { %v49_v32 = vpack.c.bf16 %v24_v30, %v24_v30  ;;  %v7322_v33 = vld [vmem:[%s10958_s1 + $0x2c8] ss:$16 sps:$4 sm:$0xff]   ;;  %v7375_v2 = vld [vmem:[%s10958_s1 + $0x3e4] ss:$16 sps:$4 sm:$0xff]  }
  0x22   :  { %v7411_v30 = vld [vmem:[%s10958_s1 + $0x4a4] ss:$16 sps:$4 sm:$0xff]  }
  0x23   :  { %4818 = vmatpush1.bf16.msra.mxu0 %v7239_v34  ;;  %5351 = vmatpush1.bf16.msra.mxu1 %v7240_v35  ;;  %v7327_v34 = vld [vmem:[%s10958_s1 + $0x2e4] ss:$16 sps:$4 sm:$0xff]   ;;  %v7330_v35 = vld [vmem:[%s10958_s1 + $0x2ec] ss:$16 sps:$4 sm:$0xff]  }
  0x24   :  { %4819 = vmatprep.subr.bf16.mxu0 %v7241_v36  ;;  %5352 = vmatprep.subr.bf16.mxu1 %v7243_v37  ;;  %v7325_v36 = vld [vmem:[%s10958_s1 + $0x2e0] ss:$16 sps:$4 sm:$0xff]   ;;  %v7328_v37 = vld [vmem:[%s10958_s1 + $0x2e8] ss:$16 sps:$4 sm:$0xff]  }
  0x27   :  { %4820 = vmatpush1.bf16.msra.mxu0 %v7245_v38  ;;  %5353 = vmatpush1.bf16.msra.mxu1 %v7246_v39  ;;  %v7333_v38 = vld [vmem:[%s10958_s1 + $0x304] ss:$16 sps:$4 sm:$0xff]   ;;  %v7336_v39 = vld [vmem:[%s10958_s1 + $0x30c] ss:$16 sps:$4 sm:$0xff]  }
  0x28   :  { %4821 = vmatprep.subr.bf16.mxu0 %v7247_v40  ;;  %5354 = vmatprep.subr.bf16.mxu1 %v7249_v41  ;;  %v7331_v40 = vld [vmem:[%s10958_s1 + $0x300] ss:$16 sps:$4 sm:$0xff]   ;;  %v7334_v41 = vld [vmem:[%s10958_s1 + $0x308] ss:$16 sps:$4 sm:$0xff]  }
  0x2b   :  { %4822 = vmatpush1.bf16.msra.mxu0 %v7251_v42  ;;  %5355 = vmatpush1.bf16.msra.mxu1 %v7252_v43  ;;  %v7339_v42 = vld [vmem:[%s10958_s1 + $0x324] ss:$16 sps:$4 sm:$0xff]   ;;  %v7342_v43 = vld [vmem:[%s10958_s1 + $0x32c] ss:$16 sps:$4 sm:$0xff]  }
  0x2c   :  { %4823 = vmatprep.subr.bf16.mxu0 %v7253_v44  ;;  %5356 = vmatprep.subr.bf16.mxu1 %v7255_v45  ;;  %v7337_v44 = vld [vmem:[%s10958_s1 + $0x320] ss:$16 sps:$4 sm:$0xff]   ;;  %v7340_v45 = vld [vmem:[%s10958_s1 + $0x328] ss:$16 sps:$4 sm:$0xff]  }
  0x2f   :  { %4824 = vmatpush1.bf16.msra.mxu0 %v7257_v47  ;;  %5357 = vmatpush1.bf16.msra.mxu1 %v7258_v49  ;;  %v7348_v47 = vld [vmem:[%s10958_s1 + $0x34c] ss:$16 sps:$4 sm:$0xff]   ;;  %v7346_v49 = vld [vmem:[%s10958_s1 + $0x348] ss:$16 sps:$4 sm:$0xff]  }
  0x30   :  { %4825 = vmatprep.subr.bf16.mxu0 %v7259_v50  ;;  %5358 = vmatprep.subr.bf16.mxu1 %v7261_v51  ;;  %v7351_v50 = vld [vmem:[%s10958_s1 + $0x364] ss:$16 sps:$4 sm:$0xff]   ;;  %v7354_v51 = vld [vmem:[%s10958_s1 + $0x36c] ss:$16 sps:$4 sm:$0xff]  }
  0x33   :  { %4826 = vmatpush1.bf16.msra.mxu0 %v7263_v52  ;;  %5359 = vmatpush1.bf16.msra.mxu1 %v7264_v53  ;;  %v7349_v52 = vld [vmem:[%s10958_s1 + $0x360] ss:$16 sps:$4 sm:$0xff]   ;;  %v7352_v53 = vld [vmem:[%s10958_s1 + $0x368] ss:$16 sps:$4 sm:$0xff]  }
  0x34   :  { %4827 = vmatprep.subr.bf16.mxu0 %v7265_v54  ;;  %5360 = vmatprep.subr.bf16.mxu1 %v7267_v55  ;;  %v7357_v54 = vld [vmem:[%s10958_s1 + $0x384] ss:$16 sps:$4 sm:$0xff]   ;;  %v7360_v55 = vld [vmem:[%s10958_s1 + $0x38c] ss:$16 sps:$4 sm:$0xff]  }
  0x37   :  { %4828 = vmatpush1.bf16.msra.mxu0 %v7269_v56  ;;  %5361 = vmatpush1.bf16.msra.mxu1 %v7270_v57  ;;  %v7355_v56 = vld [vmem:[%s10958_s1 + $0x380] ss:$16 sps:$4 sm:$0xff]   ;;  %v7358_v57 = vld [vmem:[%s10958_s1 + $0x388] ss:$16 sps:$4 sm:$0xff]  }
  0x38   :  { %4829 = vmatprep.subr.bf16.mxu0 %v7271_v58  ;;  %5362 = vmatprep.subr.bf16.mxu1 %v7273_v59  ;;  %v7363_v58 = vld [vmem:[%s10958_s1 + $0x3a4] ss:$16 sps:$4 sm:$0xff]   ;;  %v7366_v59 = vld [vmem:[%s10958_s1 + $0x3ac] ss:$16 sps:$4 sm:$0xff]  }
  0x3b   :  { %4830 = vmatpush1.bf16.msra.mxu0 %v7275_v60  ;;  %5363 = vmatpush1.bf16.msra.mxu1 %v7276_v61  ;;  %v7361_v60 = vld [vmem:[%s10958_s1 + $0x3a0] ss:$16 sps:$4 sm:$0xff]   ;;  %v7364_v61 = vld [vmem:[%s10958_s1 + $0x3a8] ss:$16 sps:$4 sm:$0xff]  }
  0x3c   :  { %4831 = vmatprep.subr.bf16.mxu0 %v7277_v62  ;;  %5364 = vmatprep.subr.bf16.mxu1 %v7279_v63  ;;  %v7369_v62 = vld [vmem:[%s10958_s1 + $0x3c4] ss:$16 sps:$4 sm:$0xff]   ;;  %v7372_v63 = vld [vmem:[%s10958_s1 + $0x3cc] ss:$16 sps:$4 sm:$0xff]  }
  0x3f   :  { %4832 = vmatpush1.bf16.msra.mxu0 %v7281_v0  ;;  %5365 = vmatpush1.bf16.msra.mxu1 %v7282_v1  ;;  %v7367_v0 = vld [vmem:[%s10958_s1 + $0x3c0] ss:$16 sps:$4 sm:$0xff]   ;;  %v7370_v1 = vld [vmem:[%s10958_s1 + $0x3c8] ss:$16 sps:$4 sm:$0xff]  }
  0x40   :  { %4842 = vmatprep.subr.bf16.mxu0 %v7285_v3  ;;  %5375 = vmatprep.subr.bf16.mxu1 %v7288_v4  ;;  %v7378_v3 = vld [vmem:[%s10958_s1 + $0x3ec] ss:$16 sps:$4 sm:$0xff]   ;;  %v7373_v4 = vld [vmem:[%s10958_s1 + $0x3e0] ss:$16 sps:$4 sm:$0xff]  }
  0x42   :  { %4834 = vmatmul.mubr.bf16.vlgmr.msra.gmra.mrb[0].mxu0 %v46_v5  ;;  %5367 = vmatmul.mubr.bf16.vlgmr.msra.gmra.mrb[0].mxu1 %v46_v5  ;;  %v7376_v5 = vld [vmem:[%s10958_s1 + $0x3e8] ss:$16 sps:$4 sm:$0xff]  }
  0x43   :  { %4843 = vmatpush1.bf16.msra.mxu0 %v7283_v6  ;;  %5376 = vmatpush1.bf16.msra.mxu1 %v7286_v7  ;;  %v7381_v6 = vld [vmem:[%s10958_s1 + $0x404] ss:$16 sps:$4 sm:$0xff]  }
  0x44   :  { %4844 = vmatprep.subr.bf16.mxu0 %v7291_v8  ;;  %5377 = vmatprep.subr.bf16.mxu1 %v7294_v9  ;;  %v23_v7 = vld [vmem:[%s10959_s0 + $0x10] sm:$0xff]  ;;  %v7384_v8 = vld [vmem:[%s10958_s1 + $0x40c] ss:$16 sps:$4 sm:$0xff]  }
  0x45   :  { %4874 = vmatprep.mubr.bf16.mxu0 %v49_v32  ;;  %5407 = vmatprep.mubr.bf16.mxu1 %v49_v32  ;;  %v7379_v9 = vld [vmem:[%s10958_s1 + $0x400] ss:$16 sps:$4 sm:$0xff]  }
  0x46   :  { %v7409_v32 = vld [vmem:[%s10958_s1 + $0x4a0] ss:$16 sps:$4 sm:$0xff]  }
  0x47   :  { %4845 = vmatpush1.bf16.msra.mxu0 %v7289_v10  ;;  %5378 = vmatpush1.bf16.msra.mxu1 %v7292_v11  ;;  %v7382_v10 = vld [vmem:[%s10958_s1 + $0x408] ss:$16 sps:$4 sm:$0xff]   ;;  %v48_v11 = vpack.c.bf16 %v23_v7, %v23_v7  ;;  %v7474_v7 = vld [vmem:[%s10958_s1 + $0x5ec] ss:$16 sps:$4 sm:$0xff]  }
  0x48   :  { %4846 = vmatprep.subr.bf16.mxu0 %v7297_v12  ;;  %5379 = vmatprep.subr.bf16.mxu1 %v7300_v13  ;;  %v7387_v12 = vld [vmem:[%s10958_s1 + $0x424] ss:$16 sps:$4 sm:$0xff]   ;;  %v7390_v13 = vld [vmem:[%s10958_s1 + $0x42c] ss:$16 sps:$4 sm:$0xff]  }
  0x4b   :  { %4847 = vmatpush1.bf16.msra.mxu0 %v7295_v14  ;;  %5380 = vmatpush1.bf16.msra.mxu1 %v7298_v15  ;;  %v26_v14 = vld [vmem:[%s10959_s0 + $0x28] sm:$0xff] }
  0x4c   :  { %4848 = vmatprep.subr.bf16.mxu0 %v7303_v16  ;;  %5381 = vmatprep.subr.bf16.mxu1 %v7306_v17  ;;  %v51_v15 = vpack.c.bf16 %v26_v14, %v26_v14  ;;  %v7385_v16 = vld [vmem:[%s10958_s1 + $0x420] ss:$16 sps:$4 sm:$0xff]   ;;  %v7388_v17 = vld [vmem:[%s10958_s1 + $0x428] ss:$16 sps:$4 sm:$0xff]  }
  0x4d   :  { %v7478_v14 = vld [vmem:[%s10958_s1 + $0x608] ss:$16 sps:$4 sm:$0xff]  }
  0x4f   :  { %4849 = vmatpush1.bf16.msra.mxu0 %v7301_v18  ;;  %5382 = vmatpush1.bf16.msra.mxu1 %v7304_v19  ;;  %v7393_v18 = vld [vmem:[%s10958_s1 + $0x444] ss:$16 sps:$4 sm:$0xff]   ;;  %v7396_v19 = vld [vmem:[%s10958_s1 + $0x44c] ss:$16 sps:$4 sm:$0xff]  }
  0x50   :  { %4850 = vmatprep.subr.bf16.mxu0 %v7309_v20  ;;  %5383 = vmatprep.subr.bf16.mxu1 %v7312_v21  ;;  %v7391_v20 = vld [vmem:[%s10958_s1 + $0x440] ss:$16 sps:$4 sm:$0xff]   ;;  %v7394_v21 = vld [vmem:[%s10958_s1 + $0x448] ss:$16 sps:$4 sm:$0xff]  }
  0x53   :  { %4851 = vmatpush1.bf16.msra.mxu0 %v7307_v22  ;;  %5384 = vmatpush1.bf16.msra.mxu1 %v7310_v23  ;;  %v7399_v22 = vld [vmem:[%s10958_s1 + $0x464] ss:$16 sps:$4 sm:$0xff]   ;;  %v7402_v23 = vld [vmem:[%s10958_s1 + $0x46c] ss:$16 sps:$4 sm:$0xff]  }
  0x54   :  { %4852 = vmatprep.subr.bf16.mxu0 %v7315_v24  ;;  %5385 = vmatprep.subr.bf16.mxu1 %v7318_v25  ;;  %v7397_v24 = vld [vmem:[%s10958_s1 + $0x460] ss:$16 sps:$4 sm:$0xff]   ;;  %v7400_v25 = vld [vmem:[%s10958_s1 + $0x468] ss:$16 sps:$4 sm:$0xff]  }
  0x57   :  { %4853 = vmatpush1.bf16.msra.mxu0 %v7313_v26  ;;  %5386 = vmatpush1.bf16.msra.mxu1 %v7316_v27  ;;  %v7405_v26 = vld [vmem:[%s10958_s1 + $0x484] ss:$16 sps:$4 sm:$0xff]   ;;  %v7408_v27 = vld [vmem:[%s10958_s1 + $0x48c] ss:$16 sps:$4 sm:$0xff]  }
  0x58   :  { %4854 = vmatprep.subr.bf16.mxu0 %v7321_v28  ;;  %5387 = vmatprep.subr.bf16.mxu1 %v7324_v29  ;;  %v7403_v28 = vld [vmem:[%s10958_s1 + $0x480] ss:$16 sps:$4 sm:$0xff]   ;;  %v7406_v29 = vld [vmem:[%s10958_s1 + $0x488] ss:$16 sps:$4 sm:$0xff]  }
  0x5b   :  { %4855 = vmatpush1.bf16.msra.mxu0 %v7319_v31  ;;  %5388 = vmatpush1.bf16.msra.mxu1 %v7322_v33  ;;  %v7414_v31 = vld [vmem:[%s10958_s1 + $0x4ac] ss:$16 sps:$4 sm:$0xff]   ;;  %v7412_v33 = vld [vmem:[%s10958_s1 + $0x4a8] ss:$16 sps:$4 sm:$0xff]  }
  0x5c   :  { %4856 = vmatprep.subr.bf16.mxu0 %v7327_v34  ;;  %5389 = vmatprep.subr.bf16.mxu1 %v7330_v35  ;;  %v7417_v34 = vld [vmem:[%s10958_s1 + $0x4c4] ss:$16 sps:$4 sm:$0xff]   ;;  %v7420_v35 = vld [vmem:[%s10958_s1 + $0x4cc] ss:$16 sps:$4 sm:$0xff]  }
  0x5f   :  { %4857 = vmatpush1.bf16.msra.mxu0 %v7325_v36  ;;  %5390 = vmatpush1.bf16.msra.mxu1 %v7328_v37  ;;  %v7415_v36 = vld [vmem:[%s10958_s1 + $0x4c0] ss:$16 sps:$4 sm:$0xff]   ;;  %v7418_v37 = vld [vmem:[%s10958_s1 + $0x4c8] ss:$16 sps:$4 sm:$0xff]  }
  0x60   :  { %4858 = vmatprep.subr.bf16.mxu0 %v7333_v38  ;;  %5391 = vmatprep.subr.bf16.mxu1 %v7336_v39  ;;  %v7423_v38 = vld [vmem:[%s10958_s1 + $0x4e4] ss:$16 sps:$4 sm:$0xff]   ;;  %v7426_v39 = vld [vmem:[%s10958_s1 + $0x4ec] ss:$16 sps:$4 sm:$0xff]  }
  0x63   :  { %4859 = vmatpush1.bf16.msra.mxu0 %v7331_v40  ;;  %5392 = vmatpush1.bf16.msra.mxu1 %v7334_v41  ;;  %v7421_v40 = vld [vmem:[%s10958_s1 + $0x4e0] ss:$16 sps:$4 sm:$0xff]   ;;  %v7424_v41 = vld [vmem:[%s10958_s1 + $0x4e8] ss:$16 sps:$4 sm:$0xff]  }
  0x64   :  { %4860 = vmatprep.subr.bf16.mxu0 %v7339_v42  ;;  %5393 = vmatprep.subr.bf16.mxu1 %v7342_v43  ;;  %v7429_v42 = vld [vmem:[%s10958_s1 + $0x504] ss:$16 sps:$4 sm:$0xff]   ;;  %v7432_v43 = vld [vmem:[%s10958_s1 + $0x50c] ss:$16 sps:$4 sm:$0xff]  }
  0x67   :  { %4861 = vmatpush1.bf16.msra.mxu0 %v7337_v44  ;;  %5394 = vmatpush1.bf16.msra.mxu1 %v7340_v45  ;;  %v7427_v44 = vld [vmem:[%s10958_s1 + $0x500] ss:$16 sps:$4 sm:$0xff]   ;;  %v7430_v45 = vld [vmem:[%s10958_s1 + $0x508] ss:$16 sps:$4 sm:$0xff]  }
  0x68   :  { %4862 = vmatprep.subr.bf16.mxu0 %v7345_v46  ;;  %5395 = vmatprep.subr.bf16.mxu1 %v7348_v47  ;;  %v7435_v46 = vld [vmem:[%s10958_s1 + $0x524] ss:$16 sps:$4 sm:$0xff]   ;;  %v7438_v47 = vld [vmem:[%s10958_s1 + $0x52c] ss:$16 sps:$4 sm:$0xff]  }
  0x6b   :  { %4863 = vmatpush1.bf16.msra.mxu0 %v7343_v48  ;;  %5396 = vmatpush1.bf16.msra.mxu1 %v7346_v49  ;;  %v7433_v48 = vld [vmem:[%s10958_s1 + $0x520] ss:$16 sps:$4 sm:$0xff]   ;;  %v7436_v49 = vld [vmem:[%s10958_s1 + $0x528] ss:$16 sps:$4 sm:$0xff]  }
  0x6c   :  { %4864 = vmatprep.subr.bf16.mxu0 %v7351_v50  ;;  %5397 = vmatprep.subr.bf16.mxu1 %v7354_v51  ;;  %v7441_v50 = vld [vmem:[%s10958_s1 + $0x544] ss:$16 sps:$4 sm:$0xff]   ;;  %v7444_v51 = vld [vmem:[%s10958_s1 + $0x54c] ss:$16 sps:$4 sm:$0xff]  }
  0x6f   :  { %4865 = vmatpush1.bf16.msra.mxu0 %v7349_v52  ;;  %5398 = vmatpush1.bf16.msra.mxu1 %v7352_v53  ;;  %v7439_v52 = vld [vmem:[%s10958_s1 + $0x540] ss:$16 sps:$4 sm:$0xff]   ;;  %v7442_v53 = vld [vmem:[%s10958_s1 + $0x548] ss:$16 sps:$4 sm:$0xff]  }
  0x70   :  { %4866 = vmatprep.subr.bf16.mxu0 %v7357_v54  ;;  %5399 = vmatprep.subr.bf16.mxu1 %v7360_v55  ;;  %v7447_v54 = vld [vmem:[%s10958_s1 + $0x564] ss:$16 sps:$4 sm:$0xff]   ;;  %v7450_v55 = vld [vmem:[%s10958_s1 + $0x56c] ss:$16 sps:$4 sm:$0xff]  }
  0x73   :  { %4867 = vmatpush1.bf16.msra.mxu0 %v7355_v56  ;;  %5400 = vmatpush1.bf16.msra.mxu1 %v7358_v57  ;;  %v7445_v56 = vld [vmem:[%s10958_s1 + $0x560] ss:$16 sps:$4 sm:$0xff]   ;;  %v7448_v57 = vld [vmem:[%s10958_s1 + $0x568] ss:$16 sps:$4 sm:$0xff]  }
  0x74   :  { %4868 = vmatprep.subr.bf16.mxu0 %v7363_v58  ;;  %5401 = vmatprep.subr.bf16.mxu1 %v7366_v59  ;;  %v7453_v58 = vld [vmem:[%s10958_s1 + $0x584] ss:$16 sps:$4 sm:$0xff]   ;;  %v7456_v59 = vld [vmem:[%s10958_s1 + $0x58c] ss:$16 sps:$4 sm:$0xff]  }
  0x77   :  { %4869 = vmatpush1.bf16.msra.mxu0 %v7361_v60  ;;  %5402 = vmatpush1.bf16.msra.mxu1 %v7364_v61  ;;  %v7451_v60 = vld [vmem:[%s10958_s1 + $0x580] ss:$16 sps:$4 sm:$0xff]   ;;  %v7454_v61 = vld [vmem:[%s10958_s1 + $0x588] ss:$16 sps:$4 sm:$0xff]  }
  0x78   :  { %4870 = vmatprep.subr.bf16.mxu0 %v7369_v62  ;;  %5403 = vmatprep.subr.bf16.mxu1 %v7372_v63  ;;  %v7459_v62 = vld [vmem:[%s10958_s1 + $0x5a4] ss:$16 sps:$4 sm:$0xff]   ;;  %v7462_v63 = vld [vmem:[%s10958_s1 + $0x5ac] ss:$16 sps:$4 sm:$0xff]  }
  0x7b   :  { %4871 = vmatpush1.bf16.msra.mxu0 %v7367_v0  ;;  %5404 = vmatpush1.bf16.msra.mxu1 %v7370_v1  ;;  %v7457_v0 = vld [vmem:[%s10958_s1 + $0x5a0] ss:$16 sps:$4 sm:$0xff]   ;;  %v7460_v1 = vld [vmem:[%s10958_s1 + $0x5a8] ss:$16 sps:$4 sm:$0xff]  }
  0x7c   :  { %4872 = vmatprep.subr.bf16.mxu0 %v7375_v2  ;;  %5405 = vmatprep.subr.bf16.mxu1 %v7378_v3  ;;  %v7465_v2 = vld [vmem:[%s10958_s1 + $0x5c4] ss:$16 sps:$4 sm:$0xff]   ;;  %v7468_v3 = vld [vmem:[%s10958_s1 + $0x5cc] ss:$16 sps:$4 sm:$0xff]  }
  0x7f   :  { %4873 = vmatpush1.bf16.msra.mxu0 %v7373_v4  ;;  %5406 = vmatpush1.bf16.msra.mxu1 %v7376_v5  ;;  %v7463_v4 = vld [vmem:[%s10958_s1 + $0x5c0] ss:$16 sps:$4 sm:$0xff]   ;;  %v7466_v5 = vld [vmem:[%s10958_s1 + $0x5c8] ss:$16 sps:$4 sm:$0xff]  }
  0x80   :  { %4883 = vmatprep.subr.bf16.mxu0 %v7381_v6  ;;  %5416 = vmatprep.subr.bf16.mxu1 %v7384_v8  ;;  %v7471_v6 = vld [vmem:[%s10958_s1 + $0x5e4] ss:$16 sps:$4 sm:$0xff]   ;;  %v7469_v8 = vld [vmem:[%s10958_s1 + $0x5e0] ss:$16 sps:$4 sm:$0xff]  }
  0x82   :  { %4875 = vmatmul.mubr.bf16.vlgmr.msra.gmra.mrb[0].mxu0 %v48_v11  ;;  %5408 = vmatmul.mubr.bf16.vlgmr.msra.gmra.mrb[0].mxu1 %v48_v11  ;;  %v25_v11 = vld [vmem:[%s10959_s0 + $0x20] sm:$0xff] }
  0x83   :  { %4884 = vmatpush1.bf16.msra.mxu0 %v7379_v9  ;;  %5417 = vmatpush1.bf16.msra.mxu1 %v7382_v10  ;;  %v7472_v9 = vld [vmem:[%s10958_s1 + $0x5e8] ss:$16 sps:$4 sm:$0xff]   ;;  %v7477_v10 = vld [vmem:[%s10958_s1 + $0x604] ss:$16 sps:$4 sm:$0xff]  }
  0x84   :  { %4885 = vmatprep.subr.bf16.mxu0 %v7387_v12  ;;  %5418 = vmatprep.subr.bf16.mxu1 %v7390_v13  ;;  %v7480_v12 = vld [vmem:[%s10958_s1 + $0x60c] ss:$16 sps:$4 sm:$0xff]   ;;  %v7475_v13 = vld [vmem:[%s10958_s1 + $0x600] ss:$16 sps:$4 sm:$0xff]  }
  0x85   :  { %4915 = vmatprep.mubr.bf16.mxu0 %v51_v15  ;;  %5448 = vmatprep.mubr.bf16.mxu1 %v51_v15  ;;  %v50_v15 = vpack.c.bf16 %v25_v11, %v25_v11  ;;  %v7570_v11 = vld [vmem:[%s10958_s1 + $0x7ec] ss:$16 sps:$4 sm:$0xff]  }
  0x87   :  { %4886 = vmatpush1.bf16.msra.mxu0 %v7385_v16  ;;  %5419 = vmatpush1.bf16.msra.mxu1 %v7388_v17  ;;  %v28_v16 = vld [vmem:[%s10959_s0 + $0x38] sm:$0xff]  ;;  %v7483_v17 = vld [vmem:[%s10958_s1 + $0x624] ss:$16 sps:$4 sm:$0xff]  }
  0x88   :  { %4887 = vmatprep.subr.bf16.mxu0 %v7393_v18  ;;  %5420 = vmatprep.subr.bf16.mxu1 %v7396_v19  ;;  %v7486_v18 = vld [vmem:[%s10958_s1 + $0x62c] ss:$16 sps:$4 sm:$0xff]   ;;  %v53_v19 = vpack.c.bf16 %v28_v16, %v28_v16 }
  0x89   :  { %v7576_v16 = vld [vmem:[%s10958_s1 + $0x80c] ss:$16 sps:$4 sm:$0xff]  }
  0x8b   :  { %4888 = vmatpush1.bf16.msra.mxu0 %v7391_v20  ;;  %5421 = vmatpush1.bf16.msra.mxu1 %v7394_v21  ;;  %v7481_v20 = vld [vmem:[%s10958_s1 + $0x620] ss:$16 sps:$4 sm:$0xff]   ;;  %v7484_v21 = vld [vmem:[%s10958_s1 + $0x628] ss:$16 sps:$4 sm:$0xff]  }
  0x8c   :  { %4889 = vmatprep.subr.bf16.mxu0 %v7399_v22  ;;  %5422 = vmatprep.subr.bf16.mxu1 %v7402_v23  ;;  %v7489_v22 = vld [vmem:[%s10958_s1 + $0x644] ss:$16 sps:$4 sm:$0xff]   ;;  %v7492_v23 = vld [vmem:[%s10958_s1 + $0x64c] ss:$16 sps:$4 sm:$0xff]  }
  0x8f   :  { %4890 = vmatpush1.bf16.msra.mxu0 %v7397_v24  ;;  %5423 = vmatpush1.bf16.msra.mxu1 %v7400_v25  ;;  %v7487_v24 = vld [vmem:[%s10958_s1 + $0x640] ss:$16 sps:$4 sm:$0xff]   ;;  %v7490_v25 = vld [vmem:[%s10958_s1 + $0x648] ss:$16 sps:$4 sm:$0xff]  }
  0x90   :  { %4891 = vmatprep.subr.bf16.mxu0 %v7405_v26  ;;  %5424 = vmatprep.subr.bf16.mxu1 %v7408_v27  ;;  %v7495_v26 = vld [vmem:[%s10958_s1 + $0x664] ss:$16 sps:$4 sm:$0xff]   ;;  %v7498_v27 = vld [vmem:[%s10958_s1 + $0x66c] ss:$16 sps:$4 sm:$0xff]  }
  0x93   :  { %4892 = vmatpush1.bf16.msra.mxu0 %v7403_v28  ;;  %5425 = vmatpush1.bf16.msra.mxu1 %v7406_v29  ;;  %v7493_v28 = vld [vmem:[%s10958_s1 + $0x660] ss:$16 sps:$4 sm:$0xff]   ;;  %v7496_v29 = vld [vmem:[%s10958_s1 + $0x668] ss:$16 sps:$4 sm:$0xff]  }
  0x94   :  { %4893 = vmatprep.subr.bf16.mxu0 %v7411_v30  ;;  %5426 = vmatprep.subr.bf16.mxu1 %v7414_v31  ;;  %v7501_v30 = vld [vmem:[%s10958_s1 + $0x684] ss:$16 sps:$4 sm:$0xff]   ;;  %v7504_v31 = vld [vmem:[%s10958_s1 + $0x68c] ss:$16 sps:$4 sm:$0xff]  }
  0x97   :  { %4894 = vmatpush1.bf16.msra.mxu0 %v7409_v32  ;;  %5427 = vmatpush1.bf16.msra.mxu1 %v7412_v33  ;;  %v7499_v32 = vld [vmem:[%s10958_s1 + $0x680] ss:$16 sps:$4 sm:$0xff]   ;;  %v7502_v33 = vld [vmem:[%s10958_s1 + $0x688] ss:$16 sps:$4 sm:$0xff]  }
  0x98   :  { %4895 = vmatprep.subr.bf16.mxu0 %v7417_v34  ;;  %5428 = vmatprep.subr.bf16.mxu1 %v7420_v35  ;;  %v7507_v34 = vld [vmem:[%s10958_s1 + $0x6a4] ss:$16 sps:$4 sm:$0xff]   ;;  %v7510_v35 = vld [vmem:[%s10958_s1 + $0x6ac] ss:$16 sps:$4 sm:$0xff]  }
  0x9b   :  { %4896 = vmatpush1.bf16.msra.mxu0 %v7415_v36  ;;  %5429 = vmatpush1.bf16.msra.mxu1 %v7418_v37  ;;  %v7505_v36 = vld [vmem:[%s10958_s1 + $0x6a0] ss:$16 sps:$4 sm:$0xff]   ;;  %v7508_v37 = vld [vmem:[%s10958_s1 + $0x6a8] ss:$16 sps:$4 sm:$0xff]  }
  0x9c   :  { %4897 = vmatprep.subr.bf16.mxu0 %v7423_v38  ;;  %5430 = vmatprep.subr.bf16.mxu1 %v7426_v39  ;;  %v7513_v38 = vld [vmem:[%s10958_s1 + $0x6c4] ss:$16 sps:$4 sm:$0xff]   ;;  %v7516_v39 = vld [vmem:[%s10958_s1 + $0x6cc] ss:$16 sps:$4 sm:$0xff]  }
  0x9f   :  { %4898 = vmatpush1.bf16.msra.mxu0 %v7421_v40  ;;  %5431 = vmatpush1.bf16.msra.mxu1 %v7424_v41  ;;  %v7511_v40 = vld [vmem:[%s10958_s1 + $0x6c0] ss:$16 sps:$4 sm:$0xff]   ;;  %v7514_v41 = vld [vmem:[%s10958_s1 + $0x6c8] ss:$16 sps:$4 sm:$0xff]  }
  0xa0   :  { %4899 = vmatprep.subr.bf16.mxu0 %v7429_v42  ;;  %5432 = vmatprep.subr.bf16.mxu1 %v7432_v43  ;;  %v7519_v42 = vld [vmem:[%s10958_s1 + $0x6e4] ss:$16 sps:$4 sm:$0xff]   ;;  %v7522_v43 = vld [vmem:[%s10958_s1 + $0x6ec] ss:$16 sps:$4 sm:$0xff]  }
  0xa3   :  { %4900 = vmatpush1.bf16.msra.mxu0 %v7427_v44  ;;  %5433 = vmatpush1.bf16.msra.mxu1 %v7430_v45  ;;  %v7517_v44 = vld [vmem:[%s10958_s1 + $0x6e0] ss:$16 sps:$4 sm:$0xff]   ;;  %v7520_v45 = vld [vmem:[%s10958_s1 + $0x6e8] ss:$16 sps:$4 sm:$0xff]  }
  0xa4   :  { %4901 = vmatprep.subr.bf16.mxu0 %v7435_v46  ;;  %5434 = vmatprep.subr.bf16.mxu1 %v7438_v47  ;;  %v7525_v46 = vld [vmem:[%s10958_s1 + $0x704] ss:$16 sps:$4 sm:$0xff]   ;;  %v7528_v47 = vld [vmem:[%s10958_s1 + $0x70c] ss:$16 sps:$4 sm:$0xff]  }
  0xa7   :  { %4902 = vmatpush1.bf16.msra.mxu0 %v7433_v48  ;;  %5435 = vmatpush1.bf16.msra.mxu1 %v7436_v49  ;;  %v7523_v48 = vld [vmem:[%s10958_s1 + $0x700] ss:$16 sps:$4 sm:$0xff]   ;;  %v7526_v49 = vld [vmem:[%s10958_s1 + $0x708] ss:$16 sps:$4 sm:$0xff]  }
  0xa8   :  { %4903 = vmatprep.subr.bf16.mxu0 %v7441_v50  ;;  %5436 = vmatprep.subr.bf16.mxu1 %v7444_v51  ;;  %v7531_v50 = vld [vmem:[%s10958_s1 + $0x724] ss:$16 sps:$4 sm:$0xff]   ;;  %v7534_v51 = vld [vmem:[%s10958_s1 + $0x72c] ss:$16 sps:$4 sm:$0xff]  }
  0xab   :  { %4904 = vmatpush1.bf16.msra.mxu0 %v7439_v52  ;;  %5437 = vmatpush1.bf16.msra.mxu1 %v7442_v53  ;;  %v7529_v52 = vld [vmem:[%s10958_s1 + $0x720] ss:$16 sps:$4 sm:$0xff]   ;;  %v7532_v53 = vld [vmem:[%s10958_s1 + $0x728] ss:$16 sps:$4 sm:$0xff]  }
  0xac   :  { %4905 = vmatprep.subr.bf16.mxu0 %v7447_v54  ;;  %5438 = vmatprep.subr.bf16.mxu1 %v7450_v55  ;;  %v7537_v54 = vld [vmem:[%s10958_s1 + $0x744] ss:$16 sps:$4 sm:$0xff]   ;;  %v7540_v55 = vld [vmem:[%s10958_s1 + $0x74c] ss:$16 sps:$4 sm:$0xff]  }
  0xaf   :  { %4906 = vmatpush1.bf16.msra.mxu0 %v7445_v56  ;;  %5439 = vmatpush1.bf16.msra.mxu1 %v7448_v57  ;;  %v7535_v56 = vld [vmem:[%s10958_s1 + $0x740] ss:$16 sps:$4 sm:$0xff]   ;;  %v7538_v57 = vld [vmem:[%s10958_s1 + $0x748] ss:$16 sps:$4 sm:$0xff]  }
  0xb0   :  { %4907 = vmatprep.subr.bf16.mxu0 %v7453_v58  ;;  %5440 = vmatprep.subr.bf16.mxu1 %v7456_v59  ;;  %v7543_v58 = vld [vmem:[%s10958_s1 + $0x764] ss:$16 sps:$4 sm:$0xff]   ;;  %v7546_v59 = vld [vmem:[%s10958_s1 + $0x76c] ss:$16 sps:$4 sm:$0xff]  }
  0xb3   :  { %4908 = vmatpush1.bf16.msra.mxu0 %v7451_v60  ;;  %5441 = vmatpush1.bf16.msra.mxu1 %v7454_v61  ;;  %v7541_v60 = vld [vmem:[%s10958_s1 + $0x760] ss:$16 sps:$4 sm:$0xff]   ;;  %v7544_v61 = vld [vmem:[%s10958_s1 + $0x768] ss:$16 sps:$4 sm:$0xff]  }
  0xb4   :  { %4909 = vmatprep.subr.bf16.mxu0 %v7459_v62  ;;  %5442 = vmatprep.subr.bf16.mxu1 %v7462_v63  ;;  %v7549_v62 = vld [vmem:[%s10958_s1 + $0x784] ss:$16 sps:$4 sm:$0xff]   ;;  %v7552_v63 = vld [vmem:[%s10958_s1 + $0x78c] ss:$16 sps:$4 sm:$0xff]  }
  0xb7   :  { %4910 = vmatpush1.bf16.msra.mxu0 %v7457_v0  ;;  %5443 = vmatpush1.bf16.msra.mxu1 %v7460_v1  ;;  %v7547_v0 = vld [vmem:[%s10958_s1 + $0x780] ss:$16 sps:$4 sm:$0xff]   ;;  %v7550_v1 = vld [vmem:[%s10958_s1 + $0x788] ss:$16 sps:$4 sm:$0xff]  }
  0xb8   :  { %4911 = vmatprep.subr.bf16.mxu0 %v7465_v2  ;;  %5444 = vmatprep.subr.bf16.mxu1 %v7468_v3  ;;  %v7555_v2 = vld [vmem:[%s10958_s1 + $0x7a4] ss:$16 sps:$4 sm:$0xff]   ;;  %v7558_v3 = vld [vmem:[%s10958_s1 + $0x7ac] ss:$16 sps:$4 sm:$0xff]  }
  0xbb   :  { %4912 = vmatpush1.bf16.msra.mxu0 %v7463_v4  ;;  %5445 = vmatpush1.bf16.msra.mxu1 %v7466_v5  ;;  %v7553_v4 = vld [vmem:[%s10958_s1 + $0x7a0] ss:$16 sps:$4 sm:$0xff]   ;;  %v7556_v5 = vld [vmem:[%s10958_s1 + $0x7a8] ss:$16 sps:$4 sm:$0xff]  }
  0xbc   :  { %4913 = vmatprep.subr.bf16.mxu0 %v7471_v6  ;;  %5446 = vmatprep.subr.bf16.mxu1 %v7474_v7  ;;  %v7561_v6 = vld [vmem:[%s10958_s1 + $0x7c4] ss:$16 sps:$4 sm:$0xff]   ;;  %v7564_v7 = vld [vmem:[%s10958_s1 + $0x7cc] ss:$16 sps:$4 sm:$0xff]  }
  0xbf   :  { %4914 = vmatpush1.bf16.msra.mxu0 %v7469_v8  ;;  %5447 = vmatpush1.bf16.msra.mxu1 %v7472_v9  ;;  %v7559_v8 = vld [vmem:[%s10958_s1 + $0x7c0] ss:$16 sps:$4 sm:$0xff]   ;;  %v7562_v9 = vld [vmem:[%s10958_s1 + $0x7c8] ss:$16 sps:$4 sm:$0xff]  }
  0xc0   :  { %4924 = vmatprep.subr.bf16.mxu0 %v7477_v10  ;;  %5457 = vmatprep.subr.bf16.mxu1 %v7480_v12  ;;  %v7567_v10 = vld [vmem:[%s10958_s1 + $0x7e4] ss:$16 sps:$4 sm:$0xff]   ;;  %v7565_v12 = vld [vmem:[%s10958_s1 + $0x7e0] ss:$16 sps:$4 sm:$0xff]  }
  0xc2   :  { %4916 = vmatmul.mubr.bf16.vlgmr.msra.gmra.mrb[0].mxu0 %v50_v15  ;;  %5449 = vmatmul.mubr.bf16.vlgmr.msra.gmra.mrb[0].mxu1 %v50_v15  ;;  %v7573_v15 = vld [vmem:[%s10958_s1 + $0x804] ss:$16 sps:$4 sm:$0xff]  }
  0xc3   :  { %4925 = vmatpush1.bf16.msra.mxu0 %v7475_v13  ;;  %5458 = vmatpush1.bf16.msra.mxu1 %v7478_v14  ;;  %v7568_v13 = vld [vmem:[%s10958_s1 + $0x7e8] ss:$16 sps:$4 sm:$0xff]   ;;  %v27_v14 = vld [vmem:[%s10959_s0 + $0x30] sm:$0xff] }
  0xc4   :  { %4926 = vmatprep.subr.bf16.mxu0 %v7483_v17  ;;  %5459 = vmatprep.subr.bf16.mxu1 %v7486_v18  ;;  %v52_v17 = vpack.c.bf16 %v27_v14, %v27_v14  ;;  %v30_v18 = vld [vmem:[%s10959_s0 + $0x48] sm:$0xff]  ;;  %v7663_v14 = vld [vmem:[%s10958_s1 + $0x9e4] ss:$16 sps:$4 sm:$0xff]  }
  0xc5   :  { %4956 = vmatprep.mubr.bf16.mxu0 %v53_v19  ;;  %5489 = vmatprep.mubr.bf16.mxu1 %v53_v19  ;;  %v7571_v19 = vld [vmem:[%s10958_s1 + $0x800] ss:$16 sps:$4 sm:$0xff]  }
  0xc7   :  { %4927 = vmatpush1.bf16.msra.mxu0 %v7481_v20  ;;  %5460 = vmatpush1.bf16.msra.mxu1 %v7484_v21  ;;  %v7574_v20 = vld [vmem:[%s10958_s1 + $0x808] ss:$16 sps:$4 sm:$0xff]   ;;  %v7579_v21 = vld [vmem:[%s10958_s1 + $0x824] ss:$16 sps:$4 sm:$0xff]  }
  0xc8   :  { %4928 = vmatprep.subr.bf16.mxu0 %v7489_v22  ;;  %5461 = vmatprep.subr.bf16.mxu1 %v7492_v23  ;;  %v7582_v22 = vld [vmem:[%s10958_s1 + $0x82c] ss:$16 sps:$4 sm:$0xff]   ;;  %v55_v23 = vpack.c.bf16 %v30_v18, %v30_v18  ;;  %v7669_v18 = vld [vmem:[%s10958_s1 + $0xa04] ss:$16 sps:$4 sm:$0xff]  }
  0xcb   :  { %4929 = vmatpush1.bf16.msra.mxu0 %v7487_v24  ;;  %5462 = vmatpush1.bf16.msra.mxu1 %v7490_v25  ;;  %v7577_v24 = vld [vmem:[%s10958_s1 + $0x820] ss:$16 sps:$4 sm:$0xff]   ;;  %v7580_v25 = vld [vmem:[%s10958_s1 + $0x828] ss:$16 sps:$4 sm:$0xff]  }
  0xcc   :  { %4930 = vmatprep.subr.bf16.mxu0 %v7495_v26  ;;  %5463 = vmatprep.subr.bf16.mxu1 %v7498_v27  ;;  %v7585_v26 = vld [vmem:[%s10958_s1 + $0x844] ss:$16 sps:$4 sm:$0xff]   ;;  %v7588_v27 = vld [vmem:[%s10958_s1 + $0x84c] ss:$16 sps:$4 sm:$0xff]  }
  0xcf   :  { %4931 = vmatpush1.bf16.msra.mxu0 %v7493_v28  ;;  %5464 = vmatpush1.bf16.msra.mxu1 %v7496_v29  ;;  %v7583_v28 = vld [vmem:[%s10958_s1 + $0x840] ss:$16 sps:$4 sm:$0xff]   ;;  %v7586_v29 = vld [vmem:[%s10958_s1 + $0x848] ss:$16 sps:$4 sm:$0xff]  }
  0xd0   :  { %4932 = vmatprep.subr.bf16.mxu0 %v7501_v30  ;;  %5465 = vmatprep.subr.bf16.mxu1 %v7504_v31  ;;  %v7591_v30 = vld [vmem:[%s10958_s1 + $0x864] ss:$16 sps:$4 sm:$0xff]   ;;  %v7594_v31 = vld [vmem:[%s10958_s1 + $0x86c] ss:$16 sps:$4 sm:$0xff]  }
  0xd3   :  { %4933 = vmatpush1.bf16.msra.mxu0 %v7499_v32  ;;  %5466 = vmatpush1.bf16.msra.mxu1 %v7502_v33  ;;  %v7589_v32 = vld [vmem:[%s10958_s1 + $0x860] ss:$16 sps:$4 sm:$0xff]   ;;  %v7592_v33 = vld [vmem:[%s10958_s1 + $0x868] ss:$16 sps:$4 sm:$0xff]  }
  0xd4   :  { %4934 = vmatprep.subr.bf16.mxu0 %v7507_v34  ;;  %5467 = vmatprep.subr.bf16.mxu1 %v7510_v35  ;;  %v7597_v34 = vld [vmem:[%s10958_s1 + $0x884] ss:$16 sps:$4 sm:$0xff]   ;;  %v7600_v35 = vld [vmem:[%s10958_s1 + $0x88c] ss:$16 sps:$4 sm:$0xff]  }
  0xd7   :  { %4935 = vmatpush1.bf16.msra.mxu0 %v7505_v36  ;;  %5468 = vmatpush1.bf16.msra.mxu1 %v7508_v37  ;;  %v7595_v36 = vld [vmem:[%s10958_s1 + $0x880] ss:$16 sps:$4 sm:$0xff]   ;;  %v7598_v37 = vld [vmem:[%s10958_s1 + $0x888] ss:$16 sps:$4 sm:$0xff]  }
  0xd8   :  { %4936 = vmatprep.subr.bf16.mxu0 %v7513_v38  ;;  %5469 = vmatprep.subr.bf16.mxu1 %v7516_v39  ;;  %v7603_v38 = vld [vmem:[%s10958_s1 + $0x8a4] ss:$16 sps:$4 sm:$0xff]   ;;  %v7606_v39 = vld [vmem:[%s10958_s1 + $0x8ac] ss:$16 sps:$4 sm:$0xff]  }
  0xdb   :  { %4937 = vmatpush1.bf16.msra.mxu0 %v7511_v40  ;;  %5470 = vmatpush1.bf16.msra.mxu1 %v7514_v41  ;;  %v7601_v40 = vld [vmem:[%s10958_s1 + $0x8a0] ss:$16 sps:$4 sm:$0xff]   ;;  %v7604_v41 = vld [vmem:[%s10958_s1 + $0x8a8] ss:$16 sps:$4 sm:$0xff]  }
  0xdc   :  { %4938 = vmatprep.subr.bf16.mxu0 %v7519_v42  ;;  %5471 = vmatprep.subr.bf16.mxu1 %v7522_v43  ;;  %v7609_v42 = vld [vmem:[%s10958_s1 + $0x8c4] ss:$16 sps:$4 sm:$0xff]   ;;  %v7612_v43 = vld [vmem:[%s10958_s1 + $0x8cc] ss:$16 sps:$4 sm:$0xff]  }
  0xdf   :  { %4939 = vmatpush1.bf16.msra.mxu0 %v7517_v44  ;;  %5472 = vmatpush1.bf16.msra.mxu1 %v7520_v45  ;;  %v7607_v44 = vld [vmem:[%s10958_s1 + $0x8c0] ss:$16 sps:$4 sm:$0xff]   ;;  %v7610_v45 = vld [vmem:[%s10958_s1 + $0x8c8] ss:$16 sps:$4 sm:$0xff]  }
  0xe0   :  { %4940 = vmatprep.subr.bf16.mxu0 %v7525_v46  ;;  %5473 = vmatprep.subr.bf16.mxu1 %v7528_v47  ;;  %v7615_v46 = vld [vmem:[%s10958_s1 + $0x8e4] ss:$16 sps:$4 sm:$0xff]   ;;  %v7618_v47 = vld [vmem:[%s10958_s1 + $0x8ec] ss:$16 sps:$4 sm:$0xff]  }
  0xe3   :  { %4941 = vmatpush1.bf16.msra.mxu0 %v7523_v48  ;;  %5474 = vmatpush1.bf16.msra.mxu1 %v7526_v49  ;;  %v7613_v48 = vld [vmem:[%s10958_s1 + $0x8e0] ss:$16 sps:$4 sm:$0xff]   ;;  %v7616_v49 = vld [vmem:[%s10958_s1 + $0x8e8] ss:$16 sps:$4 sm:$0xff]  }
  0xe4   :  { %4942 = vmatprep.subr.bf16.mxu0 %v7531_v50  ;;  %5475 = vmatprep.subr.bf16.mxu1 %v7534_v51  ;;  %v7621_v50 = vld [vmem:[%s10958_s1 + $0x904] ss:$16 sps:$4 sm:$0xff]   ;;  %v7624_v51 = vld [vmem:[%s10958_s1 + $0x90c] ss:$16 sps:$4 sm:$0xff]  }
  0xe7   :  { %4943 = vmatpush1.bf16.msra.mxu0 %v7529_v52  ;;  %5476 = vmatpush1.bf16.msra.mxu1 %v7532_v53  ;;  %v7619_v52 = vld [vmem:[%s10958_s1 + $0x900] ss:$16 sps:$4 sm:$0xff]   ;;  %v7622_v53 = vld [vmem:[%s10958_s1 + $0x908] ss:$16 sps:$4 sm:$0xff]  }
  0xe8   :  { %4944 = vmatprep.subr.bf16.mxu0 %v7537_v54  ;;  %5477 = vmatprep.subr.bf16.mxu1 %v7540_v55  ;;  %v7627_v54 = vld [vmem:[%s10958_s1 + $0x924] ss:$16 sps:$4 sm:$0xff]   ;;  %v7630_v55 = vld [vmem:[%s10958_s1 + $0x92c] ss:$16 sps:$4 sm:$0xff]  }
  0xeb   :  { %4945 = vmatpush1.bf16.msra.mxu0 %v7535_v56  ;;  %5478 = vmatpush1.bf16.msra.mxu1 %v7538_v57  ;;  %v7625_v56 = vld [vmem:[%s10958_s1 + $0x920] ss:$16 sps:$4 sm:$0xff]   ;;  %v7628_v57 = vld [vmem:[%s10958_s1 + $0x928] ss:$16 sps:$4 sm:$0xff]  }
  0xec   :  { %4946 = vmatprep.subr.bf16.mxu0 %v7543_v58  ;;  %5479 = vmatprep.subr.bf16.mxu1 %v7546_v59  ;;  %v7633_v58 = vld [vmem:[%s10958_s1 + $0x944] ss:$16 sps:$4 sm:$0xff]   ;;  %v7636_v59 = vld [vmem:[%s10958_s1 + $0x94c] ss:$16 sps:$4 sm:$0xff]  }
  0xef   :  { %4947 = vmatpush1.bf16.msra.mxu0 %v7541_v60  ;;  %5480 = vmatpush1.bf16.msra.mxu1 %v7544_v61  ;;  %v7631_v60 = vld [vmem:[%s10958_s1 + $0x940] ss:$16 sps:$4 sm:$0xff]   ;;  %v7634_v61 = vld [vmem:[%s10958_s1 + $0x948] ss:$16 sps:$4 sm:$0xff]  }
  0xf0   :  { %4948 = vmatprep.subr.bf16.mxu0 %v7549_v62  ;;  %5481 = vmatprep.subr.bf16.mxu1 %v7552_v63  ;;  %v7639_v62 = vld [vmem:[%s10958_s1 + $0x964] ss:$16 sps:$4 sm:$0xff]   ;;  %v7642_v63 = vld [vmem:[%s10958_s1 + $0x96c] ss:$16 sps:$4 sm:$0xff]  }
  0xf3   :  { %4949 = vmatpush1.bf16.msra.mxu0 %v7547_v0  ;;  %5482 = vmatpush1.bf16.msra.mxu1 %v7550_v1  ;;  %v7637_v0 = vld [vmem:[%s10958_s1 + $0x960] ss:$16 sps:$4 sm:$0xff]   ;;  %v7640_v1 = vld [vmem:[%s10958_s1 + $0x968] ss:$16 sps:$4 sm:$0xff]  }
  0xf4   :  { %4950 = vmatprep.subr.bf16.mxu0 %v7555_v2  ;;  %5483 = vmatprep.subr.bf16.mxu1 %v7558_v3  ;;  %v7645_v2 = vld [vmem:[%s10958_s1 + $0x984] ss:$16 sps:$4 sm:$0xff]   ;;  %v7648_v3 = vld [vmem:[%s10958_s1 + $0x98c] ss:$16 sps:$4 sm:$0xff]  }
  0xf7   :  { %4951 = vmatpush1.bf16.msra.mxu0 %v7553_v4  ;;  %5484 = vmatpush1.bf16.msra.mxu1 %v7556_v5  ;;  %v7643_v4 = vld [vmem:[%s10958_s1 + $0x980] ss:$16 sps:$4 sm:$0xff]   ;;  %v7646_v5 = vld [vmem:[%s10958_s1 + $0x988] ss:$16 sps:$4 sm:$0xff]  }
  0xf8   :  { %4952 = vmatprep.subr.bf16.mxu0 %v7561_v6  ;;  %5485 = vmatprep.subr.bf16.mxu1 %v7564_v7  ;;  %v7651_v6 = vld [vmem:[%s10958_s1 + $0x9a4] ss:$16 sps:$4 sm:$0xff]   ;;  %v7654_v7 = vld [vmem:[%s10958_s1 + $0x9ac] ss:$16 sps:$4 sm:$0xff]  }
  0xfb   :  { %4953 = vmatpush1.bf16.msra.mxu0 %v7559_v8  ;;  %5486 = vmatpush1.bf16.msra.mxu1 %v7562_v9  ;;  %v7649_v8 = vld [vmem:[%s10958_s1 + $0x9a0] ss:$16 sps:$4 sm:$0xff]   ;;  %v7652_v9 = vld [vmem:[%s10958_s1 + $0x9a8] ss:$16 sps:$4 sm:$0xff]  }
  0xfc   :  { %4954 = vmatprep.subr.bf16.mxu0 %v7567_v10  ;;  %5487 = vmatprep.subr.bf16.mxu1 %v7570_v11  ;;  %v7657_v10 = vld [vmem:[%s10958_s1 + $0x9c4] ss:$16 sps:$4 sm:$0xff]   ;;  %v7660_v11 = vld [vmem:[%s10958_s1 + $0x9cc] ss:$16 sps:$4 sm:$0xff]  }
  0xff   :  { %4955 = vmatpush1.bf16.msra.mxu0 %v7565_v12  ;;  %5488 = vmatpush1.bf16.msra.mxu1 %v7568_v13  ;;  %v7655_v12 = vld [vmem:[%s10958_s1 + $0x9c0] ss:$16 sps:$4 sm:$0xff]   ;;  %v7658_v13 = vld [vmem:[%s10958_s1 + $0x9c8] ss:$16 sps:$4 sm:$0xff]  }
 0x100   :  { %4965 = vmatprep.subr.bf16.mxu0 %v7573_v15  ;;  %5498 = vmatprep.subr.bf16.mxu1 %v7576_v16  ;;  %v7666_v15 = vld [vmem:[%s10958_s1 + $0x9ec] ss:$16 sps:$4 sm:$0xff]   ;;  %v7661_v16 = vld [vmem:[%s10958_s1 + $0x9e0] ss:$16 sps:$4 sm:$0xff]  }
 0x102   :  { %4957 = vmatmul.mubr.bf16.vlgmr.msra.gmra.mrb[0].mxu0 %v52_v17  ;;  %5490 = vmatmul.mubr.bf16.vlgmr.msra.gmra.mrb[0].mxu1 %v52_v17  ;;  %v7664_v17 = vld [vmem:[%s10958_s1 + $0x9e8] ss:$16 sps:$4 sm:$0xff]  }
 0x103   :  { %4966 = vmatpush1.bf16.msra.mxu0 %v7571_v19  ;;  %5499 = vmatpush1.bf16.msra.mxu1 %v7574_v20  ;;  %v29_v19 = vld [vmem:[%s10959_s0 + $0x40] sm:$0xff]  ;;  %v7672_v20 = vld [vmem:[%s10958_s1 + $0xa0c] ss:$16 sps:$4 sm:$0xff]  }
 0x104   :  { %4967 = vmatprep.subr.bf16.mxu0 %v7579_v21  ;;  %5500 = vmatprep.subr.bf16.mxu1 %v7582_v22  ;;  %v32_v21 = vld [vmem:[%s10959_s0 + $0x58] sm:$0xff]  ;;  %v54_v22 = vpack.c.bf16 %v29_v19, %v29_v19 }
 0x105   :  { %4997 = vmatprep.mubr.bf16.mxu0 %v55_v23  ;;  %5530 = vmatprep.mubr.bf16.mxu1 %v55_v23  ;;  %v7667_v23 = vld [vmem:[%s10958_s1 + $0xa00] ss:$16 sps:$4 sm:$0xff]   ;;  %v7762_v19 = vld [vmem:[%s10958_s1 + $0xbec] ss:$16 sps:$4 sm:$0xff]  }
 0x107   :  { %4968 = vmatpush1.bf16.msra.mxu0 %v7577_v24  ;;  %5501 = vmatpush1.bf16.msra.mxu1 %v7580_v25  ;;  %v7670_v24 = vld [vmem:[%s10958_s1 + $0xa08] ss:$16 sps:$4 sm:$0xff]   ;;  %v7675_v25 = vld [vmem:[%s10958_s1 + $0xa24] ss:$16 sps:$4 sm:$0xff]  }
 0x108   :  { %4969 = vmatprep.subr.bf16.mxu0 %v7585_v26  ;;  %5502 = vmatprep.subr.bf16.mxu1 %v7588_v27  ;;  %v7678_v26 = vld [vmem:[%s10958_s1 + $0xa2c] ss:$16 sps:$4 sm:$0xff]   ;;  %v57_v27 = vpack.c.bf16 %v32_v21, %v32_v21  ;;  %v7760_v21 = vld [vmem:[%s10958_s1 + $0xbe8] ss:$16 sps:$4 sm:$0xff]  }
 0x10b   :  { %4970 = vmatpush1.bf16.msra.mxu0 %v7583_v28  ;;  %5503 = vmatpush1.bf16.msra.mxu1 %v7586_v29  ;;  %v7673_v28 = vld [vmem:[%s10958_s1 + $0xa20] ss:$16 sps:$4 sm:$0xff]   ;;  %v7676_v29 = vld [vmem:[%s10958_s1 + $0xa28] ss:$16 sps:$4 sm:$0xff]  }
 0x10c   :  { %4971 = vmatprep.subr.bf16.mxu0 %v7591_v30  ;;  %5504 = vmatprep.subr.bf16.mxu1 %v7594_v31  ;;  %v7681_v30 = vld [vmem:[%s10958_s1 + $0xa44] ss:$16 sps:$4 sm:$0xff]   ;;  %v7684_v31 = vld [vmem:[%s10958_s1 + $0xa4c] ss:$16 sps:$4 sm:$0xff]  }
 0x10f   :  { %4972 = vmatpush1.bf16.msra.mxu0 %v7589_v32  ;;  %5505 = vmatpush1.bf16.msra.mxu1 %v7592_v33  ;;  %v7679_v32 = vld [vmem:[%s10958_s1 + $0xa40] ss:$16 sps:$4 sm:$0xff]   ;;  %v7682_v33 = vld [vmem:[%s10958_s1 + $0xa48] ss:$16 sps:$4 sm:$0xff]  }
 0x110   :  { %4973 = vmatprep.subr.bf16.mxu0 %v7597_v34  ;;  %5506 = vmatprep.subr.bf16.mxu1 %v7600_v35  ;;  %v7687_v34 = vld [vmem:[%s10958_s1 + $0xa64] ss:$16 sps:$4 sm:$0xff]   ;;  %v7690_v35 = vld [vmem:[%s10958_s1 + $0xa6c] ss:$16 sps:$4 sm:$0xff]  }
 0x113   :  { %4974 = vmatpush1.bf16.msra.mxu0 %v7595_v36  ;;  %5507 = vmatpush1.bf16.msra.mxu1 %v7598_v37  ;;  %v7685_v36 = vld [vmem:[%s10958_s1 + $0xa60] ss:$16 sps:$4 sm:$0xff]   ;;  %v7688_v37 = vld [vmem:[%s10958_s1 + $0xa68] ss:$16 sps:$4 sm:$0xff]  }
 0x114   :  { %4975 = vmatprep.subr.bf16.mxu0 %v7603_v38  ;;  %5508 = vmatprep.subr.bf16.mxu1 %v7606_v39  ;;  %v7693_v38 = vld [vmem:[%s10958_s1 + $0xa84] ss:$16 sps:$4 sm:$0xff]   ;;  %v7696_v39 = vld [vmem:[%s10958_s1 + $0xa8c] ss:$16 sps:$4 sm:$0xff]  }
 0x117   :  { %4976 = vmatpush1.bf16.msra.mxu0 %v7601_v40  ;;  %5509 = vmatpush1.bf16.msra.mxu1 %v7604_v41  ;;  %v7691_v40 = vld [vmem:[%s10958_s1 + $0xa80] ss:$16 sps:$4 sm:$0xff]   ;;  %v7694_v41 = vld [vmem:[%s10958_s1 + $0xa88] ss:$16 sps:$4 sm:$0xff]  }
 0x118   :  { %4977 = vmatprep.subr.bf16.mxu0 %v7609_v42  ;;  %5510 = vmatprep.subr.bf16.mxu1 %v7612_v43  ;;  %v7699_v42 = vld [vmem:[%s10958_s1 + $0xaa4] ss:$16 sps:$4 sm:$0xff]   ;;  %v7702_v43 = vld [vmem:[%s10958_s1 + $0xaac] ss:$16 sps:$4 sm:$0xff]  }
 0x11b   :  { %4978 = vmatpush1.bf16.msra.mxu0 %v7607_v44  ;;  %5511 = vmatpush1.bf16.msra.mxu1 %v7610_v45  ;;  %v7697_v44 = vld [vmem:[%s10958_s1 + $0xaa0] ss:$16 sps:$4 sm:$0xff]   ;;  %v7700_v45 = vld [vmem:[%s10958_s1 + $0xaa8] ss:$16 sps:$4 sm:$0xff]  }
 0x11c   :  { %4979 = vmatprep.subr.bf16.mxu0 %v7615_v46  ;;  %5512 = vmatprep.subr.bf16.mxu1 %v7618_v47  ;;  %v7705_v46 = vld [vmem:[%s10958_s1 + $0xac4] ss:$16 sps:$4 sm:$0xff]   ;;  %v7708_v47 = vld [vmem:[%s10958_s1 + $0xacc] ss:$16 sps:$4 sm:$0xff]  }
 0x11f   :  { %4980 = vmatpush1.bf16.msra.mxu0 %v7613_v48  ;;  %5513 = vmatpush1.bf16.msra.mxu1 %v7616_v49  ;;  %v7703_v48 = vld [vmem:[%s10958_s1 + $0xac0] ss:$16 sps:$4 sm:$0xff]   ;;  %v7706_v49 = vld [vmem:[%s10958_s1 + $0xac8] ss:$16 sps:$4 sm:$0xff]  }
 0x120   :  { %4981 = vmatprep.subr.bf16.mxu0 %v7621_v50  ;;  %5514 = vmatprep.subr.bf16.mxu1 %v7624_v51  ;;  %v7711_v50 = vld [vmem:[%s10958_s1 + $0xae4] ss:$16 sps:$4 sm:$0xff]   ;;  %v7714_v51 = vld [vmem:[%s10958_s1 + $0xaec] ss:$16 sps:$4 sm:$0xff]  }
 0x123   :  { %4982 = vmatpush1.bf16.msra.mxu0 %v7619_v52  ;;  %5515 = vmatpush1.bf16.msra.mxu1 %v7622_v53  ;;  %v7709_v52 = vld [vmem:[%s10958_s1 + $0xae0] ss:$16 sps:$4 sm:$0xff]   ;;  %v7712_v53 = vld [vmem:[%s10958_s1 + $0xae8] ss:$16 sps:$4 sm:$0xff]  }
 0x124   :  { %4983 = vmatprep.subr.bf16.mxu0 %v7627_v54  ;;  %5516 = vmatprep.subr.bf16.mxu1 %v7630_v55  ;;  %v7717_v54 = vld [vmem:[%s10958_s1 + $0xb04] ss:$16 sps:$4 sm:$0xff]   ;;  %v7720_v55 = vld [vmem:[%s10958_s1 + $0xb0c] ss:$16 sps:$4 sm:$0xff]  }
 0x127   :  { %4984 = vmatpush1.bf16.msra.mxu0 %v7625_v56  ;;  %5517 = vmatpush1.bf16.msra.mxu1 %v7628_v57  ;;  %v7715_v56 = vld [vmem:[%s10958_s1 + $0xb00] ss:$16 sps:$4 sm:$0xff]   ;;  %v7718_v57 = vld [vmem:[%s10958_s1 + $0xb08] ss:$16 sps:$4 sm:$0xff]  }
 0x128   :  { %4985 = vmatprep.subr.bf16.mxu0 %v7633_v58  ;;  %5518 = vmatprep.subr.bf16.mxu1 %v7636_v59  ;;  %v7723_v58 = vld [vmem:[%s10958_s1 + $0xb24] ss:$16 sps:$4 sm:$0xff]   ;;  %v7726_v59 = vld [vmem:[%s10958_s1 + $0xb2c] ss:$16 sps:$4 sm:$0xff]  }
 0x12b   :  { %4986 = vmatpush1.bf16.msra.mxu0 %v7631_v60  ;;  %5519 = vmatpush1.bf16.msra.mxu1 %v7634_v61  ;;  %v7721_v60 = vld [vmem:[%s10958_s1 + $0xb20] ss:$16 sps:$4 sm:$0xff]   ;;  %v7724_v61 = vld [vmem:[%s10958_s1 + $0xb28] ss:$16 sps:$4 sm:$0xff]  }
 0x12c   :  { %4987 = vmatprep.subr.bf16.mxu0 %v7639_v62  ;;  %5520 = vmatprep.subr.bf16.mxu1 %v7642_v63  ;;  %v7729_v62 = vld [vmem:[%s10958_s1 + $0xb44] ss:$16 sps:$4 sm:$0xff]   ;;  %v7732_v63 = vld [vmem:[%s10958_s1 + $0xb4c] ss:$16 sps:$4 sm:$0xff]  }
 0x12f   :  { %4988 = vmatpush1.bf16.msra.mxu0 %v7637_v0  ;;  %5521 = vmatpush1.bf16.msra.mxu1 %v7640_v1  ;;  %v7727_v0 = vld [vmem:[%s10958_s1 + $0xb40] ss:$16 sps:$4 sm:$0xff]   ;;  %v7730_v1 = vld [vmem:[%s10958_s1 + $0xb48] ss:$16 sps:$4 sm:$0xff]  }
 0x130   :  { %4989 = vmatprep.subr.bf16.mxu0 %v7645_v2  ;;  %5522 = vmatprep.subr.bf16.mxu1 %v7648_v3  ;;  %v7735_v2 = vld [vmem:[%s10958_s1 + $0xb64] ss:$16 sps:$4 sm:$0xff]   ;;  %v7738_v3 = vld [vmem:[%s10958_s1 + $0xb6c] ss:$16 sps:$4 sm:$0xff]  }
 0x133   :  { %4990 = vmatpush1.bf16.msra.mxu0 %v7643_v4  ;;  %5523 = vmatpush1.bf16.msra.mxu1 %v7646_v5  ;;  %v7733_v4 = vld [vmem:[%s10958_s1 + $0xb60] ss:$16 sps:$4 sm:$0xff]   ;;  %v7736_v5 = vld [vmem:[%s10958_s1 + $0xb68] ss:$16 sps:$4 sm:$0xff]  }
 0x134   :  { %4991 = vmatprep.subr.bf16.mxu0 %v7651_v6  ;;  %5524 = vmatprep.subr.bf16.mxu1 %v7654_v7  ;;  %v7741_v6 = vld [vmem:[%s10958_s1 + $0xb84] ss:$16 sps:$4 sm:$0xff]   ;;  %v7744_v7 = vld [vmem:[%s10958_s1 + $0xb8c] ss:$16 sps:$4 sm:$0xff]  }
 0x137   :  { %4992 = vmatpush1.bf16.msra.mxu0 %v7649_v8  ;;  %5525 = vmatpush1.bf16.msra.mxu1 %v7652_v9  ;;  %v7739_v8 = vld [vmem:[%s10958_s1 + $0xb80] ss:$16 sps:$4 sm:$0xff]   ;;  %v7742_v9 = vld [vmem:[%s10958_s1 + $0xb88] ss:$16 sps:$4 sm:$0xff]  }
 0x138   :  { %4993 = vmatprep.subr.bf16.mxu0 %v7657_v10  ;;  %5526 = vmatprep.subr.bf16.mxu1 %v7660_v11  ;;  %v7747_v10 = vld [vmem:[%s10958_s1 + $0xba4] ss:$16 sps:$4 sm:$0xff]   ;;  %v7750_v11 = vld [vmem:[%s10958_s1 + $0xbac] ss:$16 sps:$4 sm:$0xff]  }
 0x13b   :  { %4994 = vmatpush1.bf16.msra.mxu0 %v7655_v12  ;;  %5527 = vmatpush1.bf16.msra.mxu1 %v7658_v13  ;;  %v7745_v12 = vld [vmem:[%s10958_s1 + $0xba0] ss:$16 sps:$4 sm:$0xff]   ;;  %v7748_v13 = vld [vmem:[%s10958_s1 + $0xba8] ss:$16 sps:$4 sm:$0xff]  }
 0x13c   :  { %4995 = vmatprep.subr.bf16.mxu0 %v7663_v14  ;;  %5528 = vmatprep.subr.bf16.mxu1 %v7666_v15  ;;  %v7753_v14 = vld [vmem:[%s10958_s1 + $0xbc4] ss:$16 sps:$4 sm:$0xff]   ;;  %v7756_v15 = vld [vmem:[%s10958_s1 + $0xbcc] ss:$16 sps:$4 sm:$0xff]  }
 0x13f   :  { %4996 = vmatpush1.bf16.msra.mxu0 %v7661_v16  ;;  %5529 = vmatpush1.bf16.msra.mxu1 %v7664_v17  ;;  %v7751_v16 = vld [vmem:[%s10958_s1 + $0xbc0] ss:$16 sps:$4 sm:$0xff]   ;;  %v7754_v17 = vld [vmem:[%s10958_s1 + $0xbc8] ss:$16 sps:$4 sm:$0xff]  }
 0x140   :  { %5006 = vmatprep.subr.bf16.mxu0 %v7669_v18  ;;  %5539 = vmatprep.subr.bf16.mxu1 %v7672_v20  ;;  %v7759_v18 = vld [vmem:[%s10958_s1 + $0xbe4] ss:$16 sps:$4 sm:$0xff]   ;;  %v7757_v20 = vld [vmem:[%s10958_s1 + $0xbe0] ss:$16 sps:$4 sm:$0xff]  }
 0x142   :  { %4998 = vmatmul.mubr.bf16.vlgmr.msra.gmra.mrb[0].mxu0 %v54_v22  ;;  %5531 = vmatmul.mubr.bf16.vlgmr.msra.gmra.mrb[0].mxu1 %v54_v22  ;;  %v7765_v22 = vld [vmem:[%s10958_s1 + $0xc04] ss:$16 sps:$4 sm:$0xff]  }
 0x143   :  { %5007 = vmatpush1.bf16.msra.mxu0 %v7667_v23  ;;  %5540 = vmatpush1.bf16.msra.mxu1 %v7670_v24  ;;  %v31_v23 = vld [vmem:[%s10959_s0 + $0x50] sm:$0xff]  ;;  %v7768_v24 = vld [vmem:[%s10958_s1 + $0xc0c] ss:$16 sps:$4 sm:$0xff]  }
 0x144   :  { %5008 = vmatprep.subr.bf16.mxu0 %v7675_v25  ;;  %5541 = vmatprep.subr.bf16.mxu1 %v7678_v26  ;;  %v34_v25 = vld [vmem:[%s10959_s0 + $0x68] sm:$0xff]  ;;  %v56_v26 = vpack.c.bf16 %v31_v23, %v31_v23 }
 0x145   :  { %5038 = vmatprep.mubr.bf16.mxu0 %v57_v27  ;;  %5571 = vmatprep.mubr.bf16.mxu1 %v57_v27  ;;  %v7763_v27 = vld [vmem:[%s10958_s1 + $0xc00] ss:$16 sps:$4 sm:$0xff]   ;;  %v7858_v23 = vld [vmem:[%s10958_s1 + $0xdec] ss:$16 sps:$4 sm:$0xff]  }
 0x147   :  { %5009 = vmatpush1.bf16.msra.mxu0 %v7673_v28  ;;  %5542 = vmatpush1.bf16.msra.mxu1 %v7676_v29  ;;  %v7766_v28 = vld [vmem:[%s10958_s1 + $0xc08] ss:$16 sps:$4 sm:$0xff]   ;;  %v7771_v29 = vld [vmem:[%s10958_s1 + $0xc24] ss:$16 sps:$4 sm:$0xff]  }
 0x148   :  { %5010 = vmatprep.subr.bf16.mxu0 %v7681_v30  ;;  %5543 = vmatprep.subr.bf16.mxu1 %v7684_v31  ;;  %v7774_v30 = vld [vmem:[%s10958_s1 + $0xc2c] ss:$16 sps:$4 sm:$0xff]   ;;  %v59_v31 = vpack.c.bf16 %v34_v25, %v34_v25  ;;  %v7856_v25 = vld [vmem:[%s10958_s1 + $0xde8] ss:$16 sps:$4 sm:$0xff]  }
 0x14b   :  { %5011 = vmatpush1.bf16.msra.mxu0 %v7679_v32  ;;  %5544 = vmatpush1.bf16.msra.mxu1 %v7682_v33  ;;  %v7769_v32 = vld [vmem:[%s10958_s1 + $0xc20] ss:$16 sps:$4 sm:$0xff]   ;;  %v7772_v33 = vld [vmem:[%s10958_s1 + $0xc28] ss:$16 sps:$4 sm:$0xff]  }
 0x14c   :  { %5012 = vmatprep.subr.bf16.mxu0 %v7687_v34  ;;  %5545 = vmatprep.subr.bf16.mxu1 %v7690_v35  ;;  %v7777_v34 = vld [vmem:[%s10958_s1 + $0xc44] ss:$16 sps:$4 sm:$0xff]   ;;  %v7780_v35 = vld [vmem:[%s10958_s1 + $0xc4c] ss:$16 sps:$4 sm:$0xff]  }
 0x14f   :  { %5013 = vmatpush1.bf16.msra.mxu0 %v7685_v36  ;;  %5546 = vmatpush1.bf16.msra.mxu1 %v7688_v37  ;;  %v7775_v36 = vld [vmem:[%s10958_s1 + $0xc40] ss:$16 sps:$4 sm:$0xff]   ;;  %v7778_v37 = vld [vmem:[%s10958_s1 + $0xc48] ss:$16 sps:$4 sm:$0xff]  }
 0x150   :  { %5014 = vmatprep.subr.bf16.mxu0 %v7693_v38  ;;  %5547 = vmatprep.subr.bf16.mxu1 %v7696_v39  ;;  %v7783_v38 = vld [vmem:[%s10958_s1 + $0xc64] ss:$16 sps:$4 sm:$0xff]   ;;  %v7786_v39 = vld [vmem:[%s10958_s1 + $0xc6c] ss:$16 sps:$4 sm:$0xff]  }
 0x153   :  { %5015 = vmatpush1.bf16.msra.mxu0 %v7691_v40  ;;  %5548 = vmatpush1.bf16.msra.mxu1 %v7694_v41  ;;  %v7781_v40 = vld [vmem:[%s10958_s1 + $0xc60] ss:$16 sps:$4 sm:$0xff]   ;;  %v7784_v41 = vld [vmem:[%s10958_s1 + $0xc68] ss:$16 sps:$4 sm:$0xff]  }
 0x154   :  { %5016 = vmatprep.subr.bf16.mxu0 %v7699_v42  ;;  %5549 = vmatprep.subr.bf16.mxu1 %v7702_v43  ;;  %v7789_v42 = vld [vmem:[%s10958_s1 + $0xc84] ss:$16 sps:$4 sm:$0xff]   ;;  %v7792_v43 = vld [vmem:[%s10958_s1 + $0xc8c] ss:$16 sps:$4 sm:$0xff]  }
 0x157   :  { %5017 = vmatpush1.bf16.msra.mxu0 %v7697_v44  ;;  %5550 = vmatpush1.bf16.msra.mxu1 %v7700_v45  ;;  %v7787_v44 = vld [vmem:[%s10958_s1 + $0xc80] ss:$16 sps:$4 sm:$0xff]   ;;  %v7790_v45 = vld [vmem:[%s10958_s1 + $0xc88] ss:$16 sps:$4 sm:$0xff]  }
 0x158   :  { %5018 = vmatprep.subr.bf16.mxu0 %v7705_v46  ;;  %5551 = vmatprep.subr.bf16.mxu1 %v7708_v47  ;;  %v7795_v46 = vld [vmem:[%s10958_s1 + $0xca4] ss:$16 sps:$4 sm:$0xff]   ;;  %v7798_v47 = vld [vmem:[%s10958_s1 + $0xcac] ss:$16 sps:$4 sm:$0xff]  }
 0x15b   :  { %5019 = vmatpush1.bf16.msra.mxu0 %v7703_v48  ;;  %5552 = vmatpush1.bf16.msra.mxu1 %v7706_v49  ;;  %v7793_v48 = vld [vmem:[%s10958_s1 + $0xca0] ss:$16 sps:$4 sm:$0xff]   ;;  %v7796_v49 = vld [vmem:[%s10958_s1 + $0xca8] ss:$16 sps:$4 sm:$0xff]  }
 0x15c   :  { %5020 = vmatprep.subr.bf16.mxu0 %v7711_v50  ;;  %5553 = vmatprep.subr.bf16.mxu1 %v7714_v51  ;;  %v7801_v50 = vld [vmem:[%s10958_s1 + $0xcc4] ss:$16 sps:$4 sm:$0xff]   ;;  %v7804_v51 = vld [vmem:[%s10958_s1 + $0xccc] ss:$16 sps:$4 sm:$0xff]  }
 0x15f   :  { %5021 = vmatpush1.bf16.msra.mxu0 %v7709_v52  ;;  %5554 = vmatpush1.bf16.msra.mxu1 %v7712_v53  ;;  %v7799_v52 = vld [vmem:[%s10958_s1 + $0xcc0] ss:$16 sps:$4 sm:$0xff]   ;;  %v7802_v53 = vld [vmem:[%s10958_s1 + $0xcc8] ss:$16 sps:$4 sm:$0xff]  }
 0x160   :  { %5022 = vmatprep.subr.bf16.mxu0 %v7717_v54  ;;  %5555 = vmatprep.subr.bf16.mxu1 %v7720_v55  ;;  %v7807_v54 = vld [vmem:[%s10958_s1 + $0xce4] ss:$16 sps:$4 sm:$0xff]   ;;  %v7810_v55 = vld [vmem:[%s10958_s1 + $0xcec] ss:$16 sps:$4 sm:$0xff]  }
 0x163   :  { %5023 = vmatpush1.bf16.msra.mxu0 %v7715_v56  ;;  %5556 = vmatpush1.bf16.msra.mxu1 %v7718_v57  ;;  %v7805_v56 = vld [vmem:[%s10958_s1 + $0xce0] ss:$16 sps:$4 sm:$0xff]   ;;  %v7808_v57 = vld [vmem:[%s10958_s1 + $0xce8] ss:$16 sps:$4 sm:$0xff]  }
 0x164   :  { %5024 = vmatprep.subr.bf16.mxu0 %v7723_v58  ;;  %5557 = vmatprep.subr.bf16.mxu1 %v7726_v59  ;;  %v7813_v58 = vld [vmem:[%s10958_s1 + $0xd04] ss:$16 sps:$4 sm:$0xff]   ;;  %v7816_v59 = vld [vmem:[%s10958_s1 + $0xd0c] ss:$16 sps:$4 sm:$0xff]  }
 0x167   :  { %5025 = vmatpush1.bf16.msra.mxu0 %v7721_v60  ;;  %5558 = vmatpush1.bf16.msra.mxu1 %v7724_v61  ;;  %v7811_v60 = vld [vmem:[%s10958_s1 + $0xd00] ss:$16 sps:$4 sm:$0xff]   ;;  %v7814_v61 = vld [vmem:[%s10958_s1 + $0xd08] ss:$16 sps:$4 sm:$0xff]  }
 0x168   :  { %5026 = vmatprep.subr.bf16.mxu0 %v7729_v62  ;;  %5559 = vmatprep.subr.bf16.mxu1 %v7732_v63  ;;  %v7819_v62 = vld [vmem:[%s10958_s1 + $0xd24] ss:$16 sps:$4 sm:$0xff]   ;;  %v7822_v63 = vld [vmem:[%s10958_s1 + $0xd2c] ss:$16 sps:$4 sm:$0xff]  }
 0x16b   :  { %5027 = vmatpush1.bf16.msra.mxu0 %v7727_v0  ;;  %5560 = vmatpush1.bf16.msra.mxu1 %v7730_v1  ;;  %v7817_v0 = vld [vmem:[%s10958_s1 + $0xd20] ss:$16 sps:$4 sm:$0xff]   ;;  %v7820_v1 = vld [vmem:[%s10958_s1 + $0xd28] ss:$16 sps:$4 sm:$0xff]  }
 0x16c   :  { %5028 = vmatprep.subr.bf16.mxu0 %v7735_v2  ;;  %5561 = vmatprep.subr.bf16.mxu1 %v7738_v3  ;;  %v7825_v2 = vld [vmem:[%s10958_s1 + $0xd44] ss:$16 sps:$4 sm:$0xff]   ;;  %v7828_v3 = vld [vmem:[%s10958_s1 + $0xd4c] ss:$16 sps:$4 sm:$0xff]  }
 0x16f   :  { %5029 = vmatpush1.bf16.msra.mxu0 %v7733_v4  ;;  %5562 = vmatpush1.bf16.msra.mxu1 %v7736_v5  ;;  %v7823_v4 = vld [vmem:[%s10958_s1 + $0xd40] ss:$16 sps:$4 sm:$0xff]   ;;  %v7826_v5 = vld [vmem:[%s10958_s1 + $0xd48] ss:$16 sps:$4 sm:$0xff]  }
 0x170   :  { %5030 = vmatprep.subr.bf16.mxu0 %v7741_v6  ;;  %5563 = vmatprep.subr.bf16.mxu1 %v7744_v7  ;;  %v7831_v6 = vld [vmem:[%s10958_s1 + $0xd64] ss:$16 sps:$4 sm:$0xff]   ;;  %v7834_v7 = vld [vmem:[%s10958_s1 + $0xd6c] ss:$16 sps:$4 sm:$0xff]  }
 0x173   :  { %5031 = vmatpush1.bf16.msra.mxu0 %v7739_v8  ;;  %5564 = vmatpush1.bf16.msra.mxu1 %v7742_v9  ;;  %v7829_v8 = vld [vmem:[%s10958_s1 + $0xd60] ss:$16 sps:$4 sm:$0xff]   ;;  %v7832_v9 = vld [vmem:[%s10958_s1 + $0xd68] ss:$16 sps:$4 sm:$0xff]  }
 0x174   :  { %5032 = vmatprep.subr.bf16.mxu0 %v7747_v10  ;;  %5565 = vmatprep.subr.bf16.mxu1 %v7750_v11  ;;  %v7837_v10 = vld [vmem:[%s10958_s1 + $0xd84] ss:$16 sps:$4 sm:$0xff]   ;;  %v7840_v11 = vld [vmem:[%s10958_s1 + $0xd8c] ss:$16 sps:$4 sm:$0xff]  }
 0x177   :  { %5033 = vmatpush1.bf16.msra.mxu0 %v7745_v12  ;;  %5566 = vmatpush1.bf16.msra.mxu1 %v7748_v13  ;;  %v7835_v12 = vld [vmem:[%s10958_s1 + $0xd80] ss:$16 sps:$4 sm:$0xff]   ;;  %v7838_v13 = vld [vmem:[%s10958_s1 + $0xd88] ss:$16 sps:$4 sm:$0xff]  }
 0x178   :  { %5034 = vmatprep.subr.bf16.mxu0 %v7753_v14  ;;  %5567 = vmatprep.subr.bf16.mxu1 %v7756_v15  ;;  %v7843_v14 = vld [vmem:[%s10958_s1 + $0xda4] ss:$16 sps:$4 sm:$0xff]   ;;  %v7846_v15 = vld [vmem:[%s10958_s1 + $0xdac] ss:$16 sps:$4 sm:$0xff]  }
 0x17b   :  { %5035 = vmatpush1.bf16.msra.mxu0 %v7751_v16  ;;  %5568 = vmatpush1.bf16.msra.mxu1 %v7754_v17  ;;  %v7841_v16 = vld [vmem:[%s10958_s1 + $0xda0] ss:$16 sps:$4 sm:$0xff]   ;;  %v7844_v17 = vld [vmem:[%s10958_s1 + $0xda8] ss:$16 sps:$4 sm:$0xff]  }
 0x17c   :  { %5036 = vmatprep.subr.bf16.mxu0 %v7759_v18  ;;  %5569 = vmatprep.subr.bf16.mxu1 %v7762_v19  ;;  %v7849_v18 = vld [vmem:[%s10958_s1 + $0xdc4] ss:$16 sps:$4 sm:$0xff]   ;;  %v7852_v19 = vld [vmem:[%s10958_s1 + $0xdcc] ss:$16 sps:$4 sm:$0xff]  }
 0x17f   :  { %5037 = vmatpush1.bf16.msra.mxu0 %v7757_v20  ;;  %5570 = vmatpush1.bf16.msra.mxu1 %v7760_v21  ;;  %v7847_v20 = vld [vmem:[%s10958_s1 + $0xdc0] ss:$16 sps:$4 sm:$0xff]   ;;  %v7850_v21 = vld [vmem:[%s10958_s1 + $0xdc8] ss:$16 sps:$4 sm:$0xff]  }
 0x180   :  { %5047 = vmatprep.subr.bf16.mxu0 %v7765_v22  ;;  %5580 = vmatprep.subr.bf16.mxu1 %v7768_v24  ;;  %v7855_v22 = vld [vmem:[%s10958_s1 + $0xde4] ss:$16 sps:$4 sm:$0xff]   ;;  %v7853_v24 = vld [vmem:[%s10958_s1 + $0xde0] ss:$16 sps:$4 sm:$0xff]  }
 0x182   :  { %5039 = vmatmul.mubr.bf16.vlgmr.msra.gmra.mrb[0].mxu0 %v56_v26  ;;  %5572 = vmatmul.mubr.bf16.vlgmr.msra.gmra.mrb[0].mxu1 %v56_v26  ;;  %v7861_v26 = vld [vmem:[%s10958_s1 + $0xe04] ss:$16 sps:$4 sm:$0xff]  }
 0x183   :  { %5048 = vmatpush1.bf16.msra.mxu0 %v7763_v27  ;;  %5581 = vmatpush1.bf16.msra.mxu1 %v7766_v28  ;;  %v33_v27 = vld [vmem:[%s10959_s0 + $0x60] sm:$0xff]  ;;  %v7864_v28 = vld [vmem:[%s10958_s1 + $0xe0c] ss:$16 sps:$4 sm:$0xff]  }
 0x184   :  { %5049 = vmatprep.subr.bf16.mxu0 %v7771_v29  ;;  %5582 = vmatprep.subr.bf16.mxu1 %v7774_v30  ;;  %v36_v29 = vld [vmem:[%s10959_s0 + $0x78] sm:$0xff]  ;;  %v58_v30 = vpack.c.bf16 %v33_v27, %v33_v27 }
 0x185   :  { %5079 = vmatprep.mubr.bf16.mxu0 %v59_v31  ;;  %5612 = vmatprep.mubr.bf16.mxu1 %v59_v31  ;;  %v7859_v31 = vld [vmem:[%s10958_s1 + $0xe00] ss:$16 sps:$4 sm:$0xff]   ;;  %v7954_v27 = vld [vmem:[%s10958_s1 + $0xfec] ss:$16 sps:$4 sm:$0xff]  }
 0x187   :  { %5050 = vmatpush1.bf16.msra.mxu0 %v7769_v32  ;;  %5583 = vmatpush1.bf16.msra.mxu1 %v7772_v33  ;;  %v7862_v32 = vld [vmem:[%s10958_s1 + $0xe08] ss:$16 sps:$4 sm:$0xff]   ;;  %v7867_v33 = vld [vmem:[%s10958_s1 + $0xe24] ss:$16 sps:$4 sm:$0xff]  }
 0x188   :  { %5051 = vmatprep.subr.bf16.mxu0 %v7777_v34  ;;  %5584 = vmatprep.subr.bf16.mxu1 %v7780_v35  ;;  %v7870_v34 = vld [vmem:[%s10958_s1 + $0xe2c] ss:$16 sps:$4 sm:$0xff]   ;;  %v61_v35 = vpack.c.bf16 %v36_v29, %v36_v29  ;;  %v7952_v29 = vld [vmem:[%s10958_s1 + $0xfe8] ss:$16 sps:$4 sm:$0xff]  }
 0x18b   :  { %5052 = vmatpush1.bf16.msra.mxu0 %v7775_v36  ;;  %5585 = vmatpush1.bf16.msra.mxu1 %v7778_v37  ;;  %v7865_v36 = vld [vmem:[%s10958_s1 + $0xe20] ss:$16 sps:$4 sm:$0xff]   ;;  %v7868_v37 = vld [vmem:[%s10958_s1 + $0xe28] ss:$16 sps:$4 sm:$0xff]  }
 0x18c   :  { %5053 = vmatprep.subr.bf16.mxu0 %v7783_v38  ;;  %5586 = vmatprep.subr.bf16.mxu1 %v7786_v39  ;;  %v7873_v38 = vld [vmem:[%s10958_s1 + $0xe44] ss:$16 sps:$4 sm:$0xff]   ;;  %v7876_v39 = vld [vmem:[%s10958_s1 + $0xe4c] ss:$16 sps:$4 sm:$0xff]  }
 0x18f   :  { %5054 = vmatpush1.bf16.msra.mxu0 %v7781_v40  ;;  %5587 = vmatpush1.bf16.msra.mxu1 %v7784_v41  ;;  %v7871_v40 = vld [vmem:[%s10958_s1 + $0xe40] ss:$16 sps:$4 sm:$0xff]   ;;  %v7874_v41 = vld [vmem:[%s10958_s1 + $0xe48] ss:$16 sps:$4 sm:$0xff]  }
 0x190   :  { %5055 = vmatprep.subr.bf16.mxu0 %v7789_v42  ;;  %5588 = vmatprep.subr.bf16.mxu1 %v7792_v43  ;;  %v7879_v42 = vld [vmem:[%s10958_s1 + $0xe64] ss:$16 sps:$4 sm:$0xff]   ;;  %v7882_v43 = vld [vmem:[%s10958_s1 + $0xe6c] ss:$16 sps:$4 sm:$0xff]  }
 0x193   :  { %5056 = vmatpush1.bf16.msra.mxu0 %v7787_v44  ;;  %5589 = vmatpush1.bf16.msra.mxu1 %v7790_v45  ;;  %v7877_v44 = vld [vmem:[%s10958_s1 + $0xe60] ss:$16 sps:$4 sm:$0xff]   ;;  %v7880_v45 = vld [vmem:[%s10958_s1 + $0xe68] ss:$16 sps:$4 sm:$0xff]  }
 0x194   :  { %5057 = vmatprep.subr.bf16.mxu0 %v7795_v46  ;;  %5590 = vmatprep.subr.bf16.mxu1 %v7798_v47  ;;  %v7885_v46 = vld [vmem:[%s10958_s1 + $0xe84] ss:$16 sps:$4 sm:$0xff]   ;;  %v7888_v47 = vld [vmem:[%s10958_s1 + $0xe8c] ss:$16 sps:$4 sm:$0xff]  }
 0x197   :  { %5058 = vmatpush1.bf16.msra.mxu0 %v7793_v48  ;;  %5591 = vmatpush1.bf16.msra.mxu1 %v7796_v49  ;;  %v7883_v48 = vld [vmem:[%s10958_s1 + $0xe80] ss:$16 sps:$4 sm:$0xff]   ;;  %v7886_v49 = vld [vmem:[%s10958_s1 + $0xe88] ss:$16 sps:$4 sm:$0xff]  }
 0x198   :  { %5059 = vmatprep.subr.bf16.mxu0 %v7801_v50  ;;  %5592 = vmatprep.subr.bf16.mxu1 %v7804_v51  ;;  %v7891_v50 = vld [vmem:[%s10958_s1 + $0xea4] ss:$16 sps:$4 sm:$0xff]   ;;  %v7894_v51 = vld [vmem:[%s10958_s1 + $0xeac] ss:$16 sps:$4 sm:$0xff]  }
 0x19b   :  { %5060 = vmatpush1.bf16.msra.mxu0 %v7799_v52  ;;  %5593 = vmatpush1.bf16.msra.mxu1 %v7802_v53  ;;  %v7889_v52 = vld [vmem:[%s10958_s1 + $0xea0] ss:$16 sps:$4 sm:$0xff]   ;;  %v7892_v53 = vld [vmem:[%s10958_s1 + $0xea8] ss:$16 sps:$4 sm:$0xff]  }
 0x19c   :  { %5061 = vmatprep.subr.bf16.mxu0 %v7807_v54  ;;  %5594 = vmatprep.subr.bf16.mxu1 %v7810_v55  ;;  %v7897_v54 = vld [vmem:[%s10958_s1 + $0xec4] ss:$16 sps:$4 sm:$0xff]   ;;  %v7900_v55 = vld [vmem:[%s10958_s1 + $0xecc] ss:$16 sps:$4 sm:$0xff]  }
 0x19f   :  { %5062 = vmatpush1.bf16.msra.mxu0 %v7805_v56  ;;  %5595 = vmatpush1.bf16.msra.mxu1 %v7808_v57  ;;  %v7895_v56 = vld [vmem:[%s10958_s1 + $0xec0] ss:$16 sps:$4 sm:$0xff]   ;;  %v7898_v57 = vld [vmem:[%s10958_s1 + $0xec8] ss:$16 sps:$4 sm:$0xff]  }
 0x1a0   :  { %5063 = vmatprep.subr.bf16.mxu0 %v7813_v58  ;;  %5596 = vmatprep.subr.bf16.mxu1 %v7816_v59  ;;  %v7903_v58 = vld [vmem:[%s10958_s1 + $0xee4] ss:$16 sps:$4 sm:$0xff]   ;;  %v7906_v59 = vld [vmem:[%s10958_s1 + $0xeec] ss:$16 sps:$4 sm:$0xff]  }
 0x1a3   :  { %5064 = vmatpush1.bf16.msra.mxu0 %v7811_v60  ;;  %5597 = vmatpush1.bf16.msra.mxu1 %v7814_v61  ;;  %v7901_v60 = vld [vmem:[%s10958_s1 + $0xee0] ss:$16 sps:$4 sm:$0xff]   ;;  %v7904_v61 = vld [vmem:[%s10958_s1 + $0xee8] ss:$16 sps:$4 sm:$0xff]  }
 0x1a4   :  { %5065 = vmatprep.subr.bf16.mxu0 %v7819_v62  ;;  %5598 = vmatprep.subr.bf16.mxu1 %v7822_v63  ;;  %v7909_v62 = vld [vmem:[%s10958_s1 + $0xf04] ss:$16 sps:$4 sm:$0xff]   ;;  %v7912_v63 = vld [vmem:[%s10958_s1 + $0xf0c] ss:$16 sps:$4 sm:$0xff]  }
 0x1a7   :  { %5066 = vmatpush1.bf16.msra.mxu0 %v7817_v0  ;;  %5599 = vmatpush1.bf16.msra.mxu1 %v7820_v1  ;;  %v7907_v0 = vld [vmem:[%s10958_s1 + $0xf00] ss:$16 sps:$4 sm:$0xff]   ;;  %v7910_v1 = vld [vmem:[%s10958_s1 + $0xf08] ss:$16 sps:$4 sm:$0xff]  }
 0x1a8   :  { %5067 = vmatprep.subr.bf16.mxu0 %v7825_v2  ;;  %5600 = vmatprep.subr.bf16.mxu1 %v7828_v3  ;;  %v7915_v2 = vld [vmem:[%s10958_s1 + $0xf24] ss:$16 sps:$4 sm:$0xff]   ;;  %v7918_v3 = vld [vmem:[%s10958_s1 + $0xf2c] ss:$16 sps:$4 sm:$0xff]  }
 0x1ab   :  { %5068 = vmatpush1.bf16.msra.mxu0 %v7823_v4  ;;  %5601 = vmatpush1.bf16.msra.mxu1 %v7826_v5  ;;  %v7913_v4 = vld [vmem:[%s10958_s1 + $0xf20] ss:$16 sps:$4 sm:$0xff]   ;;  %v7916_v5 = vld [vmem:[%s10958_s1 + $0xf28] ss:$16 sps:$4 sm:$0xff]  }
 0x1ac   :  { %5069 = vmatprep.subr.bf16.mxu0 %v7831_v6  ;;  %5602 = vmatprep.subr.bf16.mxu1 %v7834_v7  ;;  %v7921_v6 = vld [vmem:[%s10958_s1 + $0xf44] ss:$16 sps:$4 sm:$0xff]   ;;  %v7924_v7 = vld [vmem:[%s10958_s1 + $0xf4c] ss:$16 sps:$4 sm:$0xff]  }
 0x1af   :  { %5070 = vmatpush1.bf16.msra.mxu0 %v7829_v8  ;;  %5603 = vmatpush1.bf16.msra.mxu1 %v7832_v9  ;;  %v7919_v8 = vld [vmem:[%s10958_s1 + $0xf40] ss:$16 sps:$4 sm:$0xff]   ;;  %v7922_v9 = vld [vmem:[%s10958_s1 + $0xf48] ss:$16 sps:$4 sm:$0xff]  }
 0x1b0   :  { %5071 = vmatprep.subr.bf16.mxu0 %v7837_v10  ;;  %5604 = vmatprep.subr.bf16.mxu1 %v7840_v11  ;;  %v7927_v10 = vld [vmem:[%s10958_s1 + $0xf64] ss:$16 sps:$4 sm:$0xff]   ;;  %v7930_v11 = vld [vmem:[%s10958_s1 + $0xf6c] ss:$16 sps:$4 sm:$0xff]  }
 0x1b3   :  { %5072 = vmatpush1.bf16.msra.mxu0 %v7835_v12  ;;  %5605 = vmatpush1.bf16.msra.mxu1 %v7838_v13  ;;  %v7925_v12 = vld [vmem:[%s10958_s1 + $0xf60] ss:$16 sps:$4 sm:$0xff]   ;;  %v7928_v13 = vld [vmem:[%s10958_s1 + $0xf68] ss:$16 sps:$4 sm:$0xff]  }
 0x1b4   :  { %5073 = vmatprep.subr.bf16.mxu0 %v7843_v14  ;;  %5606 = vmatprep.subr.bf16.mxu1 %v7846_v15  ;;  %v7933_v14 = vld [vmem:[%s10958_s1 + $0xf84] ss:$16 sps:$4 sm:$0xff]   ;;  %v7936_v15 = vld [vmem:[%s10958_s1 + $0xf8c] ss:$16 sps:$4 sm:$0xff]  }
 0x1b7   :  { %5074 = vmatpush1.bf16.msra.mxu0 %v7841_v16  ;;  %5607 = vmatpush1.bf16.msra.mxu1 %v7844_v17  ;;  %v7931_v16 = vld [vmem:[%s10958_s1 + $0xf80] ss:$16 sps:$4 sm:$0xff]   ;;  %v7934_v17 = vld [vmem:[%s10958_s1 + $0xf88] ss:$16 sps:$4 sm:$0xff]  }
 0x1b8   :  { %5075 = vmatprep.subr.bf16.mxu0 %v7849_v18  ;;  %5608 = vmatprep.subr.bf16.mxu1 %v7852_v19  ;;  %v7939_v18 = vld [vmem:[%s10958_s1 + $0xfa4] ss:$16 sps:$4 sm:$0xff]   ;;  %v7942_v19 = vld [vmem:[%s10958_s1 + $0xfac] ss:$16 sps:$4 sm:$0xff]  }
 0x1bb   :  { %5076 = vmatpush1.bf16.msra.mxu0 %v7847_v20  ;;  %5609 = vmatpush1.bf16.msra.mxu1 %v7850_v21  ;;  %v7937_v20 = vld [vmem:[%s10958_s1 + $0xfa0] ss:$16 sps:$4 sm:$0xff]   ;;  %v7940_v21 = vld [vmem:[%s10958_s1 + $0xfa8] ss:$16 sps:$4 sm:$0xff]  }
 0x1bc   :  { %5077 = vmatprep.subr.bf16.mxu0 %v7855_v22  ;;  %5610 = vmatprep.subr.bf16.mxu1 %v7858_v23  ;;  %v7945_v22 = vld [vmem:[%s10958_s1 + $0xfc4] ss:$16 sps:$4 sm:$0xff]   ;;  %v7948_v23 = vld [vmem:[%s10958_s1 + $0xfcc] ss:$16 sps:$4 sm:$0xff]  }
 0x1bf   :  { %5078 = vmatpush1.bf16.msra.mxu0 %v7853_v24  ;;  %5611 = vmatpush1.bf16.msra.mxu1 %v7856_v25  ;;  %v7943_v24 = vld [vmem:[%s10958_s1 + $0xfc0] ss:$16 sps:$4 sm:$0xff]   ;;  %v7946_v25 = vld [vmem:[%s10958_s1 + $0xfc8] ss:$16 sps:$4 sm:$0xff]  }
 0x1c0   :  { %5088 = vmatprep.subr.bf16.mxu0 %v7861_v26  ;;  %5621 = vmatprep.subr.bf16.mxu1 %v7864_v28  ;;  %v7951_v26 = vld [vmem:[%s10958_s1 + $0xfe4] ss:$16 sps:$4 sm:$0xff]   ;;  %v7949_v28 = vld [vmem:[%s10958_s1 + $0xfe0] ss:$16 sps:$4 sm:$0xff]  }
 0x1c2   :  { %5080 = vmatmul.mubr.bf16.vlgmr.msra.gmra.mrb[0].mxu0 %v58_v30  ;;  %5613 = vmatmul.mubr.bf16.vlgmr.msra.gmra.mrb[0].mxu1 %v58_v30  ;;  %v35_v30 = vld [vmem:[%s10959_s0 + $0x70] sm:$0xff] }
 0x1c3   :  { %5089 = vmatpush1.bf16.msra.mxu0 %v7859_v31  ;;  %5622 = vmatpush1.bf16.msra.mxu1 %v7862_v32  ;;  %v7957_v31 = vld [vmem:[%s10958_s1 + $0x1004] ss:$16 sps:$4 sm:$0xff]   ;;  %v7960_v32 = vld [vmem:[%s10958_s1 + $0x100c] ss:$16 sps:$4 sm:$0xff]  }
 0x1c4   :  { %5090 = vmatprep.subr.bf16.mxu0 %v7867_v33  ;;  %5623 = vmatprep.subr.bf16.mxu1 %v7870_v34  ;;  %v60_v33 = vpack.c.bf16 %v35_v30, %v35_v30  ;;  %v38_v34 = vld [vmem:[%s10959_s0 + $0x88] sm:$0xff]  ;;  %v8047_v30 = vld [vmem:[%s10958_s1 + $0x11e4] ss:$16 sps:$4 sm:$0xff]  }
 0x1c5   :  { %5120 = vmatprep.mubr.bf16.mxu0 %v61_v35  ;;  %5653 = vmatprep.mubr.bf16.mxu1 %v61_v35  ;;  %v7955_v35 = vld [vmem:[%s10958_s1 + $0x1000] ss:$16 sps:$4 sm:$0xff]  }
 0x1c7   :  { %5091 = vmatpush1.bf16.msra.mxu0 %v7865_v36  ;;  %5624 = vmatpush1.bf16.msra.mxu1 %v7868_v37  ;;  %v7958_v36 = vld [vmem:[%s10958_s1 + $0x1008] ss:$16 sps:$4 sm:$0xff]   ;;  %v7963_v37 = vld [vmem:[%s10958_s1 + $0x1024] ss:$16 sps:$4 sm:$0xff]  }
 0x1c8   :  { %5092 = vmatprep.subr.bf16.mxu0 %v7873_v38  ;;  %5625 = vmatprep.subr.bf16.mxu1 %v7876_v39  ;;  %v7966_v38 = vld [vmem:[%s10958_s1 + $0x102c] ss:$16 sps:$4 sm:$0xff]   ;;  %v63_v39 = vpack.c.bf16 %v38_v34, %v38_v34  ;;  %v37_v34 = vld [vmem:[%s10959_s0 + $0x80] sm:$0xff] }
 0x1cb   :  { %5093 = vmatpush1.bf16.msra.mxu0 %v7871_v40  ;;  %5626 = vmatpush1.bf16.msra.mxu1 %v7874_v41  ;;  %v7961_v40 = vld [vmem:[%s10958_s1 + $0x1020] ss:$16 sps:$4 sm:$0xff]   ;;  %v7964_v41 = vld [vmem:[%s10958_s1 + $0x1028] ss:$16 sps:$4 sm:$0xff]  }
 0x1cc   :  { %5094 = vmatprep.subr.bf16.mxu0 %v7879_v42  ;;  %5627 = vmatprep.subr.bf16.mxu1 %v7882_v43  ;;  %v7969_v42 = vld [vmem:[%s10958_s1 + $0x1044] ss:$16 sps:$4 sm:$0xff]   ;;  %v7972_v43 = vld [vmem:[%s10958_s1 + $0x104c] ss:$16 sps:$4 sm:$0xff]  }
 0x1cf   :  { %5095 = vmatpush1.bf16.msra.mxu0 %v7877_v44  ;;  %5628 = vmatpush1.bf16.msra.mxu1 %v7880_v45  ;;  %v7967_v44 = vld [vmem:[%s10958_s1 + $0x1040] ss:$16 sps:$4 sm:$0xff]   ;;  %v7970_v45 = vld [vmem:[%s10958_s1 + $0x1048] ss:$16 sps:$4 sm:$0xff]  }
 0x1d0   :  { %5096 = vmatprep.subr.bf16.mxu0 %v7885_v46  ;;  %5629 = vmatprep.subr.bf16.mxu1 %v7888_v47  ;;  %v7975_v46 = vld [vmem:[%s10958_s1 + $0x1064] ss:$16 sps:$4 sm:$0xff]   ;;  %v7978_v47 = vld [vmem:[%s10958_s1 + $0x106c] ss:$16 sps:$4 sm:$0xff]  }
 0x1d3   :  { %5097 = vmatpush1.bf16.msra.mxu0 %v7883_v48  ;;  %5630 = vmatpush1.bf16.msra.mxu1 %v7886_v49  ;;  %v7973_v48 = vld [vmem:[%s10958_s1 + $0x1060] ss:$16 sps:$4 sm:$0xff]   ;;  %v7976_v49 = vld [vmem:[%s10958_s1 + $0x1068] ss:$16 sps:$4 sm:$0xff]  }
 0x1d4   :  { %5098 = vmatprep.subr.bf16.mxu0 %v7891_v50  ;;  %5631 = vmatprep.subr.bf16.mxu1 %v7894_v51  ;;  %v7981_v50 = vld [vmem:[%s10958_s1 + $0x1084] ss:$16 sps:$4 sm:$0xff]   ;;  %v7984_v51 = vld [vmem:[%s10958_s1 + $0x108c] ss:$16 sps:$4 sm:$0xff]  }
 0x1d7   :  { %5099 = vmatpush1.bf16.msra.mxu0 %v7889_v52  ;;  %5632 = vmatpush1.bf16.msra.mxu1 %v7892_v53  ;;  %v7979_v52 = vld [vmem:[%s10958_s1 + $0x1080] ss:$16 sps:$4 sm:$0xff]   ;;  %v7982_v53 = vld [vmem:[%s10958_s1 + $0x1088] ss:$16 sps:$4 sm:$0xff]  }
 0x1d8   :  { %5100 = vmatprep.subr.bf16.mxu0 %v7897_v54  ;;  %5633 = vmatprep.subr.bf16.mxu1 %v7900_v55  ;;  %v7987_v54 = vld [vmem:[%s10958_s1 + $0x10a4] ss:$16 sps:$4 sm:$0xff]   ;;  %v7990_v55 = vld [vmem:[%s10958_s1 + $0x10ac] ss:$16 sps:$4 sm:$0xff]  }
 0x1db   :  { %5101 = vmatpush1.bf16.msra.mxu0 %v7895_v56  ;;  %5634 = vmatpush1.bf16.msra.mxu1 %v7898_v57  ;;  %v7985_v56 = vld [vmem:[%s10958_s1 + $0x10a0] ss:$16 sps:$4 sm:$0xff]   ;;  %v7988_v57 = vld [vmem:[%s10958_s1 + $0x10a8] ss:$16 sps:$4 sm:$0xff]  }
 0x1dc   :  { %5102 = vmatprep.subr.bf16.mxu0 %v7903_v58  ;;  %5635 = vmatprep.subr.bf16.mxu1 %v7906_v59  ;;  %v7993_v58 = vld [vmem:[%s10958_s1 + $0x10c4] ss:$16 sps:$4 sm:$0xff]   ;;  %v7996_v59 = vld [vmem:[%s10958_s1 + $0x10cc] ss:$16 sps:$4 sm:$0xff]  }
 0x1df   :  { %5103 = vmatpush1.bf16.msra.mxu0 %v7901_v60  ;;  %5636 = vmatpush1.bf16.msra.mxu1 %v7904_v61  ;;  %v7991_v60 = vld [vmem:[%s10958_s1 + $0x10c0] ss:$16 sps:$4 sm:$0xff]   ;;  %v7994_v61 = vld [vmem:[%s10958_s1 + $0x10c8] ss:$16 sps:$4 sm:$0xff]  }
 0x1e0   :  { %5104 = vmatprep.subr.bf16.mxu0 %v7909_v62  ;;  %5637 = vmatprep.subr.bf16.mxu1 %v7912_v63  ;;  %v7999_v62 = vld [vmem:[%s10958_s1 + $0x10e4] ss:$16 sps:$4 sm:$0xff]   ;;  %v8002_v63 = vld [vmem:[%s10958_s1 + $0x10ec] ss:$16 sps:$4 sm:$0xff]  }
 0x1e3   :  { %5105 = vmatpush1.bf16.msra.mxu0 %v7907_v0  ;;  %5638 = vmatpush1.bf16.msra.mxu1 %v7910_v1  ;;  %v7997_v0 = vld [vmem:[%s10958_s1 + $0x10e0] ss:$16 sps:$4 sm:$0xff]   ;;  %v8000_v1 = vld [vmem:[%s10958_s1 + $0x10e8] ss:$16 sps:$4 sm:$0xff]  }
 0x1e4   :  { %5106 = vmatprep.subr.bf16.mxu0 %v7915_v2  ;;  %5639 = vmatprep.subr.bf16.mxu1 %v7918_v3  ;;  %v8005_v2 = vld [vmem:[%s10958_s1 + $0x1104] ss:$16 sps:$4 sm:$0xff]   ;;  %v8008_v3 = vld [vmem:[%s10958_s1 + $0x110c] ss:$16 sps:$4 sm:$0xff]  }
 0x1e7   :  { %5107 = vmatpush1.bf16.msra.mxu0 %v7913_v4  ;;  %5640 = vmatpush1.bf16.msra.mxu1 %v7916_v5  ;;  %v8003_v4 = vld [vmem:[%s10958_s1 + $0x1100] ss:$16 sps:$4 sm:$0xff]   ;;  %v8006_v5 = vld [vmem:[%s10958_s1 + $0x1108] ss:$16 sps:$4 sm:$0xff]  }
 0x1e8   :  { %5108 = vmatprep.subr.bf16.mxu0 %v7921_v6  ;;  %5641 = vmatprep.subr.bf16.mxu1 %v7924_v7  ;;  %v8011_v6 = vld [vmem:[%s10958_s1 + $0x1124] ss:$16 sps:$4 sm:$0xff]   ;;  %v8014_v7 = vld [vmem:[%s10958_s1 + $0x112c] ss:$16 sps:$4 sm:$0xff]  }
 0x1eb   :  { %5109 = vmatpush1.bf16.msra.mxu0 %v7919_v8  ;;  %5642 = vmatpush1.bf16.msra.mxu1 %v7922_v9  ;;  %v8009_v8 = vld [vmem:[%s10958_s1 + $0x1120] ss:$16 sps:$4 sm:$0xff]   ;;  %v8012_v9 = vld [vmem:[%s10958_s1 + $0x1128] ss:$16 sps:$4 sm:$0xff]  }
 0x1ec   :  { %5110 = vmatprep.subr.bf16.mxu0 %v7927_v10  ;;  %5643 = vmatprep.subr.bf16.mxu1 %v7930_v11  ;;  %v8017_v10 = vld [vmem:[%s10958_s1 + $0x1144] ss:$16 sps:$4 sm:$0xff]   ;;  %v8020_v11 = vld [vmem:[%s10958_s1 + $0x114c] ss:$16 sps:$4 sm:$0xff]  }
 0x1ef   :  { %5111 = vmatpush1.bf16.msra.mxu0 %v7925_v12  ;;  %5644 = vmatpush1.bf16.msra.mxu1 %v7928_v13  ;;  %v8015_v12 = vld [vmem:[%s10958_s1 + $0x1140] ss:$16 sps:$4 sm:$0xff]   ;;  %v8018_v13 = vld [vmem:[%s10958_s1 + $0x1148] ss:$16 sps:$4 sm:$0xff]  }
 0x1f0   :  { %5112 = vmatprep.subr.bf16.mxu0 %v7933_v14  ;;  %5645 = vmatprep.subr.bf16.mxu1 %v7936_v15  ;;  %v8023_v14 = vld [vmem:[%s10958_s1 + $0x1164] ss:$16 sps:$4 sm:$0xff]   ;;  %v8026_v15 = vld [vmem:[%s10958_s1 + $0x116c] ss:$16 sps:$4 sm:$0xff]  }
 0x1f3   :  { %5113 = vmatpush1.bf16.msra.mxu0 %v7931_v16  ;;  %5646 = vmatpush1.bf16.msra.mxu1 %v7934_v17  ;;  %v8021_v16 = vld [vmem:[%s10958_s1 + $0x1160] ss:$16 sps:$4 sm:$0xff]   ;;  %v8024_v17 = vld [vmem:[%s10958_s1 + $0x1168] ss:$16 sps:$4 sm:$0xff]  }
 0x1f4   :  { %5114 = vmatprep.subr.bf16.mxu0 %v7939_v18  ;;  %5647 = vmatprep.subr.bf16.mxu1 %v7942_v19  ;;  %v8029_v18 = vld [vmem:[%s10958_s1 + $0x1184] ss:$16 sps:$4 sm:$0xff]   ;;  %v8032_v19 = vld [vmem:[%s10958_s1 + $0x118c] ss:$16 sps:$4 sm:$0xff]  }
 0x1f7   :  { %5115 = vmatpush1.bf16.msra.mxu0 %v7937_v20  ;;  %5648 = vmatpush1.bf16.msra.mxu1 %v7940_v21  ;;  %v8027_v20 = vld [vmem:[%s10958_s1 + $0x1180] ss:$16 sps:$4 sm:$0xff]   ;;  %v8030_v21 = vld [vmem:[%s10958_s1 + $0x1188] ss:$16 sps:$4 sm:$0xff]  }
 0x1f8   :  { %5116 = vmatprep.subr.bf16.mxu0 %v7945_v22  ;;  %5649 = vmatprep.subr.bf16.mxu1 %v7948_v23  ;;  %v8035_v22 = vld [vmem:[%s10958_s1 + $0x11a4] ss:$16 sps:$4 sm:$0xff]   ;;  %v8038_v23 = vld [vmem:[%s10958_s1 + $0x11ac] ss:$16 sps:$4 sm:$0xff]  }
 0x1fb   :  { %5117 = vmatpush1.bf16.msra.mxu0 %v7943_v24  ;;  %5650 = vmatpush1.bf16.msra.mxu1 %v7946_v25  ;;  %v8033_v24 = vld [vmem:[%s10958_s1 + $0x11a0] ss:$16 sps:$4 sm:$0xff]   ;;  %v8036_v25 = vld [vmem:[%s10958_s1 + $0x11a8] ss:$16 sps:$4 sm:$0xff]  }
 0x1fc   :  { %5118 = vmatprep.subr.bf16.mxu0 %v7951_v26  ;;  %5651 = vmatprep.subr.bf16.mxu1 %v7954_v27  ;;  %v8041_v26 = vld [vmem:[%s10958_s1 + $0x11c4] ss:$16 sps:$4 sm:$0xff]   ;;  %v8044_v27 = vld [vmem:[%s10958_s1 + $0x11cc] ss:$16 sps:$4 sm:$0xff]  }
 0x1ff   :  { %5119 = vmatpush1.bf16.msra.mxu0 %v7949_v28  ;;  %5652 = vmatpush1.bf16.msra.mxu1 %v7952_v29  ;;  %v8039_v28 = vld [vmem:[%s10958_s1 + $0x11c0] ss:$16 sps:$4 sm:$0xff]   ;;  %v8042_v29 = vld [vmem:[%s10958_s1 + $0x11c8] ss:$16 sps:$4 sm:$0xff]  }
 0x200   :  { %5129 = vmatprep.subr.bf16.mxu0 %v7957_v31  ;;  %5662 = vmatprep.subr.bf16.mxu1 %v7960_v32  ;;  %v8050_v31 = vld [vmem:[%s10958_s1 + $0x11ec] ss:$16 sps:$4 sm:$0xff]   ;;  %v8045_v32 = vld [vmem:[%s10958_s1 + $0x11e0] ss:$16 sps:$4 sm:$0xff]  }
 0x202   :  { %5121 = vmatmul.mubr.bf16.vlgmr.msra.gmra.mrb[0].mxu0 %v60_v33  ;;  %5654 = vmatmul.mubr.bf16.vlgmr.msra.gmra.mrb[0].mxu1 %v60_v33  ;;  %v8048_v33 = vld [vmem:[%s10958_s1 + $0x11e8] ss:$16 sps:$4 sm:$0xff]  }
 0x203   :  { %5130 = vmatpush1.bf16.msra.mxu0 %v7955_v35  ;;  %5663 = vmatpush1.bf16.msra.mxu1 %v7958_v36  ;;  %v8053_v35 = vld [vmem:[%s10958_s1 + $0x1204] ss:$16 sps:$4 sm:$0xff]   ;;  %v8056_v36 = vld [vmem:[%s10958_s1 + $0x120c] ss:$16 sps:$4 sm:$0xff]  }
 0x204   :  { %5131 = vmatprep.subr.bf16.mxu0 %v7963_v37  ;;  %5664 = vmatprep.subr.bf16.mxu1 %v7966_v38  ;;  %v62_v37 = vpack.c.bf16 %v37_v34, %v37_v34  ;;  %v40_v38 = vld [vmem:[%s10959_s0 + $0x98] sm:$0xff]  ;;  %v8143_v34 = vld [vmem:[%s10958_s1 + $0x13e4] ss:$16 sps:$4 sm:$0xff]  }
 0x205   :  { %5161 = vmatprep.mubr.bf16.mxu0 %v63_v39  ;;  %5694 = vmatprep.mubr.bf16.mxu1 %v63_v39  ;;  %v8051_v39 = vld [vmem:[%s10958_s1 + $0x1200] ss:$16 sps:$4 sm:$0xff]  }
 0x207   :  { %5132 = vmatpush1.bf16.msra.mxu0 %v7961_v40  ;;  %5665 = vmatpush1.bf16.msra.mxu1 %v7964_v41  ;;  %v8054_v40 = vld [vmem:[%s10958_s1 + $0x1208] ss:$16 sps:$4 sm:$0xff]   ;;  %v8059_v41 = vld [vmem:[%s10958_s1 + $0x1224] ss:$16 sps:$4 sm:$0xff]  }
 0x208   :  { %5133 = vmatprep.subr.bf16.mxu0 %v7969_v42  ;;  %5666 = vmatprep.subr.bf16.mxu1 %v7972_v43  ;;  %v8062_v42 = vld [vmem:[%s10958_s1 + $0x122c] ss:$16 sps:$4 sm:$0xff]   ;;  %v65_v43 = vpack.c.bf16 %v40_v38, %v40_v38  ;;  %v39_v38 = vld [vmem:[%s10959_s0 + $0x90] sm:$0xff] }
 0x20b   :  { %5134 = vmatpush1.bf16.msra.mxu0 %v7967_v44  ;;  %5667 = vmatpush1.bf16.msra.mxu1 %v7970_v45  ;;  %v8057_v44 = vld [vmem:[%s10958_s1 + $0x1220] ss:$16 sps:$4 sm:$0xff]   ;;  %v8060_v45 = vld [vmem:[%s10958_s1 + $0x1228] ss:$16 sps:$4 sm:$0xff]  }
 0x20c   :  { %5135 = vmatprep.subr.bf16.mxu0 %v7975_v46  ;;  %5668 = vmatprep.subr.bf16.mxu1 %v7978_v47  ;;  %v8065_v46 = vld [vmem:[%s10958_s1 + $0x1244] ss:$16 sps:$4 sm:$0xff]   ;;  %v8068_v47 = vld [vmem:[%s10958_s1 + $0x124c] ss:$16 sps:$4 sm:$0xff]  }
 0x20f   :  { %5136 = vmatpush1.bf16.msra.mxu0 %v7973_v48  ;;  %5669 = vmatpush1.bf16.msra.mxu1 %v7976_v49  ;;  %v8063_v48 = vld [vmem:[%s10958_s1 + $0x1240] ss:$16 sps:$4 sm:$0xff]   ;;  %v8066_v49 = vld [vmem:[%s10958_s1 + $0x1248] ss:$16 sps:$4 sm:$0xff]  }
 0x210   :  { %5137 = vmatprep.subr.bf16.mxu0 %v7981_v50  ;;  %5670 = vmatprep.subr.bf16.mxu1 %v7984_v51  ;;  %v8071_v50 = vld [vmem:[%s10958_s1 + $0x1264] ss:$16 sps:$4 sm:$0xff]   ;;  %v8074_v51 = vld [vmem:[%s10958_s1 + $0x126c] ss:$16 sps:$4 sm:$0xff]  }
 0x213   :  { %5138 = vmatpush1.bf16.msra.mxu0 %v7979_v52  ;;  %5671 = vmatpush1.bf16.msra.mxu1 %v7982_v53  ;;  %v8069_v52 = vld [vmem:[%s10958_s1 + $0x1260] ss:$16 sps:$4 sm:$0xff]   ;;  %v8072_v53 = vld [vmem:[%s10958_s1 + $0x1268] ss:$16 sps:$4 sm:$0xff]  }
 0x214   :  { %5139 = vmatprep.subr.bf16.mxu0 %v7987_v54  ;;  %5672 = vmatprep.subr.bf16.mxu1 %v7990_v55  ;;  %v8077_v54 = vld [vmem:[%s10958_s1 + $0x1284] ss:$16 sps:$4 sm:$0xff]   ;;  %v8080_v55 = vld [vmem:[%s10958_s1 + $0x128c] ss:$16 sps:$4 sm:$0xff]  }
 0x217   :  { %5140 = vmatpush1.bf16.msra.mxu0 %v7985_v56  ;;  %5673 = vmatpush1.bf16.msra.mxu1 %v7988_v57  ;;  %v8075_v56 = vld [vmem:[%s10958_s1 + $0x1280] ss:$16 sps:$4 sm:$0xff]   ;;  %v8078_v57 = vld [vmem:[%s10958_s1 + $0x1288] ss:$16 sps:$4 sm:$0xff]  }
 0x218   :  { %5141 = vmatprep.subr.bf16.mxu0 %v7993_v58  ;;  %5674 = vmatprep.subr.bf16.mxu1 %v7996_v59  ;;  %v8083_v58 = vld [vmem:[%s10958_s1 + $0x12a4] ss:$16 sps:$4 sm:$0xff]   ;;  %v8086_v59 = vld [vmem:[%s10958_s1 + $0x12ac] ss:$16 sps:$4 sm:$0xff]  }
 0x21b   :  { %5142 = vmatpush1.bf16.msra.mxu0 %v7991_v60  ;;  %5675 = vmatpush1.bf16.msra.mxu1 %v7994_v61  ;;  %v8081_v60 = vld [vmem:[%s10958_s1 + $0x12a0] ss:$16 sps:$4 sm:$0xff]   ;;  %v8084_v61 = vld [vmem:[%s10958_s1 + $0x12a8] ss:$16 sps:$4 sm:$0xff]  }
 0x21c   :  { %5143 = vmatprep.subr.bf16.mxu0 %v7999_v62  ;;  %5676 = vmatprep.subr.bf16.mxu1 %v8002_v63  ;;  %v8089_v62 = vld [vmem:[%s10958_s1 + $0x12c4] ss:$16 sps:$4 sm:$0xff]   ;;  %v8092_v63 = vld [vmem:[%s10958_s1 + $0x12cc] ss:$16 sps:$4 sm:$0xff]  }
 0x21f   :  { %5144 = vmatpush1.bf16.msra.mxu0 %v7997_v0  ;;  %5677 = vmatpush1.bf16.msra.mxu1 %v8000_v1  ;;  %v8087_v0 = vld [vmem:[%s10958_s1 + $0x12c0] ss:$16 sps:$4 sm:$0xff]   ;;  %v8090_v1 = vld [vmem:[%s10958_s1 + $0x12c8] ss:$16 sps:$4 sm:$0xff]  }
 0x220   :  { %5145 = vmatprep.subr.bf16.mxu0 %v8005_v2  ;;  %5678 = vmatprep.subr.bf16.mxu1 %v8008_v3  ;;  %v8095_v2 = vld [vmem:[%s10958_s1 + $0x12e4] ss:$16 sps:$4 sm:$0xff]   ;;  %v8098_v3 = vld [vmem:[%s10958_s1 + $0x12ec] ss:$16 sps:$4 sm:$0xff]  }
 0x223   :  { %5146 = vmatpush1.bf16.msra.mxu0 %v8003_v4  ;;  %5679 = vmatpush1.bf16.msra.mxu1 %v8006_v5  ;;  %v8093_v4 = vld [vmem:[%s10958_s1 + $0x12e0] ss:$16 sps:$4 sm:$0xff]   ;;  %v8096_v5 = vld [vmem:[%s10958_s1 + $0x12e8] ss:$16 sps:$4 sm:$0xff]  }
 0x224   :  { %5147 = vmatprep.subr.bf16.mxu0 %v8011_v6  ;;  %5680 = vmatprep.subr.bf16.mxu1 %v8014_v7  ;;  %v8101_v6 = vld [vmem:[%s10958_s1 + $0x1304] ss:$16 sps:$4 sm:$0xff]   ;;  %v8104_v7 = vld [vmem:[%s10958_s1 + $0x130c] ss:$16 sps:$4 sm:$0xff]  }
 0x227   :  { %5148 = vmatpush1.bf16.msra.mxu0 %v8009_v8  ;;  %5681 = vmatpush1.bf16.msra.mxu1 %v8012_v9  ;;  %v8099_v8 = vld [vmem:[%s10958_s1 + $0x1300] ss:$16 sps:$4 sm:$0xff]   ;;  %v8102_v9 = vld [vmem:[%s10958_s1 + $0x1308] ss:$16 sps:$4 sm:$0xff]  }
 0x228   :  { %5149 = vmatprep.subr.bf16.mxu0 %v8017_v10  ;;  %5682 = vmatprep.subr.bf16.mxu1 %v8020_v11  ;;  %v8107_v10 = vld [vmem:[%s10958_s1 + $0x1324] ss:$16 sps:$4 sm:$0xff]   ;;  %v8110_v11 = vld [vmem:[%s10958_s1 + $0x132c] ss:$16 sps:$4 sm:$0xff]  }
 0x22b   :  { %5150 = vmatpush1.bf16.msra.mxu0 %v8015_v12  ;;  %5683 = vmatpush1.bf16.msra.mxu1 %v8018_v13  ;;  %v8105_v12 = vld [vmem:[%s10958_s1 + $0x1320] ss:$16 sps:$4 sm:$0xff]   ;;  %v8108_v13 = vld [vmem:[%s10958_s1 + $0x1328] ss:$16 sps:$4 sm:$0xff]  }
 0x22c   :  { %5151 = vmatprep.subr.bf16.mxu0 %v8023_v14  ;;  %5684 = vmatprep.subr.bf16.mxu1 %v8026_v15  ;;  %v8113_v14 = vld [vmem:[%s10958_s1 + $0x1344] ss:$16 sps:$4 sm:$0xff]   ;;  %v8116_v15 = vld [vmem:[%s10958_s1 + $0x134c] ss:$16 sps:$4 sm:$0xff]  }
 0x22f   :  { %5152 = vmatpush1.bf16.msra.mxu0 %v8021_v16  ;;  %5685 = vmatpush1.bf16.msra.mxu1 %v8024_v17  ;;  %v8111_v16 = vld [vmem:[%s10958_s1 + $0x1340] ss:$16 sps:$4 sm:$0xff]   ;;  %v8114_v17 = vld [vmem:[%s10958_s1 + $0x1348] ss:$16 sps:$4 sm:$0xff]  }
 0x230   :  { %5153 = vmatprep.subr.bf16.mxu0 %v8029_v18  ;;  %5686 = vmatprep.subr.bf16.mxu1 %v8032_v19  ;;  %v8119_v18 = vld [vmem:[%s10958_s1 + $0x1364] ss:$16 sps:$4 sm:$0xff]   ;;  %v8122_v19 = vld [vmem:[%s10958_s1 + $0x136c] ss:$16 sps:$4 sm:$0xff]  }
 0x233   :  { %5154 = vmatpush1.bf16.msra.mxu0 %v8027_v20  ;;  %5687 = vmatpush1.bf16.msra.mxu1 %v8030_v21  ;;  %v8117_v20 = vld [vmem:[%s10958_s1 + $0x1360] ss:$16 sps:$4 sm:$0xff]   ;;  %v8120_v21 = vld [vmem:[%s10958_s1 + $0x1368] ss:$16 sps:$4 sm:$0xff]  }
 0x234   :  { %5155 = vmatprep.subr.bf16.mxu0 %v8035_v22  ;;  %5688 = vmatprep.subr.bf16.mxu1 %v8038_v23  ;;  %v8125_v22 = vld [vmem:[%s10958_s1 + $0x1384] ss:$16 sps:$4 sm:$0xff]   ;;  %v8128_v23 = vld [vmem:[%s10958_s1 + $0x138c] ss:$16 sps:$4 sm:$0xff]  }
 0x237   :  { %5156 = vmatpush1.bf16.msra.mxu0 %v8033_v24  ;;  %5689 = vmatpush1.bf16.msra.mxu1 %v8036_v25  ;;  %v8123_v24 = vld [vmem:[%s10958_s1 + $0x1380] ss:$16 sps:$4 sm:$0xff]   ;;  %v8126_v25 = vld [vmem:[%s10958_s1 + $0x1388] ss:$16 sps:$4 sm:$0xff]  }
 0x238   :  { %5157 = vmatprep.subr.bf16.mxu0 %v8041_v26  ;;  %5690 = vmatprep.subr.bf16.mxu1 %v8044_v27  ;;  %v8131_v26 = vld [vmem:[%s10958_s1 + $0x13a4] ss:$16 sps:$4 sm:$0xff]   ;;  %v8134_v27 = vld [vmem:[%s10958_s1 + $0x13ac] ss:$16 sps:$4 sm:$0xff]  }
 0x23b   :  { %5158 = vmatpush1.bf16.msra.mxu0 %v8039_v28  ;;  %5691 = vmatpush1.bf16.msra.mxu1 %v8042_v29  ;;  %v8129_v28 = vld [vmem:[%s10958_s1 + $0x13a0] ss:$16 sps:$4 sm:$0xff]   ;;  %v8132_v29 = vld [vmem:[%s10958_s1 + $0x13a8] ss:$16 sps:$4 sm:$0xff]  }
 0x23c   :  { %5159 = vmatprep.subr.bf16.mxu0 %v8047_v30  ;;  %5692 = vmatprep.subr.bf16.mxu1 %v8050_v31  ;;  %v8137_v30 = vld [vmem:[%s10958_s1 + $0x13c4] ss:$16 sps:$4 sm:$0xff]   ;;  %v8140_v31 = vld [vmem:[%s10958_s1 + $0x13cc] ss:$16 sps:$4 sm:$0xff]  }
 0x23f   :  { %5160 = vmatpush1.bf16.msra.mxu0 %v8045_v32  ;;  %5693 = vmatpush1.bf16.msra.mxu1 %v8048_v33  ;;  %v8135_v32 = vld [vmem:[%s10958_s1 + $0x13c0] ss:$16 sps:$4 sm:$0xff]   ;;  %v8138_v33 = vld [vmem:[%s10958_s1 + $0x13c8] ss:$16 sps:$4 sm:$0xff]  }
 0x240   :  { %5170 = vmatprep.subr.bf16.mxu0 %v8053_v35  ;;  %5703 = vmatprep.subr.bf16.mxu1 %v8056_v36  ;;  %v8146_v35 = vld [vmem:[%s10958_s1 + $0x13ec] ss:$16 sps:$4 sm:$0xff]   ;;  %v8141_v36 = vld [vmem:[%s10958_s1 + $0x13e0] ss:$16 sps:$4 sm:$0xff]  }
 0x242   :  { %5162 = vmatmul.mubr.bf16.vlgmr.msra.gmra.mrb[0].mxu0 %v62_v37  ;;  %5695 = vmatmul.mubr.bf16.vlgmr.msra.gmra.mrb[0].mxu1 %v62_v37  ;;  %v8144_v37 = vld [vmem:[%s10958_s1 + $0x13e8] ss:$16 sps:$4 sm:$0xff]  }
 0x243   :  { %5171 = vmatpush1.bf16.msra.mxu0 %v8051_v39  ;;  %5704 = vmatpush1.bf16.msra.mxu1 %v8054_v40  ;;  %v8149_v39 = vld [vmem:[%s10958_s1 + $0x1404] ss:$16 sps:$4 sm:$0xff]   ;;  %v8152_v40 = vld [vmem:[%s10958_s1 + $0x140c] ss:$16 sps:$4 sm:$0xff]  }
 0x244   :  { %5172 = vmatprep.subr.bf16.mxu0 %v8059_v41  ;;  %5705 = vmatprep.subr.bf16.mxu1 %v8062_v42  ;;  %v64_v41 = vpack.c.bf16 %v39_v38, %v39_v38  ;;  %v42_v42 = vld [vmem:[%s10959_s0 + $0xa8] sm:$0xff]  ;;  %v8239_v38 = vld [vmem:[%s10958_s1 + $0x15e4] ss:$16 sps:$4 sm:$0xff]  }
 0x245   :  { %5202 = vmatprep.mubr.bf16.mxu0 %v65_v43  ;;  %5735 = vmatprep.mubr.bf16.mxu1 %v65_v43  ;;  %v8147_v43 = vld [vmem:[%s10958_s1 + $0x1400] ss:$16 sps:$4 sm:$0xff]  }
 0x247   :  { %5173 = vmatpush1.bf16.msra.mxu0 %v8057_v44  ;;  %5706 = vmatpush1.bf16.msra.mxu1 %v8060_v45  ;;  %v8150_v44 = vld [vmem:[%s10958_s1 + $0x1408] ss:$16 sps:$4 sm:$0xff]   ;;  %v8155_v45 = vld [vmem:[%s10958_s1 + $0x1424] ss:$16 sps:$4 sm:$0xff]  }
 0x248   :  { %5174 = vmatprep.subr.bf16.mxu0 %v8065_v46  ;;  %5707 = vmatprep.subr.bf16.mxu1 %v8068_v47  ;;  %v8158_v46 = vld [vmem:[%s10958_s1 + $0x142c] ss:$16 sps:$4 sm:$0xff]   ;;  %v67_v47 = vpack.c.bf16 %v42_v42, %v42_v42  ;;  %v41_v42 = vld [vmem:[%s10959_s0 + $0xa0] sm:$0xff] }
 0x24b   :  { %5175 = vmatpush1.bf16.msra.mxu0 %v8063_v48  ;;  %5708 = vmatpush1.bf16.msra.mxu1 %v8066_v49  ;;  %v8153_v48 = vld [vmem:[%s10958_s1 + $0x1420] ss:$16 sps:$4 sm:$0xff]   ;;  %v8156_v49 = vld [vmem:[%s10958_s1 + $0x1428] ss:$16 sps:$4 sm:$0xff]  }
 0x24c   :  { %5176 = vmatprep.subr.bf16.mxu0 %v8071_v50  ;;  %5709 = vmatprep.subr.bf16.mxu1 %v8074_v51  ;;  %v8161_v50 = vld [vmem:[%s10958_s1 + $0x1444] ss:$16 sps:$4 sm:$0xff]   ;;  %v8164_v51 = vld [vmem:[%s10958_s1 + $0x144c] ss:$16 sps:$4 sm:$0xff]  }
 0x24f   :  { %5177 = vmatpush1.bf16.msra.mxu0 %v8069_v52  ;;  %5710 = vmatpush1.bf16.msra.mxu1 %v8072_v53  ;;  %v8159_v52 = vld [vmem:[%s10958_s1 + $0x1440] ss:$16 sps:$4 sm:$0xff]   ;;  %v8162_v53 = vld [vmem:[%s10958_s1 + $0x1448] ss:$16 sps:$4 sm:$0xff]  }
 0x250   :  { %5178 = vmatprep.subr.bf16.mxu0 %v8077_v54  ;;  %5711 = vmatprep.subr.bf16.mxu1 %v8080_v55  ;;  %v8167_v54 = vld [vmem:[%s10958_s1 + $0x1464] ss:$16 sps:$4 sm:$0xff]   ;;  %v8170_v55 = vld [vmem:[%s10958_s1 + $0x146c] ss:$16 sps:$4 sm:$0xff]  }
 0x253   :  { %5179 = vmatpush1.bf16.msra.mxu0 %v8075_v56  ;;  %5712 = vmatpush1.bf16.msra.mxu1 %v8078_v57  ;;  %v8165_v56 = vld [vmem:[%s10958_s1 + $0x1460] ss:$16 sps:$4 sm:$0xff]   ;;  %v8168_v57 = vld [vmem:[%s10958_s1 + $0x1468] ss:$16 sps:$4 sm:$0xff]  }
 0x254   :  { %5180 = vmatprep.subr.bf16.mxu0 %v8083_v58  ;;  %5713 = vmatprep.subr.bf16.mxu1 %v8086_v59  ;;  %v8173_v58 = vld [vmem:[%s10958_s1 + $0x1484] ss:$16 sps:$4 sm:$0xff]   ;;  %v8176_v59 = vld [vmem:[%s10958_s1 + $0x148c] ss:$16 sps:$4 sm:$0xff]  }
 0x257   :  { %5181 = vmatpush1.bf16.msra.mxu0 %v8081_v60  ;;  %5714 = vmatpush1.bf16.msra.mxu1 %v8084_v61  ;;  %v8171_v60 = vld [vmem:[%s10958_s1 + $0x1480] ss:$16 sps:$4 sm:$0xff]   ;;  %v8174_v61 = vld [vmem:[%s10958_s1 + $0x1488] ss:$16 sps:$4 sm:$0xff]  }
 0x258   :  { %5182 = vmatprep.subr.bf16.mxu0 %v8089_v62  ;;  %5715 = vmatprep.subr.bf16.mxu1 %v8092_v63  ;;  %v8179_v62 = vld [vmem:[%s10958_s1 + $0x14a4] ss:$16 sps:$4 sm:$0xff]   ;;  %v8182_v63 = vld [vmem:[%s10958_s1 + $0x14ac] ss:$16 sps:$4 sm:$0xff]  }
 0x25b   :  { %5183 = vmatpush1.bf16.msra.mxu0 %v8087_v0  ;;  %5716 = vmatpush1.bf16.msra.mxu1 %v8090_v1  ;;  %v8177_v0 = vld [vmem:[%s10958_s1 + $0x14a0] ss:$16 sps:$4 sm:$0xff]   ;;  %v8180_v1 = vld [vmem:[%s10958_s1 + $0x14a8] ss:$16 sps:$4 sm:$0xff]  }
 0x25c   :  { %5184 = vmatprep.subr.bf16.mxu0 %v8095_v2  ;;  %5717 = vmatprep.subr.bf16.mxu1 %v8098_v3  ;;  %v8185_v2 = vld [vmem:[%s10958_s1 + $0x14c4] ss:$16 sps:$4 sm:$0xff]   ;;  %v8188_v3 = vld [vmem:[%s10958_s1 + $0x14cc] ss:$16 sps:$4 sm:$0xff]  }
 0x25f   :  { %5185 = vmatpush1.bf16.msra.mxu0 %v8093_v4  ;;  %5718 = vmatpush1.bf16.msra.mxu1 %v8096_v5  ;;  %v8183_v4 = vld [vmem:[%s10958_s1 + $0x14c0] ss:$16 sps:$4 sm:$0xff]   ;;  %v8186_v5 = vld [vmem:[%s10958_s1 + $0x14c8] ss:$16 sps:$4 sm:$0xff]  }
 0x260   :  { %5186 = vmatprep.subr.bf16.mxu0 %v8101_v6  ;;  %5719 = vmatprep.subr.bf16.mxu1 %v8104_v7  ;;  %v8191_v6 = vld [vmem:[%s10958_s1 + $0x14e4] ss:$16 sps:$4 sm:$0xff]   ;;  %v8194_v7 = vld [vmem:[%s10958_s1 + $0x14ec] ss:$16 sps:$4 sm:$0xff]  }
 0x263   :  { %5187 = vmatpush1.bf16.msra.mxu0 %v8099_v8  ;;  %5720 = vmatpush1.bf16.msra.mxu1 %v8102_v9  ;;  %v8189_v8 = vld [vmem:[%s10958_s1 + $0x14e0] ss:$16 sps:$4 sm:$0xff]   ;;  %v8192_v9 = vld [vmem:[%s10958_s1 + $0x14e8] ss:$16 sps:$4 sm:$0xff]  }
 0x264   :  { %5188 = vmatprep.subr.bf16.mxu0 %v8107_v10  ;;  %5721 = vmatprep.subr.bf16.mxu1 %v8110_v11  ;;  %v8197_v10 = vld [vmem:[%s10958_s1 + $0x1504] ss:$16 sps:$4 sm:$0xff]   ;;  %v8200_v11 = vld [vmem:[%s10958_s1 + $0x150c] ss:$16 sps:$4 sm:$0xff]  }
 0x267   :  { %5189 = vmatpush1.bf16.msra.mxu0 %v8105_v12  ;;  %5722 = vmatpush1.bf16.msra.mxu1 %v8108_v13  ;;  %v8195_v12 = vld [vmem:[%s10958_s1 + $0x1500] ss:$16 sps:$4 sm:$0xff]   ;;  %v8198_v13 = vld [vmem:[%s10958_s1 + $0x1508] ss:$16 sps:$4 sm:$0xff]  }
 0x268   :  { %5190 = vmatprep.subr.bf16.mxu0 %v8113_v14  ;;  %5723 = vmatprep.subr.bf16.mxu1 %v8116_v15  ;;  %v8203_v14 = vld [vmem:[%s10958_s1 + $0x1524] ss:$16 sps:$4 sm:$0xff]   ;;  %v8206_v15 = vld [vmem:[%s10958_s1 + $0x152c] ss:$16 sps:$4 sm:$0xff]  }
 0x26b   :  { %5191 = vmatpush1.bf16.msra.mxu0 %v8111_v16  ;;  %5724 = vmatpush1.bf16.msra.mxu1 %v8114_v17  ;;  %v8201_v16 = vld [vmem:[%s10958_s1 + $0x1520] ss:$16 sps:$4 sm:$0xff]   ;;  %v8204_v17 = vld [vmem:[%s10958_s1 + $0x1528] ss:$16 sps:$4 sm:$0xff]  }
 0x26c   :  { %5192 = vmatprep.subr.bf16.mxu0 %v8119_v18  ;;  %5725 = vmatprep.subr.bf16.mxu1 %v8122_v19  ;;  %v8209_v18 = vld [vmem:[%s10958_s1 + $0x1544] ss:$16 sps:$4 sm:$0xff]   ;;  %v8212_v19 = vld [vmem:[%s10958_s1 + $0x154c] ss:$16 sps:$4 sm:$0xff]  }
 0x26f   :  { %5193 = vmatpush1.bf16.msra.mxu0 %v8117_v20  ;;  %5726 = vmatpush1.bf16.msra.mxu1 %v8120_v21  ;;  %v8207_v20 = vld [vmem:[%s10958_s1 + $0x1540] ss:$16 sps:$4 sm:$0xff]   ;;  %v8210_v21 = vld [vmem:[%s10958_s1 + $0x1548] ss:$16 sps:$4 sm:$0xff]  }
 0x270   :  { %5194 = vmatprep.subr.bf16.mxu0 %v8125_v22  ;;  %5727 = vmatprep.subr.bf16.mxu1 %v8128_v23  ;;  %v8215_v22 = vld [vmem:[%s10958_s1 + $0x1564] ss:$16 sps:$4 sm:$0xff]   ;;  %v8218_v23 = vld [vmem:[%s10958_s1 + $0x156c] ss:$16 sps:$4 sm:$0xff]  }
 0x273   :  { %5195 = vmatpush1.bf16.msra.mxu0 %v8123_v24  ;;  %5728 = vmatpush1.bf16.msra.mxu1 %v8126_v25  ;;  %v8213_v24 = vld [vmem:[%s10958_s1 + $0x1560] ss:$16 sps:$4 sm:$0xff]   ;;  %v8216_v25 = vld [vmem:[%s10958_s1 + $0x1568] ss:$16 sps:$4 sm:$0xff]  }
 0x274   :  { %5196 = vmatprep.subr.bf16.mxu0 %v8131_v26  ;;  %5729 = vmatprep.subr.bf16.mxu1 %v8134_v27  ;;  %v8221_v26 = vld [vmem:[%s10958_s1 + $0x1584] ss:$16 sps:$4 sm:$0xff]   ;;  %v8224_v27 = vld [vmem:[%s10958_s1 + $0x158c] ss:$16 sps:$4 sm:$0xff]  }
 0x277   :  { %5197 = vmatpush1.bf16.msra.mxu0 %v8129_v28  ;;  %5730 = vmatpush1.bf16.msra.mxu1 %v8132_v29  ;;  %v8219_v28 = vld [vmem:[%s10958_s1 + $0x1580] ss:$16 sps:$4 sm:$0xff]   ;;  %v8222_v29 = vld [vmem:[%s10958_s1 + $0x1588] ss:$16 sps:$4 sm:$0xff]  }
 0x278   :  { %5198 = vmatprep.subr.bf16.mxu0 %v8137_v30  ;;  %5731 = vmatprep.subr.bf16.mxu1 %v8140_v31  ;;  %v8227_v30 = vld [vmem:[%s10958_s1 + $0x15a4] ss:$16 sps:$4 sm:$0xff]   ;;  %v8230_v31 = vld [vmem:[%s10958_s1 + $0x15ac] ss:$16 sps:$4 sm:$0xff]  }
 0x27b   :  { %5199 = vmatpush1.bf16.msra.mxu0 %v8135_v32  ;;  %5732 = vmatpush1.bf16.msra.mxu1 %v8138_v33  ;;  %v8225_v32 = vld [vmem:[%s10958_s1 + $0x15a0] ss:$16 sps:$4 sm:$0xff]   ;;  %v8228_v33 = vld [vmem:[%s10958_s1 + $0x15a8] ss:$16 sps:$4 sm:$0xff]  }
 0x27c   :  { %5200 = vmatprep.subr.bf16.mxu0 %v8143_v34  ;;  %5733 = vmatprep.subr.bf16.mxu1 %v8146_v35  ;;  %v8233_v34 = vld [vmem:[%s10958_s1 + $0x15c4] ss:$16 sps:$4 sm:$0xff]   ;;  %v8236_v35 = vld [vmem:[%s10958_s1 + $0x15cc] ss:$16 sps:$4 sm:$0xff]  }
 0x27f   :  { %5201 = vmatpush1.bf16.msra.mxu0 %v8141_v36  ;;  %5734 = vmatpush1.bf16.msra.mxu1 %v8144_v37  ;;  %v8231_v36 = vld [vmem:[%s10958_s1 + $0x15c0] ss:$16 sps:$4 sm:$0xff]   ;;  %v8234_v37 = vld [vmem:[%s10958_s1 + $0x15c8] ss:$16 sps:$4 sm:$0xff]  }
 0x280   :  { %5211 = vmatprep.subr.bf16.mxu0 %v8149_v39  ;;  %5744 = vmatprep.subr.bf16.mxu1 %v8152_v40  ;;  %v8242_v39 = vld [vmem:[%s10958_s1 + $0x15ec] ss:$16 sps:$4 sm:$0xff]   ;;  %v8237_v40 = vld [vmem:[%s10958_s1 + $0x15e0] ss:$16 sps:$4 sm:$0xff]  }
 0x282   :  { %5203 = vmatmul.mubr.bf16.vlgmr.msra.gmra.mrb[0].mxu0 %v64_v41  ;;  %5736 = vmatmul.mubr.bf16.vlgmr.msra.gmra.mrb[0].mxu1 %v64_v41  ;;  %v8240_v41 = vld [vmem:[%s10958_s1 + $0x15e8] ss:$16 sps:$4 sm:$0xff]  }
 0x283   :  { %5212 = vmatpush1.bf16.msra.mxu0 %v8147_v43  ;;  %5745 = vmatpush1.bf16.msra.mxu1 %v8150_v44  ;;  %v8245_v43 = vld [vmem:[%s10958_s1 + $0x1604] ss:$16 sps:$4 sm:$0xff]   ;;  %v8248_v44 = vld [vmem:[%s10958_s1 + $0x160c] ss:$16 sps:$4 sm:$0xff]  }
 0x284   :  { %5213 = vmatprep.subr.bf16.mxu0 %v8155_v45  ;;  %5746 = vmatprep.subr.bf16.mxu1 %v8158_v46  ;;  %v66_v45 = vpack.c.bf16 %v41_v42, %v41_v42  ;;  %v44_v46 = vld [vmem:[%s10959_s0 + $0xb8] sm:$0xff]  ;;  %v8335_v42 = vld [vmem:[%s10958_s1 + $0x17e4] ss:$16 sps:$4 sm:$0xff]  }
 0x285   :  { %5243 = vmatprep.mubr.bf16.mxu0 %v67_v47  ;;  %5776 = vmatprep.mubr.bf16.mxu1 %v67_v47  ;;  %v8243_v47 = vld [vmem:[%s10958_s1 + $0x1600] ss:$16 sps:$4 sm:$0xff]  }
 0x287   :  { %5214 = vmatpush1.bf16.msra.mxu0 %v8153_v48  ;;  %5747 = vmatpush1.bf16.msra.mxu1 %v8156_v49  ;;  %v8246_v48 = vld [vmem:[%s10958_s1 + $0x1608] ss:$16 sps:$4 sm:$0xff]   ;;  %v8251_v49 = vld [vmem:[%s10958_s1 + $0x1624] ss:$16 sps:$4 sm:$0xff]  }
 0x288   :  { %5215 = vmatprep.subr.bf16.mxu0 %v8161_v50  ;;  %5748 = vmatprep.subr.bf16.mxu1 %v8164_v51  ;;  %v8254_v50 = vld [vmem:[%s10958_s1 + $0x162c] ss:$16 sps:$4 sm:$0xff]   ;;  %v69_v51 = vpack.c.bf16 %v44_v46, %v44_v46  ;;  %v43_v46 = vld [vmem:[%s10959_s0 + $0xb0] sm:$0xff] }
 0x28b   :  { %5216 = vmatpush1.bf16.msra.mxu0 %v8159_v52  ;;  %5749 = vmatpush1.bf16.msra.mxu1 %v8162_v53  ;;  %v8249_v52 = vld [vmem:[%s10958_s1 + $0x1620] ss:$16 sps:$4 sm:$0xff]   ;;  %v8252_v53 = vld [vmem:[%s10958_s1 + $0x1628] ss:$16 sps:$4 sm:$0xff]  }
 0x28c   :  { %5217 = vmatprep.subr.bf16.mxu0 %v8167_v54  ;;  %5750 = vmatprep.subr.bf16.mxu1 %v8170_v55  ;;  %v8257_v54 = vld [vmem:[%s10958_s1 + $0x1644] ss:$16 sps:$4 sm:$0xff]   ;;  %v8260_v55 = vld [vmem:[%s10958_s1 + $0x164c] ss:$16 sps:$4 sm:$0xff]  }
 0x28f   :  { %5218 = vmatpush1.bf16.msra.mxu0 %v8165_v56  ;;  %5751 = vmatpush1.bf16.msra.mxu1 %v8168_v57  ;;  %v8255_v56 = vld [vmem:[%s10958_s1 + $0x1640] ss:$16 sps:$4 sm:$0xff]   ;;  %v8258_v57 = vld [vmem:[%s10958_s1 + $0x1648] ss:$16 sps:$4 sm:$0xff]  }
 0x290   :  { %5219 = vmatprep.subr.bf16.mxu0 %v8173_v58  ;;  %5752 = vmatprep.subr.bf16.mxu1 %v8176_v59  ;;  %v8263_v58 = vld [vmem:[%s10958_s1 + $0x1664] ss:$16 sps:$4 sm:$0xff]   ;;  %v8266_v59 = vld [vmem:[%s10958_s1 + $0x166c] ss:$16 sps:$4 sm:$0xff]  }
 0x293   :  { %5220 = vmatpush1.bf16.msra.mxu0 %v8171_v60  ;;  %5753 = vmatpush1.bf16.msra.mxu1 %v8174_v61  ;;  %v8261_v60 = vld [vmem:[%s10958_s1 + $0x1660] ss:$16 sps:$4 sm:$0xff]   ;;  %v8264_v61 = vld [vmem:[%s10958_s1 + $0x1668] ss:$16 sps:$4 sm:$0xff]  }
 0x294   :  { %5221 = vmatprep.subr.bf16.mxu0 %v8179_v62  ;;  %5754 = vmatprep.subr.bf16.mxu1 %v8182_v63  ;;  %v8269_v62 = vld [vmem:[%s10958_s1 + $0x1684] ss:$16 sps:$4 sm:$0xff]   ;;  %v8272_v63 = vld [vmem:[%s10958_s1 + $0x168c] ss:$16 sps:$4 sm:$0xff]  }
 0x297   :  { %5222 = vmatpush1.bf16.msra.mxu0 %v8177_v0  ;;  %5755 = vmatpush1.bf16.msra.mxu1 %v8180_v1  ;;  %v8267_v0 = vld [vmem:[%s10958_s1 + $0x1680] ss:$16 sps:$4 sm:$0xff]   ;;  %v8270_v1 = vld [vmem:[%s10958_s1 + $0x1688] ss:$16 sps:$4 sm:$0xff]  }
 0x298   :  { %5223 = vmatprep.subr.bf16.mxu0 %v8185_v2  ;;  %5756 = vmatprep.subr.bf16.mxu1 %v8188_v3  ;;  %v8275_v2 = vld [vmem:[%s10958_s1 + $0x16a4] ss:$16 sps:$4 sm:$0xff]   ;;  %v8278_v3 = vld [vmem:[%s10958_s1 + $0x16ac] ss:$16 sps:$4 sm:$0xff]  }
 0x29b   :  { %5224 = vmatpush1.bf16.msra.mxu0 %v8183_v4  ;;  %5757 = vmatpush1.bf16.msra.mxu1 %v8186_v5  ;;  %v8273_v4 = vld [vmem:[%s10958_s1 + $0x16a0] ss:$16 sps:$4 sm:$0xff]   ;;  %v8276_v5 = vld [vmem:[%s10958_s1 + $0x16a8] ss:$16 sps:$4 sm:$0xff]  }
 0x29c   :  { %5225 = vmatprep.subr.bf16.mxu0 %v8191_v6  ;;  %5758 = vmatprep.subr.bf16.mxu1 %v8194_v7  ;;  %v8281_v6 = vld [vmem:[%s10958_s1 + $0x16c4] ss:$16 sps:$4 sm:$0xff]   ;;  %v8284_v7 = vld [vmem:[%s10958_s1 + $0x16cc] ss:$16 sps:$4 sm:$0xff]  }
 0x29f   :  { %5226 = vmatpush1.bf16.msra.mxu0 %v8189_v8  ;;  %5759 = vmatpush1.bf16.msra.mxu1 %v8192_v9  ;;  %v8279_v8 = vld [vmem:[%s10958_s1 + $0x16c0] ss:$16 sps:$4 sm:$0xff]   ;;  %v8282_v9 = vld [vmem:[%s10958_s1 + $0x16c8] ss:$16 sps:$4 sm:$0xff]  }
 0x2a0   :  { %5227 = vmatprep.subr.bf16.mxu0 %v8197_v10  ;;  %5760 = vmatprep.subr.bf16.mxu1 %v8200_v11  ;;  %v8287_v10 = vld [vmem:[%s10958_s1 + $0x16e4] ss:$16 sps:$4 sm:$0xff]   ;;  %v8290_v11 = vld [vmem:[%s10958_s1 + $0x16ec] ss:$16 sps:$4 sm:$0xff]  }
 0x2a3   :  { %5228 = vmatpush1.bf16.msra.mxu0 %v8195_v12  ;;  %5761 = vmatpush1.bf16.msra.mxu1 %v8198_v13  ;;  %v8285_v12 = vld [vmem:[%s10958_s1 + $0x16e0] ss:$16 sps:$4 sm:$0xff]   ;;  %v8288_v13 = vld [vmem:[%s10958_s1 + $0x16e8] ss:$16 sps:$4 sm:$0xff]  }
 0x2a4   :  { %5229 = vmatprep.subr.bf16.mxu0 %v8203_v14  ;;  %5762 = vmatprep.subr.bf16.mxu1 %v8206_v15  ;;  %v8293_v14 = vld [vmem:[%s10958_s1 + $0x1704] ss:$16 sps:$4 sm:$0xff]   ;;  %v8296_v15 = vld [vmem:[%s10958_s1 + $0x170c] ss:$16 sps:$4 sm:$0xff]  }
 0x2a7   :  { %5230 = vmatpush1.bf16.msra.mxu0 %v8201_v16  ;;  %5763 = vmatpush1.bf16.msra.mxu1 %v8204_v17  ;;  %v8291_v16 = vld [vmem:[%s10958_s1 + $0x1700] ss:$16 sps:$4 sm:$0xff]   ;;  %v8294_v17 = vld [vmem:[%s10958_s1 + $0x1708] ss:$16 sps:$4 sm:$0xff]  }
 0x2a8   :  { %5231 = vmatprep.subr.bf16.mxu0 %v8209_v18  ;;  %5764 = vmatprep.subr.bf16.mxu1 %v8212_v19  ;;  %v8299_v18 = vld [vmem:[%s10958_s1 + $0x1724] ss:$16 sps:$4 sm:$0xff]   ;;  %v8302_v19 = vld [vmem:[%s10958_s1 + $0x172c] ss:$16 sps:$4 sm:$0xff]  }
 0x2ab   :  { %5232 = vmatpush1.bf16.msra.mxu0 %v8207_v20  ;;  %5765 = vmatpush1.bf16.msra.mxu1 %v8210_v21  ;;  %v8297_v20 = vld [vmem:[%s10958_s1 + $0x1720] ss:$16 sps:$4 sm:$0xff]   ;;  %v8300_v21 = vld [vmem:[%s10958_s1 + $0x1728] ss:$16 sps:$4 sm:$0xff]  }
 0x2ac   :  { %5233 = vmatprep.subr.bf16.mxu0 %v8215_v22  ;;  %5766 = vmatprep.subr.bf16.mxu1 %v8218_v23  ;;  %v8305_v22 = vld [vmem:[%s10958_s1 + $0x1744] ss:$16 sps:$4 sm:$0xff]   ;;  %v8308_v23 = vld [vmem:[%s10958_s1 + $0x174c] ss:$16 sps:$4 sm:$0xff]  }
 0x2af   :  { %5234 = vmatpush1.bf16.msra.mxu0 %v8213_v24  ;;  %5767 = vmatpush1.bf16.msra.mxu1 %v8216_v25  ;;  %v8303_v24 = vld [vmem:[%s10958_s1 + $0x1740] ss:$16 sps:$4 sm:$0xff]   ;;  %v8306_v25 = vld [vmem:[%s10958_s1 + $0x1748] ss:$16 sps:$4 sm:$0xff]  }
 0x2b0   :  { %5235 = vmatprep.subr.bf16.mxu0 %v8221_v26  ;;  %5768 = vmatprep.subr.bf16.mxu1 %v8224_v27  ;;  %v8311_v26 = vld [vmem:[%s10958_s1 + $0x1764] ss:$16 sps:$4 sm:$0xff]   ;;  %v8314_v27 = vld [vmem:[%s10958_s1 + $0x176c] ss:$16 sps:$4 sm:$0xff]  }
 0x2b3   :  { %5236 = vmatpush1.bf16.msra.mxu0 %v8219_v28  ;;  %5769 = vmatpush1.bf16.msra.mxu1 %v8222_v29  ;;  %v8309_v28 = vld [vmem:[%s10958_s1 + $0x1760] ss:$16 sps:$4 sm:$0xff]   ;;  %v8312_v29 = vld [vmem:[%s10958_s1 + $0x1768] ss:$16 sps:$4 sm:$0xff]  }
 0x2b4   :  { %5237 = vmatprep.subr.bf16.mxu0 %v8227_v30  ;;  %5770 = vmatprep.subr.bf16.mxu1 %v8230_v31  ;;  %v8317_v30 = vld [vmem:[%s10958_s1 + $0x1784] ss:$16 sps:$4 sm:$0xff]   ;;  %v8320_v31 = vld [vmem:[%s10958_s1 + $0x178c] ss:$16 sps:$4 sm:$0xff]  }
 0x2b7   :  { %5238 = vmatpush1.bf16.msra.mxu0 %v8225_v32  ;;  %5771 = vmatpush1.bf16.msra.mxu1 %v8228_v33  ;;  %v8315_v32 = vld [vmem:[%s10958_s1 + $0x1780] ss:$16 sps:$4 sm:$0xff]   ;;  %v8318_v33 = vld [vmem:[%s10958_s1 + $0x1788] ss:$16 sps:$4 sm:$0xff]  }
 0x2b8   :  { %5239 = vmatprep.subr.bf16.mxu0 %v8233_v34  ;;  %5772 = vmatprep.subr.bf16.mxu1 %v8236_v35  ;;  %v8323_v34 = vld [vmem:[%s10958_s1 + $0x17a4] ss:$16 sps:$4 sm:$0xff]   ;;  %v8326_v35 = vld [vmem:[%s10958_s1 + $0x17ac] ss:$16 sps:$4 sm:$0xff]  }
 0x2bb   :  { %5240 = vmatpush1.bf16.msra.mxu0 %v8231_v36  ;;  %5773 = vmatpush1.bf16.msra.mxu1 %v8234_v37  ;;  %v8321_v36 = vld [vmem:[%s10958_s1 + $0x17a0] ss:$16 sps:$4 sm:$0xff]   ;;  %v8324_v37 = vld [vmem:[%s10958_s1 + $0x17a8] ss:$16 sps:$4 sm:$0xff]  }
 0x2bc   :  { %5241 = vmatprep.subr.bf16.mxu0 %v8239_v38  ;;  %5774 = vmatprep.subr.bf16.mxu1 %v8242_v39  ;;  %v8329_v38 = vld [vmem:[%s10958_s1 + $0x17c4] ss:$16 sps:$4 sm:$0xff]   ;;  %v8332_v39 = vld [vmem:[%s10958_s1 + $0x17cc] ss:$16 sps:$4 sm:$0xff]  }
 0x2bf   :  { %5242 = vmatpush1.bf16.msra.mxu0 %v8237_v40  ;;  %5775 = vmatpush1.bf16.msra.mxu1 %v8240_v41  ;;  %v8327_v40 = vld [vmem:[%s10958_s1 + $0x17c0] ss:$16 sps:$4 sm:$0xff]   ;;  %v8330_v41 = vld [vmem:[%s10958_s1 + $0x17c8] ss:$16 sps:$4 sm:$0xff]  }
 0x2c0   :  { %5252 = vmatprep.subr.bf16.mxu0 %v8245_v43  ;;  %5785 = vmatprep.subr.bf16.mxu1 %v8248_v44  ;;  %v8338_v43 = vld [vmem:[%s10958_s1 + $0x17ec] ss:$16 sps:$4 sm:$0xff]   ;;  %v8333_v44 = vld [vmem:[%s10958_s1 + $0x17e0] ss:$16 sps:$4 sm:$0xff]  }
 0x2c2   :  { %5244 = vmatmul.mubr.bf16.vlgmr.msra.gmra.mrb[0].mxu0 %v66_v45  ;;  %5777 = vmatmul.mubr.bf16.vlgmr.msra.gmra.mrb[0].mxu1 %v66_v45  ;;  %v8336_v45 = vld [vmem:[%s10958_s1 + $0x17e8] ss:$16 sps:$4 sm:$0xff]  }
 0x2c3   :  { %5253 = vmatpush1.bf16.msra.mxu0 %v8243_v47  ;;  %5786 = vmatpush1.bf16.msra.mxu1 %v8246_v48  ;;  %v8341_v47 = vld [vmem:[%s10958_s1 + $0x1804] ss:$16 sps:$4 sm:$0xff]   ;;  %v8344_v48 = vld [vmem:[%s10958_s1 + $0x180c] ss:$16 sps:$4 sm:$0xff]  }
 0x2c4   :  { %5254 = vmatprep.subr.bf16.mxu0 %v8251_v49  ;;  %5787 = vmatprep.subr.bf16.mxu1 %v8254_v50  ;;  %v68_v49 = vpack.c.bf16 %v43_v46, %v43_v46  ;;  %v8339_v50 = vld [vmem:[%s10958_s1 + $0x1800] ss:$16 sps:$4 sm:$0xff]  }
 0x2c5   :  { %5284 = vmatprep.mubr.bf16.mxu0 %v69_v51  ;;  %5817 = vmatprep.mubr.bf16.mxu1 %v69_v51  ;;  %v8342_v51 = vld [vmem:[%s10958_s1 + $0x1808] ss:$16 sps:$4 sm:$0xff]  }
 0x2c7   :  { %5255 = vmatpush1.bf16.msra.mxu0 %v8249_v52  ;;  %5788 = vmatpush1.bf16.msra.mxu1 %v8252_v53  ;;  %v8347_v52 = vld [vmem:[%s10958_s1 + $0x1824] ss:$16 sps:$4 sm:$0xff]   ;;  %v8350_v53 = vld [vmem:[%s10958_s1 + $0x182c] ss:$16 sps:$4 sm:$0xff]  }
 0x2c8   :  { %5256 = vmatprep.subr.bf16.mxu0 %v8257_v54  ;;  %5789 = vmatprep.subr.bf16.mxu1 %v8260_v55  ;;  %v8345_v54 = vld [vmem:[%s10958_s1 + $0x1820] ss:$16 sps:$4 sm:$0xff]   ;;  %v8348_v55 = vld [vmem:[%s10958_s1 + $0x1828] ss:$16 sps:$4 sm:$0xff]  }
 0x2cb   :  { %5257 = vmatpush1.bf16.msra.mxu0 %v8255_v56  ;;  %5790 = vmatpush1.bf16.msra.mxu1 %v8258_v57  ;;  %v8353_v56 = vld [vmem:[%s10958_s1 + $0x1844] ss:$16 sps:$4 sm:$0xff]   ;;  %v8356_v57 = vld [vmem:[%s10958_s1 + $0x184c] ss:$16 sps:$4 sm:$0xff]  }
 0x2cc   :  { %5258 = vmatprep.subr.bf16.mxu0 %v8263_v58  ;;  %5791 = vmatprep.subr.bf16.mxu1 %v8266_v59  ;;  %v8395_v58 = vmov 0   ;;  %v8351_v59 = vld [vmem:[%s10958_s1 + $0x1840] ss:$16 sps:$4 sm:$0xff]  }
 0x2cf   :  { %5259 = vmatpush1.bf16.msra.mxu0 %v8261_v60  ;;  %5792 = vmatpush1.bf16.msra.mxu1 %v8264_v61  ;;  %v8354_v60 = vld [vmem:[%s10958_s1 + $0x1848] ss:$16 sps:$4 sm:$0xff]   ;;  %v8359_v61 = vld [vmem:[%s10958_s1 + $0x1864] ss:$16 sps:$4 sm:$0xff]  }
 0x2d0   :  { %5260 = vmatprep.subr.bf16.mxu0 %v8269_v62  ;;  %5793 = vmatprep.subr.bf16.mxu1 %v8272_v63  ;;  %v8362_v62 = vld [vmem:[%s10958_s1 + $0x186c] ss:$16 sps:$4 sm:$0xff]   ;;  %v8357_v63 = vld [vmem:[%s10958_s1 + $0x1860] ss:$16 sps:$4 sm:$0xff]  }
 0x2d3   :  { %5261 = vmatpush1.bf16.msra.mxu0 %v8267_v0  ;;  %5794 = vmatpush1.bf16.msra.mxu1 %v8270_v1  ;;  %v8360_v0 = vld [vmem:[%s10958_s1 + $0x1868] ss:$16 sps:$4 sm:$0xff]   ;;  %v45_v1 = vld [vmem:[%s10959_s0 + $0xc0] sm:$0xff] }
 0x2d4   :  { %5262 = vmatprep.subr.bf16.mxu0 %v8275_v2  ;;  %5795 = vmatprep.subr.bf16.mxu1 %v8278_v3  ;;  %v8363_v2 = vld [vmem:[%s10960_s3 + $0x40] sm:$0xff]  }
 0x2d5   :  { %v8364_v3 = vld [vmem:[%s10960_s3 + $0xc0] sm:$0xff]  }
 0x2d7   :  { %5263 = vmatpush1.bf16.msra.mxu0 %v8273_v4  ;;  %5796 = vmatpush1.bf16.msra.mxu1 %v8276_v5  ;;  %v70_v4 = vpack.c.bf16 %v45_v1, %v45_v1  ;;  %v8365_v5 = vld [vmem:[%s10960_s3] sm:$0xff]  }
 0x2d8   :  { %5264 = vmatprep.subr.bf16.mxu0 %v8281_v6  ;;  %5797 = vmatprep.subr.bf16.mxu1 %v8284_v7  ;;  %v8366_v6 = vld [vmem:[%s10960_s3 + $0x80] sm:$0xff]   ;;  %v8367_v7 = vld [vmem:[%s10960_s3 + $0x48] sm:$0xff]  }
 0x2db   :  { %5265 = vmatpush1.bf16.msra.mxu0 %v8279_v8  ;;  %5798 = vmatpush1.bf16.msra.mxu1 %v8282_v9  ;;  %v8368_v8 = vld [vmem:[%s10960_s3 + $0xc8] sm:$0xff]  }
 0x2dc   :  { %5266 = vmatprep.subr.bf16.mxu0 %v8287_v10  ;;  %5799 = vmatprep.subr.bf16.mxu1 %v8290_v11  ;;  %v8369_v9 = vld [vmem:[%s10960_s3 + $0x8] sm:$0xff]   ;;  %v8371_v11 = vld [vmem:[%s10960_s3 + $0x50] sm:$0xff]  }
 0x2dd   :  { %v8370_v10 = vld [vmem:[%s10960_s3 + $0x88] sm:$0xff]  }
 0x2df   :  { %5267 = vmatpush1.bf16.msra.mxu0 %v8285_v12  ;;  %5800 = vmatpush1.bf16.msra.mxu1 %v8288_v13  ;;  %v8372_v12 = vld [vmem:[%s10960_s3 + $0xd0] sm:$0xff]  }
 0x2e0   :  { %5268 = vmatprep.subr.bf16.mxu0 %v8293_v14  ;;  %5801 = vmatprep.subr.bf16.mxu1 %v8296_v15  ;;  %v8373_v13 = vld [vmem:[%s10960_s3 + $0x10] sm:$0xff]   ;;  %v8375_v15 = vld [vmem:[%s10960_s3 + $0x58] sm:$0xff]  }
 0x2e1   :  { %v8374_v14 = vld [vmem:[%s10960_s3 + $0x90] sm:$0xff]  }
 0x2e3   :  { %5269 = vmatpush1.bf16.msra.mxu0 %v8291_v16  ;;  %5802 = vmatpush1.bf16.msra.mxu1 %v8294_v17  ;;  %v8376_v16 = vld [vmem:[%s10960_s3 + $0xd8] sm:$0xff]  }
 0x2e4   :  { %5270 = vmatprep.subr.bf16.mxu0 %v8299_v18  ;;  %5803 = vmatprep.subr.bf16.mxu1 %v8302_v19  ;;  %v8377_v17 = vld [vmem:[%s10960_s3 + $0x18] sm:$0xff]   ;;  %v8379_v19 = vld [vmem:[%s10960_s3 + $0x60] sm:$0xff]  }
 0x2e5   :  { %v8378_v18 = vld [vmem:[%s10960_s3 + $0x98] sm:$0xff]  }
 0x2e7   :  { %5271 = vmatpush1.bf16.msra.mxu0 %v8297_v20  ;;  %5804 = vmatpush1.bf16.msra.mxu1 %v8300_v21  ;;  %v8380_v20 = vld [vmem:[%s10960_s3 + $0xe0] sm:$0xff]  }
 0x2e8   :  { %5272 = vmatprep.subr.bf16.mxu0 %v8305_v22  ;;  %5805 = vmatprep.subr.bf16.mxu1 %v8308_v23  ;;  %v8381_v21 = vld [vmem:[%s10960_s3 + $0x20] sm:$0xff]   ;;  %v8383_v23 = vld [vmem:[%s10960_s3 + $0x68] sm:$0xff]  }
 0x2e9   :  { %v8382_v22 = vld [vmem:[%s10960_s3 + $0xa0] sm:$0xff]  }
 0x2eb   :  { %5273 = vmatpush1.bf16.msra.mxu0 %v8303_v24  ;;  %5806 = vmatpush1.bf16.msra.mxu1 %v8306_v25  ;;  %v8384_v24 = vld [vmem:[%s10960_s3 + $0xe8] sm:$0xff]  }
 0x2ec   :  { %5274 = vmatprep.subr.bf16.mxu0 %v8311_v26  ;;  %5807 = vmatprep.subr.bf16.mxu1 %v8314_v27  ;;  %v8385_v25 = vld [vmem:[%s10960_s3 + $0x28] sm:$0xff]   ;;  %v8387_v27 = vld [vmem:[%s10960_s3 + $0x70] sm:$0xff]  }
 0x2ed   :  { %v8386_v26 = vld [vmem:[%s10960_s3 + $0xa8] sm:$0xff]  }
 0x2ef   :  { %5275 = vmatpush1.bf16.msra.mxu0 %v8309_v28  ;;  %5808 = vmatpush1.bf16.msra.mxu1 %v8312_v29  ;;  %v8388_v28 = vld [vmem:[%s10960_s3 + $0xf0] sm:$0xff]  }
 0x2f0   :  { %5276 = vmatprep.subr.bf16.mxu0 %v8317_v30  ;;  %5809 = vmatprep.subr.bf16.mxu1 %v8320_v31  ;;  %v8389_v29 = vld [vmem:[%s10960_s3 + $0x30] sm:$0xff]   ;;  %v8391_v31 = vld [vmem:[%s10960_s3 + $0x78] sm:$0xff]  }
 0x2f1   :  { %v8390_v30 = vld [vmem:[%s10960_s3 + $0xb0] sm:$0xff]  }
 0x2f3   :  { %5277 = vmatpush1.bf16.msra.mxu0 %v8315_v32  ;;  %5810 = vmatpush1.bf16.msra.mxu1 %v8318_v33  ;;  %v8392_v32 = vld [vmem:[%s10960_s3 + $0xf8] sm:$0xff]  }
 0x2f4   :  { %5278 = vmatprep.subr.bf16.mxu0 %v8323_v34  ;;  %5811 = vmatprep.subr.bf16.mxu1 %v8326_v35  ;;  %v8393_v33 = vld [vmem:[%s10960_s3 + $0x38] sm:$0xff]   ;;  %v857_v35 = vlaneseq }
 0x2f5   :  { %v8394_v34 = vld [vmem:[%s10960_s3 + $0xb8] sm:$0xff]  }
 0x2f7   :  { %5279 = vmatpush1.bf16.msra.mxu0 %v8321_v36  ;;  %5812 = vmatpush1.bf16.msra.mxu1 %v8324_v37  ;;  %v858_v36 = vshrl.u32 %v857_v35, 7 }
 0x2f8   :  { %5280 = vmatprep.subr.bf16.mxu0 %v8329_v38  ;;  %5813 = vmatprep.subr.bf16.mxu1 %v8332_v39  ;;  %v855_v39 = vld [vmem:[%s10961_s2] sm:$0xf] }
 0x2f9   :  { %v859_v37 = vsub.s32 0, %v858_v36  ;;  %v867_v38 = vsub.s32 2, %v858_v36 }
 0x2fb   :  { %5281 = vmatpush1.bf16.msra.mxu0 %v8327_v40  ;;  %5814 = vmatpush1.bf16.msra.mxu1 %v8330_v41  ;;  %v863_v40 = vsub.s32 1, %v858_v36  ;;  %v871_v41 = vsub.s32 3, %v858_v36 }
 0x2fc   :  { %5282 = vmatprep.subr.bf16.mxu0 %v8335_v42  ;;  %5815 = vmatprep.subr.bf16.mxu1 %v8338_v43  ;;  %v860_v42 = vrot.slane %v855_v39, %v859_v37  ;;  %v868_v43 = vrot.slane %v855_v39, %v867_v38 }
 0x2ff   :  { %5283 = vmatpush1.bf16.msra.mxu0 %v8333_v44  ;;  %5816 = vmatpush1.bf16.msra.mxu1 %v8336_v45  ;;  %v864_v44 = vrot.slane %v855_v39, %v863_v40  ;;  %v872_v45 = vrot.slane %v855_v39, %v871_v41 }
 0x300   :  { %5293 = vmatprep.subr.bf16.mxu0 %v8341_v47  ;;  %5826 = vmatprep.subr.bf16.mxu1 %v8344_v48 }
 0x302   :  { %5285 = vmatmul.mubr.bf16.vlgmr.msra.gmra.mrb[0].mxu0 %v68_v49  ;;  %5818 = vmatmul.mubr.bf16.vlgmr.msra.gmra.mrb[0].mxu1 %v68_v49 }
 0x303   :  { %5294 = vmatpush1.bf16.msra.mxu0 %v8339_v50  ;;  %5827 = vmatpush1.bf16.msra.mxu1 %v8342_v51 }
 0x304   :  { %5295 = vmatprep.subr.bf16.mxu0 %v8347_v52  ;;  %5828 = vmatprep.subr.bf16.mxu1 %v8350_v53 }
 0x305   :  { %5325 = vmatprep.mubr.bf16.mxu0 %v8395_v58  ;;  %5858 = vmatprep.mubr.bf16.mxu1 %v8395_v58 }
 0x307   :  { %5296 = vmatpush1.bf16.msra.mxu0 %v8345_v54  ;;  %5829 = vmatpush1.bf16.msra.mxu1 %v8348_v55 }
 0x308   :  { %5297 = vmatprep.subr.bf16.mxu0 %v8353_v56  ;;  %5830 = vmatprep.subr.bf16.mxu1 %v8356_v57 }
 0x30b   :  { %5298 = vmatpush1.bf16.msra.mxu0 %v8351_v59  ;;  %5831 = vmatpush1.bf16.msra.mxu1 %v8354_v60 }
 0x30c   :  { %5299 = vmatprep.subr.bf16.mxu0 %v8359_v61  ;;  %5832 = vmatprep.subr.bf16.mxu1 %v8362_v62 }
 0x30f   :  { %5300 = vmatpush1.bf16.msra.mxu0 %v8357_v63  ;;  %5833 = vmatpush1.bf16.msra.mxu1 %v8360_v0 }
 0x310   :  { %7042 = vmatprep.subr.bf16.mxu0 %v8363_v2  ;;  %7064 = vmatprep.subr.bf16.mxu1 %v8364_v3 }
 0x312   :  { %7007 = vmatmul.mubr.msk.bf16.vlgmr.msra.gmra.mrb[0].mxu0 %vm4797_vm0, %v70_v4  ;;  %7008 = vmatmul.mubr.msk.bf16.vlgmr.msra.gmra.mrb[0].mxu1 %vm4797_vm0, %v70_v4  ;;  %v7009_v4 = vld [vmem:[%s10962_s4] ss:$0 sm:$0xff] }
 0x313   :  { %7043 = vmatpush3.bf16.msra.mxu0 %v8365_v5  ;;  %7065 = vmatpush3.bf16.msra.mxu1 %v8366_v6 }
 0x314   :  { %7044 = vmatprep.subr.bf16.mxu0 %v8367_v7  ;;  %7066 = vmatprep.subr.bf16.mxu1 %v8368_v8 }
 0x317   :  { %7045 = vmatpush3.bf16.msra.mxu0 %v8369_v9  ;;  %7067 = vmatpush3.bf16.msra.mxu1 %v8370_v10 }
 0x318   :  { %7046 = vmatprep.subr.bf16.mxu0 %v8371_v11  ;;  %7068 = vmatprep.subr.bf16.mxu1 %v8372_v12 }
 0x31b   :  { %7047 = vmatpush3.bf16.msra.mxu0 %v8373_v13  ;;  %7069 = vmatpush3.bf16.msra.mxu1 %v8374_v14 }
 0x31c   :  { %7048 = vmatprep.subr.bf16.mxu0 %v8375_v15  ;;  %7070 = vmatprep.subr.bf16.mxu1 %v8376_v16 }
 0x31f   :  { %7049 = vmatpush3.bf16.msra.mxu0 %v8377_v17  ;;  %7071 = vmatpush3.bf16.msra.mxu1 %v8378_v18 }
 0x320   :  { %7050 = vmatprep.subr.bf16.mxu0 %v8379_v19  ;;  %7072 = vmatprep.subr.bf16.mxu1 %v8380_v20 }
 0x323   :  { %7051 = vmatpush3.bf16.msra.mxu0 %v8381_v21  ;;  %7073 = vmatpush3.bf16.msra.mxu1 %v8382_v22 }
 0x324   :  { %7052 = vmatprep.subr.bf16.mxu0 %v8383_v23  ;;  %7074 = vmatprep.subr.bf16.mxu1 %v8384_v24 }
 0x327   :  { %7053 = vmatpush3.bf16.msra.mxu0 %v8385_v25  ;;  %7075 = vmatpush3.bf16.msra.mxu1 %v8386_v26 }
 0x328   :  { %7054 = vmatprep.subr.bf16.mxu0 %v8387_v27  ;;  %7076 = vmatprep.subr.bf16.mxu1 %v8388_v28 }
 0x32b   :  { %7055 = vmatpush3.bf16.msra.mxu0 %v8389_v29  ;;  %7077 = vmatpush3.bf16.msra.mxu1 %v8390_v30 }
 0x32c   :  { %7056 = vmatprep.subr.bf16.mxu0 %v8391_v31  ;;  %7078 = vmatprep.subr.bf16.mxu1 %v8392_v32 }
 0x32f   :  { %7057 = vmatpush3.bf16.msra.mxu0 %v8393_v33  ;;  %7079 = vmatpush3.bf16.msra.mxu1 %v8394_v34 }
 0x3e5   :  { %v5327_v46 = vpop.f32.mrb[0].mxu0  ;;  %v5860_v47 = vpop.f32.mrb[0].mxu1 }
 0x3e6   :  { %v7086_v48 = vadd.f32 %v5327_v46, %v860_v42  ;;  %v7088_v49 = vadd.f32 %v5860_v47, %v868_v43  ;;  %v5329_v50 = vpop.f32.mrb[1].mxu0  ;;  %v5862_v51 = vpop.f32.mrb[1].mxu1 }
 0x3e7   :  { %v7087_v52 = vadd.f32 %v5329_v50, %v864_v44  ;;  %v7089_v53 = vadd.f32 %v5862_v51, %v872_v45  ;;  %v5331_v54 = vpop.f32.mrb[2].mxu0  ;;  %v5864_v55 = vpop.f32.mrb[2].mxu1 }
 0x3e8   :  { %v5867_v56 = vmax.f32 %v7086_v48, 0.0  ;;  %v5869_v57 = vmax.f32 %v7088_v49, 0.0  ;;  %v5332_v58 = vpop.f32.mrb[3].mxu0  ;;  %v5865_v59 = vpop.f32.mrb[3].mxu1 }
 0x3e9   :  { %v5868_v60 = vmax.f32 %v7087_v52, 0.0  ;;  %v5870_v61 = vmax.f32 %v7089_v53, 0.0 }
 0x3ea   :  { %v5871_v0 = vpack.c.bf16 %v5867_v56, %v5867_v56  ;;  %v5873_v1 = vpack.c.bf16 %v5869_v57, %v5869_v57 }
 0x3eb   :  { %v5872_v62 = vpack.c.bf16 %v5868_v60, %v5868_v60  ;;  %v5874_v63 = vpack.c.bf16 %v5870_v61, %v5870_v61 }
 0x3ed   :  { %6170 = vmatprep.mubr.bf16.mxu0 %v5872_v62  ;;  %6210 = vmatprep.mubr.bf16.mxu1 %v5874_v63 }
 0x3ee   :  { %6171 = vmatmul.mubr.bf16.vlgmr.msra.gmra.mrb[4].mxu0 %v5871_v0  ;;  %6211 = vmatmul.mubr.bf16.vlgmr.msra.gmra.mrb[4].mxu1 %v5873_v1 }
 0x4c1   :  { %v7058_v2 = vpop.f32.mrb[4].mxu0  ;;  %v7080_v3 = vpop.f32.mrb[4].mxu1 }
 0x4c2   :  { %v7059_v5 = vpop.f32.mrb[5].mxu0  ;;  %v7081_v6 = vpop.f32.mrb[5].mxu1 }
 0x4c3   :  { %v7060_v7 = vadd.f32 %v7059_v5, %v7058_v2  ;;  %v7082_v8 = vadd.f32 %v7081_v6, %v7080_v3  ;;  %v7061_v9 = vpop.f32.mrb[6].mxu0  ;;  %v7083_v10 = vpop.f32.mrb[6].mxu1 }
 0x4c4   :  { %v7062_v11 = vpop.f32.mrb[7].mxu0  ;;  %v7084_v12 = vpop.f32.mrb[7].mxu1 }
 0x4c5   :  { %v6173_v13 = vadd.f32 %v7060_v7, %v7009_v4 }
 0x4c7   :  { %v6213_v14 = vadd.f32 %v7082_v8, %v6173_v13 }
 0x4c9   :  { %6218 = vst [vmem:[%s10963_s5] sm:$0xff] %v6213_v14 }

</bundles_post_ra>
